<compile_context>
chip_gen: v7x
topology: tpu7x:2x2x1
jax: 0.10.0
libtpu: 0.0.40
codegen_flags: <defaults>
</compile_context>

<pallas_src>
import jax
import jax.numpy as jnp
from jax import lax
from jax.experimental import pallas as pl
from jax.experimental.pallas import tpu as pltpu


# =============================================================================
# small in-kernel helpers
# =============================================================================

def _dot2d(a_bf16, b_bf16):
    """2-D matmul, bf16 operands, f32 accumulation on the MXU."""
    return lax.dot_general(
        a_bf16, b_bf16,
        dimension_numbers=(((1,), (0,)), ((), ())),
        preferred_element_type=jnp.float32)


def _softmax_lastdim(s):
    """f32 softmax over the last (lane) dim; divide moved to the EUP."""
    m = jnp.max(s, axis=-1, keepdims=True)
    p = jnp.exp(s - m)
    return p * pl.reciprocal(jnp.sum(p, axis=-1, keepdims=True), approx=True)


# =============================================================================
# Kernel 1: direct 3x3 conv (stride 1, pad 1) with fused bias / ReLU / residual
# =============================================================================

def _make_conv3x3_kernel(H, W, add_residual, apply_relu):
    def kernel(xp_ref, w_ref, b_ref, *rest):
        if add_residual:
            res_ref, o_ref = rest
        else:
            (o_ref,) = rest
        cout = o_ref.shape[-1]
        xp = xp_ref[0].astype(jnp.bfloat16)                      # (H+2, W+2, Cin)
        acc = jnp.zeros((H * W, cout), jnp.float32)
        for ky in range(3):                                       # 9 taps, unrolled
            for kx in range(3):
                tap = xp[ky:ky + H, kx:kx + W, :]                 # (H, W, Cin)
                tap2 = tap.reshape(H * W, tap.shape[-1])
                acc = acc + _dot2d(tap2, w_ref[ky * 3 + kx])
        out = acc + b_ref[...]
        if add_residual:
            out = out + res_ref[0]
        if apply_relu:
            out = jnp.maximum(out, 0.0)
        o_ref[0] = out
    return kernel


def conv3x3(x_nhwc, w9, b, residual=None, relu=False):
    """x_nhwc: (B,H,W,Cin); w9: (9,Cin,Cout) with tap = ky*3+kx (== torch w[:,:,ky,kx].T)."""
    B, H, W, Cin = x_nhwc.shape
    Cout = w9.shape[-1]
    xp = jnp.pad(x_nhwc, ((0, 0), (1, 1), (1, 1), (0, 0)))
    inputs = [xp, w9.astype(jnp.bfloat16), b.reshape(1, Cout)]
    in_specs = [
        pl.BlockSpec((1, H + 2, W + 2, Cin), lambda i: (i, 0, 0, 0)),
        pl.BlockSpec((9, Cin, Cout), lambda i: (0, 0, 0)),        # resident weights
        pl.BlockSpec((1, Cout), lambda i: (0, 0)),
    ]
    if residual is not None:
        inputs.append(residual.reshape(B, H * W, Cin))
        in_specs.append(pl.BlockSpec((1, H * W, Cin), lambda i: (i, 0, 0)))
    out = pl.pallas_call(
        _make_conv3x3_kernel(H, W, residual is not None, relu),
        out_shape=jax.ShapeDtypeStruct((B, H * W, Cout), jnp.float32),
        grid=(B,),
        in_specs=in_specs,
        out_specs=pl.BlockSpec((1, H * W, Cout), lambda i: (i, 0, 0)),
        compiler_params=pltpu.CompilerParams(dimension_semantics=("parallel",)),
    )(*inputs)
    return out.reshape(B, H, W, Cout)


# =============================================================================
# Kernel 2: fused DomainEmbeding (KV projection + cross-attention, all regions)
# =============================================================================
# TODO(synk): LinearProjection internals (and its `ratio` arg) are not in the
# reference source; implemented as standard per-head linear K/V projections.

def _make_domain_emb_kernel(num_heads, query_size):
    def kernel(x_ref, wk_ref, wv_ref, bk_ref, bv_ref, q_ref, o_ref):
        gb, n, c = x_ref.shape
        d = c // num_heads
        x2 = x_ref[...].reshape(gb * n, c).astype(jnp.bfloat16)
        for h in range(num_heads):                                # static, unrolled
            kh = (_dot2d(x2, wk_ref[h]) + bk_ref[h]).reshape(gb, n, d)
            vh = (_dot2d(x2, wv_ref[h]) + bv_ref[h]).reshape(gb, n, d)
            qh = jnp.broadcast_to(q_ref[h][None],
                                  (gb, query_size, d)).astype(jnp.bfloat16)
            s = jnp.einsum('bqd,bkd->bqk', qh, kh.astype(jnp.bfloat16),
                           preferred_element_type=jnp.float32)    # (gb, q, n)
            p_attn = _softmax_lastdim(s)                          # no 1/sqrt(d): ref has none
            oh = jnp.einsum('bqk,bkd->bqd', p_attn.astype(jnp.bfloat16),
                            vh.astype(jnp.bfloat16),
                            preferred_element_type=jnp.float32)   # (gb, q, d)
            o_ref[:, :, h * d:(h + 1) * d] = oh
    return kernel


def domain_embedding(x_tok, p, *, num_heads, query_size, group_block=8):
    G, N, C = x_tok.shape
    d = C // num_heads
    gb = group_block if G % group_block == 0 else G
    return pl.pallas_call(
        _make_domain_emb_kernel(num_heads, query_size),
        out_shape=jax.ShapeDtypeStruct((G, query_size, C), jnp.float32),
        grid=(G // gb,),
        in_specs=[
            pl.BlockSpec((gb, N, C), lambda i: (i, 0, 0)),
            pl.BlockSpec((num_heads, C, d), lambda i: (0, 0, 0)),
            pl.BlockSpec((num_heads, C, d), lambda i: (0, 0, 0)),
            pl.BlockSpec((num_heads, 1, d), lambda i: (0, 0, 0)),
            pl.BlockSpec((num_heads, 1, d), lambda i: (0, 0, 0)),
            pl.BlockSpec((num_heads, query_size, d), lambda i: (0, 0, 0)),  # resident dq
        ],
        out_specs=pl.BlockSpec((gb, query_size, C), lambda i: (i, 0, 0)),
        compiler_params=pltpu.CompilerParams(dimension_semantics=("parallel",)),
    )(x_tok,
      p["de_wk"].astype(jnp.bfloat16), p["de_wv"].astype(jnp.bfloat16),
      p["de_bk"], p["de_bv"], p["dq"])


# =============================================================================
# Kernel 3: fused IntraDomainAttention (Q/K/V projection + attention, all regions)
# =============================================================================

def _make_intra_attn_kernel(num_heads):
    def kernel(x_ref, g_ref, wq_ref, bq_ref, wk_ref, bk_ref, wv_ref, bv_ref, o_ref):
        gb, n, c = x_ref.shape
        nk = g_ref.shape[1]
        d = c // num_heads
        x2 = x_ref[...].reshape(gb * n, c).astype(jnp.bfloat16)
        g2 = g_ref[...].reshape(gb * nk, c).astype(jnp.bfloat16)
        for h in range(num_heads):
            qh = (_dot2d(x2, wq_ref[h]) + bq_ref[h]).reshape(gb, n, d)
            kh = (_dot2d(g2, wk_ref[h]) + bk_ref[h]).reshape(gb, nk, d)
            vh = (_dot2d(g2, wv_ref[h]) + bv_ref[h]).reshape(gb, nk, d)
            s = jnp.einsum('bqd,bkd->bqk', qh.astype(jnp.bfloat16),
                           kh.astype(jnp.bfloat16),
                           preferred_element_type=jnp.float32)    # (gb, n, nk)
            p_attn = _softmax_lastdim(s)
            oh = jnp.einsum('bqk,bkd->bqd', p_attn.astype(jnp.bfloat16),
                            vh.astype(jnp.bfloat16),
                            preferred_element_type=jnp.float32)   # (gb, n, d)
            o_ref[:, :, h * d:(h + 1) * d] = oh
    return kernel


def intra_domain_attention(x_tok, g_tok, p, *, num_heads, group_block=8):
    G, N, C = x_tok.shape
    Nk = g_tok.shape[1]
    d = C // num_heads
    gb = group_block if G % group_block == 0 else G
    return pl.pallas_call(
        _make_intra_attn_kernel(num_heads),
        out_shape=jax.ShapeDtypeStruct((G, N, C), jnp.float32),
        grid=(G // gb,),
        in_specs=[
            pl.BlockSpec((gb, N, C), lambda i: (i, 0, 0)),
            pl.BlockSpec((gb, Nk, C), lambda i: (i, 0, 0)),
            pl.BlockSpec((num_heads, C, d), lambda i: (0, 0, 0)),
            pl.BlockSpec((num_heads, 1, d), lambda i: (0, 0, 0)),
            pl.BlockSpec((num_heads, C, d), lambda i: (0, 0, 0)),
            pl.BlockSpec((num_heads, 1, d), lambda i: (0, 0, 0)),
            pl.BlockSpec((num_heads, C, d), lambda i: (0, 0, 0)),
            pl.BlockSpec((num_heads, 1, d), lambda i: (0, 0, 0)),
        ],
        out_specs=pl.BlockSpec((gb, N, C), lambda i: (i, 0, 0)),
        compiler_params=pltpu.CompilerParams(dimension_semantics=("parallel",)),
    )(x_tok, g_tok,
      p["ia_wq"].astype(jnp.bfloat16), p["ia_bq"],
      p["ia_wk"].astype(jnp.bfloat16), p["ia_bk"],
      p["ia_wv"].astype(jnp.bfloat16), p["ia_bv"])


# =============================================================================
# Kernel 4: fused GAT (QKV projection + self-attention + output projection)
# =============================================================================
# TODO(synk): GAT source not provided; synthesized as multi-head self-attention
# over the subdomain-grid tokens with QKV + output linear projections.

def _make_gat_kernel(num_heads):
    def kernel(t_ref, wq_ref, bq_ref, wk_ref, bk_ref, wv_ref, bv_ref,
               wo_ref, bo_ref, o_ref):
        _, ntok, cg = t_ref.shape
        t2 = t_ref[0].astype(jnp.bfloat16)                        # (ntok, cg)
        acc = jnp.zeros((ntok, cg), jnp.float32)
        for h in range(num_heads):
            qh = _dot2d(t2, wq_ref[h]) + bq_ref[h]                # (ntok, dg) f32
            kh = _dot2d(t2, wk_ref[h]) + bk_ref[h]
            vh = _dot2d(t2, wv_ref[h]) + bv_ref[h]
            s = lax.dot_general(qh.astype(jnp.bfloat16), kh.astype(jnp.bfloat16),
                                dimension_numbers=(((1,), (1,)), ((), ())),
                                preferred_element_type=jnp.float32)  # (ntok, ntok)
            p_attn = _softmax_lastdim(s)
            ah = _dot2d(p_attn.astype(jnp.bfloat16), vh.astype(jnp.bfloat16))
            # output projection folded per head: concat_h(ah) @ Wo == sum_h ah @ Wo[h]
            acc = acc + _dot2d(ah.astype(jnp.bfloat16), wo_ref[h])
        o_ref[0] = acc + bo_ref[...]
    return kernel


def gat(tokens, p, *, num_heads):
    B, Ntok, Cg = tokens.shape
    dg = Cg // num_heads
    return pl.pallas_call(
        _make_gat_kernel(num_heads),
        out_shape=jax.ShapeDtypeStruct((B, Ntok, Cg), jnp.float32),
        grid=(B,),
        in_specs=[
            pl.BlockSpec((1, Ntok, Cg), lambda i: (i, 0, 0)),
            pl.BlockSpec((num_heads, Cg, dg), lambda i: (0, 0, 0)),
            pl.BlockSpec((num_heads, 1, dg), lambda i: (0, 0, 0)),
            pl.BlockSpec((num_heads, Cg, dg), lambda i: (0, 0, 0)),
            pl.BlockSpec((num_heads, 1, dg), lambda i: (0, 0, 0)),
            pl.BlockSpec((num_heads, Cg, dg), lambda i: (0, 0, 0)),
            pl.BlockSpec((num_heads, 1, dg), lambda i: (0, 0, 0)),
            pl.BlockSpec((num_heads, dg, Cg), lambda i: (0, 0, 0)),
            pl.BlockSpec((1, Cg), lambda i: (0, 0)),
        ],
        out_specs=pl.BlockSpec((1, Ntok, Cg), lambda i: (i, 0, 0)),
        compiler_params=pltpu.CompilerParams(dimension_semantics=("parallel",)),
    )(tokens,
      p["gat_wq"].astype(jnp.bfloat16), p["gat_bq"],
      p["gat_wk"].astype(jnp.bfloat16), p["gat_bk"],
      p["gat_wv"].astype(jnp.bfloat16), p["gat_bv"],
      p["gat_wo"].astype(jnp.bfloat16), p["gat_bo"])


# =============================================================================
# GABBlock forward
# =============================================================================

def gab_block_forward(x, p, *, num_heads, query_size, n_subdomain):
    B, C, H, W = x.shape
    x_nhwc = jnp.transpose(x, (0, 2, 3, 1))

    # SingleConv = Conv3x3 + BN + ReLU (fused in the conv kernel).
    # TODO(synk): SingleConv/BN source not provided; BN treated as identity (eval stats).
    xc = conv3x3(x_nhwc, p["conv_w"], p["conv_b"], relu=True)     # (B, H, W, C)

    # TODO(synk): subdomainSplit/subdomainPartition/subdomainMerge not in source;
    # implemented as quadrant split + non-overlapping window partition/merge.
    nh = nw = n_subdomain // 2
    hh, hw = H // 2, W // 2
    sh, sw = hh // nh, hw // nw
    npix = sh * sw
    quad_offsets = ((0, 0), (0, hw), (hh, 0), (hh, hw))

    toks = []
    for hs, ws in quad_offsets:
        quad = xc[:, hs:hs + hh, ws:ws + hw, :]                   # (B, hh, hw, C)
        part = quad.reshape(B, nh, sh, nw, sw, C)
        part = jnp.transpose(part, (0, 1, 3, 2, 4, 5))            # (B, nh, nw, sh, sw, C)
        toks.append(part.reshape(B * nh * nw, npix, C))
    x_tok = jnp.concatenate(toks, axis=0)                         # (4*B*nh*nw, npix, C)
    Gr = B * nh * nw

    # ---- fused domain embedding over all regions in a single pallas_call ----
    emb = domain_embedding(x_tok, p, num_heads=num_heads, query_size=query_size)

    subdomains = []
    for r in range(4):
        e = jnp.transpose(emb[r * Gr:(r + 1) * Gr], (0, 2, 1))    # (B*nh*nw, C, q)
        subdomains.append(e.reshape(B, nh, nw, C, query_size))
    top = jnp.concatenate([subdomains[0], subdomains[1]], axis=2)
    btm = jnp.concatenate([subdomains[2], subdomains[3]], axis=2)
    xg = jnp.concatenate([top, btm], axis=1)                      # (B, gh, gw, C, q)
    _, gh, gw, c, n_q = xg.shape
    xg = jnp.transpose(xg, (0, 4, 3, 2, 1))                       # mirrors PyTorch permute
    gat_in = xg.reshape(B, n_q * c, gh, gw)

    # ---- fused GAT over the subdomain-grid tokens ----
    Cg = n_q * c
    gat_tok = jnp.transpose(gat_in.reshape(B, Cg, gh * gw), (0, 2, 1))   # (B, gh*gw, Cg)
    gat_out_tok = gat(gat_tok, p, num_heads=num_heads)
    gat_out = jnp.transpose(gat_out_tok, (0, 2, 1)).reshape(B, Cg, gh, gw)
    inter_att = gat_out.reshape(B, c, query_size, n_subdomain, n_subdomain)

    # per-region global tokens, stacked in the same group order as x_tok
    gts = []
    for r in range(4):
        rs = slice(0, nh) if r < 2 else slice(nh, 2 * nh)
        cs = slice(0, nw) if r % 2 == 0 else slice(nw, 2 * nw)
        gt = inter_att[:, :, :, rs, cs]                           # (B, C, q, nh, nw)
        gt = jnp.transpose(gt, (0, 3, 4, 2, 1)).reshape(B * nh * nw, query_size, C)
        gts.append(gt)
    g_tok = jnp.concatenate(gts, axis=0)                          # (4*B*nh*nw, q, C)

    # ---- fused intra-domain attention over all regions ----
    att = intra_domain_attention(x_tok, g_tok, p, num_heads=num_heads)   # (G, npix, C)

    # merge windows back into the full feature map (NHWC)
    quads = []
    for r in range(4):
        a = att[r * Gr:(r + 1) * Gr].reshape(B, nh, nw, sh, sw, C)
        a = jnp.transpose(a, (0, 1, 3, 2, 4, 5)).reshape(B, hh, hw, C)
        quads.append(a)
    top = jnp.concatenate([quads[0], quads[1]], axis=2)
    btm = jnp.concatenate([quads[2], quads[3]], axis=2)
    merged = jnp.concatenate([top, btm], axis=1)                  # (B, H, W, C)

    # out_proj conv with the residual add fused into the kernel
    out_nhwc = conv3x3(merged, p["out_w"], p["out_b"], residual=x_nhwc)
    return jnp.transpose(out_nhwc, (0, 3, 1, 2))


# =============================================================================
# Deterministic parameter init (stored directly in the packed per-head layouts)
# =============================================================================

def init_params(key, C, num_heads, query_size):
    d = C // num_heads
    Cg = query_size * C
    dg = Cg // num_heads
    ks = jax.random.split(key, 14)
    s = 0.05
    f32 = jnp.float32
    return dict(
        # conv weights tap-major: index ky*3+kx holds torch_w[:, :, ky, kx].T  (Cin, Cout)
        conv_w=jax.random.normal(ks[0], (9, C, C), f32) * s,
        conv_b=jax.random.normal(ks[1], (C,), f32) * s,
        # DomainEmbeding: learned query + per-head K/V projections
        dq=jax.random.normal(ks[2], (num_heads, query_size, d), f32),
        de_wk=jax.random.normal(ks[3], (num_heads, C, d), f32) * s,
        de_wv=jax.random.normal(ks[4], (num_heads, C, d), f32) * s,
        de_bk=jnp.zeros((num_heads, 1, d), f32),
        de_bv=jnp.zeros((num_heads, 1, d), f32),
        # IntraDomainAttention: per-head Q (from x) and K/V (from global tokens)
        ia_wq=jax.random.normal(ks[5], (num_heads, C, d), f32) * s,
        ia_bq=jnp.zeros((num_heads, 1, d), f32),
        ia_wk=jax.random.normal(ks[6], (num_heads, C, d), f32) * s,
        ia_bk=jnp.zeros((num_heads, 1, d), f32),
        ia_wv=jax.random.normal(ks[7], (num_heads, C, d), f32) * s,
        ia_bv=jnp.zeros((num_heads, 1, d), f32),
        # GAT: per-head QKV + output projection (rows split per head)
        gat_wq=jax.random.normal(ks[8], (num_heads, Cg, dg), f32) * s,
        gat_bq=jnp.zeros((num_heads, 1, dg), f32),
        gat_wk=jax.random.normal(ks[9], (num_heads, Cg, dg), f32) * s,
        gat_bk=jnp.zeros((num_heads, 1, dg), f32),
        gat_wv=jax.random.normal(ks[10], (num_heads, Cg, dg), f32) * s,
        gat_bv=jnp.zeros((num_heads, 1, dg), f32),
        gat_wo=jax.random.normal(ks[11], (num_heads, dg, Cg), f32) * s,
        gat_bo=jnp.zeros((1, Cg), f32),
        out_w=jax.random.normal(ks[12], (9, C, C), f32) * s,
        out_b=jax.random.normal(ks[13], (C,), f32) * s,
    )


if __name__ == "__main__":
    # batch=2, in_channels=32, H=W=16, num_heads=4, query_size=4, n_subdomains=4
    B, C, H, W = 2, 32, 16, 16
    num_heads, query_size, n_subdomain = 4, 4, 4

    key = jax.random.PRNGKey(0)
    pkey, xkey = jax.random.split(key)
    params = init_params(pkey, C, num_heads, query_size)
    x = jax.random.normal(xkey, (B, C, H, W), jnp.float32)

    fwd = jax.jit(lambda xx, pp: gab_block_forward(
        xx, pp, num_heads=num_heads, query_size=query_size, n_subdomain=n_subdomain))
    y = jax.block_until_ready(fwd(x, params))
    assert y.shape == (B, C, H, W)
    assert bool(jnp.all(jnp.isfinite(y)))
    print("KERNEL_OK")
</pallas_src>

<mosaic_0001>
module attributes {stable_mosaic.version = 11 : i64} {
  func.func @kernel(%arg0: i32, %arg1: memref<1x18x18x32xf32, #tpu.memory_space<vmem>>, %arg2: memref<9x32x32xbf16, #tpu.memory_space<vmem>>, %arg3: memref<1x32xf32, #tpu.memory_space<vmem>>, %arg4: memref<1x256x32xf32, #tpu.memory_space<vmem>>) attributes {dimension_semantics = [#tpu.dimension_semantics<parallel>], iteration_bounds = array<i64: 2>, scalar_prefetch = 0 : i64, scratch_operands = 0 : i64, tpu.core_type = #tpu.core_type<tc>, window_params = [{transform_indices = @transform_0, window_bounds = array<i64: 1, 18, 18, 32>}, {pipeline_mode = #tpu.pipeline_mode<synchronous>, transform_indices = @transform_1, window_bounds = array<i64: 9, 32, 32>}, {pipeline_mode = #tpu.pipeline_mode<synchronous>, transform_indices = @transform_2, window_bounds = array<i64: 1, 32>}, {transform_indices = @transform_3, window_bounds = array<i64: 1, 256, 32>}]} {
    %c0 = arith.constant 0 : index
    %c0_0 = arith.constant 0 : index
    %c0_1 = arith.constant 0 : index
    %c0_2 = arith.constant 0 : index
    %0 = vector.load %arg1[%c0, %c0_0, %c0_1, %c0_2] : memref<1x18x18x32xf32, #tpu.memory_space<vmem>>, vector<1x18x18x32xf32>
    %1 = vector.shape_cast %0 : vector<1x18x18x32xf32> to vector<18x18x32xf32>
    %2 = arith.truncf %1 : vector<18x18x32xf32> to vector<18x18x32xbf16>
    %cst = arith.constant 0.000000e+00 : f32
    %3 = vector.broadcast %cst : f32 to vector<256x32xf32>
    %4 = vector.extract_strided_slice %2 {offsets = [0, 0, 0], sizes = [16, 16, 32], strides = [1, 1, 1]} : vector<18x18x32xbf16> to vector<16x16x32xbf16>
    %5 = vector.shape_cast %4 : vector<16x16x32xbf16> to vector<256x32xbf16>
    %c0_3 = arith.constant 0 : index
    %c0_4 = arith.constant 0 : index
    %c0_5 = arith.constant 0 : index
    %6 = vector.load %arg2[%c0_3, %c0_4, %c0_5] : memref<9x32x32xbf16, #tpu.memory_space<vmem>>, vector<1x32x32xbf16>
    %7 = vector.shape_cast %6 : vector<1x32x32xbf16> to vector<32x32xbf16>
    %cst_6 = arith.constant dense<0.000000e+00> : vector<256x32xf32>
    %8 = tpu.matmul %5, %7, %cst_6 {dimension_numbers = #tpu.dot_dimension_numbers<[1], [0], [0], [1], [0, 0, 1, 1], [], []>} : vector<256x32xbf16>, vector<32x32xbf16>, vector<256x32xf32> -> vector<256x32xf32>
    %9 = arith.addf %3, %8 : vector<256x32xf32>
    %10 = vector.extract_strided_slice %2 {offsets = [0, 1, 0], sizes = [16, 16, 32], strides = [1, 1, 1]} : vector<18x18x32xbf16> to vector<16x16x32xbf16>
    %11 = vector.shape_cast %10 : vector<16x16x32xbf16> to vector<256x32xbf16>
    %c1 = arith.constant 1 : index
    %c0_7 = arith.constant 0 : index
    %c0_8 = arith.constant 0 : index
    %12 = vector.load %arg2[%c1, %c0_7, %c0_8] : memref<9x32x32xbf16, #tpu.memory_space<vmem>>, vector<1x32x32xbf16>
    %13 = vector.shape_cast %12 : vector<1x32x32xbf16> to vector<32x32xbf16>
    %cst_9 = arith.constant dense<0.000000e+00> : vector<256x32xf32>
    %14 = tpu.matmul %11, %13, %cst_9 {dimension_numbers = #tpu.dot_dimension_numbers<[1], [0], [0], [1], [0, 0, 1, 1], [], []>} : vector<256x32xbf16>, vector<32x32xbf16>, vector<256x32xf32> -> vector<256x32xf32>
    %15 = arith.addf %9, %14 : vector<256x32xf32>
    %16 = vector.extract_strided_slice %2 {offsets = [0, 2, 0], sizes = [16, 16, 32], strides = [1, 1, 1]} : vector<18x18x32xbf16> to vector<16x16x32xbf16>
    %17 = vector.shape_cast %16 : vector<16x16x32xbf16> to vector<256x32xbf16>
    %c2 = arith.constant 2 : index
    %c0_10 = arith.constant 0 : index
    %c0_11 = arith.constant 0 : index
    %18 = vector.load %arg2[%c2, %c0_10, %c0_11] : memref<9x32x32xbf16, #tpu.memory_space<vmem>>, vector<1x32x32xbf16>
    %19 = vector.shape_cast %18 : vector<1x32x32xbf16> to vector<32x32xbf16>
    %cst_12 = arith.constant dense<0.000000e+00> : vector<256x32xf32>
    %20 = tpu.matmul %17, %19, %cst_12 {dimension_numbers = #tpu.dot_dimension_numbers<[1], [0], [0], [1], [0, 0, 1, 1], [], []>} : vector<256x32xbf16>, vector<32x32xbf16>, vector<256x32xf32> -> vector<256x32xf32>
    %21 = arith.addf %15, %20 : vector<256x32xf32>
    %22 = vector.extract_strided_slice %2 {offsets = [1, 0, 0], sizes = [16, 16, 32], strides = [1, 1, 1]} : vector<18x18x32xbf16> to vector<16x16x32xbf16>
    %23 = vector.shape_cast %22 : vector<16x16x32xbf16> to vector<256x32xbf16>
    %c3 = arith.constant 3 : index
    %c0_13 = arith.constant 0 : index
    %c0_14 = arith.constant 0 : index
    %24 = vector.load %arg2[%c3, %c0_13, %c0_14] : memref<9x32x32xbf16, #tpu.memory_space<vmem>>, vector<1x32x32xbf16>
    %25 = vector.shape_cast %24 : vector<1x32x32xbf16> to vector<32x32xbf16>
    %cst_15 = arith.constant dense<0.000000e+00> : vector<256x32xf32>
    %26 = tpu.matmul %23, %25, %cst_15 {dimension_numbers = #tpu.dot_dimension_numbers<[1], [0], [0], [1], [0, 0, 1, 1], [], []>} : vector<256x32xbf16>, vector<32x32xbf16>, vector<256x32xf32> -> vector<256x32xf32>
    %27 = arith.addf %21, %26 : vector<256x32xf32>
    %28 = vector.extract_strided_slice %2 {offsets = [1, 1, 0], sizes = [16, 16, 32], strides = [1, 1, 1]} : vector<18x18x32xbf16> to vector<16x16x32xbf16>
    %29 = vector.shape_cast %28 : vector<16x16x32xbf16> to vector<256x32xbf16>
    %c4 = arith.constant 4 : index
    %c0_16 = arith.constant 0 : index
    %c0_17 = arith.constant 0 : index
    %30 = vector.load %arg2[%c4, %c0_16, %c0_17] : memref<9x32x32xbf16, #tpu.memory_space<vmem>>, vector<1x32x32xbf16>
    %31 = vector.shape_cast %30 : vector<1x32x32xbf16> to vector<32x32xbf16>
    %cst_18 = arith.constant dense<0.000000e+00> : vector<256x32xf32>
    %32 = tpu.matmul %29, %31, %cst_18 {dimension_numbers = #tpu.dot_dimension_numbers<[1], [0], [0], [1], [0, 0, 1, 1], [], []>} : vector<256x32xbf16>, vector<32x32xbf16>, vector<256x32xf32> -> vector<256x32xf32>
    %33 = arith.addf %27, %32 : vector<256x32xf32>
    %34 = vector.extract_strided_slice %2 {offsets = [1, 2, 0], sizes = [16, 16, 32], strides = [1, 1, 1]} : vector<18x18x32xbf16> to vector<16x16x32xbf16>
    %35 = vector.shape_cast %34 : vector<16x16x32xbf16> to vector<256x32xbf16>
    %c5 = arith.constant 5 : index
    %c0_19 = arith.constant 0 : index
    %c0_20 = arith.constant 0 : index
    %36 = vector.load %arg2[%c5, %c0_19, %c0_20] : memref<9x32x32xbf16, #tpu.memory_space<vmem>>, vector<1x32x32xbf16>
    %37 = vector.shape_cast %36 : vector<1x32x32xbf16> to vector<32x32xbf16>
    %cst_21 = arith.constant dense<0.000000e+00> : vector<256x32xf32>
    %38 = tpu.matmul %35, %37, %cst_21 {dimension_numbers = #tpu.dot_dimension_numbers<[1], [0], [0], [1], [0, 0, 1, 1], [], []>} : vector<256x32xbf16>, vector<32x32xbf16>, vector<256x32xf32> -> vector<256x32xf32>
    %39 = arith.addf %33, %38 : vector<256x32xf32>
    %40 = vector.extract_strided_slice %2 {offsets = [2, 0, 0], sizes = [16, 16, 32], strides = [1, 1, 1]} : vector<18x18x32xbf16> to vector<16x16x32xbf16>
    %41 = vector.shape_cast %40 : vector<16x16x32xbf16> to vector<256x32xbf16>
    %c6 = arith.constant 6 : index
    %c0_22 = arith.constant 0 : index
    %c0_23 = arith.constant 0 : index
    %42 = vector.load %arg2[%c6, %c0_22, %c0_23] : memref<9x32x32xbf16, #tpu.memory_space<vmem>>, vector<1x32x32xbf16>
    %43 = vector.shape_cast %42 : vector<1x32x32xbf16> to vector<32x32xbf16>
    %cst_24 = arith.constant dense<0.000000e+00> : vector<256x32xf32>
    %44 = tpu.matmul %41, %43, %cst_24 {dimension_numbers = #tpu.dot_dimension_numbers<[1], [0], [0], [1], [0, 0, 1, 1], [], []>} : vector<256x32xbf16>, vector<32x32xbf16>, vector<256x32xf32> -> vector<256x32xf32>
    %45 = arith.addf %39, %44 : vector<256x32xf32>
    %46 = vector.extract_strided_slice %2 {offsets = [2, 1, 0], sizes = [16, 16, 32], strides = [1, 1, 1]} : vector<18x18x32xbf16> to vector<16x16x32xbf16>
    %47 = vector.shape_cast %46 : vector<16x16x32xbf16> to vector<256x32xbf16>
    %c7 = arith.constant 7 : index
    %c0_25 = arith.constant 0 : index
    %c0_26 = arith.constant 0 : index
    %48 = vector.load %arg2[%c7, %c0_25, %c0_26] : memref<9x32x32xbf16, #tpu.memory_space<vmem>>, vector<1x32x32xbf16>
    %49 = vector.shape_cast %48 : vector<1x32x32xbf16> to vector<32x32xbf16>
    %cst_27 = arith.constant dense<0.000000e+00> : vector<256x32xf32>
    %50 = tpu.matmul %47, %49, %cst_27 {dimension_numbers = #tpu.dot_dimension_numbers<[1], [0], [0], [1], [0, 0, 1, 1], [], []>} : vector<256x32xbf16>, vector<32x32xbf16>, vector<256x32xf32> -> vector<256x32xf32>
    %51 = arith.addf %45, %50 : vector<256x32xf32>
    %52 = vector.extract_strided_slice %2 {offsets = [2, 2, 0], sizes = [16, 16, 32], strides = [1, 1, 1]} : vector<18x18x32xbf16> to vector<16x16x32xbf16>
    %53 = vector.shape_cast %52 : vector<16x16x32xbf16> to vector<256x32xbf16>
    %c8 = arith.constant 8 : index
    %c0_28 = arith.constant 0 : index
    %c0_29 = arith.constant 0 : index
    %54 = vector.load %arg2[%c8, %c0_28, %c0_29] : memref<9x32x32xbf16, #tpu.memory_space<vmem>>, vector<1x32x32xbf16>
    %55 = vector.shape_cast %54 : vector<1x32x32xbf16> to vector<32x32xbf16>
    %cst_30 = arith.constant dense<0.000000e+00> : vector<256x32xf32>
    %56 = tpu.matmul %53, %55, %cst_30 {dimension_numbers = #tpu.dot_dimension_numbers<[1], [0], [0], [1], [0, 0, 1, 1], [], []>} : vector<256x32xbf16>, vector<32x32xbf16>, vector<256x32xf32> -> vector<256x32xf32>
    %57 = arith.addf %51, %56 : vector<256x32xf32>
    %c0_31 = arith.constant 0 : index
    %c0_32 = arith.constant 0 : index
    %58 = vector.load %arg3[%c0_31, %c0_32] : memref<1x32xf32, #tpu.memory_space<vmem>>, vector<1x32xf32>
    %59 = vector.broadcast %58 : vector<1x32xf32> to vector<256x32xf32>
    %60 = arith.addf %57, %59 : vector<256x32xf32>
    %cst_33 = arith.constant 0.000000e+00 : f32
    %61 = vector.broadcast %cst_33 : f32 to vector<256x32xf32>
    %62 = arith.maximumf %60, %61 : vector<256x32xf32>
    %c0_34 = arith.constant 0 : index
    %c0_35 = arith.constant 0 : index
    %c0_36 = arith.constant 0 : index
    %63 = vector.load %arg4[%c0_34, %c0_35, %c0_36] : memref<1x256x32xf32, #tpu.memory_space<vmem>>, vector<1x256x32xf32>
    %64 = vector.shape_cast %63 : vector<1x256x32xf32> to vector<256x32xf32>
    %65 = vector.shape_cast %62 : vector<256x32xf32> to vector<1x256x32xf32>
    tpu.vector_store %arg4[%c0_34, %c0_35, %c0_36], %65 {strides = array<i32>} : memref<1x256x32xf32, #tpu.memory_space<vmem>>, vector<1x256x32xf32>,
    return
  }
  func.func @transform_0(%arg0: i32) -> (i32, i32, i32, i32) {
    %c0_i32 = arith.constant 0 : i32
    %c0_i32_0 = arith.constant 0 : i32
    %c0_i32_1 = arith.constant 0 : i32
    %c0_i32_2 = arith.constant 0 : i32
    return %arg0, %c0_i32, %c0_i32_0, %c0_i32_1 : i32, i32, i32, i32
  }
  func.func @transform_1(%arg0: i32) -> (i32, i32, i32) {
    %c0_i32 = arith.constant 0 : i32
    %c0_i32_0 = arith.constant 0 : i32
    %c0_i32_1 = arith.constant 0 : i32
    %c0_i32_2 = arith.constant 0 : i32
    return %c0_i32, %c0_i32_0, %c0_i32_1 : i32, i32, i32
  }
  func.func @transform_2(%arg0: i32) -> (i32, i32) {
    %c0_i32 = arith.constant 0 : i32
    %c0_i32_0 = arith.constant 0 : i32
    %c0_i32_1 = arith.constant 0 : i32
    return %c0_i32, %c0_i32_0 : i32, i32
  }
  func.func @transform_3(%arg0: i32) -> (i32, i32, i32) {
    %c0_i32 = arith.constant 0 : i32
    %c0_i32_0 = arith.constant 0 : i32
    %c0_i32_1 = arith.constant 0 : i32
    return %arg0, %c0_i32, %c0_i32_0 : i32, i32, i32
  }
}

module attributes {stable_mosaic.version = 11 : i64} {
  func.func @kernel(%arg0: i32, %arg1: memref<8x16x32xf32, #tpu.memory_space<vmem>>, %arg2: memref<4x32x8xbf16, #tpu.memory_space<vmem>>, %arg3: memref<4x32x8xbf16, #tpu.memory_space<vmem>>, %arg4: memref<4x1x8xf32, #tpu.memory_space<vmem>>, %arg5: memref<4x1x8xf32, #tpu.memory_space<vmem>>, %arg6: memref<4x4x8xf32, #tpu.memory_space<vmem>>, %arg7: memref<8x4x32xf32, #tpu.memory_space<vmem>>) attributes {dimension_semantics = [#tpu.dimension_semantics<parallel>], iteration_bounds = array<i64: 4>, scalar_prefetch = 0 : i64, scratch_operands = 0 : i64, tpu.core_type = #tpu.core_type<tc>, window_params = [{transform_indices = @transform_0, window_bounds = array<i64: 8, 16, 32>}, {pipeline_mode = #tpu.pipeline_mode<synchronous>, transform_indices = @transform_1, window_bounds = array<i64: 4, 32, 8>}, {pipeline_mode = #tpu.pipeline_mode<synchronous>, transform_indices = @transform_2, window_bounds = array<i64: 4, 32, 8>}, {pipeline_mode = #tpu.pipeline_mode<synchronous>, transform_indices = @transform_3, window_bounds = array<i64: 4, 1, 8>}, {pipeline_mode = #tpu.pipeline_mode<synchronous>, transform_indices = @transform_4, window_bounds = array<i64: 4, 1, 8>}, {pipeline_mode = #tpu.pipeline_mode<synchronous>, transform_indices = @transform_5, window_bounds = array<i64: 4, 4, 8>}, {transform_indices = @transform_6, window_bounds = array<i64: 8, 4, 32>}]} {
    %c0 = arith.constant 0 : index
    %c0_0 = arith.constant 0 : index
    %c0_1 = arith.constant 0 : index
    %0 = vector.load %arg1[%c0, %c0_0, %c0_1] : memref<8x16x32xf32, #tpu.memory_space<vmem>>, vector<8x16x32xf32>
    %1 = vector.shape_cast %0 : vector<8x16x32xf32> to vector<128x32xf32>
    %2 = arith.truncf %1 : vector<128x32xf32> to vector<128x32xbf16>
    %c0_2 = arith.constant 0 : index
    %c0_3 = arith.constant 0 : index
    %c0_4 = arith.constant 0 : index
    %3 = vector.load %arg2[%c0_2, %c0_3, %c0_4] : memref<4x32x8xbf16, #tpu.memory_space<vmem>>, vector<1x32x8xbf16>
    %4 = vector.shape_cast %3 : vector<1x32x8xbf16> to vector<32x8xbf16>
    %cst = arith.constant dense<0.000000e+00> : vector<128x8xf32>
    %5 = tpu.matmul %2, %4, %cst {dimension_numbers = #tpu.dot_dimension_numbers<[1], [0], [0], [1], [0, 0, 1, 1], [], []>} : vector<128x32xbf16>, vector<32x8xbf16>, vector<128x8xf32> -> vector<128x8xf32>
    %c0_5 = arith.constant 0 : index
    %c0_6 = arith.constant 0 : index
    %c0_7 = arith.constant 0 : index
    %6 = vector.load %arg4[%c0_5, %c0_6, %c0_7] : memref<4x1x8xf32, #tpu.memory_space<vmem>>, vector<1x1x8xf32>
    %7 = vector.shape_cast %6 : vector<1x1x8xf32> to vector<1x8xf32>
    %8 = vector.broadcast %7 : vector<1x8xf32> to vector<128x8xf32>
    %9 = arith.addf %5, %8 : vector<128x8xf32>
    %10 = vector.shape_cast %9 : vector<128x8xf32> to vector<8x16x8xf32>
    %c0_8 = arith.constant 0 : index
    %c0_9 = arith.constant 0 : index
    %c0_10 = arith.constant 0 : index
    %11 = vector.load %arg3[%c0_8, %c0_9, %c0_10] : memref<4x32x8xbf16, #tpu.memory_space<vmem>>, vector<1x32x8xbf16>
    %12 = vector.shape_cast %11 : vector<1x32x8xbf16> to vector<32x8xbf16>
    %cst_11 = arith.constant dense<0.000000e+00> : vector<128x8xf32>
    %13 = tpu.matmul %2, %12, %cst_11 {dimension_numbers = #tpu.dot_dimension_numbers<[1], [0], [0], [1], [0, 0, 1, 1], [], []>} : vector<128x32xbf16>, vector<32x8xbf16>, vector<128x8xf32> -> vector<128x8xf32>
    %c0_12 = arith.constant 0 : index
    %c0_13 = arith.constant 0 : index
    %c0_14 = arith.constant 0 : index
    %14 = vector.load %arg5[%c0_12, %c0_13, %c0_14] : memref<4x1x8xf32, #tpu.memory_space<vmem>>, vector<1x1x8xf32>
    %15 = vector.shape_cast %14 : vector<1x1x8xf32> to vector<1x8xf32>
    %16 = vector.broadcast %15 : vector<1x8xf32> to vector<128x8xf32>
    %17 = arith.addf %13, %16 : vector<128x8xf32>
    %18 = vector.shape_cast %17 : vector<128x8xf32> to vector<8x16x8xf32>
    %c0_15 = arith.constant 0 : index
    %c0_16 = arith.constant 0 : index
    %c0_17 = arith.constant 0 : index
    %19 = vector.load %arg6[%c0_15, %c0_16, %c0_17] : memref<4x4x8xf32, #tpu.memory_space<vmem>>, vector<1x4x8xf32>
    %20 = vector.shape_cast %19 : vector<1x4x8xf32> to vector<4x8xf32>
    %21 = vector.shape_cast %20 : vector<4x8xf32> to vector<1x4x8xf32>
    %22 = vector.shape_cast %21 : vector<1x4x8xf32> to vector<1x4x8xf32>
    %23 = vector.broadcast %22 : vector<1x4x8xf32> to vector<8x4x8xf32>
    %24 = arith.truncf %23 : vector<8x4x8xf32> to vector<8x4x8xbf16>
    %25 = arith.truncf %10 : vector<8x16x8xf32> to vector<8x16x8xbf16>
    "tpu.trace_start"() <{level = 10 : i32, message = "bqd,bkd->bqk"}> : () -> ()
    %cst_18 = arith.constant dense<0.000000e+00> : vector<8x4x16xf32>
    %26 = tpu.matmul %24, %25, %cst_18 {dimension_numbers = #tpu.dot_dimension_numbers<[2], [2], [1], [1], [0, 0, 0, 1, 1, 1], [0], [0]>} : vector<8x4x8xbf16>, vector<8x16x8xbf16>, vector<8x4x16xf32> -> vector<8x4x16xf32>
    "tpu.trace_stop"() : () -> ()
    %cst_19 = arith.constant dense<0xFF800000> : vector<8x4xf32>
    %27 = vector.multi_reduction <maximumf>, %26, %cst_19 [2] : vector<8x4x16xf32> to vector<8x4xf32>
    %28 = vector.shape_cast %27 : vector<8x4xf32> to vector<8x4x1xf32>
    %29 = vector.broadcast %28 : vector<8x4x1xf32> to vector<8x4x16xf32>
    %30 = arith.subf %26, %29 : vector<8x4x16xf32>
    %31 = math.exp %30 : vector<8x4x16xf32>
    %cst_20 = arith.constant dense<0.000000e+00> : vector<8x4xf32>
    %32 = vector.multi_reduction <add>, %31, %cst_20 [2] : vector<8x4x16xf32> to vector<8x4xf32>
    %33 = vector.shape_cast %32 : vector<8x4xf32> to vector<8x4x1xf32>
    %34 = tpu.reciprocal %33 {approx = true} : vector<8x4x1xf32> -> vector<8x4x1xf32>
    %35 = vector.broadcast %34 : vector<8x4x1xf32> to vector<8x4x16xf32>
    %36 = arith.mulf %31, %35 : vector<8x4x16xf32>
    %37 = arith.truncf %36 : vector<8x4x16xf32> to vector<8x4x16xbf16>
    %38 = arith.truncf %18 : vector<8x16x8xf32> to vector<8x16x8xbf16>
    "tpu.trace_start"() <{level = 10 : i32, message = "bqk,bkd->bqd"}> : () -> ()
    %cst_21 = arith.constant dense<0.000000e+00> : vector<8x4x8xf32>
    %39 = tpu.matmul %37, %38, %cst_21 {dimension_numbers = #tpu.dot_dimension_numbers<[2], [1], [1], [2], [0, 0, 0, 1, 1, 2], [0], [0]>} : vector<8x4x16xbf16>, vector<8x16x8xbf16>, vector<8x4x8xf32> -> vector<8x4x8xf32>
    "tpu.trace_stop"() : () -> ()
    %c0_22 = arith.constant 0 : index
    %c0_23 = arith.constant 0 : index
    %c0_24 = arith.constant 0 : index
    %40 = vector.load %arg7[%c0_22, %c0_23, %c0_24] : memref<8x4x32xf32, #tpu.memory_space<vmem>>, vector<8x4x8xf32>
    tpu.vector_store %arg7[%c0_22, %c0_23, %c0_24], %39 {strides = array<i32>} : memref<8x4x32xf32, #tpu.memory_space<vmem>>, vector<8x4x8xf32>,
    %c1 = arith.constant 1 : index
    %c0_25 = arith.constant 0 : index
    %c0_26 = arith.constant 0 : index
    %41 = vector.load %arg2[%c1, %c0_25, %c0_26] : memref<4x32x8xbf16, #tpu.memory_space<vmem>>, vector<1x32x8xbf16>
    %42 = vector.shape_cast %41 : vector<1x32x8xbf16> to vector<32x8xbf16>
    %cst_27 = arith.constant dense<0.000000e+00> : vector<128x8xf32>
    %43 = tpu.matmul %2, %42, %cst_27 {dimension_numbers = #tpu.dot_dimension_numbers<[1], [0], [0], [1], [0, 0, 1, 1], [], []>} : vector<128x32xbf16>, vector<32x8xbf16>, vector<128x8xf32> -> vector<128x8xf32>
    %c1_28 = arith.constant 1 : index
    %c0_29 = arith.constant 0 : index
    %c0_30 = arith.constant 0 : index
    %44 = vector.load %arg4[%c1_28, %c0_29, %c0_30] : memref<4x1x8xf32, #tpu.memory_space<vmem>>, vector<1x1x8xf32>
    %45 = vector.shape_cast %44 : vector<1x1x8xf32> to vector<1x8xf32>
    %46 = vector.broadcast %45 : vector<1x8xf32> to vector<128x8xf32>
    %47 = arith.addf %43, %46 : vector<128x8xf32>
    %48 = vector.shape_cast %47 : vector<128x8xf32> to vector<8x16x8xf32>
    %c1_31 = arith.constant 1 : index
    %c0_32 = arith.constant 0 : index
    %c0_33 = arith.constant 0 : index
    %49 = vector.load %arg3[%c1_31, %c0_32, %c0_33] : memref<4x32x8xbf16, #tpu.memory_space<vmem>>, vector<1x32x8xbf16>
    %50 = vector.shape_cast %49 : vector<1x32x8xbf16> to vector<32x8xbf16>
    %cst_34 = arith.constant dense<0.000000e+00> : vector<128x8xf32>
    %51 = tpu.matmul %2, %50, %cst_34 {dimension_numbers = #tpu.dot_dimension_numbers<[1], [0], [0], [1], [0, 0, 1, 1], [], []>} : vector<128x32xbf16>, vector<32x8xbf16>, vector<128x8xf32> -> vector<128x8xf32>
    %c1_35 = arith.constant 1 : index
    %c0_36 = arith.constant 0 : index
    %c0_37 = arith.constant 0 : index
    %52 = vector.load %arg5[%c1_35, %c0_36, %c0_37] : memref<4x1x8xf32, #tpu.memory_space<vmem>>, vector<1x1x8xf32>
    %53 = vector.shape_cast %52 : vector<1x1x8xf32> to vector<1x8xf32>
    %54 = vector.broadcast %53 : vector<1x8xf32> to vector<128x8xf32>
    %55 = arith.addf %51, %54 : vector<128x8xf32>
    %56 = vector.shape_cast %55 : vector<128x8xf32> to vector<8x16x8xf32>
    %c1_38 = arith.constant 1 : index
    %c0_39 = arith.constant 0 : index
    %c0_40 = arith.constant 0 : index
    %57 = vector.load %arg6[%c1_38, %c0_39, %c0_40] : memref<4x4x8xf32, #tpu.memory_space<vmem>>, vector<1x4x8xf32>
    %58 = vector.shape_cast %57 : vector<1x4x8xf32> to vector<4x8xf32>
    %59 = vector.shape_cast %58 : vector<4x8xf32> to vector<1x4x8xf32>
    %60 = vector.shape_cast %59 : vector<1x4x8xf32> to vector<1x4x8xf32>
    %61 = vector.broadcast %60 : vector<1x4x8xf32> to vector<8x4x8xf32>
    %62 = arith.truncf %61 : vector<8x4x8xf32> to vector<8x4x8xbf16>
    %63 = arith.truncf %48 : vector<8x16x8xf32> to vector<8x16x8xbf16>
    "tpu.trace_start"() <{level = 10 : i32, message = "bqd,bkd->bqk"}> : () -> ()
    %cst_41 = arith.constant dense<0.000000e+00> : vector<8x4x16xf32>
    %64 = tpu.matmul %62, %63, %cst_41 {dimension_numbers = #tpu.dot_dimension_numbers<[2], [2], [1], [1], [0, 0, 0, 1, 1, 1], [0], [0]>} : vector<8x4x8xbf16>, vector<8x16x8xbf16>, vector<8x4x16xf32> -> vector<8x4x16xf32>
    "tpu.trace_stop"() : () -> ()
    %cst_42 = arith.constant dense<0xFF800000> : vector<8x4xf32>
    %65 = vector.multi_reduction <maximumf>, %64, %cst_42 [2] : vector<8x4x16xf32> to vector<8x4xf32>
    %66 = vector.shape_cast %65 : vector<8x4xf32> to vector<8x4x1xf32>
    %67 = vector.broadcast %66 : vector<8x4x1xf32> to vector<8x4x16xf32>
    %68 = arith.subf %64, %67 : vector<8x4x16xf32>
    %69 = math.exp %68 : vector<8x4x16xf32>
    %cst_43 = arith.constant dense<0.000000e+00> : vector<8x4xf32>
    %70 = vector.multi_reduction <add>, %69, %cst_43 [2] : vector<8x4x16xf32> to vector<8x4xf32>
    %71 = vector.shape_cast %70 : vector<8x4xf32> to vector<8x4x1xf32>
    %72 = tpu.reciprocal %71 {approx = true} : vector<8x4x1xf32> -> vector<8x4x1xf32>
    %73 = vector.broadcast %72 : vector<8x4x1xf32> to vector<8x4x16xf32>
    %74 = arith.mulf %69, %73 : vector<8x4x16xf32>
    %75 = arith.truncf %74 : vector<8x4x16xf32> to vector<8x4x16xbf16>
    %76 = arith.truncf %56 : vector<8x16x8xf32> to vector<8x16x8xbf16>
    "tpu.trace_start"() <{level = 10 : i32, message = "bqk,bkd->bqd"}> : () -> ()
    %cst_44 = arith.constant dense<0.000000e+00> : vector<8x4x8xf32>
    %77 = tpu.matmul %75, %76, %cst_44 {dimension_numbers = #tpu.dot_dimension_numbers<[2], [1], [1], [2], [0, 0, 0, 1, 1, 2], [0], [0]>} : vector<8x4x16xbf16>, vector<8x16x8xbf16>, vector<8x4x8xf32> -> vector<8x4x8xf32>
    "tpu.trace_stop"() : () -> ()
    %c0_45 = arith.constant 0 : index
    %c0_46 = arith.constant 0 : index
    %c8 = arith.constant 8 : index
    %78 = vector.load %arg7[%c0_45, %c0_46, %c8] : memref<8x4x32xf32, #tpu.memory_space<vmem>>, vector<8x4x8xf32>
    tpu.vector_store %arg7[%c0_45, %c0_46, %c8], %77 {strides = array<i32>} : memref<8x4x32xf32, #tpu.memory_space<vmem>>, vector<8x4x8xf32>,
    %c2 = arith.constant 2 : index
    %c0_47 = arith.constant 0 : index
    %c0_48 = arith.constant 0 : index
    %79 = vector.load %arg2[%c2, %c0_47, %c0_48] : memref<4x32x8xbf16, #tpu.memory_space<vmem>>, vector<1x32x8xbf16>
    %80 = vector.shape_cast %79 : vector<1x32x8xbf16> to vector<32x8xbf16>
    %cst_49 = arith.constant dense<0.000000e+00> : vector<128x8xf32>
    %81 = tpu.matmul %2, %80, %cst_49 {dimension_numbers = #tpu.dot_dimension_numbers<[1], [0], [0], [1], [0, 0, 1, 1], [], []>} : vector<128x32xbf16>, vector<32x8xbf16>, vector<128x8xf32> -> vector<128x8xf32>
    %c2_50 = arith.constant 2 : index
    %c0_51 = arith.constant 0 : index
    %c0_52 = arith.constant 0 : index
    %82 = vector.load %arg4[%c2_50, %c0_51, %c0_52] : memref<4x1x8xf32, #tpu.memory_space<vmem>>, vector<1x1x8xf32>
    %83 = vector.shape_cast %82 : vector<1x1x8xf32> to vector<1x8xf32>
    %84 = vector.broadcast %83 : vector<1x8xf32> to vector<128x8xf32>
    %85 = arith.addf %81, %84 : vector<128x8xf32>
    %86 = vector.shape_cast %85 : vector<128x8xf32> to vector<8x16x8xf32>
    %c2_53 = arith.constant 2 : index
    %c0_54 = arith.constant 0 : index
    %c0_55 = arith.constant 0 : index
    %87 = vector.load %arg3[%c2_53, %c0_54, %c0_55] : memref<4x32x8xbf16, #tpu.memory_space<vmem>>, vector<1x32x8xbf16>
    %88 = vector.shape_cast %87 : vector<1x32x8xbf16> to vector<32x8xbf16>
    %cst_56 = arith.constant dense<0.000000e+00> : vector<128x8xf32>
    %89 = tpu.matmul %2, %88, %cst_56 {dimension_numbers = #tpu.dot_dimension_numbers<[1], [0], [0], [1], [0, 0, 1, 1], [], []>} : vector<128x32xbf16>, vector<32x8xbf16>, vector<128x8xf32> -> vector<128x8xf32>
    %c2_57 = arith.constant 2 : index
    %c0_58 = arith.constant 0 : index
    %c0_59 = arith.constant 0 : index
    %90 = vector.load %arg5[%c2_57, %c0_58, %c0_59] : memref<4x1x8xf32, #tpu.memory_space<vmem>>, vector<1x1x8xf32>
    %91 = vector.shape_cast %90 : vector<1x1x8xf32> to vector<1x8xf32>
    %92 = vector.broadcast %91 : vector<1x8xf32> to vector<128x8xf32>
    %93 = arith.addf %89, %92 : vector<128x8xf32>
    %94 = vector.shape_cast %93 : vector<128x8xf32> to vector<8x16x8xf32>
    %c2_60 = arith.constant 2 : index
    %c0_61 = arith.constant 0 : index
    %c0_62 = arith.constant 0 : index
    %95 = vector.load %arg6[%c2_60, %c0_61, %c0_62] : memref<4x4x8xf32, #tpu.memory_space<vmem>>, vector<1x4x8xf32>
    %96 = vector.shape_cast %95 : vector<1x4x8xf32> to vector<4x8xf32>
    %97 = vector.shape_cast %96 : vector<4x8xf32> to vector<1x4x8xf32>
    %98 = vector.shape_cast %97 : vector<1x4x8xf32> to vector<1x4x8xf32>
    %99 = vector.broadcast %98 : vector<1x4x8xf32> to vector<8x4x8xf32>
    %100 = arith.truncf %99 : vector<8x4x8xf32> to vector<8x4x8xbf16>
    %101 = arith.truncf %86 : vector<8x16x8xf32> to vector<8x16x8xbf16>
    "tpu.trace_start"() <{level = 10 : i32, message = "bqd,bkd->bqk"}> : () -> ()
    %cst_63 = arith.constant dense<0.000000e+00> : vector<8x4x16xf32>
    %102 = tpu.matmul %100, %101, %cst_63 {dimension_numbers = #tpu.dot_dimension_numbers<[2], [2], [1], [1], [0, 0, 0, 1, 1, 1], [0], [0]>} : vector<8x4x8xbf16>, vector<8x16x8xbf16>, vector<8x4x16xf32> -> vector<8x4x16xf32>
    "tpu.trace_stop"() : () -> ()
    %cst_64 = arith.constant dense<0xFF800000> : vector<8x4xf32>
    %103 = vector.multi_reduction <maximumf>, %102, %cst_64 [2] : vector<8x4x16xf32> to vector<8x4xf32>
    %104 = vector.shape_cast %103 : vector<8x4xf32> to vector<8x4x1xf32>
    %105 = vector.broadcast %104 : vector<8x4x1xf32> to vector<8x4x16xf32>
    %106 = arith.subf %102, %105 : vector<8x4x16xf32>
    %107 = math.exp %106 : vector<8x4x16xf32>
    %cst_65 = arith.constant dense<0.000000e+00> : vector<8x4xf32>
    %108 = vector.multi_reduction <add>, %107, %cst_65 [2] : vector<8x4x16xf32> to vector<8x4xf32>
    %109 = vector.shape_cast %108 : vector<8x4xf32> to vector<8x4x1xf32>
    %110 = tpu.reciprocal %109 {approx = true} : vector<8x4x1xf32> -> vector<8x4x1xf32>
    %111 = vector.broadcast %110 : vector<8x4x1xf32> to vector<8x4x16xf32>
    %112 = arith.mulf %107, %111 : vector<8x4x16xf32>
    %113 = arith.truncf %112 : vector<8x4x16xf32> to vector<8x4x16xbf16>
    %114 = arith.truncf %94 : vector<8x16x8xf32> to vector<8x16x8xbf16>
    "tpu.trace_start"() <{level = 10 : i32, message = "bqk,bkd->bqd"}> : () -> ()
    %cst_66 = arith.constant dense<0.000000e+00> : vector<8x4x8xf32>
    %115 = tpu.matmul %113, %114, %cst_66 {dimension_numbers = #tpu.dot_dimension_numbers<[2], [1], [1], [2], [0, 0, 0, 1, 1, 2], [0], [0]>} : vector<8x4x16xbf16>, vector<8x16x8xbf16>, vector<8x4x8xf32> -> vector<8x4x8xf32>
    "tpu.trace_stop"() : () -> ()
    %c0_67 = arith.constant 0 : index
    %c0_68 = arith.constant 0 : index
    %c16 = arith.constant 16 : index
    %116 = vector.load %arg7[%c0_67, %c0_68, %c16] : memref<8x4x32xf32, #tpu.memory_space<vmem>>, vector<8x4x8xf32>
    tpu.vector_store %arg7[%c0_67, %c0_68, %c16], %115 {strides = array<i32>} : memref<8x4x32xf32, #tpu.memory_space<vmem>>, vector<8x4x8xf32>,
    %c3 = arith.constant 3 : index
    %c0_69 = arith.constant 0 : index
    %c0_70 = arith.constant 0 : index
    %117 = vector.load %arg2[%c3, %c0_69, %c0_70] : memref<4x32x8xbf16, #tpu.memory_space<vmem>>, vector<1x32x8xbf16>
    %118 = vector.shape_cast %117 : vector<1x32x8xbf16> to vector<32x8xbf16>
    %cst_71 = arith.constant dense<0.000000e+00> : vector<128x8xf32>
    %119 = tpu.matmul %2, %118, %cst_71 {dimension_numbers = #tpu.dot_dimension_numbers<[1], [0], [0], [1], [0, 0, 1, 1], [], []>} : vector<128x32xbf16>, vector<32x8xbf16>, vector<128x8xf32> -> vector<128x8xf32>
    %c3_72 = arith.constant 3 : index
    %c0_73 = arith.constant 0 : index
    %c0_74 = arith.constant 0 : index
    %120 = vector.load %arg4[%c3_72, %c0_73, %c0_74] : memref<4x1x8xf32, #tpu.memory_space<vmem>>, vector<1x1x8xf32>
    %121 = vector.shape_cast %120 : vector<1x1x8xf32> to vector<1x8xf32>
    %122 = vector.broadcast %121 : vector<1x8xf32> to vector<128x8xf32>
    %123 = arith.addf %119, %122 : vector<128x8xf32>
    %124 = vector.shape_cast %123 : vector<128x8xf32> to vector<8x16x8xf32>
    %c3_75 = arith.constant 3 : index
    %c0_76 = arith.constant 0 : index
    %c0_77 = arith.constant 0 : index
    %125 = vector.load %arg3[%c3_75, %c0_76, %c0_77] : memref<4x32x8xbf16, #tpu.memory_space<vmem>>, vector<1x32x8xbf16>
    %126 = vector.shape_cast %125 : vector<1x32x8xbf16> to vector<32x8xbf16>
    %cst_78 = arith.constant dense<0.000000e+00> : vector<128x8xf32>
    %127 = tpu.matmul %2, %126, %cst_78 {dimension_numbers = #tpu.dot_dimension_numbers<[1], [0], [0], [1], [0, 0, 1, 1], [], []>} : vector<128x32xbf16>, vector<32x8xbf16>, vector<128x8xf32> -> vector<128x8xf32>
    %c3_79 = arith.constant 3 : index
    %c0_80 = arith.constant 0 : index
    %c0_81 = arith.constant 0 : index
    %128 = vector.load %arg5[%c3_79, %c0_80, %c0_81] : memref<4x1x8xf32, #tpu.memory_space<vmem>>, vector<1x1x8xf32>
    %129 = vector.shape_cast %128 : vector<1x1x8xf32> to vector<1x8xf32>
    %130 = vector.broadcast %129 : vector<1x8xf32> to vector<128x8xf32>
    %131 = arith.addf %127, %130 : vector<128x8xf32>
    %132 = vector.shape_cast %131 : vector<128x8xf32> to vector<8x16x8xf32>
    %c3_82 = arith.constant 3 : index
    %c0_83 = arith.constant 0 : index
    %c0_84 = arith.constant 0 : index
    %133 = vector.load %arg6[%c3_82, %c0_83, %c0_84] : memref<4x4x8xf32, #tpu.memory_space<vmem>>, vector<1x4x8xf32>
    %134 = vector.shape_cast %133 : vector<1x4x8xf32> to vector<4x8xf32>
    %135 = vector.shape_cast %134 : vector<4x8xf32> to vector<1x4x8xf32>
    %136 = vector.shape_cast %135 : vector<1x4x8xf32> to vector<1x4x8xf32>
    %137 = vector.broadcast %136 : vector<1x4x8xf32> to vector<8x4x8xf32>
    %138 = arith.truncf %137 : vector<8x4x8xf32> to vector<8x4x8xbf16>
    %139 = arith.truncf %124 : vector<8x16x8xf32> to vector<8x16x8xbf16>
    "tpu.trace_start"() <{level = 10 : i32, message = "bqd,bkd->bqk"}> : () -> ()
    %cst_85 = arith.constant dense<0.000000e+00> : vector<8x4x16xf32>
    %140 = tpu.matmul %138, %139, %cst_85 {dimension_numbers = #tpu.dot_dimension_numbers<[2], [2], [1], [1], [0, 0, 0, 1, 1, 1], [0], [0]>} : vector<8x4x8xbf16>, vector<8x16x8xbf16>, vector<8x4x16xf32> -> vector<8x4x16xf32>
    "tpu.trace_stop"() : () -> ()
    %cst_86 = arith.constant dense<0xFF800000> : vector<8x4xf32>
    %141 = vector.multi_reduction <maximumf>, %140, %cst_86 [2] : vector<8x4x16xf32> to vector<8x4xf32>
    %142 = vector.shape_cast %141 : vector<8x4xf32> to vector<8x4x1xf32>
    %143 = vector.broadcast %142 : vector<8x4x1xf32> to vector<8x4x16xf32>
    %144 = arith.subf %140, %143 : vector<8x4x16xf32>
    %145 = math.exp %144 : vector<8x4x16xf32>
    %cst_87 = arith.constant dense<0.000000e+00> : vector<8x4xf32>
    %146 = vector.multi_reduction <add>, %145, %cst_87 [2] : vector<8x4x16xf32> to vector<8x4xf32>
    %147 = vector.shape_cast %146 : vector<8x4xf32> to vector<8x4x1xf32>
    %148 = tpu.reciprocal %147 {approx = true} : vector<8x4x1xf32> -> vector<8x4x1xf32>
    %149 = vector.broadcast %148 : vector<8x4x1xf32> to vector<8x4x16xf32>
    %150 = arith.mulf %145, %149 : vector<8x4x16xf32>
    %151 = arith.truncf %150 : vector<8x4x16xf32> to vector<8x4x16xbf16>
    %152 = arith.truncf %132 : vector<8x16x8xf32> to vector<8x16x8xbf16>
    "tpu.trace_start"() <{level = 10 : i32, message = "bqk,bkd->bqd"}> : () -> ()
    %cst_88 = arith.constant dense<0.000000e+00> : vector<8x4x8xf32>
    %153 = tpu.matmul %151, %152, %cst_88 {dimension_numbers = #tpu.dot_dimension_numbers<[2], [1], [1], [2], [0, 0, 0, 1, 1, 2], [0], [0]>} : vector<8x4x16xbf16>, vector<8x16x8xbf16>, vector<8x4x8xf32> -> vector<8x4x8xf32>
    "tpu.trace_stop"() : () -> ()
    %c0_89 = arith.constant 0 : index
    %c0_90 = arith.constant 0 : index
    %c24 = arith.constant 24 : index
    %154 = vector.load %arg7[%c0_89, %c0_90, %c24] : memref<8x4x32xf32, #tpu.memory_space<vmem>>, vector<8x4x8xf32>
    tpu.vector_store %arg7[%c0_89, %c0_90, %c24], %153 {strides = array<i32>} : memref<8x4x32xf32, #tpu.memory_space<vmem>>, vector<8x4x8xf32>,
    return
  }
  func.func @transform_0(%arg0: i32) -> (i32, i32, i32) {
    %c0_i32 = arith.constant 0 : i32
    %c0_i32_0 = arith.constant 0 : i32
    %c0_i32_1 = arith.constant 0 : i32
    return %arg0, %c0_i32, %c0_i32_0 : i32, i32, i32
  }
  func.func @transform_1(%arg0: i32) -> (i32, i32, i32) {
    %c0_i32 = arith.constant 0 : i32
    %c0_i32_0 = arith.constant 0 : i32
    %c0_i32_1 = arith.constant 0 : i32
    %c0_i32_2 = arith.constant 0 : i32
    return %c0_i32, %c0_i32_0, %c0_i32_1 : i32, i32, i32
  }
  func.func @transform_2(%arg0: i32) -> (i32, i32, i32) {
    %c0_i32 = arith.constant 0 : i32
    %c0_i32_0 = arith.constant 0 : i32
    %c0_i32_1 = arith.constant 0 : i32
    %c0_i32_2 = arith.constant 0 : i32
    return %c0_i32, %c0_i32_0, %c0_i32_1 : i32, i32, i32
  }
  func.func @transform_3(%arg0: i32) -> (i32, i32, i32) {
    %c0_i32 = arith.constant 0 : i32
    %c0_i32_0 = arith.constant 0 : i32
    %c0_i32_1 = arith.constant 0 : i32
    %c0_i32_2 = arith.constant 0 : i32
    return %c0_i32, %c0_i32_0, %c0_i32_1 : i32, i32, i32
  }
  func.func @transform_4(%arg0: i32) -> (i32, i32, i32) {
    %c0_i32 = arith.constant 0 : i32
    %c0_i32_0 = arith.constant 0 : i32
    %c0_i32_1 = arith.constant 0 : i32
    %c0_i32_2 = arith.constant 0 : i32
    return %c0_i32, %c0_i32_0, %c0_i32_1 : i32, i32, i32
  }
  func.func @transform_5(%arg0: i32) -> (i32, i32, i32) {
    %c0_i32 = arith.constant 0 : i32
    %c0_i32_0 = arith.constant 0 : i32
    %c0_i32_1 = arith.constant 0 : i32
    %c0_i32_2 = arith.constant 0 : i32
    return %c0_i32, %c0_i32_0, %c0_i32_1 : i32, i32, i32
  }
  func.func @transform_6(%arg0: i32) -> (i32, i32, i32) {
    %c0_i32 = arith.constant 0 : i32
    %c0_i32_0 = arith.constant 0 : i32
    %c0_i32_1 = arith.constant 0 : i32
    return %arg0, %c0_i32, %c0_i32_0 : i32, i32, i32
  }
}

module attributes {stable_mosaic.version = 11 : i64} {
  func.func @kernel(%arg0: i32, %arg1: memref<1x16x128xf32, #tpu.memory_space<vmem>>, %arg2: memref<4x128x32xbf16, #tpu.memory_space<vmem>>, %arg3: memref<4x1x32xf32, #tpu.memory_space<vmem>>, %arg4: memref<4x128x32xbf16, #tpu.memory_space<vmem>>, %arg5: memref<4x1x32xf32, #tpu.memory_space<vmem>>, %arg6: memref<4x128x32xbf16, #tpu.memory_space<vmem>>, %arg7: memref<4x1x32xf32, #tpu.memory_space<vmem>>, %arg8: memref<4x32x128xbf16, #tpu.memory_space<vmem>>, %arg9: memref<1x128xf32, #tpu.memory_space<vmem>>, %arg10: memref<1x16x128xf32, #tpu.memory_space<vmem>>) attributes {dimension_semantics = [#tpu.dimension_semantics<parallel>], iteration_bounds = array<i64: 2>, scalar_prefetch = 0 : i64, scratch_operands = 0 : i64, tpu.core_type = #tpu.core_type<tc>, window_params = [{transform_indices = @transform_0, window_bounds = array<i64: 1, 16, 128>}, {pipeline_mode = #tpu.pipeline_mode<synchronous>, transform_indices = @transform_1, window_bounds = array<i64: 4, 128, 32>}, {pipeline_mode = #tpu.pipeline_mode<synchronous>, transform_indices = @transform_2, window_bounds = array<i64: 4, 1, 32>}, {pipeline_mode = #tpu.pipeline_mode<synchronous>, transform_indices = @transform_3, window_bounds = array<i64: 4, 128, 32>}, {pipeline_mode = #tpu.pipeline_mode<synchronous>, transform_indices = @transform_4, window_bounds = array<i64: 4, 1, 32>}, {pipeline_mode = #tpu.pipeline_mode<synchronous>, transform_indices = @transform_5, window_bounds = array<i64: 4, 128, 32>}, {pipeline_mode = #tpu.pipeline_mode<synchronous>, transform_indices = @transform_6, window_bounds = array<i64: 4, 1, 32>}, {pipeline_mode = #tpu.pipeline_mode<synchronous>, transform_indices = @transform_7, window_bounds = array<i64: 4, 32, 128>}, {pipeline_mode = #tpu.pipeline_mode<synchronous>, transform_indices = @transform_8, window_bounds = array<i64: 1, 128>}, {transform_indices = @transform_9, window_bounds = array<i64: 1, 16, 128>}]} {
    %c0 = arith.constant 0 : index
    %c0_0 = arith.constant 0 : index
    %c0_1 = arith.constant 0 : index
    %0 = vector.load %arg1[%c0, %c0_0, %c0_1] : memref<1x16x128xf32, #tpu.memory_space<vmem>>, vector<1x16x128xf32>
    %1 = vector.shape_cast %0 : vector<1x16x128xf32> to vector<16x128xf32>
    %2 = arith.truncf %1 : vector<16x128xf32> to vector<16x128xbf16>
    %cst = arith.constant 0.000000e+00 : f32
    %3 = vector.broadcast %cst : f32 to vector<16x128xf32>
    %c0_2 = arith.constant 0 : index
    %c0_3 = arith.constant 0 : index
    %c0_4 = arith.constant 0 : index
    %4 = vector.load %arg2[%c0_2, %c0_3, %c0_4] : memref<4x128x32xbf16, #tpu.memory_space<vmem>>, vector<1x128x32xbf16>
    %5 = vector.shape_cast %4 : vector<1x128x32xbf16> to vector<128x32xbf16>
    %cst_5 = arith.constant dense<0.000000e+00> : vector<16x32xf32>
    %6 = tpu.matmul %2, %5, %cst_5 {dimension_numbers = #tpu.dot_dimension_numbers<[1], [0], [0], [1], [0, 0, 1, 1], [], []>} : vector<16x128xbf16>, vector<128x32xbf16>, vector<16x32xf32> -> vector<16x32xf32>
    %c0_6 = arith.constant 0 : index
    %c0_7 = arith.constant 0 : index
    %c0_8 = arith.constant 0 : index
    %7 = vector.load %arg3[%c0_6, %c0_7, %c0_8] : memref<4x1x32xf32, #tpu.memory_space<vmem>>, vector<1x1x32xf32>
    %8 = vector.shape_cast %7 : vector<1x1x32xf32> to vector<1x32xf32>
    %9 = vector.broadcast %8 : vector<1x32xf32> to vector<16x32xf32>
    %10 = arith.addf %6, %9 : vector<16x32xf32>
    %c0_9 = arith.constant 0 : index
    %c0_10 = arith.constant 0 : index
    %c0_11 = arith.constant 0 : index
    %11 = vector.load %arg4[%c0_9, %c0_10, %c0_11] : memref<4x128x32xbf16, #tpu.memory_space<vmem>>, vector<1x128x32xbf16>
    %12 = vector.shape_cast %11 : vector<1x128x32xbf16> to vector<128x32xbf16>
    %cst_12 = arith.constant dense<0.000000e+00> : vector<16x32xf32>
    %13 = tpu.matmul %2, %12, %cst_12 {dimension_numbers = #tpu.dot_dimension_numbers<[1], [0], [0], [1], [0, 0, 1, 1], [], []>} : vector<16x128xbf16>, vector<128x32xbf16>, vector<16x32xf32> -> vector<16x32xf32>
    %c0_13 = arith.constant 0 : index
    %c0_14 = arith.constant 0 : index
    %c0_15 = arith.constant 0 : index
    %14 = vector.load %arg5[%c0_13, %c0_14, %c0_15] : memref<4x1x32xf32, #tpu.memory_space<vmem>>, vector<1x1x32xf32>
    %15 = vector.shape_cast %14 : vector<1x1x32xf32> to vector<1x32xf32>
    %16 = vector.broadcast %15 : vector<1x32xf32> to vector<16x32xf32>
    %17 = arith.addf %13, %16 : vector<16x32xf32>
    %c0_16 = arith.constant 0 : index
    %c0_17 = arith.constant 0 : index
    %c0_18 = arith.constant 0 : index
    %18 = vector.load %arg6[%c0_16, %c0_17, %c0_18] : memref<4x128x32xbf16, #tpu.memory_space<vmem>>, vector<1x128x32xbf16>
    %19 = vector.shape_cast %18 : vector<1x128x32xbf16> to vector<128x32xbf16>
    %cst_19 = arith.constant dense<0.000000e+00> : vector<16x32xf32>
    %20 = tpu.matmul %2, %19, %cst_19 {dimension_numbers = #tpu.dot_dimension_numbers<[1], [0], [0], [1], [0, 0, 1, 1], [], []>} : vector<16x128xbf16>, vector<128x32xbf16>, vector<16x32xf32> -> vector<16x32xf32>
    %c0_20 = arith.constant 0 : index
    %c0_21 = arith.constant 0 : index
    %c0_22 = arith.constant 0 : index
    %21 = vector.load %arg7[%c0_20, %c0_21, %c0_22] : memref<4x1x32xf32, #tpu.memory_space<vmem>>, vector<1x1x32xf32>
    %22 = vector.shape_cast %21 : vector<1x1x32xf32> to vector<1x32xf32>
    %23 = vector.broadcast %22 : vector<1x32xf32> to vector<16x32xf32>
    %24 = arith.addf %20, %23 : vector<16x32xf32>
    %25 = arith.truncf %10 : vector<16x32xf32> to vector<16x32xbf16>
    %26 = arith.truncf %17 : vector<16x32xf32> to vector<16x32xbf16>
    %cst_23 = arith.constant dense<0.000000e+00> : vector<16x16xf32>
    %27 = tpu.matmul %25, %26, %cst_23 {dimension_numbers = #tpu.dot_dimension_numbers<[1], [1], [0], [0], [0, 0, 1, 0], [], []>} : vector<16x32xbf16>, vector<16x32xbf16>, vector<16x16xf32> -> vector<16x16xf32>
    %cst_24 = arith.constant dense<0xFF800000> : vector<16xf32>
    %28 = vector.multi_reduction <maximumf>, %27, %cst_24 [1] : vector<16x16xf32> to vector<16xf32>
    %29 = vector.shape_cast %28 : vector<16xf32> to vector<16x1xf32>
    %30 = vector.broadcast %29 : vector<16x1xf32> to vector<16x16xf32>
    %31 = arith.subf %27, %30 : vector<16x16xf32>
    %32 = math.exp %31 : vector<16x16xf32>
    %cst_25 = arith.constant dense<0.000000e+00> : vector<16xf32>
    %33 = vector.multi_reduction <add>, %32, %cst_25 [1] : vector<16x16xf32> to vector<16xf32>
    %34 = vector.shape_cast %33 : vector<16xf32> to vector<16x1xf32>
    %35 = tpu.reciprocal %34 {approx = true} : vector<16x1xf32> -> vector<16x1xf32>
    %36 = vector.broadcast %35 : vector<16x1xf32> to vector<16x16xf32>
    %37 = arith.mulf %32, %36 : vector<16x16xf32>
    %38 = arith.truncf %37 : vector<16x16xf32> to vector<16x16xbf16>
    %39 = arith.truncf %24 : vector<16x32xf32> to vector<16x32xbf16>
    %cst_26 = arith.constant dense<0.000000e+00> : vector<16x32xf32>
    %40 = tpu.matmul %38, %39, %cst_26 {dimension_numbers = #tpu.dot_dimension_numbers<[1], [0], [0], [1], [0, 0, 1, 1], [], []>} : vector<16x16xbf16>, vector<16x32xbf16>, vector<16x32xf32> -> vector<16x32xf32>
    %41 = arith.truncf %40 : vector<16x32xf32> to vector<16x32xbf16>
    %c0_27 = arith.constant 0 : index
    %c0_28 = arith.constant 0 : index
    %c0_29 = arith.constant 0 : index
    %42 = vector.load %arg8[%c0_27, %c0_28, %c0_29] : memref<4x32x128xbf16, #tpu.memory_space<vmem>>, vector<1x32x128xbf16>
    %43 = vector.shape_cast %42 : vector<1x32x128xbf16> to vector<32x128xbf16>
    %cst_30 = arith.constant dense<0.000000e+00> : vector<16x128xf32>
    %44 = tpu.matmul %41, %43, %cst_30 {dimension_numbers = #tpu.dot_dimension_numbers<[1], [0], [0], [1], [0, 0, 1, 1], [], []>} : vector<16x32xbf16>, vector<32x128xbf16>, vector<16x128xf32> -> vector<16x128xf32>
    %45 = arith.addf %3, %44 : vector<16x128xf32>
    %c1 = arith.constant 1 : index
    %c0_31 = arith.constant 0 : index
    %c0_32 = arith.constant 0 : index
    %46 = vector.load %arg2[%c1, %c0_31, %c0_32] : memref<4x128x32xbf16, #tpu.memory_space<vmem>>, vector<1x128x32xbf16>
    %47 = vector.shape_cast %46 : vector<1x128x32xbf16> to vector<128x32xbf16>
    %cst_33 = arith.constant dense<0.000000e+00> : vector<16x32xf32>
    %48 = tpu.matmul %2, %47, %cst_33 {dimension_numbers = #tpu.dot_dimension_numbers<[1], [0], [0], [1], [0, 0, 1, 1], [], []>} : vector<16x128xbf16>, vector<128x32xbf16>, vector<16x32xf32> -> vector<16x32xf32>
    %c1_34 = arith.constant 1 : index
    %c0_35 = arith.constant 0 : index
    %c0_36 = arith.constant 0 : index
    %49 = vector.load %arg3[%c1_34, %c0_35, %c0_36] : memref<4x1x32xf32, #tpu.memory_space<vmem>>, vector<1x1x32xf32>
    %50 = vector.shape_cast %49 : vector<1x1x32xf32> to vector<1x32xf32>
    %51 = vector.broadcast %50 : vector<1x32xf32> to vector<16x32xf32>
    %52 = arith.addf %48, %51 : vector<16x32xf32>
    %c1_37 = arith.constant 1 : index
    %c0_38 = arith.constant 0 : index
    %c0_39 = arith.constant 0 : index
    %53 = vector.load %arg4[%c1_37, %c0_38, %c0_39] : memref<4x128x32xbf16, #tpu.memory_space<vmem>>, vector<1x128x32xbf16>
    %54 = vector.shape_cast %53 : vector<1x128x32xbf16> to vector<128x32xbf16>
    %cst_40 = arith.constant dense<0.000000e+00> : vector<16x32xf32>
    %55 = tpu.matmul %2, %54, %cst_40 {dimension_numbers = #tpu.dot_dimension_numbers<[1], [0], [0], [1], [0, 0, 1, 1], [], []>} : vector<16x128xbf16>, vector<128x32xbf16>, vector<16x32xf32> -> vector<16x32xf32>
    %c1_41 = arith.constant 1 : index
    %c0_42 = arith.constant 0 : index
    %c0_43 = arith.constant 0 : index
    %56 = vector.load %arg5[%c1_41, %c0_42, %c0_43] : memref<4x1x32xf32, #tpu.memory_space<vmem>>, vector<1x1x32xf32>
    %57 = vector.shape_cast %56 : vector<1x1x32xf32> to vector<1x32xf32>
    %58 = vector.broadcast %57 : vector<1x32xf32> to vector<16x32xf32>
    %59 = arith.addf %55, %58 : vector<16x32xf32>
    %c1_44 = arith.constant 1 : index
    %c0_45 = arith.constant 0 : index
    %c0_46 = arith.constant 0 : index
    %60 = vector.load %arg6[%c1_44, %c0_45, %c0_46] : memref<4x128x32xbf16, #tpu.memory_space<vmem>>, vector<1x128x32xbf16>
    %61 = vector.shape_cast %60 : vector<1x128x32xbf16> to vector<128x32xbf16>
    %cst_47 = arith.constant dense<0.000000e+00> : vector<16x32xf32>
    %62 = tpu.matmul %2, %61, %cst_47 {dimension_numbers = #tpu.dot_dimension_numbers<[1], [0], [0], [1], [0, 0, 1, 1], [], []>} : vector<16x128xbf16>, vector<128x32xbf16>, vector<16x32xf32> -> vector<16x32xf32>
    %c1_48 = arith.constant 1 : index
    %c0_49 = arith.constant 0 : index
    %c0_50 = arith.constant 0 : index
    %63 = vector.load %arg7[%c1_48, %c0_49, %c0_50] : memref<4x1x32xf32, #tpu.memory_space<vmem>>, vector<1x1x32xf32>
    %64 = vector.shape_cast %63 : vector<1x1x32xf32> to vector<1x32xf32>
    %65 = vector.broadcast %64 : vector<1x32xf32> to vector<16x32xf32>
    %66 = arith.addf %62, %65 : vector<16x32xf32>
    %67 = arith.truncf %52 : vector<16x32xf32> to vector<16x32xbf16>
    %68 = arith.truncf %59 : vector<16x32xf32> to vector<16x32xbf16>
    %cst_51 = arith.constant dense<0.000000e+00> : vector<16x16xf32>
    %69 = tpu.matmul %67, %68, %cst_51 {dimension_numbers = #tpu.dot_dimension_numbers<[1], [1], [0], [0], [0, 0, 1, 0], [], []>} : vector<16x32xbf16>, vector<16x32xbf16>, vector<16x16xf32> -> vector<16x16xf32>
    %cst_52 = arith.constant dense<0xFF800000> : vector<16xf32>
    %70 = vector.multi_reduction <maximumf>, %69, %cst_52 [1] : vector<16x16xf32> to vector<16xf32>
    %71 = vector.shape_cast %70 : vector<16xf32> to vector<16x1xf32>
    %72 = vector.broadcast %71 : vector<16x1xf32> to vector<16x16xf32>
    %73 = arith.subf %69, %72 : vector<16x16xf32>
    %74 = math.exp %73 : vector<16x16xf32>
    %cst_53 = arith.constant dense<0.000000e+00> : vector<16xf32>
    %75 = vector.multi_reduction <add>, %74, %cst_53 [1] : vector<16x16xf32> to vector<16xf32>
    %76 = vector.shape_cast %75 : vector<16xf32> to vector<16x1xf32>
    %77 = tpu.reciprocal %76 {approx = true} : vector<16x1xf32> -> vector<16x1xf32>
    %78 = vector.broadcast %77 : vector<16x1xf32> to vector<16x16xf32>
    %79 = arith.mulf %74, %78 : vector<16x16xf32>
    %80 = arith.truncf %79 : vector<16x16xf32> to vector<16x16xbf16>
    %81 = arith.truncf %66 : vector<16x32xf32> to vector<16x32xbf16>
    %cst_54 = arith.constant dense<0.000000e+00> : vector<16x32xf32>
    %82 = tpu.matmul %80, %81, %cst_54 {dimension_numbers = #tpu.dot_dimension_numbers<[1], [0], [0], [1], [0, 0, 1, 1], [], []>} : vector<16x16xbf16>, vector<16x32xbf16>, vector<16x32xf32> -> vector<16x32xf32>
    %83 = arith.truncf %82 : vector<16x32xf32> to vector<16x32xbf16>
    %c1_55 = arith.constant 1 : index
    %c0_56 = arith.constant 0 : index
    %c0_57 = arith.constant 0 : index
    %84 = vector.load %arg8[%c1_55, %c0_56, %c0_57] : memref<4x32x128xbf16, #tpu.memory_space<vmem>>, vector<1x32x128xbf16>
    %85 = vector.shape_cast %84 : vector<1x32x128xbf16> to vector<32x128xbf16>
    %cst_58 = arith.constant dense<0.000000e+00> : vector<16x128xf32>
    %86 = tpu.matmul %83, %85, %cst_58 {dimension_numbers = #tpu.dot_dimension_numbers<[1], [0], [0], [1], [0, 0, 1, 1], [], []>} : vector<16x32xbf16>, vector<32x128xbf16>, vector<16x128xf32> -> vector<16x128xf32>
    %87 = arith.addf %45, %86 : vector<16x128xf32>
    %c2 = arith.constant 2 : index
    %c0_59 = arith.constant 0 : index
    %c0_60 = arith.constant 0 : index
    %88 = vector.load %arg2[%c2, %c0_59, %c0_60] : memref<4x128x32xbf16, #tpu.memory_space<vmem>>, vector<1x128x32xbf16>
    %89 = vector.shape_cast %88 : vector<1x128x32xbf16> to vector<128x32xbf16>
    %cst_61 = arith.constant dense<0.000000e+00> : vector<16x32xf32>
    %90 = tpu.matmul %2, %89, %cst_61 {dimension_numbers = #tpu.dot_dimension_numbers<[1], [0], [0], [1], [0, 0, 1, 1], [], []>} : vector<16x128xbf16>, vector<128x32xbf16>, vector<16x32xf32> -> vector<16x32xf32>
    %c2_62 = arith.constant 2 : index
    %c0_63 = arith.constant 0 : index
    %c0_64 = arith.constant 0 : index
    %91 = vector.load %arg3[%c2_62, %c0_63, %c0_64] : memref<4x1x32xf32, #tpu.memory_space<vmem>>, vector<1x1x32xf32>
    %92 = vector.shape_cast %91 : vector<1x1x32xf32> to vector<1x32xf32>
    %93 = vector.broadcast %92 : vector<1x32xf32> to vector<16x32xf32>
    %94 = arith.addf %90, %93 : vector<16x32xf32>
    %c2_65 = arith.constant 2 : index
    %c0_66 = arith.constant 0 : index
    %c0_67 = arith.constant 0 : index
    %95 = vector.load %arg4[%c2_65, %c0_66, %c0_67] : memref<4x128x32xbf16, #tpu.memory_space<vmem>>, vector<1x128x32xbf16>
    %96 = vector.shape_cast %95 : vector<1x128x32xbf16> to vector<128x32xbf16>
    %cst_68 = arith.constant dense<0.000000e+00> : vector<16x32xf32>
    %97 = tpu.matmul %2, %96, %cst_68 {dimension_numbers = #tpu.dot_dimension_numbers<[1], [0], [0], [1], [0, 0, 1, 1], [], []>} : vector<16x128xbf16>, vector<128x32xbf16>, vector<16x32xf32> -> vector<16x32xf32>
    %c2_69 = arith.constant 2 : index
    %c0_70 = arith.constant 0 : index
    %c0_71 = arith.constant 0 : index
    %98 = vector.load %arg5[%c2_69, %c0_70, %c0_71] : memref<4x1x32xf32, #tpu.memory_space<vmem>>, vector<1x1x32xf32>
    %99 = vector.shape_cast %98 : vector<1x1x32xf32> to vector<1x32xf32>
    %100 = vector.broadcast %99 : vector<1x32xf32> to vector<16x32xf32>
    %101 = arith.addf %97, %100 : vector<16x32xf32>
    %c2_72 = arith.constant 2 : index
    %c0_73 = arith.constant 0 : index
    %c0_74 = arith.constant 0 : index
    %102 = vector.load %arg6[%c2_72, %c0_73, %c0_74] : memref<4x128x32xbf16, #tpu.memory_space<vmem>>, vector<1x128x32xbf16>
    %103 = vector.shape_cast %102 : vector<1x128x32xbf16> to vector<128x32xbf16>
    %cst_75 = arith.constant dense<0.000000e+00> : vector<16x32xf32>
    %104 = tpu.matmul %2, %103, %cst_75 {dimension_numbers = #tpu.dot_dimension_numbers<[1], [0], [0], [1], [0, 0, 1, 1], [], []>} : vector<16x128xbf16>, vector<128x32xbf16>, vector<16x32xf32> -> vector<16x32xf32>
    %c2_76 = arith.constant 2 : index
    %c0_77 = arith.constant 0 : index
    %c0_78 = arith.constant 0 : index
    %105 = vector.load %arg7[%c2_76, %c0_77, %c0_78] : memref<4x1x32xf32, #tpu.memory_space<vmem>>, vector<1x1x32xf32>
    %106 = vector.shape_cast %105 : vector<1x1x32xf32> to vector<1x32xf32>
    %107 = vector.broadcast %106 : vector<1x32xf32> to vector<16x32xf32>
    %108 = arith.addf %104, %107 : vector<16x32xf32>
    %109 = arith.truncf %94 : vector<16x32xf32> to vector<16x32xbf16>
    %110 = arith.truncf %101 : vector<16x32xf32> to vector<16x32xbf16>
    %cst_79 = arith.constant dense<0.000000e+00> : vector<16x16xf32>
    %111 = tpu.matmul %109, %110, %cst_79 {dimension_numbers = #tpu.dot_dimension_numbers<[1], [1], [0], [0], [0, 0, 1, 0], [], []>} : vector<16x32xbf16>, vector<16x32xbf16>, vector<16x16xf32> -> vector<16x16xf32>
    %cst_80 = arith.constant dense<0xFF800000> : vector<16xf32>
    %112 = vector.multi_reduction <maximumf>, %111, %cst_80 [1] : vector<16x16xf32> to vector<16xf32>
    %113 = vector.shape_cast %112 : vector<16xf32> to vector<16x1xf32>
    %114 = vector.broadcast %113 : vector<16x1xf32> to vector<16x16xf32>
    %115 = arith.subf %111, %114 : vector<16x16xf32>
    %116 = math.exp %115 : vector<16x16xf32>
    %cst_81 = arith.constant dense<0.000000e+00> : vector<16xf32>
    %117 = vector.multi_reduction <add>, %116, %cst_81 [1] : vector<16x16xf32> to vector<16xf32>
    %118 = vector.shape_cast %117 : vector<16xf32> to vector<16x1xf32>
    %119 = tpu.reciprocal %118 {approx = true} : vector<16x1xf32> -> vector<16x1xf32>
    %120 = vector.broadcast %119 : vector<16x1xf32> to vector<16x16xf32>
    %121 = arith.mulf %116, %120 : vector<16x16xf32>
    %122 = arith.truncf %121 : vector<16x16xf32> to vector<16x16xbf16>
    %123 = arith.truncf %108 : vector<16x32xf32> to vector<16x32xbf16>
    %cst_82 = arith.constant dense<0.000000e+00> : vector<16x32xf32>
    %124 = tpu.matmul %122, %123, %cst_82 {dimension_numbers = #tpu.dot_dimension_numbers<[1], [0], [0], [1], [0, 0, 1, 1], [], []>} : vector<16x16xbf16>, vector<16x32xbf16>, vector<16x32xf32> -> vector<16x32xf32>
    %125 = arith.truncf %124 : vector<16x32xf32> to vector<16x32xbf16>
    %c2_83 = arith.constant 2 : index
    %c0_84 = arith.constant 0 : index
    %c0_85 = arith.constant 0 : index
    %126 = vector.load %arg8[%c2_83, %c0_84, %c0_85] : memref<4x32x128xbf16, #tpu.memory_space<vmem>>, vector<1x32x128xbf16>
    %127 = vector.shape_cast %126 : vector<1x32x128xbf16> to vector<32x128xbf16>
    %cst_86 = arith.constant dense<0.000000e+00> : vector<16x128xf32>
    %128 = tpu.matmul %125, %127, %cst_86 {dimension_numbers = #tpu.dot_dimension_numbers<[1], [0], [0], [1], [0, 0, 1, 1], [], []>} : vector<16x32xbf16>, vector<32x128xbf16>, vector<16x128xf32> -> vector<16x128xf32>
    %129 = arith.addf %87, %128 : vector<16x128xf32>
    %c3 = arith.constant 3 : index
    %c0_87 = arith.constant 0 : index
    %c0_88 = arith.constant 0 : index
    %130 = vector.load %arg2[%c3, %c0_87, %c0_88] : memref<4x128x32xbf16, #tpu.memory_space<vmem>>, vector<1x128x32xbf16>
    %131 = vector.shape_cast %130 : vector<1x128x32xbf16> to vector<128x32xbf16>
    %cst_89 = arith.constant dense<0.000000e+00> : vector<16x32xf32>
    %132 = tpu.matmul %2, %131, %cst_89 {dimension_numbers = #tpu.dot_dimension_numbers<[1], [0], [0], [1], [0, 0, 1, 1], [], []>} : vector<16x128xbf16>, vector<128x32xbf16>, vector<16x32xf32> -> vector<16x32xf32>
    %c3_90 = arith.constant 3 : index
    %c0_91 = arith.constant 0 : index
    %c0_92 = arith.constant 0 : index
    %133 = vector.load %arg3[%c3_90, %c0_91, %c0_92] : memref<4x1x32xf32, #tpu.memory_space<vmem>>, vector<1x1x32xf32>
    %134 = vector.shape_cast %133 : vector<1x1x32xf32> to vector<1x32xf32>
    %135 = vector.broadcast %134 : vector<1x32xf32> to vector<16x32xf32>
    %136 = arith.addf %132, %135 : vector<16x32xf32>
    %c3_93 = arith.constant 3 : index
    %c0_94 = arith.constant 0 : index
    %c0_95 = arith.constant 0 : index
    %137 = vector.load %arg4[%c3_93, %c0_94, %c0_95] : memref<4x128x32xbf16, #tpu.memory_space<vmem>>, vector<1x128x32xbf16>
    %138 = vector.shape_cast %137 : vector<1x128x32xbf16> to vector<128x32xbf16>
    %cst_96 = arith.constant dense<0.000000e+00> : vector<16x32xf32>
    %139 = tpu.matmul %2, %138, %cst_96 {dimension_numbers = #tpu.dot_dimension_numbers<[1], [0], [0], [1], [0, 0, 1, 1], [], []>} : vector<16x128xbf16>, vector<128x32xbf16>, vector<16x32xf32> -> vector<16x32xf32>
    %c3_97 = arith.constant 3 : index
    %c0_98 = arith.constant 0 : index
    %c0_99 = arith.constant 0 : index
    %140 = vector.load %arg5[%c3_97, %c0_98, %c0_99] : memref<4x1x32xf32, #tpu.memory_space<vmem>>, vector<1x1x32xf32>
    %141 = vector.shape_cast %140 : vector<1x1x32xf32> to vector<1x32xf32>
    %142 = vector.broadcast %141 : vector<1x32xf32> to vector<16x32xf32>
    %143 = arith.addf %139, %142 : vector<16x32xf32>
    %c3_100 = arith.constant 3 : index
    %c0_101 = arith.constant 0 : index
    %c0_102 = arith.constant 0 : index
    %144 = vector.load %arg6[%c3_100, %c0_101, %c0_102] : memref<4x128x32xbf16, #tpu.memory_space<vmem>>, vector<1x128x32xbf16>
    %145 = vector.shape_cast %144 : vector<1x128x32xbf16> to vector<128x32xbf16>
    %cst_103 = arith.constant dense<0.000000e+00> : vector<16x32xf32>
    %146 = tpu.matmul %2, %145, %cst_103 {dimension_numbers = #tpu.dot_dimension_numbers<[1], [0], [0], [1], [0, 0, 1, 1], [], []>} : vector<16x128xbf16>, vector<128x32xbf16>, vector<16x32xf32> -> vector<16x32xf32>
    %c3_104 = arith.constant 3 : index
    %c0_105 = arith.constant 0 : index
    %c0_106 = arith.constant 0 : index
    %147 = vector.load %arg7[%c3_104, %c0_105, %c0_106] : memref<4x1x32xf32, #tpu.memory_space<vmem>>, vector<1x1x32xf32>
    %148 = vector.shape_cast %147 : vector<1x1x32xf32> to vector<1x32xf32>
    %149 = vector.broadcast %148 : vector<1x32xf32> to vector<16x32xf32>
    %150 = arith.addf %146, %149 : vector<16x32xf32>
    %151 = arith.truncf %136 : vector<16x32xf32> to vector<16x32xbf16>
    %152 = arith.truncf %143 : vector<16x32xf32> to vector<16x32xbf16>
    %cst_107 = arith.constant dense<0.000000e+00> : vector<16x16xf32>
    %153 = tpu.matmul %151, %152, %cst_107 {dimension_numbers = #tpu.dot_dimension_numbers<[1], [1], [0], [0], [0, 0, 1, 0], [], []>} : vector<16x32xbf16>, vector<16x32xbf16>, vector<16x16xf32> -> vector<16x16xf32>
    %cst_108 = arith.constant dense<0xFF800000> : vector<16xf32>
    %154 = vector.multi_reduction <maximumf>, %153, %cst_108 [1] : vector<16x16xf32> to vector<16xf32>
    %155 = vector.shape_cast %154 : vector<16xf32> to vector<16x1xf32>
    %156 = vector.broadcast %155 : vector<16x1xf32> to vector<16x16xf32>
    %157 = arith.subf %153, %156 : vector<16x16xf32>
    %158 = math.exp %157 : vector<16x16xf32>
    %cst_109 = arith.constant dense<0.000000e+00> : vector<16xf32>
    %159 = vector.multi_reduction <add>, %158, %cst_109 [1] : vector<16x16xf32> to vector<16xf32>
    %160 = vector.shape_cast %159 : vector<16xf32> to vector<16x1xf32>
    %161 = tpu.reciprocal %160 {approx = true} : vector<16x1xf32> -> vector<16x1xf32>
    %162 = vector.broadcast %161 : vector<16x1xf32> to vector<16x16xf32>
    %163 = arith.mulf %158, %162 : vector<16x16xf32>
    %164 = arith.truncf %163 : vector<16x16xf32> to vector<16x16xbf16>
    %165 = arith.truncf %150 : vector<16x32xf32> to vector<16x32xbf16>
    %cst_110 = arith.constant dense<0.000000e+00> : vector<16x32xf32>
    %166 = tpu.matmul %164, %165, %cst_110 {dimension_numbers = #tpu.dot_dimension_numbers<[1], [0], [0], [1], [0, 0, 1, 1], [], []>} : vector<16x16xbf16>, vector<16x32xbf16>, vector<16x32xf32> -> vector<16x32xf32>
    %167 = arith.truncf %166 : vector<16x32xf32> to vector<16x32xbf16>
    %c3_111 = arith.constant 3 : index
    %c0_112 = arith.constant 0 : index
    %c0_113 = arith.constant 0 : index
    %168 = vector.load %arg8[%c3_111, %c0_112, %c0_113] : memref<4x32x128xbf16, #tpu.memory_space<vmem>>, vector<1x32x128xbf16>
    %169 = vector.shape_cast %168 : vector<1x32x128xbf16> to vector<32x128xbf16>
    %cst_114 = arith.constant dense<0.000000e+00> : vector<16x128xf32>
    %170 = tpu.matmul %167, %169, %cst_114 {dimension_numbers = #tpu.dot_dimension_numbers<[1], [0], [0], [1], [0, 0, 1, 1], [], []>} : vector<16x32xbf16>, vector<32x128xbf16>, vector<16x128xf32> -> vector<16x128xf32>
    %171 = arith.addf %129, %170 : vector<16x128xf32>
    %c0_115 = arith.constant 0 : index
    %c0_116 = arith.constant 0 : index
    %172 = vector.load %arg9[%c0_115, %c0_116] : memref<1x128xf32, #tpu.memory_space<vmem>>, vector<1x128xf32>
    %173 = vector.broadcast %172 : vector<1x128xf32> to vector<16x128xf32>
    %174 = arith.addf %171, %173 : vector<16x128xf32>
    %c0_117 = arith.constant 0 : index
    %c0_118 = arith.constant 0 : index
    %c0_119 = arith.constant 0 : index
    %175 = vector.load %arg10[%c0_117, %c0_118, %c0_119] : memref<1x16x128xf32, #tpu.memory_space<vmem>>, vector<1x16x128xf32>
    %176 = vector.shape_cast %175 : vector<1x16x128xf32> to vector<16x128xf32>
    %177 = vector.shape_cast %174 : vector<16x128xf32> to vector<1x16x128xf32>
    tpu.vector_store %arg10[%c0_117, %c0_118, %c0_119], %177 {strides = array<i32>} : memref<1x16x128xf32, #tpu.memory_space<vmem>>, vector<1x16x128xf32>,
    return
  }
  func.func @transform_0(%arg0: i32) -> (i32, i32, i32) {
    %c0_i32 = arith.constant 0 : i32
    %c0_i32_0 = arith.constant 0 : i32
    %c0_i32_1 = arith.constant 0 : i32
    return %arg0, %c0_i32, %c0_i32_0 : i32, i32, i32
  }
  func.func @transform_1(%arg0: i32) -> (i32, i32, i32) {
    %c0_i32 = arith.constant 0 : i32
    %c0_i32_0 = arith.constant 0 : i32
    %c0_i32_1 = arith.constant 0 : i32
    %c0_i32_2 = arith.constant 0 : i32
    return %c0_i32, %c0_i32_0, %c0_i32_1 : i32, i32, i32
  }
  func.func @transform_2(%arg0: i32) -> (i32, i32, i32) {
    %c0_i32 = arith.constant 0 : i32
    %c0_i32_0 = arith.constant 0 : i32
    %c0_i32_1 = arith.constant 0 : i32
    %c0_i32_2 = arith.constant 0 : i32
    return %c0_i32, %c0_i32_0, %c0_i32_1 : i32, i32, i32
  }
  func.func @transform_3(%arg0: i32) -> (i32, i32, i32) {
    %c0_i32 = arith.constant 0 : i32
    %c0_i32_0 = arith.constant 0 : i32
    %c0_i32_1 = arith.constant 0 : i32
    %c0_i32_2 = arith.constant 0 : i32
    return %c0_i32, %c0_i32_0, %c0_i32_1 : i32, i32, i32
  }
  func.func @transform_4(%arg0: i32) -> (i32, i32, i32) {
    %c0_i32 = arith.constant 0 : i32
    %c0_i32_0 = arith.constant 0 : i32
    %c0_i32_1 = arith.constant 0 : i32
    %c0_i32_2 = arith.constant 0 : i32
    return %c0_i32, %c0_i32_0, %c0_i32_1 : i32, i32, i32
  }
  func.func @transform_5(%arg0: i32) -> (i32, i32, i32) {
    %c0_i32 = arith.constant 0 : i32
    %c0_i32_0 = arith.constant 0 : i32
    %c0_i32_1 = arith.constant 0 : i32
    %c0_i32_2 = arith.constant 0 : i32
    return %c0_i32, %c0_i32_0, %c0_i32_1 : i32, i32, i32
  }
  func.func @transform_6(%arg0: i32) -> (i32, i32, i32) {
    %c0_i32 = arith.constant 0 : i32
    %c0_i32_0 = arith.constant 0 : i32
    %c0_i32_1 = arith.constant 0 : i32
    %c0_i32_2 = arith.constant 0 : i32
    return %c0_i32, %c0_i32_0, %c0_i32_1 : i32, i32, i32
  }
  func.func @transform_7(%arg0: i32) -> (i32, i32, i32) {
    %c0_i32 = arith.constant 0 : i32
    %c0_i32_0 = arith.constant 0 : i32
    %c0_i32_1 = arith.constant 0 : i32
    %c0_i32_2 = arith.constant 0 : i32
    return %c0_i32, %c0_i32_0, %c0_i32_1 : i32, i32, i32
  }
  func.func @transform_8(%arg0: i32) -> (i32, i32) {
    %c0_i32 = arith.constant 0 : i32
    %c0_i32_0 = arith.constant 0 : i32
    %c0_i32_1 = arith.constant 0 : i32
    return %c0_i32, %c0_i32_0 : i32, i32
  }
  func.func @transform_9(%arg0: i32) -> (i32, i32, i32) {
    %c0_i32 = arith.constant 0 : i32
    %c0_i32_0 = arith.constant 0 : i32
    %c0_i32_1 = arith.constant 0 : i32
    return %arg0, %c0_i32, %c0_i32_0 : i32, i32, i32
  }
}

module attributes {stable_mosaic.version = 11 : i64} {
  func.func @kernel(%arg0: i32, %arg1: memref<8x16x32xf32, #tpu.memory_space<vmem>>, %arg2: memref<8x4x32xf32, #tpu.memory_space<vmem>>, %arg3: memref<4x32x8xbf16, #tpu.memory_space<vmem>>, %arg4: memref<4x1x8xf32, #tpu.memory_space<vmem>>, %arg5: memref<4x32x8xbf16, #tpu.memory_space<vmem>>, %arg6: memref<4x1x8xf32, #tpu.memory_space<vmem>>, %arg7: memref<4x32x8xbf16, #tpu.memory_space<vmem>>, %arg8: memref<4x1x8xf32, #tpu.memory_space<vmem>>, %arg9: memref<8x16x32xf32, #tpu.memory_space<vmem>>) attributes {dimension_semantics = [#tpu.dimension_semantics<parallel>], iteration_bounds = array<i64: 4>, scalar_prefetch = 0 : i64, scratch_operands = 0 : i64, tpu.core_type = #tpu.core_type<tc>, window_params = [{transform_indices = @transform_0, window_bounds = array<i64: 8, 16, 32>}, {transform_indices = @transform_1, window_bounds = array<i64: 8, 4, 32>}, {pipeline_mode = #tpu.pipeline_mode<synchronous>, transform_indices = @transform_2, window_bounds = array<i64: 4, 32, 8>}, {pipeline_mode = #tpu.pipeline_mode<synchronous>, transform_indices = @transform_3, window_bounds = array<i64: 4, 1, 8>}, {pipeline_mode = #tpu.pipeline_mode<synchronous>, transform_indices = @transform_4, window_bounds = array<i64: 4, 32, 8>}, {pipeline_mode = #tpu.pipeline_mode<synchronous>, transform_indices = @transform_5, window_bounds = array<i64: 4, 1, 8>}, {pipeline_mode = #tpu.pipeline_mode<synchronous>, transform_indices = @transform_6, window_bounds = array<i64: 4, 32, 8>}, {pipeline_mode = #tpu.pipeline_mode<synchronous>, transform_indices = @transform_7, window_bounds = array<i64: 4, 1, 8>}, {transform_indices = @transform_8, window_bounds = array<i64: 8, 16, 32>}]} {
    %c0 = arith.constant 0 : index
    %c0_0 = arith.constant 0 : index
    %c0_1 = arith.constant 0 : index
    %0 = vector.load %arg1[%c0, %c0_0, %c0_1] : memref<8x16x32xf32, #tpu.memory_space<vmem>>, vector<8x16x32xf32>
    %1 = vector.shape_cast %0 : vector<8x16x32xf32> to vector<128x32xf32>
    %2 = arith.truncf %1 : vector<128x32xf32> to vector<128x32xbf16>
    %c0_2 = arith.constant 0 : index
    %c0_3 = arith.constant 0 : index
    %c0_4 = arith.constant 0 : index
    %3 = vector.load %arg2[%c0_2, %c0_3, %c0_4] : memref<8x4x32xf32, #tpu.memory_space<vmem>>, vector<8x4x32xf32>
    %4 = vector.shape_cast %3 : vector<8x4x32xf32> to vector<32x32xf32>
    %5 = arith.truncf %4 : vector<32x32xf32> to vector<32x32xbf16>
    %c0_5 = arith.constant 0 : index
    %c0_6 = arith.constant 0 : index
    %c0_7 = arith.constant 0 : index
    %6 = vector.load %arg3[%c0_5, %c0_6, %c0_7] : memref<4x32x8xbf16, #tpu.memory_space<vmem>>, vector<1x32x8xbf16>
    %7 = vector.shape_cast %6 : vector<1x32x8xbf16> to vector<32x8xbf16>
    %cst = arith.constant dense<0.000000e+00> : vector<128x8xf32>
    %8 = tpu.matmul %2, %7, %cst {dimension_numbers = #tpu.dot_dimension_numbers<[1], [0], [0], [1], [0, 0, 1, 1], [], []>} : vector<128x32xbf16>, vector<32x8xbf16>, vector<128x8xf32> -> vector<128x8xf32>
    %c0_8 = arith.constant 0 : index
    %c0_9 = arith.constant 0 : index
    %c0_10 = arith.constant 0 : index
    %9 = vector.load %arg4[%c0_8, %c0_9, %c0_10] : memref<4x1x8xf32, #tpu.memory_space<vmem>>, vector<1x1x8xf32>
    %10 = vector.shape_cast %9 : vector<1x1x8xf32> to vector<1x8xf32>
    %11 = vector.broadcast %10 : vector<1x8xf32> to vector<128x8xf32>
    %12 = arith.addf %8, %11 : vector<128x8xf32>
    %13 = vector.shape_cast %12 : vector<128x8xf32> to vector<8x16x8xf32>
    %c0_11 = arith.constant 0 : index
    %c0_12 = arith.constant 0 : index
    %c0_13 = arith.constant 0 : index
    %14 = vector.load %arg5[%c0_11, %c0_12, %c0_13] : memref<4x32x8xbf16, #tpu.memory_space<vmem>>, vector<1x32x8xbf16>
    %15 = vector.shape_cast %14 : vector<1x32x8xbf16> to vector<32x8xbf16>
    %cst_14 = arith.constant dense<0.000000e+00> : vector<32x8xf32>
    %16 = tpu.matmul %5, %15, %cst_14 {dimension_numbers = #tpu.dot_dimension_numbers<[1], [0], [0], [1], [0, 0, 1, 1], [], []>} : vector<32x32xbf16>, vector<32x8xbf16>, vector<32x8xf32> -> vector<32x8xf32>
    %c0_15 = arith.constant 0 : index
    %c0_16 = arith.constant 0 : index
    %c0_17 = arith.constant 0 : index
    %17 = vector.load %arg6[%c0_15, %c0_16, %c0_17] : memref<4x1x8xf32, #tpu.memory_space<vmem>>, vector<1x1x8xf32>
    %18 = vector.shape_cast %17 : vector<1x1x8xf32> to vector<1x8xf32>
    %19 = vector.broadcast %18 : vector<1x8xf32> to vector<32x8xf32>
    %20 = arith.addf %16, %19 : vector<32x8xf32>
    %21 = vector.shape_cast %20 : vector<32x8xf32> to vector<8x4x8xf32>
    %c0_18 = arith.constant 0 : index
    %c0_19 = arith.constant 0 : index
    %c0_20 = arith.constant 0 : index
    %22 = vector.load %arg7[%c0_18, %c0_19, %c0_20] : memref<4x32x8xbf16, #tpu.memory_space<vmem>>, vector<1x32x8xbf16>
    %23 = vector.shape_cast %22 : vector<1x32x8xbf16> to vector<32x8xbf16>
    %cst_21 = arith.constant dense<0.000000e+00> : vector<32x8xf32>
    %24 = tpu.matmul %5, %23, %cst_21 {dimension_numbers = #tpu.dot_dimension_numbers<[1], [0], [0], [1], [0, 0, 1, 1], [], []>} : vector<32x32xbf16>, vector<32x8xbf16>, vector<32x8xf32> -> vector<32x8xf32>
    %c0_22 = arith.constant 0 : index
    %c0_23 = arith.constant 0 : index
    %c0_24 = arith.constant 0 : index
    %25 = vector.load %arg8[%c0_22, %c0_23, %c0_24] : memref<4x1x8xf32, #tpu.memory_space<vmem>>, vector<1x1x8xf32>
    %26 = vector.shape_cast %25 : vector<1x1x8xf32> to vector<1x8xf32>
    %27 = vector.broadcast %26 : vector<1x8xf32> to vector<32x8xf32>
    %28 = arith.addf %24, %27 : vector<32x8xf32>
    %29 = vector.shape_cast %28 : vector<32x8xf32> to vector<8x4x8xf32>
    %30 = arith.truncf %13 : vector<8x16x8xf32> to vector<8x16x8xbf16>
    %31 = arith.truncf %21 : vector<8x4x8xf32> to vector<8x4x8xbf16>
    "tpu.trace_start"() <{level = 10 : i32, message = "bqd,bkd->bqk"}> : () -> ()
    %cst_25 = arith.constant dense<0.000000e+00> : vector<8x16x4xf32>
    %32 = tpu.matmul %30, %31, %cst_25 {dimension_numbers = #tpu.dot_dimension_numbers<[2], [2], [1], [1], [0, 0, 0, 1, 1, 1], [0], [0]>} : vector<8x16x8xbf16>, vector<8x4x8xbf16>, vector<8x16x4xf32> -> vector<8x16x4xf32>
    "tpu.trace_stop"() : () -> ()
    %cst_26 = arith.constant dense<0xFF800000> : vector<8x16xf32>
    %33 = vector.multi_reduction <maximumf>, %32, %cst_26 [2] : vector<8x16x4xf32> to vector<8x16xf32>
    %34 = vector.shape_cast %33 : vector<8x16xf32> to vector<8x16x1xf32>
    %35 = vector.broadcast %34 : vector<8x16x1xf32> to vector<8x16x4xf32>
    %36 = arith.subf %32, %35 : vector<8x16x4xf32>
    %37 = math.exp %36 : vector<8x16x4xf32>
    %cst_27 = arith.constant dense<0.000000e+00> : vector<8x16xf32>
    %38 = vector.multi_reduction <add>, %37, %cst_27 [2] : vector<8x16x4xf32> to vector<8x16xf32>
    %39 = vector.shape_cast %38 : vector<8x16xf32> to vector<8x16x1xf32>
    %40 = tpu.reciprocal %39 {approx = true} : vector<8x16x1xf32> -> vector<8x16x1xf32>
    %41 = vector.broadcast %40 : vector<8x16x1xf32> to vector<8x16x4xf32>
    %42 = arith.mulf %37, %41 : vector<8x16x4xf32>
    %43 = arith.truncf %42 : vector<8x16x4xf32> to vector<8x16x4xbf16>
    %44 = arith.truncf %29 : vector<8x4x8xf32> to vector<8x4x8xbf16>
    "tpu.trace_start"() <{level = 10 : i32, message = "bqk,bkd->bqd"}> : () -> ()
    %cst_28 = arith.constant dense<0.000000e+00> : vector<8x16x8xf32>
    %45 = tpu.matmul %43, %44, %cst_28 {dimension_numbers = #tpu.dot_dimension_numbers<[2], [1], [1], [2], [0, 0, 0, 1, 1, 2], [0], [0]>} : vector<8x16x4xbf16>, vector<8x4x8xbf16>, vector<8x16x8xf32> -> vector<8x16x8xf32>
    "tpu.trace_stop"() : () -> ()
    %c0_29 = arith.constant 0 : index
    %c0_30 = arith.constant 0 : index
    %c0_31 = arith.constant 0 : index
    %46 = vector.load %arg9[%c0_29, %c0_30, %c0_31] : memref<8x16x32xf32, #tpu.memory_space<vmem>>, vector<8x16x8xf32>
    tpu.vector_store %arg9[%c0_29, %c0_30, %c0_31], %45 {strides = array<i32>} : memref<8x16x32xf32, #tpu.memory_space<vmem>>, vector<8x16x8xf32>,
    %c1 = arith.constant 1 : index
    %c0_32 = arith.constant 0 : index
    %c0_33 = arith.constant 0 : index
    %47 = vector.load %arg3[%c1, %c0_32, %c0_33] : memref<4x32x8xbf16, #tpu.memory_space<vmem>>, vector<1x32x8xbf16>
    %48 = vector.shape_cast %47 : vector<1x32x8xbf16> to vector<32x8xbf16>
    %cst_34 = arith.constant dense<0.000000e+00> : vector<128x8xf32>
    %49 = tpu.matmul %2, %48, %cst_34 {dimension_numbers = #tpu.dot_dimension_numbers<[1], [0], [0], [1], [0, 0, 1, 1], [], []>} : vector<128x32xbf16>, vector<32x8xbf16>, vector<128x8xf32> -> vector<128x8xf32>
    %c1_35 = arith.constant 1 : index
    %c0_36 = arith.constant 0 : index
    %c0_37 = arith.constant 0 : index
    %50 = vector.load %arg4[%c1_35, %c0_36, %c0_37] : memref<4x1x8xf32, #tpu.memory_space<vmem>>, vector<1x1x8xf32>
    %51 = vector.shape_cast %50 : vector<1x1x8xf32> to vector<1x8xf32>
    %52 = vector.broadcast %51 : vector<1x8xf32> to vector<128x8xf32>
    %53 = arith.addf %49, %52 : vector<128x8xf32>
    %54 = vector.shape_cast %53 : vector<128x8xf32> to vector<8x16x8xf32>
    %c1_38 = arith.constant 1 : index
    %c0_39 = arith.constant 0 : index
    %c0_40 = arith.constant 0 : index
    %55 = vector.load %arg5[%c1_38, %c0_39, %c0_40] : memref<4x32x8xbf16, #tpu.memory_space<vmem>>, vector<1x32x8xbf16>
    %56 = vector.shape_cast %55 : vector<1x32x8xbf16> to vector<32x8xbf16>
    %cst_41 = arith.constant dense<0.000000e+00> : vector<32x8xf32>
    %57 = tpu.matmul %5, %56, %cst_41 {dimension_numbers = #tpu.dot_dimension_numbers<[1], [0], [0], [1], [0, 0, 1, 1], [], []>} : vector<32x32xbf16>, vector<32x8xbf16>, vector<32x8xf32> -> vector<32x8xf32>
    %c1_42 = arith.constant 1 : index
    %c0_43 = arith.constant 0 : index
    %c0_44 = arith.constant 0 : index
    %58 = vector.load %arg6[%c1_42, %c0_43, %c0_44] : memref<4x1x8xf32, #tpu.memory_space<vmem>>, vector<1x1x8xf32>
    %59 = vector.shape_cast %58 : vector<1x1x8xf32> to vector<1x8xf32>
    %60 = vector.broadcast %59 : vector<1x8xf32> to vector<32x8xf32>
    %61 = arith.addf %57, %60 : vector<32x8xf32>
    %62 = vector.shape_cast %61 : vector<32x8xf32> to vector<8x4x8xf32>
    %c1_45 = arith.constant 1 : index
    %c0_46 = arith.constant 0 : index
    %c0_47 = arith.constant 0 : index
    %63 = vector.load %arg7[%c1_45, %c0_46, %c0_47] : memref<4x32x8xbf16, #tpu.memory_space<vmem>>, vector<1x32x8xbf16>
    %64 = vector.shape_cast %63 : vector<1x32x8xbf16> to vector<32x8xbf16>
    %cst_48 = arith.constant dense<0.000000e+00> : vector<32x8xf32>
    %65 = tpu.matmul %5, %64, %cst_48 {dimension_numbers = #tpu.dot_dimension_numbers<[1], [0], [0], [1], [0, 0, 1, 1], [], []>} : vector<32x32xbf16>, vector<32x8xbf16>, vector<32x8xf32> -> vector<32x8xf32>
    %c1_49 = arith.constant 1 : index
    %c0_50 = arith.constant 0 : index
    %c0_51 = arith.constant 0 : index
    %66 = vector.load %arg8[%c1_49, %c0_50, %c0_51] : memref<4x1x8xf32, #tpu.memory_space<vmem>>, vector<1x1x8xf32>
    %67 = vector.shape_cast %66 : vector<1x1x8xf32> to vector<1x8xf32>
    %68 = vector.broadcast %67 : vector<1x8xf32> to vector<32x8xf32>
    %69 = arith.addf %65, %68 : vector<32x8xf32>
    %70 = vector.shape_cast %69 : vector<32x8xf32> to vector<8x4x8xf32>
    %71 = arith.truncf %54 : vector<8x16x8xf32> to vector<8x16x8xbf16>
    %72 = arith.truncf %62 : vector<8x4x8xf32> to vector<8x4x8xbf16>
    "tpu.trace_start"() <{level = 10 : i32, message = "bqd,bkd->bqk"}> : () -> ()
    %cst_52 = arith.constant dense<0.000000e+00> : vector<8x16x4xf32>
    %73 = tpu.matmul %71, %72, %cst_52 {dimension_numbers = #tpu.dot_dimension_numbers<[2], [2], [1], [1], [0, 0, 0, 1, 1, 1], [0], [0]>} : vector<8x16x8xbf16>, vector<8x4x8xbf16>, vector<8x16x4xf32> -> vector<8x16x4xf32>
    "tpu.trace_stop"() : () -> ()
    %cst_53 = arith.constant dense<0xFF800000> : vector<8x16xf32>
    %74 = vector.multi_reduction <maximumf>, %73, %cst_53 [2] : vector<8x16x4xf32> to vector<8x16xf32>
    %75 = vector.shape_cast %74 : vector<8x16xf32> to vector<8x16x1xf32>
    %76 = vector.broadcast %75 : vector<8x16x1xf32> to vector<8x16x4xf32>
    %77 = arith.subf %73, %76 : vector<8x16x4xf32>
    %78 = math.exp %77 : vector<8x16x4xf32>
    %cst_54 = arith.constant dense<0.000000e+00> : vector<8x16xf32>
    %79 = vector.multi_reduction <add>, %78, %cst_54 [2] : vector<8x16x4xf32> to vector<8x16xf32>
    %80 = vector.shape_cast %79 : vector<8x16xf32> to vector<8x16x1xf32>
    %81 = tpu.reciprocal %80 {approx = true} : vector<8x16x1xf32> -> vector<8x16x1xf32>
    %82 = vector.broadcast %81 : vector<8x16x1xf32> to vector<8x16x4xf32>
    %83 = arith.mulf %78, %82 : vector<8x16x4xf32>
    %84 = arith.truncf %83 : vector<8x16x4xf32> to vector<8x16x4xbf16>
    %85 = arith.truncf %70 : vector<8x4x8xf32> to vector<8x4x8xbf16>
    "tpu.trace_start"() <{level = 10 : i32, message = "bqk,bkd->bqd"}> : () -> ()
    %cst_55 = arith.constant dense<0.000000e+00> : vector<8x16x8xf32>
    %86 = tpu.matmul %84, %85, %cst_55 {dimension_numbers = #tpu.dot_dimension_numbers<[2], [1], [1], [2], [0, 0, 0, 1, 1, 2], [0], [0]>} : vector<8x16x4xbf16>, vector<8x4x8xbf16>, vector<8x16x8xf32> -> vector<8x16x8xf32>
    "tpu.trace_stop"() : () -> ()
    %c0_56 = arith.constant 0 : index
    %c0_57 = arith.constant 0 : index
    %c8 = arith.constant 8 : index
    %87 = vector.load %arg9[%c0_56, %c0_57, %c8] : memref<8x16x32xf32, #tpu.memory_space<vmem>>, vector<8x16x8xf32>
    tpu.vector_store %arg9[%c0_56, %c0_57, %c8], %86 {strides = array<i32>} : memref<8x16x32xf32, #tpu.memory_space<vmem>>, vector<8x16x8xf32>,
    %c2 = arith.constant 2 : index
    %c0_58 = arith.constant 0 : index
    %c0_59 = arith.constant 0 : index
    %88 = vector.load %arg3[%c2, %c0_58, %c0_59] : memref<4x32x8xbf16, #tpu.memory_space<vmem>>, vector<1x32x8xbf16>
    %89 = vector.shape_cast %88 : vector<1x32x8xbf16> to vector<32x8xbf16>
    %cst_60 = arith.constant dense<0.000000e+00> : vector<128x8xf32>
    %90 = tpu.matmul %2, %89, %cst_60 {dimension_numbers = #tpu.dot_dimension_numbers<[1], [0], [0], [1], [0, 0, 1, 1], [], []>} : vector<128x32xbf16>, vector<32x8xbf16>, vector<128x8xf32> -> vector<128x8xf32>
    %c2_61 = arith.constant 2 : index
    %c0_62 = arith.constant 0 : index
    %c0_63 = arith.constant 0 : index
    %91 = vector.load %arg4[%c2_61, %c0_62, %c0_63] : memref<4x1x8xf32, #tpu.memory_space<vmem>>, vector<1x1x8xf32>
    %92 = vector.shape_cast %91 : vector<1x1x8xf32> to vector<1x8xf32>
    %93 = vector.broadcast %92 : vector<1x8xf32> to vector<128x8xf32>
    %94 = arith.addf %90, %93 : vector<128x8xf32>
    %95 = vector.shape_cast %94 : vector<128x8xf32> to vector<8x16x8xf32>
    %c2_64 = arith.constant 2 : index
    %c0_65 = arith.constant 0 : index
    %c0_66 = arith.constant 0 : index
    %96 = vector.load %arg5[%c2_64, %c0_65, %c0_66] : memref<4x32x8xbf16, #tpu.memory_space<vmem>>, vector<1x32x8xbf16>
    %97 = vector.shape_cast %96 : vector<1x32x8xbf16> to vector<32x8xbf16>
    %cst_67 = arith.constant dense<0.000000e+00> : vector<32x8xf32>
    %98 = tpu.matmul %5, %97, %cst_67 {dimension_numbers = #tpu.dot_dimension_numbers<[1], [0], [0], [1], [0, 0, 1, 1], [], []>} : vector<32x32xbf16>, vector<32x8xbf16>, vector<32x8xf32> -> vector<32x8xf32>
    %c2_68 = arith.constant 2 : index
    %c0_69 = arith.constant 0 : index
    %c0_70 = arith.constant 0 : index
    %99 = vector.load %arg6[%c2_68, %c0_69, %c0_70] : memref<4x1x8xf32, #tpu.memory_space<vmem>>, vector<1x1x8xf32>
    %100 = vector.shape_cast %99 : vector<1x1x8xf32> to vector<1x8xf32>
    %101 = vector.broadcast %100 : vector<1x8xf32> to vector<32x8xf32>
    %102 = arith.addf %98, %101 : vector<32x8xf32>
    %103 = vector.shape_cast %102 : vector<32x8xf32> to vector<8x4x8xf32>
    %c2_71 = arith.constant 2 : index
    %c0_72 = arith.constant 0 : index
    %c0_73 = arith.constant 0 : index
    %104 = vector.load %arg7[%c2_71, %c0_72, %c0_73] : memref<4x32x8xbf16, #tpu.memory_space<vmem>>, vector<1x32x8xbf16>
    %105 = vector.shape_cast %104 : vector<1x32x8xbf16> to vector<32x8xbf16>
    %cst_74 = arith.constant dense<0.000000e+00> : vector<32x8xf32>
    %106 = tpu.matmul %5, %105, %cst_74 {dimension_numbers = #tpu.dot_dimension_numbers<[1], [0], [0], [1], [0, 0, 1, 1], [], []>} : vector<32x32xbf16>, vector<32x8xbf16>, vector<32x8xf32> -> vector<32x8xf32>
    %c2_75 = arith.constant 2 : index
    %c0_76 = arith.constant 0 : index
    %c0_77 = arith.constant 0 : index
    %107 = vector.load %arg8[%c2_75, %c0_76, %c0_77] : memref<4x1x8xf32, #tpu.memory_space<vmem>>, vector<1x1x8xf32>
    %108 = vector.shape_cast %107 : vector<1x1x8xf32> to vector<1x8xf32>
    %109 = vector.broadcast %108 : vector<1x8xf32> to vector<32x8xf32>
    %110 = arith.addf %106, %109 : vector<32x8xf32>
    %111 = vector.shape_cast %110 : vector<32x8xf32> to vector<8x4x8xf32>
    %112 = arith.truncf %95 : vector<8x16x8xf32> to vector<8x16x8xbf16>
    %113 = arith.truncf %103 : vector<8x4x8xf32> to vector<8x4x8xbf16>
    "tpu.trace_start"() <{level = 10 : i32, message = "bqd,bkd->bqk"}> : () -> ()
    %cst_78 = arith.constant dense<0.000000e+00> : vector<8x16x4xf32>
    %114 = tpu.matmul %112, %113, %cst_78 {dimension_numbers = #tpu.dot_dimension_numbers<[2], [2], [1], [1], [0, 0, 0, 1, 1, 1], [0], [0]>} : vector<8x16x8xbf16>, vector<8x4x8xbf16>, vector<8x16x4xf32> -> vector<8x16x4xf32>
    "tpu.trace_stop"() : () -> ()
    %cst_79 = arith.constant dense<0xFF800000> : vector<8x16xf32>
    %115 = vector.multi_reduction <maximumf>, %114, %cst_79 [2] : vector<8x16x4xf32> to vector<8x16xf32>
    %116 = vector.shape_cast %115 : vector<8x16xf32> to vector<8x16x1xf32>
    %117 = vector.broadcast %116 : vector<8x16x1xf32> to vector<8x16x4xf32>
    %118 = arith.subf %114, %117 : vector<8x16x4xf32>
    %119 = math.exp %118 : vector<8x16x4xf32>
    %cst_80 = arith.constant dense<0.000000e+00> : vector<8x16xf32>
    %120 = vector.multi_reduction <add>, %119, %cst_80 [2] : vector<8x16x4xf32> to vector<8x16xf32>
    %121 = vector.shape_cast %120 : vector<8x16xf32> to vector<8x16x1xf32>
    %122 = tpu.reciprocal %121 {approx = true} : vector<8x16x1xf32> -> vector<8x16x1xf32>
    %123 = vector.broadcast %122 : vector<8x16x1xf32> to vector<8x16x4xf32>
    %124 = arith.mulf %119, %123 : vector<8x16x4xf32>
    %125 = arith.truncf %124 : vector<8x16x4xf32> to vector<8x16x4xbf16>
    %126 = arith.truncf %111 : vector<8x4x8xf32> to vector<8x4x8xbf16>
    "tpu.trace_start"() <{level = 10 : i32, message = "bqk,bkd->bqd"}> : () -> ()
    %cst_81 = arith.constant dense<0.000000e+00> : vector<8x16x8xf32>
    %127 = tpu.matmul %125, %126, %cst_81 {dimension_numbers = #tpu.dot_dimension_numbers<[2], [1], [1], [2], [0, 0, 0, 1, 1, 2], [0], [0]>} : vector<8x16x4xbf16>, vector<8x4x8xbf16>, vector<8x16x8xf32> -> vector<8x16x8xf32>
    "tpu.trace_stop"() : () -> ()
    %c0_82 = arith.constant 0 : index
    %c0_83 = arith.constant 0 : index
    %c16 = arith.constant 16 : index
    %128 = vector.load %arg9[%c0_82, %c0_83, %c16] : memref<8x16x32xf32, #tpu.memory_space<vmem>>, vector<8x16x8xf32>
    tpu.vector_store %arg9[%c0_82, %c0_83, %c16], %127 {strides = array<i32>} : memref<8x16x32xf32, #tpu.memory_space<vmem>>, vector<8x16x8xf32>,
    %c3 = arith.constant 3 : index
    %c0_84 = arith.constant 0 : index
    %c0_85 = arith.constant 0 : index
    %129 = vector.load %arg3[%c3, %c0_84, %c0_85] : memref<4x32x8xbf16, #tpu.memory_space<vmem>>, vector<1x32x8xbf16>
    %130 = vector.shape_cast %129 : vector<1x32x8xbf16> to vector<32x8xbf16>
    %cst_86 = arith.constant dense<0.000000e+00> : vector<128x8xf32>
    %131 = tpu.matmul %2, %130, %cst_86 {dimension_numbers = #tpu.dot_dimension_numbers<[1], [0], [0], [1], [0, 0, 1, 1], [], []>} : vector<128x32xbf16>, vector<32x8xbf16>, vector<128x8xf32> -> vector<128x8xf32>
    %c3_87 = arith.constant 3 : index
    %c0_88 = arith.constant 0 : index
    %c0_89 = arith.constant 0 : index
    %132 = vector.load %arg4[%c3_87, %c0_88, %c0_89] : memref<4x1x8xf32, #tpu.memory_space<vmem>>, vector<1x1x8xf32>
    %133 = vector.shape_cast %132 : vector<1x1x8xf32> to vector<1x8xf32>
    %134 = vector.broadcast %133 : vector<1x8xf32> to vector<128x8xf32>
    %135 = arith.addf %131, %134 : vector<128x8xf32>
    %136 = vector.shape_cast %135 : vector<128x8xf32> to vector<8x16x8xf32>
    %c3_90 = arith.constant 3 : index
    %c0_91 = arith.constant 0 : index
    %c0_92 = arith.constant 0 : index
    %137 = vector.load %arg5[%c3_90, %c0_91, %c0_92] : memref<4x32x8xbf16, #tpu.memory_space<vmem>>, vector<1x32x8xbf16>
    %138 = vector.shape_cast %137 : vector<1x32x8xbf16> to vector<32x8xbf16>
    %cst_93 = arith.constant dense<0.000000e+00> : vector<32x8xf32>
    %139 = tpu.matmul %5, %138, %cst_93 {dimension_numbers = #tpu.dot_dimension_numbers<[1], [0], [0], [1], [0, 0, 1, 1], [], []>} : vector<32x32xbf16>, vector<32x8xbf16>, vector<32x8xf32> -> vector<32x8xf32>
    %c3_94 = arith.constant 3 : index
    %c0_95 = arith.constant 0 : index
    %c0_96 = arith.constant 0 : index
    %140 = vector.load %arg6[%c3_94, %c0_95, %c0_96] : memref<4x1x8xf32, #tpu.memory_space<vmem>>, vector<1x1x8xf32>
    %141 = vector.shape_cast %140 : vector<1x1x8xf32> to vector<1x8xf32>
    %142 = vector.broadcast %141 : vector<1x8xf32> to vector<32x8xf32>
    %143 = arith.addf %139, %142 : vector<32x8xf32>
    %144 = vector.shape_cast %143 : vector<32x8xf32> to vector<8x4x8xf32>
    %c3_97 = arith.constant 3 : index
    %c0_98 = arith.constant 0 : index
    %c0_99 = arith.constant 0 : index
    %145 = vector.load %arg7[%c3_97, %c0_98, %c0_99] : memref<4x32x8xbf16, #tpu.memory_space<vmem>>, vector<1x32x8xbf16>
    %146 = vector.shape_cast %145 : vector<1x32x8xbf16> to vector<32x8xbf16>
    %cst_100 = arith.constant dense<0.000000e+00> : vector<32x8xf32>
    %147 = tpu.matmul %5, %146, %cst_100 {dimension_numbers = #tpu.dot_dimension_numbers<[1], [0], [0], [1], [0, 0, 1, 1], [], []>} : vector<32x32xbf16>, vector<32x8xbf16>, vector<32x8xf32> -> vector<32x8xf32>
    %c3_101 = arith.constant 3 : index
    %c0_102 = arith.constant 0 : index
    %c0_103 = arith.constant 0 : index
    %148 = vector.load %arg8[%c3_101, %c0_102, %c0_103] : memref<4x1x8xf32, #tpu.memory_space<vmem>>, vector<1x1x8xf32>
    %149 = vector.shape_cast %148 : vector<1x1x8xf32> to vector<1x8xf32>
    %150 = vector.broadcast %149 : vector<1x8xf32> to vector<32x8xf32>
    %151 = arith.addf %147, %150 : vector<32x8xf32>
    %152 = vector.shape_cast %151 : vector<32x8xf32> to vector<8x4x8xf32>
    %153 = arith.truncf %136 : vector<8x16x8xf32> to vector<8x16x8xbf16>
    %154 = arith.truncf %144 : vector<8x4x8xf32> to vector<8x4x8xbf16>
    "tpu.trace_start"() <{level = 10 : i32, message = "bqd,bkd->bqk"}> : () -> ()
    %cst_104 = arith.constant dense<0.000000e+00> : vector<8x16x4xf32>
    %155 = tpu.matmul %153, %154, %cst_104 {dimension_numbers = #tpu.dot_dimension_numbers<[2], [2], [1], [1], [0, 0, 0, 1, 1, 1], [0], [0]>} : vector<8x16x8xbf16>, vector<8x4x8xbf16>, vector<8x16x4xf32> -> vector<8x16x4xf32>
    "tpu.trace_stop"() : () -> ()
    %cst_105 = arith.constant dense<0xFF800000> : vector<8x16xf32>
    %156 = vector.multi_reduction <maximumf>, %155, %cst_105 [2] : vector<8x16x4xf32> to vector<8x16xf32>
    %157 = vector.shape_cast %156 : vector<8x16xf32> to vector<8x16x1xf32>
    %158 = vector.broadcast %157 : vector<8x16x1xf32> to vector<8x16x4xf32>
    %159 = arith.subf %155, %158 : vector<8x16x4xf32>
    %160 = math.exp %159 : vector<8x16x4xf32>
    %cst_106 = arith.constant dense<0.000000e+00> : vector<8x16xf32>
    %161 = vector.multi_reduction <add>, %160, %cst_106 [2] : vector<8x16x4xf32> to vector<8x16xf32>
    %162 = vector.shape_cast %161 : vector<8x16xf32> to vector<8x16x1xf32>
    %163 = tpu.reciprocal %162 {approx = true} : vector<8x16x1xf32> -> vector<8x16x1xf32>
    %164 = vector.broadcast %163 : vector<8x16x1xf32> to vector<8x16x4xf32>
    %165 = arith.mulf %160, %164 : vector<8x16x4xf32>
    %166 = arith.truncf %165 : vector<8x16x4xf32> to vector<8x16x4xbf16>
    %167 = arith.truncf %152 : vector<8x4x8xf32> to vector<8x4x8xbf16>
    "tpu.trace_start"() <{level = 10 : i32, message = "bqk,bkd->bqd"}> : () -> ()
    %cst_107 = arith.constant dense<0.000000e+00> : vector<8x16x8xf32>
    %168 = tpu.matmul %166, %167, %cst_107 {dimension_numbers = #tpu.dot_dimension_numbers<[2], [1], [1], [2], [0, 0, 0, 1, 1, 2], [0], [0]>} : vector<8x16x4xbf16>, vector<8x4x8xbf16>, vector<8x16x8xf32> -> vector<8x16x8xf32>
    "tpu.trace_stop"() : () -> ()
    %c0_108 = arith.constant 0 : index
    %c0_109 = arith.constant 0 : index
    %c24 = arith.constant 24 : index
    %169 = vector.load %arg9[%c0_108, %c0_109, %c24] : memref<8x16x32xf32, #tpu.memory_space<vmem>>, vector<8x16x8xf32>
    tpu.vector_store %arg9[%c0_108, %c0_109, %c24], %168 {strides = array<i32>} : memref<8x16x32xf32, #tpu.memory_space<vmem>>, vector<8x16x8xf32>,
    return
  }
  func.func @transform_0(%arg0: i32) -> (i32, i32, i32) {
    %c0_i32 = arith.constant 0 : i32
    %c0_i32_0 = arith.constant 0 : i32
    %c0_i32_1 = arith.constant 0 : i32
    return %arg0, %c0_i32, %c0_i32_0 : i32, i32, i32
  }
  func.func @transform_1(%arg0: i32) -> (i32, i32, i32) {
    %c0_i32 = arith.constant 0 : i32
    %c0_i32_0 = arith.constant 0 : i32
    %c0_i32_1 = arith.constant 0 : i32
    return %arg0, %c0_i32, %c0_i32_0 : i32, i32, i32
  }
  func.func @transform_2(%arg0: i32) -> (i32, i32, i32) {
    %c0_i32 = arith.constant 0 : i32
    %c0_i32_0 = arith.constant 0 : i32
    %c0_i32_1 = arith.constant 0 : i32
    %c0_i32_2 = arith.constant 0 : i32
    return %c0_i32, %c0_i32_0, %c0_i32_1 : i32, i32, i32
  }
  func.func @transform_3(%arg0: i32) -> (i32, i32, i32) {
    %c0_i32 = arith.constant 0 : i32
    %c0_i32_0 = arith.constant 0 : i32
    %c0_i32_1 = arith.constant 0 : i32
    %c0_i32_2 = arith.constant 0 : i32
    return %c0_i32, %c0_i32_0, %c0_i32_1 : i32, i32, i32
  }
  func.func @transform_4(%arg0: i32) -> (i32, i32, i32) {
    %c0_i32 = arith.constant 0 : i32
    %c0_i32_0 = arith.constant 0 : i32
    %c0_i32_1 = arith.constant 0 : i32
    %c0_i32_2 = arith.constant 0 : i32
    return %c0_i32, %c0_i32_0, %c0_i32_1 : i32, i32, i32
  }
  func.func @transform_5(%arg0: i32) -> (i32, i32, i32) {
    %c0_i32 = arith.constant 0 : i32
    %c0_i32_0 = arith.constant 0 : i32
    %c0_i32_1 = arith.constant 0 : i32
    %c0_i32_2 = arith.constant 0 : i32
    return %c0_i32, %c0_i32_0, %c0_i32_1 : i32, i32, i32
  }
  func.func @transform_6(%arg0: i32) -> (i32, i32, i32) {
    %c0_i32 = arith.constant 0 : i32
    %c0_i32_0 = arith.constant 0 : i32
    %c0_i32_1 = arith.constant 0 : i32
    %c0_i32_2 = arith.constant 0 : i32
    return %c0_i32, %c0_i32_0, %c0_i32_1 : i32, i32, i32
  }
  func.func @transform_7(%arg0: i32) -> (i32, i32, i32) {
    %c0_i32 = arith.constant 0 : i32
    %c0_i32_0 = arith.constant 0 : i32
    %c0_i32_1 = arith.constant 0 : i32
    %c0_i32_2 = arith.constant 0 : i32
    return %c0_i32, %c0_i32_0, %c0_i32_1 : i32, i32, i32
  }
  func.func @transform_8(%arg0: i32) -> (i32, i32, i32) {
    %c0_i32 = arith.constant 0 : i32
    %c0_i32_0 = arith.constant 0 : i32
    %c0_i32_1 = arith.constant 0 : i32
    return %arg0, %c0_i32, %c0_i32_0 : i32, i32, i32
  }
}

module attributes {stable_mosaic.version = 11 : i64} {
  func.func @kernel(%arg0: i32, %arg1: memref<1x18x18x32xf32, #tpu.memory_space<vmem>>, %arg2: memref<9x32x32xbf16, #tpu.memory_space<vmem>>, %arg3: memref<1x32xf32, #tpu.memory_space<vmem>>, %arg4: memref<1x256x32xf32, #tpu.memory_space<vmem>>, %arg5: memref<1x256x32xf32, #tpu.memory_space<vmem>>) attributes {dimension_semantics = [#tpu.dimension_semantics<parallel>], iteration_bounds = array<i64: 2>, scalar_prefetch = 0 : i64, scratch_operands = 0 : i64, tpu.core_type = #tpu.core_type<tc>, window_params = [{transform_indices = @transform_0, window_bounds = array<i64: 1, 18, 18, 32>}, {pipeline_mode = #tpu.pipeline_mode<synchronous>, transform_indices = @transform_1, window_bounds = array<i64: 9, 32, 32>}, {pipeline_mode = #tpu.pipeline_mode<synchronous>, transform_indices = @transform_2, window_bounds = array<i64: 1, 32>}, {transform_indices = @transform_3, window_bounds = array<i64: 1, 256, 32>}, {transform_indices = @transform_4, window_bounds = array<i64: 1, 256, 32>}]} {
    %c0 = arith.constant 0 : index
    %c0_0 = arith.constant 0 : index
    %c0_1 = arith.constant 0 : index
    %c0_2 = arith.constant 0 : index
    %0 = vector.load %arg1[%c0, %c0_0, %c0_1, %c0_2] : memref<1x18x18x32xf32, #tpu.memory_space<vmem>>, vector<1x18x18x32xf32>
    %1 = vector.shape_cast %0 : vector<1x18x18x32xf32> to vector<18x18x32xf32>
    %2 = arith.truncf %1 : vector<18x18x32xf32> to vector<18x18x32xbf16>
    %cst = arith.constant 0.000000e+00 : f32
    %3 = vector.broadcast %cst : f32 to vector<256x32xf32>
    %4 = vector.extract_strided_slice %2 {offsets = [0, 0, 0], sizes = [16, 16, 32], strides = [1, 1, 1]} : vector<18x18x32xbf16> to vector<16x16x32xbf16>
    %5 = vector.shape_cast %4 : vector<16x16x32xbf16> to vector<256x32xbf16>
    %c0_3 = arith.constant 0 : index
    %c0_4 = arith.constant 0 : index
    %c0_5 = arith.constant 0 : index
    %6 = vector.load %arg2[%c0_3, %c0_4, %c0_5] : memref<9x32x32xbf16, #tpu.memory_space<vmem>>, vector<1x32x32xbf16>
    %7 = vector.shape_cast %6 : vector<1x32x32xbf16> to vector<32x32xbf16>
    %cst_6 = arith.constant dense<0.000000e+00> : vector<256x32xf32>
    %8 = tpu.matmul %5, %7, %cst_6 {dimension_numbers = #tpu.dot_dimension_numbers<[1], [0], [0], [1], [0, 0, 1, 1], [], []>} : vector<256x32xbf16>, vector<32x32xbf16>, vector<256x32xf32> -> vector<256x32xf32>
    %9 = arith.addf %3, %8 : vector<256x32xf32>
    %10 = vector.extract_strided_slice %2 {offsets = [0, 1, 0], sizes = [16, 16, 32], strides = [1, 1, 1]} : vector<18x18x32xbf16> to vector<16x16x32xbf16>
    %11 = vector.shape_cast %10 : vector<16x16x32xbf16> to vector<256x32xbf16>
    %c1 = arith.constant 1 : index
    %c0_7 = arith.constant 0 : index
    %c0_8 = arith.constant 0 : index
    %12 = vector.load %arg2[%c1, %c0_7, %c0_8] : memref<9x32x32xbf16, #tpu.memory_space<vmem>>, vector<1x32x32xbf16>
    %13 = vector.shape_cast %12 : vector<1x32x32xbf16> to vector<32x32xbf16>
    %cst_9 = arith.constant dense<0.000000e+00> : vector<256x32xf32>
    %14 = tpu.matmul %11, %13, %cst_9 {dimension_numbers = #tpu.dot_dimension_numbers<[1], [0], [0], [1], [0, 0, 1, 1], [], []>} : vector<256x32xbf16>, vector<32x32xbf16>, vector<256x32xf32> -> vector<256x32xf32>
    %15 = arith.addf %9, %14 : vector<256x32xf32>
    %16 = vector.extract_strided_slice %2 {offsets = [0, 2, 0], sizes = [16, 16, 32], strides = [1, 1, 1]} : vector<18x18x32xbf16> to vector<16x16x32xbf16>
    %17 = vector.shape_cast %16 : vector<16x16x32xbf16> to vector<256x32xbf16>
    %c2 = arith.constant 2 : index
    %c0_10 = arith.constant 0 : index
    %c0_11 = arith.constant 0 : index
    %18 = vector.load %arg2[%c2, %c0_10, %c0_11] : memref<9x32x32xbf16, #tpu.memory_space<vmem>>, vector<1x32x32xbf16>
    %19 = vector.shape_cast %18 : vector<1x32x32xbf16> to vector<32x32xbf16>
    %cst_12 = arith.constant dense<0.000000e+00> : vector<256x32xf32>
    %20 = tpu.matmul %17, %19, %cst_12 {dimension_numbers = #tpu.dot_dimension_numbers<[1], [0], [0], [1], [0, 0, 1, 1], [], []>} : vector<256x32xbf16>, vector<32x32xbf16>, vector<256x32xf32> -> vector<256x32xf32>
    %21 = arith.addf %15, %20 : vector<256x32xf32>
    %22 = vector.extract_strided_slice %2 {offsets = [1, 0, 0], sizes = [16, 16, 32], strides = [1, 1, 1]} : vector<18x18x32xbf16> to vector<16x16x32xbf16>
    %23 = vector.shape_cast %22 : vector<16x16x32xbf16> to vector<256x32xbf16>
    %c3 = arith.constant 3 : index
    %c0_13 = arith.constant 0 : index
    %c0_14 = arith.constant 0 : index
    %24 = vector.load %arg2[%c3, %c0_13, %c0_14] : memref<9x32x32xbf16, #tpu.memory_space<vmem>>, vector<1x32x32xbf16>
    %25 = vector.shape_cast %24 : vector<1x32x32xbf16> to vector<32x32xbf16>
    %cst_15 = arith.constant dense<0.000000e+00> : vector<256x32xf32>
    %26 = tpu.matmul %23, %25, %cst_15 {dimension_numbers = #tpu.dot_dimension_numbers<[1], [0], [0], [1], [0, 0, 1, 1], [], []>} : vector<256x32xbf16>, vector<32x32xbf16>, vector<256x32xf32> -> vector<256x32xf32>
    %27 = arith.addf %21, %26 : vector<256x32xf32>
    %28 = vector.extract_strided_slice %2 {offsets = [1, 1, 0], sizes = [16, 16, 32], strides = [1, 1, 1]} : vector<18x18x32xbf16> to vector<16x16x32xbf16>
    %29 = vector.shape_cast %28 : vector<16x16x32xbf16> to vector<256x32xbf16>
    %c4 = arith.constant 4 : index
    %c0_16 = arith.constant 0 : index
    %c0_17 = arith.constant 0 : index
    %30 = vector.load %arg2[%c4, %c0_16, %c0_17] : memref<9x32x32xbf16, #tpu.memory_space<vmem>>, vector<1x32x32xbf16>
    %31 = vector.shape_cast %30 : vector<1x32x32xbf16> to vector<32x32xbf16>
    %cst_18 = arith.constant dense<0.000000e+00> : vector<256x32xf32>
    %32 = tpu.matmul %29, %31, %cst_18 {dimension_numbers = #tpu.dot_dimension_numbers<[1], [0], [0], [1], [0, 0, 1, 1], [], []>} : vector<256x32xbf16>, vector<32x32xbf16>, vector<256x32xf32> -> vector<256x32xf32>
    %33 = arith.addf %27, %32 : vector<256x32xf32>
    %34 = vector.extract_strided_slice %2 {offsets = [1, 2, 0], sizes = [16, 16, 32], strides = [1, 1, 1]} : vector<18x18x32xbf16> to vector<16x16x32xbf16>
    %35 = vector.shape_cast %34 : vector<16x16x32xbf16> to vector<256x32xbf16>
    %c5 = arith.constant 5 : index
    %c0_19 = arith.constant 0 : index
    %c0_20 = arith.constant 0 : index
    %36 = vector.load %arg2[%c5, %c0_19, %c0_20] : memref<9x32x32xbf16, #tpu.memory_space<vmem>>, vector<1x32x32xbf16>
    %37 = vector.shape_cast %36 : vector<1x32x32xbf16> to vector<32x32xbf16>
    %cst_21 = arith.constant dense<0.000000e+00> : vector<256x32xf32>
    %38 = tpu.matmul %35, %37, %cst_21 {dimension_numbers = #tpu.dot_dimension_numbers<[1], [0], [0], [1], [0, 0, 1, 1], [], []>} : vector<256x32xbf16>, vector<32x32xbf16>, vector<256x32xf32> -> vector<256x32xf32>
    %39 = arith.addf %33, %38 : vector<256x32xf32>
    %40 = vector.extract_strided_slice %2 {offsets = [2, 0, 0], sizes = [16, 16, 32], strides = [1, 1, 1]} : vector<18x18x32xbf16> to vector<16x16x32xbf16>
    %41 = vector.shape_cast %40 : vector<16x16x32xbf16> to vector<256x32xbf16>
    %c6 = arith.constant 6 : index
    %c0_22 = arith.constant 0 : index
    %c0_23 = arith.constant 0 : index
    %42 = vector.load %arg2[%c6, %c0_22, %c0_23] : memref<9x32x32xbf16, #tpu.memory_space<vmem>>, vector<1x32x32xbf16>
    %43 = vector.shape_cast %42 : vector<1x32x32xbf16> to vector<32x32xbf16>
    %cst_24 = arith.constant dense<0.000000e+00> : vector<256x32xf32>
    %44 = tpu.matmul %41, %43, %cst_24 {dimension_numbers = #tpu.dot_dimension_numbers<[1], [0], [0], [1], [0, 0, 1, 1], [], []>} : vector<256x32xbf16>, vector<32x32xbf16>, vector<256x32xf32> -> vector<256x32xf32>
    %45 = arith.addf %39, %44 : vector<256x32xf32>
    %46 = vector.extract_strided_slice %2 {offsets = [2, 1, 0], sizes = [16, 16, 32], strides = [1, 1, 1]} : vector<18x18x32xbf16> to vector<16x16x32xbf16>
    %47 = vector.shape_cast %46 : vector<16x16x32xbf16> to vector<256x32xbf16>
    %c7 = arith.constant 7 : index
    %c0_25 = arith.constant 0 : index
    %c0_26 = arith.constant 0 : index
    %48 = vector.load %arg2[%c7, %c0_25, %c0_26] : memref<9x32x32xbf16, #tpu.memory_space<vmem>>, vector<1x32x32xbf16>
    %49 = vector.shape_cast %48 : vector<1x32x32xbf16> to vector<32x32xbf16>
    %cst_27 = arith.constant dense<0.000000e+00> : vector<256x32xf32>
    %50 = tpu.matmul %47, %49, %cst_27 {dimension_numbers = #tpu.dot_dimension_numbers<[1], [0], [0], [1], [0, 0, 1, 1], [], []>} : vector<256x32xbf16>, vector<32x32xbf16>, vector<256x32xf32> -> vector<256x32xf32>
    %51 = arith.addf %45, %50 : vector<256x32xf32>
    %52 = vector.extract_strided_slice %2 {offsets = [2, 2, 0], sizes = [16, 16, 32], strides = [1, 1, 1]} : vector<18x18x32xbf16> to vector<16x16x32xbf16>
    %53 = vector.shape_cast %52 : vector<16x16x32xbf16> to vector<256x32xbf16>
    %c8 = arith.constant 8 : index
    %c0_28 = arith.constant 0 : index
    %c0_29 = arith.constant 0 : index
    %54 = vector.load %arg2[%c8, %c0_28, %c0_29] : memref<9x32x32xbf16, #tpu.memory_space<vmem>>, vector<1x32x32xbf16>
    %55 = vector.shape_cast %54 : vector<1x32x32xbf16> to vector<32x32xbf16>
    %cst_30 = arith.constant dense<0.000000e+00> : vector<256x32xf32>
    %56 = tpu.matmul %53, %55, %cst_30 {dimension_numbers = #tpu.dot_dimension_numbers<[1], [0], [0], [1], [0, 0, 1, 1], [], []>} : vector<256x32xbf16>, vector<32x32xbf16>, vector<256x32xf32> -> vector<256x32xf32>
    %57 = arith.addf %51, %56 : vector<256x32xf32>
    %c0_31 = arith.constant 0 : index
    %c0_32 = arith.constant 0 : index
    %58 = vector.load %arg3[%c0_31, %c0_32] : memref<1x32xf32, #tpu.memory_space<vmem>>, vector<1x32xf32>
    %59 = vector.broadcast %58 : vector<1x32xf32> to vector<256x32xf32>
    %60 = arith.addf %57, %59 : vector<256x32xf32>
    %c0_33 = arith.constant 0 : index
    %c0_34 = arith.constant 0 : index
    %c0_35 = arith.constant 0 : index
    %61 = vector.load %arg4[%c0_33, %c0_34, %c0_35] : memref<1x256x32xf32, #tpu.memory_space<vmem>>, vector<1x256x32xf32>
    %62 = vector.shape_cast %61 : vector<1x256x32xf32> to vector<256x32xf32>
    %63 = arith.addf %60, %62 : vector<256x32xf32>
    %c0_36 = arith.constant 0 : index
    %c0_37 = arith.constant 0 : index
    %c0_38 = arith.constant 0 : index
    %64 = vector.load %arg5[%c0_36, %c0_37, %c0_38] : memref<1x256x32xf32, #tpu.memory_space<vmem>>, vector<1x256x32xf32>
    %65 = vector.shape_cast %64 : vector<1x256x32xf32> to vector<256x32xf32>
    %66 = vector.shape_cast %63 : vector<256x32xf32> to vector<1x256x32xf32>
    tpu.vector_store %arg5[%c0_36, %c0_37, %c0_38], %66 {strides = array<i32>} : memref<1x256x32xf32, #tpu.memory_space<vmem>>, vector<1x256x32xf32>,
    return
  }
  func.func @transform_0(%arg0: i32) -> (i32, i32, i32, i32) {
    %c0_i32 = arith.constant 0 : i32
    %c0_i32_0 = arith.constant 0 : i32
    %c0_i32_1 = arith.constant 0 : i32
    %c0_i32_2 = arith.constant 0 : i32
    return %arg0, %c0_i32, %c0_i32_0, %c0_i32_1 : i32, i32, i32, i32
  }
  func.func @transform_1(%arg0: i32) -> (i32, i32, i32) {
    %c0_i32 = arith.constant 0 : i32
    %c0_i32_0 = arith.constant 0 : i32
    %c0_i32_1 = arith.constant 0 : i32
    %c0_i32_2 = arith.constant 0 : i32
    return %c0_i32, %c0_i32_0, %c0_i32_1 : i32, i32, i32
  }
  func.func @transform_2(%arg0: i32) -> (i32, i32) {
    %c0_i32 = arith.constant 0 : i32
    %c0_i32_0 = arith.constant 0 : i32
    %c0_i32_1 = arith.constant 0 : i32
    return %c0_i32, %c0_i32_0 : i32, i32
  }
  func.func @transform_3(%arg0: i32) -> (i32, i32, i32) {
    %c0_i32 = arith.constant 0 : i32
    %c0_i32_0 = arith.constant 0 : i32
    %c0_i32_1 = arith.constant 0 : i32
    return %arg0, %c0_i32, %c0_i32_0 : i32, i32, i32
  }
  func.func @transform_4(%arg0: i32) -> (i32, i32, i32) {
    %c0_i32 = arith.constant 0 : i32
    %c0_i32_0 = arith.constant 0 : i32
    %c0_i32_1 = arith.constant 0 : i32
    return %arg0, %c0_i32, %c0_i32_0 : i32, i32, i32
  }
}

</mosaic_0001>

<bundles_post_ra>
// kernel: _lambda_.5
= control target key start
LH: loop header
LB: loop body
LE: loop exit
PB: predicated region body
PF: predicated region fallthrough
CT: control target
= control target key end

     0   :  { %s3705_s12 = smov 0   ;;  %s4517_s0 = inlined_call_operand.vmem [shape: f32[2,18,18,32], index: 0, kind: input, shape index: {}]   ;;  %s4518_s1 = inlined_call_operand.vmem [shape: bf16[9,32,32], index: 1, kind: input, shape index: {}]   ;;  %s4519_s2 = inlined_call_operand.vmem [shape: f32[1,32], index: 2, kind: input, shape index: {}]   ;;  %s4520_s3 = inlined_call_operand.vmem [shape: f32[2,256,32], index: 3, kind: output, shape index: {}]  }
   0x1 LB: > { %s2698_s13 = sadd.s32 4294967295, %s3683_s12   ;;  %p2702_p0 = scmp.ge.s32.totalorder %s3683_s12, 1  ;;  %s3683_s12 = sphi %s3705_s12, %s13_s12  }
   0x2   : > { %p137_p1 = scmp.lt.s32.totalorder %s3683_s12, 3 }
   0x4   : > { %p138_p2 = pnand %p2702_p0, %p137_p1 }
   0x6   : > { %141 = sbr.rel (%p138_p2) target bundleno = 533 (0x215), region = 32 }
   0xd   : > { %v3659_v0 = vld [vmem:[%s4518_s1 + $0x10] sm:$0xff]   ;;  %p161_p3 = scmp.lt.s32.totalorder %s2698_s13, 1  ;;  %v3719_v1 = vld [vmem:[%s4518_s1 + $0x40] sm:$0xff]   ;;  %v3661_v2 = vld [vmem:[%s4518_s1 + $0x18] sm:$0xff]   ;;  %vm476_vm0 = vcmask 261120   ;;  %vm923_vm2 = vcmask 1046528  }
   0xe   : > { %3066 = vmatprep.subr.bf16.mxu1 %v3659_v0  ;;  %3210 = vmatprep.subr.bf16.mxu0 %v3719_v1  ;;  %v3730_v3 = vld [vmem:[%s4518_s1 + $0x48] sm:$0xff]   ;;  %v3737_v4 = vld [vmem:[%s4518_s1] sm:$0xff]   ;;  %v3748_v5 = vld [vmem:[%s4518_s1 + $0x50] sm:$0xff]   ;;  %vm266_vm1 = vsmask.f32 7424 }
   0xf   : > { %s4526_s13 = smov (!%p161_p3, %s2698_s13), 1  ;;  %3067 = vmatpush3.bf16.msra.mxu1 %v3659_v0  ;;  %4523 = vst [vmem:[#allocation2_spill] sm:$0xff] %v3730_v3  ;;  %3211 = vmatpush3.bf16.msra.mxu0 %v3719_v1  ;;  %v3665_v55 = vld [vmem:[%s4518_s1 + $0x58] sm:$0xff]  }
  0x10   : > { %3068 = vmatprep.subr.bf16.mxu1 %v3661_v2  ;;  %s3650_s22 = smul.u32 432, %s4526_s13  ;;  %3212 = vmatprep.subr.bf16.mxu0 %v3730_v3  ;;  %s2903_s4 = sshll.u32 %s4526_s13, 8 }
  0x11   : > { %s4413_s7 = scalar_lea.vmem %s4520_s3, %s2903_s4 }
  0x12   : > { %s3743_s27 = scalar_lea.vmem %s4517_s0, %s3650_s22 }
  0x13   : > { %3069 = vmatpush3.bf16.msra.mxu1 %v3661_v2  ;;  %v172_v6 = vld [vmem:[%s3743_s27] sm:$0xff]  ;;  %v173_v7 = vld [vmem:[%s3743_s27 + $0x8] sm:$0xff]  ;;  %v174_v8 = vld [vmem:[%s3743_s27 + $0x10] sm:$0x3]  ;;  %3213 = vmatpush3.bf16.msra.mxu0 %v3730_v3 }
  0x14   : > { %v3754_v9 = vpack.c.bf16 %v173_v7, %v172_v6  ;;  %v3756_v10 = vpack.c.bf16 %v174_v8, %v174_v8  ;;  %3102 = vmatprep.subr.bf16.mxu1 %v3737_v4  ;;  %v175_v11 = vld [vmem:[%s3743_s27 + $0x18] sm:$0xff]  ;;  %v176_v12 = vld [vmem:[%s3743_s27 + $0x20] sm:$0xff]  ;;  %v177_v13 = vld [vmem:[%s3743_s27 + $0x28] sm:$0x3]  ;;  %3246 = vmatprep.subr.bf16.mxu0 %v3748_v5 }
  0x15   : > { %v3762_v14 = vpack.c.bf16 %v176_v12, %v175_v11  ;;  %v3764_v15 = vpack.c.bf16 %v177_v13, %v177_v13  ;;  %v178_v16 = vld [vmem:[%s3743_s27 + $0x30] sm:$0xff]  ;;  %v179_v17 = vld [vmem:[%s3743_s27 + $0x38] sm:$0xff]  ;;  %v180_v18 = vld [vmem:[%s3743_s27 + $0x40] sm:$0x3] }
  0x16   : > { %v268_v19 = vshrl.u32 %v3754_v9, 16  ;;  %v270_v20 = vshll.u32 %v3754_v9, 16  ;;  %v275_v21 = vshll.u32 %v3756_v10, 16  ;;  %v3773_v22 = vpack.c.bf16 %v179_v17, %v178_v16  ;;  %v181_v23 = vld [vmem:[%s3743_s27 + $0x48] sm:$0xff]  ;;  %v182_v24 = vld [vmem:[%s3743_s27 + $0x50] sm:$0xff]  ;;  %v184_v25 = vld [vmem:[%s3743_s27 + $0x60] sm:$0xff] }
  0x17   : > { %v280_v26 = vshrl.u32 %v3762_v14, 16  ;;  %v282_v27 = vshll.u32 %v3762_v14, 16  ;;  %v287_v28 = vshll.u32 %v3764_v15, 16  ;;  %v3781_v29 = vpack.c.bf16 %v180_v18, %v180_v18  ;;  %v183_v30 = vld [vmem:[%s3743_s27 + $0x58] sm:$0x3]  ;;  %v185_v31 = vld [vmem:[%s3743_s27 + $0x68] sm:$0xff] }
  0x18   : > { %v272_v32 = vrot.slane %v270_v20, 1  ;;  %v277_v33 = vrot.slane %v275_v21, 1  ;;  %v292_v34 = vshrl.u32 %v3773_v22, 16  ;;  %v294_v35 = vshll.u32 %v3773_v22, 16  ;;  %v186_v36 = vld [vmem:[%s3743_s27 + $0x70] sm:$0x3] }
  0x19   : > { %v284_v37 = vrot.slane %v282_v27, 1  ;;  %v289_v38 = vrot.slane %v287_v28, 1  ;;  %v299_v39 = vshll.u32 %v3781_v29, 16  ;;  %v3789_v42 = vpack.c.bf16 %v182_v24, %v181_v23  ;;  %v187_v48 = vld [vmem:[%s3743_s27 + $0x78] sm:$0xff]  ;;  %v188_v49 = vld [vmem:[%s3743_s27 + $0x80] sm:$0xff]  ;;  %v190_v56 = vld [vmem:[%s3743_s27 + $0x90] sm:$0xff] }
  0x1a   : > { %v273_v40 = vor.u32 %v272_v32, %v268_v19  ;;  %v296_v41 = vrot.slane %v294_v35, 1  ;;  %v3791_v43 = vpack.c.bf16 %v183_v30, %v183_v30  ;;  %v3793_v46 = vpack.c.bf16 %v185_v31, %v184_v25  ;;  %v189_v50 = vld [vmem:[%s3743_s27 + $0x88] sm:$0x3]  ;;  %v191_v57 = vld [vmem:[%s3743_s27 + $0x98] sm:$0xff]  ;;  %v192_v62 = vld [vmem:[%s3743_s27 + $0xa0] sm:$0x3] }
  0x1b   : > { %v285_v44 = vor.u32 %v284_v37, %v280_v26  ;;  %v301_v45 = vrot.slane %v299_v39, 1  ;;  %v3795_v47 = vpack.c.bf16 %v186_v36, %v186_v36  ;;  %v304_v53 = vshrl.u32 %v3789_v42, 16  ;;  %v193_v63 = vld [vmem:[%s3743_s27 + $0xa8] sm:$0xff]  ;;  %v195_v8 = vld [vmem:[%s3743_s27 + $0xb8] sm:$0x3]  ;;  %v194_v17 = vld [vmem:[%s3743_s27 + $0xb0] sm:$0xff] }
  0x1c   : > { %v278_v51 = vsel %vm266_vm1, %v273_v40, %v277_v33  ;;  %v297_v52 = vor.u32 %v296_v41, %v292_v34  ;;  %v306_v54 = vshll.u32 %v3789_v42, 16  ;;  %v311_v59 = vshll.u32 %v3791_v43, 16  ;;  %v3666_v18 = vld [vmem:[%s4518_s1 + $0x8] sm:$0xff]   ;;  %v196_v31 = vld [vmem:[%s3743_s27 + $0xc0] sm:$0xff] }
  0x1d   : > { %3070 = vmatprep.mubr.msk.bf16.mxu1 %vm476_vm0, %v278_v51  ;;  %v290_v58 = vsel %vm266_vm1, %v285_v44, %v289_v38  ;;  %v316_v60 = vshrl.u32 %v3793_v46, 16  ;;  %v318_v61 = vshll.u32 %v3793_v46, 16  ;;  %v323_v6 = vshll.u32 %v3795_v47, 16  ;;  %v197_v32 = vld [vmem:[%s3743_s27 + $0xc8] sm:$0xff]  ;;  %v199_v51 = vld [vmem:[%s3743_s27 + $0xd8] sm:$0xff] }
  0x1e   : > { %3214 = vmatprep.mubr.msk.bf16.mxu0 %vm476_vm0, %v290_v58  ;;  %3071 = vmatmul.mubr.msk.bf16.vlgmr.msra.gmra.mrb[0].mxu1 %vm476_vm0, %v290_v58  ;;  %v3818_v0 = vsel %vm266_vm1, %v297_v52, %v301_v45  ;;  %v308_v2 = vrot.slane %v306_v54, 1  ;;  %v3821_v7 = vpack.c.bf16 %v188_v49, %v187_v48  ;;  %v313_v11 = vrot.slane %v311_v59, 1  ;;  %v198_v45 = vld [vmem:[%s3743_s27 + $0xd0] sm:$0x3]  ;;  %v200_v52 = vld [vmem:[%s3743_s27 + $0xe0] sm:$0xff]  ;;  %v203_v58 = vld [vmem:[%s3743_s27 + $0xf8] sm:$0xff] }
  0x1f   : > { %3103 = vmatpush3.bf16.msra.mxu1 %v3737_v4  ;;  %3215 = vmatmul.mubr.msk.bf16.vlgmr.msra.gmra.mrb[0].mxu0 %vm476_vm0, %v3818_v0  ;;  %v320_v12 = vrot.slane %v318_v61, 1  ;;  %v3827_v13 = vpack.c.bf16 %v189_v50, %v189_v50  ;;  %v3829_v16 = vpack.c.bf16 %v191_v57, %v190_v56  ;;  %v325_v19 = vrot.slane %v323_v6, 1  ;;  %v3893_v59 = vld [vmem:[%s4518_s1 + $0x20] sm:$0xff]  }
  0x20   : > { %3247 = vmatpush3.bf16.msra.mxu0 %v3748_v5  ;;  %3074 = vmatprep.mubr.msk.bf16.mxu1 %vm476_vm0, %v3818_v0  ;;  %v309_v4 = vor.u32 %v308_v2, %v304_v53  ;;  %v328_v20 = vshrl.u32 %v3821_v7, 16  ;;  %v330_v21 = vshll.u32 %v3821_v7, 16  ;;  %v3841_v25 = vpack.c.bf16 %v192_v62, %v192_v62  ;;  %v3846_v5 = vld [vmem:[%s4518_s1 + $0x60] sm:$0xff]   ;;  %v202_v53 = vld [vmem:[%s3743_s27 + $0xf0] sm:$0xff]  ;;  %v201_v62 = vld [vmem:[%s3743_s27 + $0xe8] sm:$0x3] }
  0x21   : > { %v321_v23 = vor.u32 %v320_v12, %v316_v60  ;;  %v335_v24 = vshll.u32 %v3827_v13, 16  ;;  %3248 = vmatprep.subr.bf16.mxu0 %v3665_v55  ;;  %3104 = vmatprep.subr.bf16.mxu1 %v3666_v18  ;;  %v342_v28 = vshll.u32 %v3829_v16, 16  ;;  %v3852_v30 = vpack.c.bf16 %v194_v17, %v193_v63  ;;  %v204_v2 = vld [vmem:[%s3743_s27 + $0x100] sm:$0x3] }
  0x22   : > { %v3849_v26 = vsel %vm266_vm1, %v309_v4, %v313_v11  ;;  %v332_v27 = vrot.slane %v330_v21, 1  ;;  %v340_v35 = vshrl.u32 %v3829_v16, 16  ;;  %v3862_v36 = vpack.c.bf16 %v195_v8, %v195_v8 }
  0x23   : > { %3218 = vmatprep.mubr.msk.bf16.mxu0 %vm476_vm0, %v3849_v26  ;;  %v3859_v33 = vsel %vm266_vm1, %v321_v23, %v325_v19  ;;  %v337_v34 = vrot.slane %v335_v24, 1  ;;  %3105 = vmatpush3.bf16.msra.mxu1 %v3666_v18  ;;  %v344_v38 = vrot.slane %v342_v28, 1  ;;  %v347_v39 = vshll.u32 %v3841_v25, 16  ;;  %v205_v23 = vld [vmem:[%s3743_s27 + $0x108] sm:$0xff]  ;;  %v206_v24 = vld [vmem:[%s3743_s27 + $0x110] sm:$0xff] }
  0x24   : > { %v333_v37 = vor.u32 %v332_v27, %v328_v20  ;;  %3249 = vmatpush3.bf16.msra.mxu0 %v3665_v55  ;;  %v354_v40 = vshll.u32 %v3852_v30, 16  ;;  %v352_v41 = vshrl.u32 %v3852_v30, 16  ;;  %v359_v44 = vshll.u32 %v3862_v36, 16  ;;  %3138 = vmatprep.subr.bf16.mxu1 %v3893_v59 }
  0x25   : > { %v3869_v48 = vpack.c.bf16 %v197_v32, %v196_v31  ;;  %3282 = vmatprep.subr.bf16.mxu0 %v3846_v5  ;;  %v345_v54 = vor.u32 %v344_v38, %v340_v35  ;;  %v349_v55 = vrot.slane %v347_v39, 1  ;;  %v3886_v56 = vpack.c.bf16 %v198_v45, %v198_v45  ;;  %v208_v31 = vld [vmem:[%s3743_s27 + $0x120] sm:$0xff]  ;;  %v209_v32 = vld [vmem:[%s3743_s27 + $0x128] sm:$0xff]  ;;  %v207_v39 = vld [vmem:[%s3743_s27 + $0x118] sm:$0x3] }
  0x26   : > { %3075 = vmatmul.mubr.msk.bf16.gmra.mrb[4].mxu1 %vm476_vm0, %v3849_v26  ;;  %v3875_v49 = vsel %vm266_vm1, %v333_v37, %v337_v34  ;;  %v356_v50 = vrot.slane %v354_v40, 1  ;;  %v361_v61 = vrot.slane %v359_v44, 1  ;;  %v3897_v63 = vpack.c.bf16 %v200_v52, %v199_v51 }
  0x27   : > { %3219 = vmatmul.mubr.msk.bf16.gmra.mrb[4].mxu0 %vm476_vm0, %v3859_v33  ;;  %3078 = vmatprep.mubr.msk.bf16.mxu1 %vm476_vm0, %v3859_v33  ;;  %v366_v57 = vshll.u32 %v3869_v48, 16  ;;  %v3900_v6 = vpack.c.bf16 %v203_v58, %v202_v53  ;;  %v3903_v8 = vsel %vm266_vm1, %v345_v54, %v349_v55  ;;  %v364_v11 = vshrl.u32 %v3869_v48, 16  ;;  %v210_v53 = vld [vmem:[%s3743_s27 + $0x130] sm:$0x3] }
  0x28   : > { %3222 = vmatprep.mubr.msk.bf16.mxu0 %vm476_vm0, %v3875_v49  ;;  %v357_v60 = vor.u32 %v356_v50, %v352_v41  ;;  %v371_v17 = vshll.u32 %v3886_v56, 16  ;;  %v3912_v4 = vpack.c.bf16 %v201_v62, %v201_v62  ;;  %v378_v19 = vshll.u32 %v3897_v63, 16 }
  0x29   : > { %v368_v12 = vrot.slane %v366_v57, 1  ;;  %v3919_v20 = vpack.c.bf16 %v204_v2, %v204_v2  ;;  %v390_v21 = vshll.u32 %v3900_v6, 16  ;;  %v927_v34 = vrot.slane %v3762_v14, 1 }
  0x2a   : > { %v3908_v18 = vsel %vm266_vm1, %v357_v60, %v361_v61  ;;  %v373_v28 = vrot.slane %v371_v17, 1  ;;  %v928_v35 = vrot.slane %v3764_v15, 1  ;;  %v376_v37 = vshrl.u32 %v3897_v63, 16  ;;  %v212_v17 = vld [vmem:[%s3743_s27 + $0x140] sm:$0xff] }
  0x2b   : > { %v369_v27 = vor.u32 %v368_v12, %v364_v11  ;;  %v383_v38 = vshll.u32 %v3912_v4, 16  ;;  %v3933_v40 = vpack.c.bf16 %v206_v24, %v205_v23  ;;  %v380_v41 = vrot.slane %v378_v19, 1  ;;  %v211_v12 = vld [vmem:[%s3743_s27 + $0x138] sm:$0xff]  ;;  %v214_v23 = vld [vmem:[%s3743_s27 + $0x150] sm:$0xff] }
  0x2c   : > { %v388_v44 = vshrl.u32 %v3900_v6, 16  ;;  %v392_v45 = vrot.slane %v390_v21, 1  ;;  %v395_v50 = vshll.u32 %v3919_v20, 16  ;;  %v3940_v52 = vpack.c.bf16 %v209_v32, %v208_v31  ;;  %v215_v24 = vld [vmem:[%s3743_s27 + $0x158] sm:$0xff] }
  0x2d   : > { %v3938_v51 = vsel %vm266_vm1, %v369_v27, %v373_v28  ;;  %v3943_v15 = vsel %vm923_vm2, %v927_v34, %v928_v35  ;;  %v931_v54 = vrot.slane %v3781_v29, 1  ;;  %v930_v55 = vrot.slane %v3773_v22, 1 }
  0x2e   : > { %3079 = vmatmul.mubr.msk.bf16.gmra.mrb[8].mxu1 %vm476_vm0, %v3875_v49  ;;  %v3950_v57 = vpack.c.bf16 %v207_v39, %v207_v39  ;;  %v402_v58 = vshll.u32 %v3933_v40, 16  ;;  %v381_v60 = vor.u32 %v380_v41, %v376_v37  ;;  %v385_v61 = vrot.slane %v383_v38, 1  ;;  %v213_v41 = vld [vmem:[%s3743_s27 + $0x148] sm:$0x3] }
  0x2f   : > { %3223 = vmatmul.mubr.msk.bf16.gmra.mrb[8].mxu0 %vm476_vm0, %v3903_v8  ;;  %3082 = vmatprep.mubr.msk.bf16.mxu1 %vm476_vm0, %v3903_v8  ;;  %v393_v29 = vor.u32 %v392_v45, %v388_v44  ;;  %v397_v62 = vrot.slane %v395_v50, 1  ;;  %v3959_v2 = vpack.c.bf16 %v210_v53, %v210_v53  ;;  %v414_v11 = vshll.u32 %v3940_v52, 16  ;;  %v216_v50 = vld [vmem:[%s3743_s27 + $0x160] sm:$0x3]  ;;  %v3669_v53 = vld [vmem:[%s4518_s1 + $0x68] sm:$0xff]  }
  0x30   : > { %3226 = vmatprep.mubr.msk.bf16.mxu0 %vm476_vm0, %v3908_v18  ;;  %v933_v19 = vrot.slane %v3789_v42, 1  ;;  %v934_v21 = vrot.slane %v3791_v43, 1  ;;  %v400_v27 = vshrl.u32 %v3933_v40, 16  ;;  %v404_v28 = vrot.slane %v402_v58, 1 }
  0x31   : > { %v407_v31 = vshll.u32 %v3950_v57, 16  ;;  %v3971_v32 = vsel %vm266_vm1, %v381_v60, %v385_v61  ;;  %v3974_v34 = vsel %vm923_vm2, %v930_v55, %v931_v54  ;;  %v3977_v35 = vsel %vm266_vm1, %v393_v29, %v397_v62 }
  0x32   : > { %v3979_v37 = vpack.c.bf16 %v212_v17, %v211_v12  ;;  %v412_v43 = vshrl.u32 %v3940_v52, 16  ;;  %v416_v38 = vrot.slane %v414_v11, 1  ;;  %v419_v39 = vshll.u32 %v3959_v2, 16  ;;  %v217_v17 = vld [vmem:[%s3743_s27 + $0x168] sm:$0xff] }
  0x33   : > { %v3984_v44 = vpack.c.bf16 %v215_v24, %v214_v23  ;;  %v3987_v45 = vsel %vm923_vm2, %v933_v19, %v934_v21  ;;  %v405_v54 = vor.u32 %v404_v28, %v400_v27  ;;  %v409_v55 = vrot.slane %v407_v31, 1  ;;  %v218_v19 = vld [vmem:[%s3743_s27 + $0x170] sm:$0xff] }
  0x34   : > { %v936_v58 = vrot.slane %v3793_v46, 1  ;;  %v937_v60 = vrot.slane %v3795_v47, 1  ;;  %v4001_v61 = vpack.c.bf16 %v213_v41, %v213_v41  ;;  %v426_v29 = vshll.u32 %v3979_v37, 16 }
  0x35   : > { %v417_v62 = vor.u32 %v416_v38, %v412_v43  ;;  %v421_v11 = vrot.slane %v419_v39, 1  ;;  %v4007_v12 = vpack.c.bf16 %v216_v50, %v216_v50  ;;  %v438_v47 = vshll.u32 %v3984_v44, 16 }
  0x36   : > { %3083 = vmatmul.mubr.msk.bf16.gmra.mrb[12].mxu1 %vm476_vm0, %v3908_v18  ;;  %v939_v21 = vrot.slane %v3821_v7, 1  ;;  %v940_v23 = vrot.slane %v3827_v13, 1  ;;  %v4020_v24 = vsel %vm266_vm1, %v405_v54, %v409_v55  ;;  %v4023_v27 = vsel %vm923_vm2, %v936_v58, %v937_v60  ;;  %v219_v54 = vld [vmem:[%s3743_s27 + $0x178] sm:$0x3] }
  0x37   : > { %3227 = vmatmul.mubr.msk.bf16.gmra.mrb[12].mxu0 %vm476_vm0, %v3938_v51  ;;  %3086 = vmatprep.mubr.msk.bf16.mxu1 %vm476_vm0, %v3938_v51  ;;  %v424_v28 = vshrl.u32 %v3979_v37, 16  ;;  %v428_v31 = vrot.slane %v426_v29, 1  ;;  %v431_v43 = vshll.u32 %v4001_v61, 16  ;;  %v4027_v38 = vpack.c.bf16 %v218_v19, %v217_v17 }
  0x38   : > { %3250 = vmatprep.mubr.msk.bf16.mxu0 %vm476_vm0, %v3943_v15  ;;  %v4030_v13 = vsel %vm266_vm1, %v417_v62, %v421_v11  ;;  %v436_v39 = vshrl.u32 %v3984_v44, 16  ;;  %v440_v41 = vrot.slane %v438_v47, 1  ;;  %v443_v50 = vshll.u32 %v4007_v12, 16 }
  0x39   : > { %v4036_v55 = vsel %vm923_vm2, %v939_v21, %v940_v23  ;;  %v429_v58 = vor.u32 %v428_v31, %v424_v28  ;;  %v433_v60 = vrot.slane %v431_v43, 1  ;;  %v4045_v29 = vpack.c.bf16 %v219_v54, %v219_v54 }
  0x3a   : > { %v942_v62 = vrot.slane %v3829_v16, 1  ;;  %v943_v11 = vrot.slane %v3841_v25, 1  ;;  %v441_v47 = vor.u32 %v440_v41, %v436_v39  ;;  %v445_v17 = vrot.slane %v443_v50, 1 }
  0x3b   : > { %v945_v19 = vrot.slane %v3852_v30, 1  ;;  %v946_v21 = vrot.slane %v3862_v36, 1  ;;  %v4055_v23 = vsel %vm266_vm1, %v429_v58, %v433_v60  ;;  %v448_v28 = vshrl.u32 %v4027_v38, 16 }
  0x3c   : > { %v455_v43 = vshll.u32 %v4045_v29, 16  ;;  %v4060_v54 = vsel %vm923_vm2, %v942_v62, %v943_v11  ;;  %v4063_v3 = vsel %vm266_vm1, %v441_v47, %v445_v17  ;;  %v948_v41 = vrot.slane %v3869_v48, 1 }
  0x3d   : > { %v4066_v25 = vsel %vm923_vm2, %v945_v19, %v946_v21  ;;  %v949_v50 = vrot.slane %v3886_v56, 1  ;;  %v951_v58 = vrot.slane %v3897_v63, 1  ;;  %v952_v60 = vrot.slane %v3912_v4, 1 }
  0x3e   : > { %3087 = vmatmul.mubr.msk.bf16.gmra.mrb[16].mxu1 %vm476_vm0, %v3971_v32  ;;  %v457_v39 = vrot.slane %v455_v43, 1  ;;  %v954_v56 = vrot.slane %v3900_v6, 1  ;;  %v955_v4 = vrot.slane %v3919_v20, 1  ;;  %v957_v47 = vrot.slane %v3933_v40, 1 }
  0x3f   : > { %3251 = vmatmul.mubr.msk.bf16.vlgmr.msra.gmra.mrb[0].mxu0 %vm476_vm0, %v3974_v34  ;;  %3090 = vmatprep.mubr.msk.bf16.mxu1 %vm476_vm0, %v3977_v35  ;;  %v4084_v62 = vsel %vm923_vm2, %v948_v41, %v949_v50  ;;  %v4087_v11 = vsel %vm923_vm2, %v951_v58, %v952_v60  ;;  %v958_v17 = vrot.slane %v3950_v57, 1  ;;  %v960_v20 = vrot.slane %v3940_v52, 1  ;;  %v220_v58 = vld [vmem:[%s3743_s27 + $0x180] sm:$0xff]  ;;  %v221_v60 = vld [vmem:[%s3743_s27 + $0x188] sm:$0xff] }
  0x40   : > { %3283 = vmatpush3.bf16.msra.mxu0 %v3846_v5  ;;  %3254 = vmatprep.mubr.msk.bf16.mxu0 %vm476_vm0, %v3987_v45  ;;  %v4017_v5 = vld [vmem:[%s4518_s1 + $0x70] sm:$0xff]   ;;  %v4102_v19 = vsel %vm923_vm2, %v954_v56, %v955_v4  ;;  %v961_v57 = vrot.slane %v3959_v2, 1  ;;  %v964_v43 = vrot.slane %v4001_v61, 1  ;;  %v966_v2 = vrot.slane %v3984_v44, 1 }
  0x41   : > { %3284 = vmatprep.subr.bf16.mxu0 %v3669_v53  ;;  %v4105_v21 = vsel %vm923_vm2, %v957_v47, %v958_v17  ;;  %v967_v61 = vrot.slane %v4007_v12, 1  ;;  %v969_v41 = vrot.slane %v4027_v38, 1  ;;  %v970_v50 = vrot.slane %v4045_v29, 1  ;;  %v222_v56 = vld [vmem:[%s3743_s27 + $0x190] sm:$0x3] }
  0x42   : > { %v4150_v47 = vpack.c.bf16 %v221_v60, %v220_v58  ;;  %v4152_v17 = vpack.c.bf16 %v222_v56, %v222_v56 }
  0x43   : > { %v4148_v4 = vsel %vm923_vm2, %v966_v2, %v967_v61  ;;  %v3674_v61 = vld [vmem:[%s4518_s1 + $0x38] sm:$0xff]  }
  0x44   : > { %3285 = vmatpush3.bf16.msra.mxu0 %v3669_v53  ;;  %v450_v53 = vshll.u32 %v4027_v38, 16  ;;  %v1669_v12 = vrot.slane %v4150_v47, 1  ;;  %v1670_v29 = vrot.slane %v4152_v17, 1 }
  0x45   : > { %3318 = vmatprep.subr.bf16.mxu0 %v4017_v5 }
  0x46   : > { %3091 = vmatmul.mubr.msk.bf16.gmra.mrb[20].mxu1 %vm476_vm0, %v4020_v24  ;;  %v452_v31 = vrot.slane %v450_v53, 1 }
  0x47   : > { %3255 = vmatmul.mubr.msk.bf16.gmra.mrb[4].mxu0 %vm476_vm0, %v4023_v27  ;;  %3094 = vmatprep.mubr.msk.bf16.mxu1 %vm476_vm0, %v4030_v13 }
  0x48   : > { %3258 = vmatprep.mubr.msk.bf16.mxu0 %vm476_vm0, %v4036_v55  ;;  %v453_v36 = vor.u32 %v452_v31, %v448_v28  ;;  %v3670_v28 = vld [vmem:[%s4518_s1 + $0x28] sm:$0xff]   ;;  %v3672_v31 = vld [vmem:[%s4518_s1 + $0x30] sm:$0xff]  }
  0x4a   : > { %v4081_v53 = vsel %vm266_vm1, %v453_v36, %v457_v39  ;;  %v4127_v36 = vsel %vm923_vm2, %v960_v20, %v961_v57  ;;  %v4168_v20 = vsel %vm923_vm2, %v1669_v12, %v1670_v29  ;;  %v3673_v57 = vld [vmem:[%s4518_s1 + $0x78] sm:$0xff]  }
  0x4e   : > { %3095 = vmatmul.mubr.msk.bf16.gmra.mrb[24].mxu1 %vm476_vm0, %v4055_v23 }
  0x4f   : > { %3259 = vmatmul.mubr.msk.bf16.gmra.mrb[8].mxu0 %vm476_vm0, %v4060_v54  ;;  %3098 = vmatprep.mubr.msk.bf16.mxu1 %vm476_vm0, %v4063_v3 }
  0x50   : > { %3262 = vmatprep.mubr.msk.bf16.mxu0 %vm476_vm0, %v4066_v25 }
  0x56   : > { %3099 = vmatmul.mubr.msk.bf16.gmra.mrb[28].mxu1 %vm476_vm0, %v4081_v53 }
  0x57   : > { %3263 = vmatmul.mubr.msk.bf16.gmra.mrb[12].mxu0 %vm476_vm0, %v4084_v62  ;;  %3106 = vmatprep.mubr.msk.bf16.mxu1 %vm476_vm0, %v3754_v9 }
  0x58   : > { %3266 = vmatprep.mubr.msk.bf16.mxu0 %vm476_vm0, %v4087_v11 }
  0x5e   : > { %3107 = vmatmul.mubr.msk.bf16.vlgmr.msra.gmra.mrb[0].mxu1 %vm476_vm0, %v3762_v14 }
  0x5f   : > { %3139 = vmatpush3.bf16.msra.mxu1 %v3893_v59  ;;  %3267 = vmatmul.mubr.msk.bf16.gmra.mrb[16].mxu0 %vm476_vm0, %v4102_v19  ;;  %v963_v59 = vrot.slane %v3979_v37, 1 }
  0x60   : > { %3110 = vmatprep.mubr.msk.bf16.mxu1 %vm476_vm0, %v3773_v22  ;;  %3270 = vmatprep.mubr.msk.bf16.mxu0 %vm476_vm0, %v4105_v21 }
  0x61   : > { %3140 = vmatprep.subr.bf16.mxu1 %v3670_v28  ;;  %v4130_v39 = vsel %vm923_vm2, %v963_v59, %v964_v43  ;;  %v3675_v59 = vld [vmem:[%s4518_s1 + $0x80] sm:$0xff]   ;;  %v925_v43 = vrot.slane %v3756_v10, 1 }
  0x62   : > { %v224_v10 = vld [vmem:[%s3743_s27 + $0x1a0] sm:$0xff] }
  0x63   : > { %3141 = vmatpush3.bf16.msra.mxu1 %v3670_v28  ;;  %v4155_v28 = vsel %vm923_vm2, %v969_v41, %v970_v50 }
  0x64   : > { %3174 = vmatprep.subr.bf16.mxu1 %v3672_v31 }
  0x66   : > { %3111 = vmatmul.mubr.msk.bf16.gmra.mrb[4].mxu1 %vm476_vm0, %v3789_v42 }
  0x67   : > { %3271 = vmatmul.mubr.msk.bf16.gmra.mrb[20].mxu0 %vm476_vm0, %v4127_v36  ;;  %3114 = vmatprep.mubr.msk.bf16.mxu1 %vm476_vm0, %v3793_v46 }
  0x68   : > { %3274 = vmatprep.mubr.msk.bf16.mxu0 %vm476_vm0, %v4130_v39 }
  0x6e   : > { %3115 = vmatmul.mubr.msk.bf16.gmra.mrb[8].mxu1 %vm476_vm0, %v3821_v7 }
  0x6f   : > { %3275 = vmatmul.mubr.msk.bf16.gmra.mrb[24].mxu0 %vm476_vm0, %v4148_v4  ;;  %3118 = vmatprep.mubr.msk.bf16.mxu1 %vm476_vm0, %v3829_v16 }
  0x70   : > { %3278 = vmatprep.mubr.msk.bf16.mxu0 %vm476_vm0, %v4155_v28 }
  0x76   : > { %3119 = vmatmul.mubr.msk.bf16.gmra.mrb[12].mxu1 %vm476_vm0, %v3852_v30 }
  0x77   : > { %3279 = vmatmul.mubr.msk.bf16.gmra.mrb[28].mxu0 %vm476_vm0, %v4168_v20  ;;  %3122 = vmatprep.mubr.msk.bf16.mxu1 %vm476_vm0, %v3869_v48 }
  0x78   : > { %3286 = vmatprep.mubr.msk.bf16.mxu0 %vm476_vm0, %v3773_v22 }
  0x7e   : > { %3123 = vmatmul.mubr.msk.bf16.gmra.mrb[16].mxu1 %vm476_vm0, %v3897_v63 }
  0x7f   : > { %3287 = vmatmul.mubr.msk.bf16.vlgmr.msra.gmra.mrb[0].mxu0 %vm476_vm0, %v3789_v42  ;;  %3126 = vmatprep.mubr.msk.bf16.mxu1 %vm476_vm0, %v3900_v6 }
  0x80   : > { %3319 = vmatpush3.bf16.msra.mxu0 %v4017_v5  ;;  %3290 = vmatprep.mubr.msk.bf16.mxu0 %vm476_vm0, %v3793_v46  ;;  %v924_v5 = vrot.slane %v3754_v9, 1  ;;  %v223_v9 = vld [vmem:[%s3743_s27 + $0x198] sm:$0xff] }
  0x81   : > { %3320 = vmatprep.subr.bf16.mxu0 %v3673_v57 }
  0x82   : > { %v926_v2 = vsel %vm923_vm2, %v924_v5, %v925_v43 }
  0x84   : > { %3321 = vmatpush3.bf16.msra.mxu0 %v3673_v57 }
  0x85   : > { %3354 = vmatprep.subr.bf16.mxu0 %v3675_v59 }
  0x86   : > { %3127 = vmatmul.mubr.msk.bf16.gmra.mrb[20].mxu1 %vm476_vm0, %v3933_v40 }
  0x87   : > { %3291 = vmatmul.mubr.msk.bf16.gmra.mrb[4].mxu0 %vm476_vm0, %v3821_v7  ;;  %3130 = vmatprep.mubr.msk.bf16.mxu1 %vm476_vm0, %v3940_v52 }
  0x88   : > { %3294 = vmatprep.mubr.msk.bf16.mxu0 %vm476_vm0, %v3829_v16 }
  0x8e   : > { %3131 = vmatmul.mubr.msk.bf16.gmra.mrb[24].mxu1 %vm476_vm0, %v3979_v37 }
  0x8f   : > { %3295 = vmatmul.mubr.msk.bf16.gmra.mrb[8].mxu0 %vm476_vm0, %v3852_v30  ;;  %3134 = vmatprep.mubr.msk.bf16.mxu1 %vm476_vm0, %v3984_v44 }
  0x90   : > { %3298 = vmatprep.mubr.msk.bf16.mxu0 %vm476_vm0, %v3869_v48 }
  0x96   : > { %3135 = vmatmul.mubr.msk.bf16.gmra.mrb[28].mxu1 %vm476_vm0, %v4027_v38 }
  0x97   : > { %3299 = vmatmul.mubr.msk.bf16.gmra.mrb[12].mxu0 %vm476_vm0, %v3897_v63  ;;  %3142 = vmatprep.mubr.msk.bf16.mxu1 %vm476_vm0, %v926_v2 }
  0x98   : > { %3302 = vmatprep.mubr.msk.bf16.mxu0 %vm476_vm0, %v3900_v6 }
  0x9e   : > { %3143 = vmatmul.mubr.msk.bf16.vlgmr.msra.gmra.mrb[0].mxu1 %vm476_vm0, %v3943_v15  ;;  %v4249_v15 = vpack.c.bf16 %v224_v10, %v223_v9 }
  0x9f   : > { %3175 = vmatpush3.bf16.msra.mxu1 %v3672_v31  ;;  %3303 = vmatmul.mubr.msk.bf16.gmra.mrb[16].mxu0 %vm476_vm0, %v3933_v40  ;;  %v3676_v31 = vld [vmem:[%s4518_s1 + $0x88] sm:$0xff]  }
  0xa0   : > { %3146 = vmatprep.mubr.msk.bf16.mxu1 %vm476_vm0, %v3974_v34  ;;  %3306 = vmatprep.mubr.msk.bf16.mxu0 %vm476_vm0, %v3940_v52 }
  0xa1   : > { %3176 = vmatprep.subr.bf16.mxu1 %v3674_v61 }
  0xa3   : > { %3177 = vmatpush3.bf16.msra.mxu1 %v3674_v61 }
  0xa4   : > { %3390 = vmatprep.subr.bf16.mxu1 %v3719_v1 }
  0xa6   : > { %3147 = vmatmul.mubr.msk.bf16.gmra.mrb[4].mxu1 %vm476_vm0, %v3987_v45 }
  0xa7   : > { %3307 = vmatmul.mubr.msk.bf16.gmra.mrb[20].mxu0 %vm476_vm0, %v3979_v37  ;;  %3150 = vmatprep.mubr.msk.bf16.mxu1 %vm476_vm0, %v4023_v27 }
  0xa8   : > { %3310 = vmatprep.mubr.msk.bf16.mxu0 %vm476_vm0, %v3984_v44 }
  0xae   : > { %3151 = vmatmul.mubr.msk.bf16.gmra.mrb[8].mxu1 %vm476_vm0, %v4036_v55 }
  0xaf   : > { %3311 = vmatmul.mubr.msk.bf16.gmra.mrb[24].mxu0 %vm476_vm0, %v4027_v38  ;;  %3154 = vmatprep.mubr.msk.bf16.mxu1 %vm476_vm0, %v4060_v54 }
  0xb0   : > { %3314 = vmatprep.mubr.msk.bf16.mxu0 %vm476_vm0, %v4150_v47 }
  0xb6   : > { %3155 = vmatmul.mubr.msk.bf16.gmra.mrb[12].mxu1 %vm476_vm0, %v4066_v25 }
  0xb7   : > { %3315 = vmatmul.mubr.msk.bf16.gmra.mrb[28].mxu0 %vm476_vm0, %v4249_v15  ;;  %3158 = vmatprep.mubr.msk.bf16.mxu1 %vm476_vm0, %v4084_v62 }
  0xb8   : > { %3322 = vmatprep.mubr.msk.bf16.mxu0 %vm476_vm0, %v3818_v0  ;;  %v1445_v0 = vshll.u32 %v4150_v47, 16 }
  0xbe   : > { %3159 = vmatmul.mubr.msk.bf16.gmra.mrb[16].mxu1 %vm476_vm0, %v4087_v11 }
  0xbf   : > { %3323 = vmatmul.mubr.msk.bf16.vlgmr.msra.gmra.mrb[0].mxu0 %vm476_vm0, %v3849_v26  ;;  %3162 = vmatprep.mubr.msk.bf16.mxu1 %vm476_vm0, %v4102_v19  ;;  %v1443_v26 = vshrl.u32 %v4150_v47, 16 }
  0xc0   : > { %3355 = vmatpush3.bf16.msra.mxu0 %v3675_v59  ;;  %3326 = vmatprep.mubr.msk.bf16.mxu0 %vm476_vm0, %v3859_v33  ;;  %v225_v33 = vld [vmem:[%s3743_s27 + $0x1a8] sm:$0x3] }
  0xc1   : > { %3356 = vmatprep.subr.bf16.mxu0 %v3676_v31 }
  0xc4   : > { %3357 = vmatpush3.bf16.msra.mxu0 %v3676_v31 }
  0xc6   : > { %3163 = vmatmul.mubr.msk.bf16.gmra.mrb[20].mxu1 %vm476_vm0, %v4105_v21 }
  0xc7   : > { %3327 = vmatmul.mubr.msk.bf16.gmra.mrb[4].mxu0 %vm476_vm0, %v3875_v49  ;;  %3166 = vmatprep.mubr.msk.bf16.mxu1 %vm476_vm0, %v4127_v36  ;;  %v2100_v49 = vshll.u32 %v4249_v15, 16 }
  0xc8   : > { %3330 = vmatprep.mubr.msk.bf16.mxu0 %vm476_vm0, %v3903_v8 }
  0xc9   : > { %v2102_v41 = vrot.slane %v2100_v49, 1 }
  0xce   : > { %3167 = vmatmul.mubr.msk.bf16.gmra.mrb[24].mxu1 %vm476_vm0, %v4130_v39 }
  0xcf   : > { %3331 = vmatmul.mubr.msk.bf16.gmra.mrb[8].mxu0 %vm476_vm0, %v3908_v18  ;;  %3170 = vmatprep.mubr.msk.bf16.mxu1 %vm476_vm0, %v4148_v4 }
  0xd0   : > { %3334 = vmatprep.mubr.msk.bf16.mxu0 %vm476_vm0, %v3938_v51  ;;  %v2098_v51 = vshrl.u32 %v4249_v15, 16 }
  0xd6   : > { %3171 = vmatmul.mubr.msk.bf16.gmra.mrb[28].mxu1 %vm476_vm0, %v4155_v28 }
  0xd7   : > { %3335 = vmatmul.mubr.msk.bf16.gmra.mrb[12].mxu0 %vm476_vm0, %v3971_v32  ;;  %3178 = vmatprep.mubr.msk.bf16.mxu1 %vm476_vm0, %v3762_v14  ;;  %v4524_v14 = vld [vmem:[#allocation2_spill] sm:$0xff] }
  0xd8   : > { %3338 = vmatprep.mubr.msk.bf16.mxu0 %vm476_vm0, %v3977_v35 }
  0xde   : > { %3179 = vmatmul.mubr.msk.bf16.vlgmr.msra.gmra.mrb[0].mxu1 %vm476_vm0, %v3773_v22  ;;  %v1447_v22 = vrot.slane %v1445_v0, 1 }
  0xdf   : > { %3392 = vmatpush3.bf16.msra.mxu1 %v3719_v1  ;;  %3339 = vmatmul.mubr.msk.bf16.gmra.mrb[16].mxu0 %vm476_vm0, %v4020_v24  ;;  %v1450_v1 = vshll.u32 %v4152_v17, 16 }
  0xe0   : > { %3182 = vmatprep.mubr.msk.bf16.mxu1 %vm476_vm0, %v3789_v42  ;;  %3342 = vmatprep.mubr.msk.bf16.mxu0 %vm476_vm0, %v4030_v13  ;;  %v261_v42 = vpack.c.bf16 %v225_v33, %v225_v33  ;;  %v1448_v8 = vor.u32 %v1447_v22, %v1443_v26 }
  0xe1   : > { %3391 = vmatprep.subr.bf16.mxu1 %v4524_v14  ;;  %v1452_v18 = vrot.slane %v1450_v1, 1 }
  0xe2   : > { %v2105_v50 = vshll.u32 %v261_v42, 16 }
  0xe3   : > { %3393 = vmatpush3.bf16.msra.mxu1 %v4524_v14 }
  0xe4   : > { %v2107_v58 = vrot.slane %v2105_v50, 1 }
  0xe6   : > { %3183 = vmatmul.mubr.msk.bf16.gmra.mrb[4].mxu1 %vm476_vm0, %v3793_v46  ;;  %v1453_v46 = vsel %vm266_vm1, %v1448_v8, %v1452_v18 }
  0xe7   : > { %3343 = vmatmul.mubr.msk.bf16.gmra.mrb[20].mxu0 %vm476_vm0, %v4055_v23  ;;  %3186 = vmatprep.mubr.msk.bf16.mxu1 %vm476_vm0, %v3821_v7  ;;  %v2103_v7 = vor.u32 %v2102_v41, %v2098_v51 }
  0xe8   : > { %3346 = vmatprep.mubr.msk.bf16.mxu0 %vm476_vm0, %v4063_v3 }
  0xe9   : > { %v2108_v60 = vsel %vm266_vm1, %v2103_v7, %v2107_v58 }
  0xee   : > { %3187 = vmatmul.mubr.msk.bf16.gmra.mrb[8].mxu1 %vm476_vm0, %v3829_v16  ;;  %v2324_v16 = vrot.slane %v4249_v15, 1 }
  0xef   : > { %3347 = vmatmul.mubr.msk.bf16.gmra.mrb[24].mxu0 %vm476_vm0, %v4081_v53  ;;  %3190 = vmatprep.mubr.msk.bf16.mxu1 %vm476_vm0, %v3852_v30  ;;  %v2325_v30 = vrot.slane %v261_v42, 1 }
  0xf0   : > { %3350 = vmatprep.mubr.msk.bf16.mxu0 %vm476_vm0, %v1453_v46 }
  0xf6   : > { %3191 = vmatmul.mubr.msk.bf16.gmra.mrb[12].mxu1 %vm476_vm0, %v3869_v48  ;;  %v2326_v48 = vsel %vm923_vm2, %v2324_v16, %v2325_v30 }
  0xf7   : > { %3351 = vmatmul.mubr.msk.bf16.gmra.mrb[28].mxu0 %vm476_vm0, %v2108_v60  ;;  %3194 = vmatprep.mubr.msk.bf16.mxu1 %vm476_vm0, %v3897_v63 }
  0xf8   : > { %3358 = vmatprep.mubr.msk.bf16.mxu0 %vm476_vm0, %v3974_v34 }
  0xfe   : > { %3195 = vmatmul.mubr.msk.bf16.gmra.mrb[16].mxu1 %vm476_vm0, %v3900_v6 }
  0xff   : > { %3359 = vmatmul.mubr.msk.bf16.vlgmr.msra.gmra.mrb[0].mxu0 %vm476_vm0, %v3987_v45  ;;  %3198 = vmatprep.mubr.msk.bf16.mxu1 %vm476_vm0, %v3933_v40 }
 0x100   : > { %3362 = vmatprep.mubr.msk.bf16.mxu0 %vm476_vm0, %v4023_v27 }
 0x106   : > { %3199 = vmatmul.mubr.msk.bf16.gmra.mrb[20].mxu1 %vm476_vm0, %v3940_v52 }
 0x107   : > { %3363 = vmatmul.mubr.msk.bf16.gmra.mrb[4].mxu0 %vm476_vm0, %v4036_v55  ;;  %3202 = vmatprep.mubr.msk.bf16.mxu1 %vm476_vm0, %v3979_v37 }
 0x108   : > { %3366 = vmatprep.mubr.msk.bf16.mxu0 %vm476_vm0, %v4060_v54  ;;  %v4406_v54 = vld [vmem:[%s4519_s2] ss:$0 sm:$0xff] }
 0x10e   : > { %3203 = vmatmul.mubr.msk.bf16.gmra.mrb[24].mxu1 %vm476_vm0, %v3984_v44 }
 0x10f   : > { %3367 = vmatmul.mubr.msk.bf16.gmra.mrb[8].mxu0 %vm476_vm0, %v4066_v25  ;;  %3206 = vmatprep.mubr.msk.bf16.mxu1 %vm476_vm0, %v4027_v38 }
 0x110   : > { %3370 = vmatprep.mubr.msk.bf16.mxu0 %vm476_vm0, %v4084_v62 }
 0x116   : > { %3207 = vmatmul.mubr.msk.bf16.gmra.mrb[28].mxu1 %vm476_vm0, %v4150_v47 }
 0x117   : > { %3371 = vmatmul.mubr.msk.bf16.gmra.mrb[12].mxu0 %vm476_vm0, %v4087_v11  ;;  %3230 = vmatprep.mubr.msk.bf16.mxu1 %vm476_vm0, %v3971_v32 }
 0x118   : > { %3374 = vmatprep.mubr.msk.bf16.mxu0 %vm476_vm0, %v4102_v19 }
 0x11e   : > { %3231 = vmatmul.mubr.msk.bf16.vlgmr.msra.gmra.mrb[16].mxu1 %vm476_vm0, %v3977_v35 }
 0x11f   : > { %3375 = vmatmul.mubr.msk.bf16.gmra.mrb[16].mxu0 %vm476_vm0, %v4105_v21  ;;  %3234 = vmatprep.mubr.msk.bf16.mxu1 %vm476_vm0, %v4020_v24 }
 0x120   : > { %3378 = vmatprep.mubr.msk.bf16.mxu0 %vm476_vm0, %v4127_v36 }
 0x126   : > { %3235 = vmatmul.mubr.msk.bf16.gmra.mrb[20].mxu1 %vm476_vm0, %v4030_v13 }
 0x127   : > { %3379 = vmatmul.mubr.msk.bf16.gmra.mrb[20].mxu0 %vm476_vm0, %v4130_v39  ;;  %3238 = vmatprep.mubr.msk.bf16.mxu1 %vm476_vm0, %v4055_v23 }
 0x128   : > { %3382 = vmatprep.mubr.msk.bf16.mxu0 %vm476_vm0, %v4148_v4 }
 0x12e   : > { %3239 = vmatmul.mubr.msk.bf16.gmra.mrb[24].mxu1 %vm476_vm0, %v4063_v3 }
 0x12f   : > { %3383 = vmatmul.mubr.msk.bf16.gmra.mrb[24].mxu0 %vm476_vm0, %v4155_v28  ;;  %3242 = vmatprep.mubr.msk.bf16.mxu1 %vm476_vm0, %v4081_v53 }
 0x130   : > { %3386 = vmatprep.mubr.msk.bf16.mxu0 %vm476_vm0, %v4168_v20 }
 0x136   : > { %3243 = vmatmul.mubr.msk.bf16.gmra.mrb[28].mxu1 %vm476_vm0, %v1453_v46 }
 0x137   : > { %3387 = vmatmul.mubr.msk.bf16.gmra.mrb[28].mxu0 %vm476_vm0, %v2326_v48 }
 0x1b1   : > { %v3180_v63 = vpop.f32.mrb[0].mxu1 }
 0x1b2   : > { %v1284_v3 = vpop.f32.mrb[1].mxu1 }
 0x1b3   : > { %v3181_v6 = vpop.f32.mrb[2].mxu1 }
 0x1b4   : > { %v1287_v40 = vpop.f32.mrb[3].mxu1 }
 0x1b9   : > { %v3184_v52 = vpop.f32.mrb[4].mxu1 }
 0x1ba   : > { %v1300_v32 = vpop.f32.mrb[5].mxu1 }
 0x1bb   : > { %v3185_v34 = vpop.f32.mrb[6].mxu1 }
 0x1bc   : > { %v1303_v35 = vpop.f32.mrb[7].mxu1 }
 0x1c1   : > { %v3188_v37 = vpop.f32.mrb[8].mxu1 }
 0x1c2   : > { %v1316_v44 = vpop.f32.mrb[9].mxu1 }
 0x1c3   : > { %v3189_v45 = vpop.f32.mrb[10].mxu1 }
 0x1c4   : > { %v1319_v24 = vpop.f32.mrb[11].mxu1 }
 0x1c9   : > { %v4395_v27 = vpop.f32.mrb[12].mxu1 }
 0x1ca   : > { %v4397_v38 = vpop.f32.mrb[13].mxu1 }
 0x1cb   : > { %v4399_v13 = vpop.f32.mrb[14].mxu1 }
 0x1cc   : > { %v4401_v55 = vpop.f32.mrb[15].mxu1 }
 0x1d2   : > { %v3360_v23 = vpop.f32.mrb[0].mxu0 }
 0x1d3   : > { %v3394_v25 = vadd.f32 %v3360_v23, %v3180_v63  ;;  %v2381_v53 = vpop.f32.mrb[1].mxu0 }
 0x1d4   : > { %v3395_v62 = vadd.f32 %v2381_v53, %v1284_v3  ;;  %v3361_v11 = vpop.f32.mrb[2].mxu0 }
 0x1d5   : > { %v2549_v19 = vadd.f32 %v3394_v25, %v4406_v54  ;;  %v3396_v21 = vadd.f32 %v3361_v11, %v3181_v6  ;;  %v2384_v36 = vpop.f32.mrb[3].mxu0 }
 0x1d6   : > { %v2547_v39 = vadd.f32 %v3395_v62, %v4406_v54  ;;  %v3397_v56 = vadd.f32 %v2384_v36, %v1287_v40 }
 0x1d7   : > { %v2581_v4 = vmax.f32 %v2549_v19, 0.0  ;;  %v2550_v47 = vadd.f32 %v3396_v21, %v4406_v54 }
 0x1d8   : > { %v2579_v17 = vmax.f32 %v2547_v39, 0.0  ;;  %v2548_v28 = vadd.f32 %v3397_v56, %v4406_v54 }
 0x1d9   : > { %2613 = vst.msk [vmem:[%s4413_s7 + $0x10] sm:$0xff] %vm476_vm0, %v2581_v4  ;;  %v2582_v12 = vmax.f32 %v2550_v47, 0.0 }
 0x1da   : > { %2611 = vst.msk [vmem:[%s4413_s7] sm:$0xff] %vm476_vm0, %v2579_v17  ;;  %v2580_v29 = vmax.f32 %v2548_v28, 0.0  ;;  %v3364_v20 = vpop.f32.mrb[4].mxu0 }
 0x1db   : > { %2614 = vst.msk [vmem:[%s4413_s7 + $0x18] sm:$0xff] %vm476_vm0, %v2582_v12  ;;  %v3398_v57 = vadd.f32 %v3364_v20, %v3184_v52  ;;  %v2397_v59 = vpop.f32.mrb[5].mxu0 }
 0x1dc   : > { %2612 = vst.msk [vmem:[%s4413_s7 + $0x8] sm:$0xff] %vm476_vm0, %v2580_v29  ;;  %v3399_v5 = vadd.f32 %v2397_v59, %v1300_v32  ;;  %v3365_v43 = vpop.f32.mrb[6].mxu0 }
 0x1dd   : > { %v2553_v2 = vadd.f32 %v3398_v57, %v4406_v54  ;;  %v3400_v61 = vadd.f32 %v3365_v43, %v3185_v34  ;;  %v2400_v9 = vpop.f32.mrb[7].mxu0 }
 0x1de   : > { %v2551_v10 = vadd.f32 %v3399_v5, %v4406_v54  ;;  %v3401_v15 = vadd.f32 %v2400_v9, %v1303_v35 }
 0x1df   : > { %v2585_v31 = vmax.f32 %v2553_v2, 0.0  ;;  %v2554_v0 = vadd.f32 %v3400_v61, %v4406_v54 }
 0x1e0   : > { %v2583_v14 = vmax.f32 %v2551_v10, 0.0  ;;  %v2552_v26 = vadd.f32 %v3401_v15, %v4406_v54 }
 0x1e1   : > { %2617 = vst.msk [vmem:[%s4413_s7 + $0x30] sm:$0xff] %vm476_vm0, %v2585_v31  ;;  %v2586_v22 = vmax.f32 %v2554_v0, 0.0 }
 0x1e2   : > { %2615 = vst.msk [vmem:[%s4413_s7 + $0x20] sm:$0xff] %vm476_vm0, %v2583_v14  ;;  %v2584_v1 = vmax.f32 %v2552_v26, 0.0  ;;  %v3368_v33 = vpop.f32.mrb[8].mxu0 }
 0x1e3   : > { %2618 = vst.msk [vmem:[%s4413_s7 + $0x38] sm:$0xff] %vm476_vm0, %v2586_v22  ;;  %v3402_v42 = vadd.f32 %v3368_v33, %v3188_v37  ;;  %v2413_v49 = vpop.f32.mrb[9].mxu0 }
 0x1e4   : > { %2616 = vst.msk [vmem:[%s4413_s7 + $0x28] sm:$0xff] %vm476_vm0, %v2584_v1  ;;  %v3403_v8 = vadd.f32 %v2413_v49, %v1316_v44  ;;  %v3369_v18 = vpop.f32.mrb[10].mxu0 }
 0x1e5   : > { %v2557_v51 = vadd.f32 %v3402_v42, %v4406_v54  ;;  %v3404_v41 = vadd.f32 %v3369_v18, %v3189_v45  ;;  %v2416_v50 = vpop.f32.mrb[11].mxu0 }
 0x1e6   : > { %v2555_v46 = vadd.f32 %v3403_v8, %v4406_v54  ;;  %v3405_v7 = vadd.f32 %v2416_v50, %v1319_v24 }
 0x1e7   : > { %v2589_v58 = vmax.f32 %v2557_v51, 0.0  ;;  %v2558_v60 = vadd.f32 %v3404_v41, %v4406_v54 }
 0x1e8   : > { %v2587_v16 = vmax.f32 %v2555_v46, 0.0  ;;  %v2556_v30 = vadd.f32 %v3405_v7, %v4406_v54 }
 0x1e9   : > { %2621 = vst.msk [vmem:[%s4413_s7 + $0x50] sm:$0xff] %vm476_vm0, %v2589_v58  ;;  %v2590_v48 = vmax.f32 %v2558_v60, 0.0 }
 0x1ea   : > { %2619 = vst.msk [vmem:[%s4413_s7 + $0x40] sm:$0xff] %vm476_vm0, %v2587_v16  ;;  %v2588_v63 = vmax.f32 %v2556_v30, 0.0  ;;  %v3372_v3 = vpop.f32.mrb[12].mxu0 }
 0x1eb   : > { %2622 = vst.msk [vmem:[%s4413_s7 + $0x58] sm:$0xff] %vm476_vm0, %v2590_v48  ;;  %v3406_v6 = vadd.f32 %v3372_v3, %v4395_v27  ;;  %v2429_v40 = vpop.f32.mrb[13].mxu0 }
 0x1ec   : > { %2620 = vst.msk [vmem:[%s4413_s7 + $0x48] sm:$0xff] %vm476_vm0, %v2588_v63  ;;  %v3407_v52 = vadd.f32 %v2429_v40, %v4397_v38  ;;  %v3373_v32 = vpop.f32.mrb[14].mxu0 }
 0x1ed   : > { %v2561_v34 = vadd.f32 %v3406_v6, %v4406_v54  ;;  %v3408_v35 = vadd.f32 %v3373_v32, %v4399_v13  ;;  %v2432_v37 = vpop.f32.mrb[15].mxu0 }
 0x1ee   : > { %v2559_v44 = vadd.f32 %v3407_v52, %v4406_v54  ;;  %v3409_v45 = vadd.f32 %v2432_v37, %v4401_v55 }
 0x1ef   : > { %v2593_v24 = vmax.f32 %v2561_v34, 0.0  ;;  %v2562_v27 = vadd.f32 %v3408_v35, %v4406_v54 }
 0x1f0   : > { %v2591_v23 = vmax.f32 %v2559_v44, 0.0  ;;  %v2560_v25 = vadd.f32 %v3409_v45, %v4406_v54 }
 0x1f1   : > { %2625 = vst.msk [vmem:[%s4413_s7 + $0x70] sm:$0xff] %vm476_vm0, %v2593_v24  ;;  %v2594_v38 = vmax.f32 %v2562_v27, 0.0  ;;  %v3232_v53 = vpop.f32.mrb[16].mxu1 }
 0x1f2   : > { %2623 = vst.msk [vmem:[%s4413_s7 + $0x60] sm:$0xff] %vm476_vm0, %v2591_v23  ;;  %v2592_v62 = vmax.f32 %v2560_v25, 0.0  ;;  %v3376_v13 = vpop.f32.mrb[16].mxu0  ;;  %v1572_v11 = vpop.f32.mrb[17].mxu1 }
 0x1f3   : > { %2626 = vst.msk [vmem:[%s4413_s7 + $0x78] sm:$0xff] %vm476_vm0, %v2594_v38  ;;  %v3410_v19 = vadd.f32 %v3376_v13, %v3232_v53  ;;  %v2445_v55 = vpop.f32.mrb[17].mxu0  ;;  %v3233_v21 = vpop.f32.mrb[18].mxu1 }
 0x1f4   : > { %2624 = vst.msk [vmem:[%s4413_s7 + $0x68] sm:$0xff] %vm476_vm0, %v2592_v62  ;;  %v3411_v36 = vadd.f32 %v2445_v55, %v1572_v11  ;;  %v3377_v39 = vpop.f32.mrb[18].mxu0  ;;  %v1575_v56 = vpop.f32.mrb[19].mxu1 }
 0x1f5   : > { %v2565_v4 = vadd.f32 %v3410_v19, %v4406_v54  ;;  %v3412_v47 = vadd.f32 %v3377_v39, %v3233_v21  ;;  %v2448_v17 = vpop.f32.mrb[19].mxu0 }
 0x1f6   : > { %v2563_v28 = vadd.f32 %v3411_v36, %v4406_v54  ;;  %v3413_v12 = vadd.f32 %v2448_v17, %v1575_v56 }
 0x1f7   : > { %v2597_v29 = vmax.f32 %v2565_v4, 0.0  ;;  %v2566_v20 = vadd.f32 %v3412_v47, %v4406_v54 }
 0x1f8   : > { %v2595_v57 = vmax.f32 %v2563_v28, 0.0  ;;  %v2564_v59 = vadd.f32 %v3413_v12, %v4406_v54 }
 0x1f9   : > { %2629 = vst.msk [vmem:[%s4413_s7 + $0x90] sm:$0xff] %vm476_vm0, %v2597_v29  ;;  %v2598_v5 = vmax.f32 %v2566_v20, 0.0  ;;  %v3236_v43 = vpop.f32.mrb[20].mxu1 }
 0x1fa   : > { %2627 = vst.msk [vmem:[%s4413_s7 + $0x80] sm:$0xff] %vm476_vm0, %v2595_v57  ;;  %v2596_v2 = vmax.f32 %v2564_v59, 0.0  ;;  %v3380_v61 = vpop.f32.mrb[20].mxu0  ;;  %v1588_v9 = vpop.f32.mrb[21].mxu1 }
 0x1fb   : > { %2630 = vst.msk [vmem:[%s4413_s7 + $0x98] sm:$0xff] %vm476_vm0, %v2598_v5  ;;  %v3414_v10 = vadd.f32 %v3380_v61, %v3236_v43  ;;  %v2461_v15 = vpop.f32.mrb[21].mxu0  ;;  %v3237_v31 = vpop.f32.mrb[22].mxu1 }
 0x1fc   : > { %2628 = vst.msk [vmem:[%s4413_s7 + $0x88] sm:$0xff] %vm476_vm0, %v2596_v2  ;;  %v3415_v0 = vadd.f32 %v2461_v15, %v1588_v9  ;;  %v3381_v14 = vpop.f32.mrb[22].mxu0  ;;  %v1591_v26 = vpop.f32.mrb[23].mxu1 }
 0x1fd   : > { %v2569_v22 = vadd.f32 %v3414_v10, %v4406_v54  ;;  %v3416_v1 = vadd.f32 %v3381_v14, %v3237_v31  ;;  %v2464_v33 = vpop.f32.mrb[23].mxu0 }
 0x1fe   : > { %v2567_v42 = vadd.f32 %v3415_v0, %v4406_v54  ;;  %v3417_v49 = vadd.f32 %v2464_v33, %v1591_v26 }
 0x1ff   : > { %v2601_v8 = vmax.f32 %v2569_v22, 0.0  ;;  %v2570_v18 = vadd.f32 %v3416_v1, %v4406_v54 }
 0x200   : > { %v2599_v51 = vmax.f32 %v2567_v42, 0.0  ;;  %v2568_v41 = vadd.f32 %v3417_v49, %v4406_v54 }
 0x201   : > { %2633 = vst.msk [vmem:[%s4413_s7 + $0xb0] sm:$0xff] %vm476_vm0, %v2601_v8  ;;  %v2602_v50 = vmax.f32 %v2570_v18, 0.0  ;;  %v3240_v46 = vpop.f32.mrb[24].mxu1 }
 0x202   : > { %2631 = vst.msk [vmem:[%s4413_s7 + $0xa0] sm:$0xff] %vm476_vm0, %v2599_v51  ;;  %v2600_v7 = vmax.f32 %v2568_v41, 0.0  ;;  %v3384_v58 = vpop.f32.mrb[24].mxu0  ;;  %v1604_v60 = vpop.f32.mrb[25].mxu1 }
 0x203   : > { %2634 = vst.msk [vmem:[%s4413_s7 + $0xb8] sm:$0xff] %vm476_vm0, %v2602_v50  ;;  %v3418_v16 = vadd.f32 %v3384_v58, %v3240_v46  ;;  %v2477_v30 = vpop.f32.mrb[25].mxu0  ;;  %v3241_v48 = vpop.f32.mrb[26].mxu1 }
 0x204   : > { %2632 = vst.msk [vmem:[%s4413_s7 + $0xa8] sm:$0xff] %vm476_vm0, %v2600_v7  ;;  %v3419_v63 = vadd.f32 %v2477_v30, %v1604_v60  ;;  %v3385_v3 = vpop.f32.mrb[26].mxu0  ;;  %v1607_v6 = vpop.f32.mrb[27].mxu1 }
 0x205   : > { %v2573_v40 = vadd.f32 %v3418_v16, %v4406_v54  ;;  %v3420_v52 = vadd.f32 %v3385_v3, %v3241_v48  ;;  %v2480_v32 = vpop.f32.mrb[27].mxu0 }
 0x206   : > { %v2571_v34 = vadd.f32 %v3419_v63, %v4406_v54  ;;  %v3421_v35 = vadd.f32 %v2480_v32, %v1607_v6 }
 0x207   : > { %v2605_v37 = vmax.f32 %v2573_v40, 0.0  ;;  %v2574_v44 = vadd.f32 %v3420_v52, %v4406_v54 }
 0x208   : > { %v2603_v45 = vmax.f32 %v2571_v34, 0.0  ;;  %v2572_v24 = vadd.f32 %v3421_v35, %v4406_v54 }
 0x209   : > { %2637 = vst.msk [vmem:[%s4413_s7 + $0xd0] sm:$0xff] %vm476_vm0, %v2605_v37  ;;  %v2606_v27 = vmax.f32 %v2574_v44, 0.0  ;;  %v3244_v23 = vpop.f32.mrb[28].mxu1 }
 0x20a   : > { %2635 = vst.msk [vmem:[%s4413_s7 + $0xc0] sm:$0xff] %vm476_vm0, %v2603_v45  ;;  %v2604_v25 = vmax.f32 %v2572_v24, 0.0  ;;  %v3388_v38 = vpop.f32.mrb[28].mxu0  ;;  %v1620_v53 = vpop.f32.mrb[29].mxu1 }
 0x20b   : > { %2638 = vst.msk [vmem:[%s4413_s7 + $0xd8] sm:$0xff] %vm476_vm0, %v2606_v27  ;;  %v3422_v62 = vadd.f32 %v3388_v38, %v3244_v23  ;;  %v2493_v13 = vpop.f32.mrb[29].mxu0  ;;  %v3245_v11 = vpop.f32.mrb[30].mxu1 }
 0x20c   : > { %2636 = vst.msk [vmem:[%s4413_s7 + $0xc8] sm:$0xff] %vm476_vm0, %v2604_v25  ;;  %v3423_v19 = vadd.f32 %v2493_v13, %v1620_v53  ;;  %v3389_v55 = vpop.f32.mrb[30].mxu0  ;;  %v1623_v21 = vpop.f32.mrb[31].mxu1 }
 0x20d   : > { %v2577_v36 = vadd.f32 %v3422_v62, %v4406_v54  ;;  %v3424_v39 = vadd.f32 %v3389_v55, %v3245_v11  ;;  %v2496_v56 = vpop.f32.mrb[31].mxu0 }
 0x20e   : > { %v2575_v4 = vadd.f32 %v3423_v19, %v4406_v54  ;;  %v3425_v47 = vadd.f32 %v2496_v56, %v1623_v21 }
 0x20f   : > { %v2609_v17 = vmax.f32 %v2577_v36, 0.0  ;;  %v2578_v28 = vadd.f32 %v3424_v39, %v4406_v54 }
 0x210   : > { %v2607_v12 = vmax.f32 %v2575_v4, 0.0  ;;  %v2576_v29 = vadd.f32 %v3425_v47, %v4406_v54 }
 0x211   : > { %2641 = vst.msk [vmem:[%s4413_s7 + $0xf0] sm:$0xff] %vm476_vm0, %v2609_v17  ;;  %v2610_v20 = vmax.f32 %v2578_v28, 0.0 }
 0x212   : > { %2639 = vst.msk [vmem:[%s4413_s7 + $0xe0] sm:$0xff] %vm476_vm0, %v2607_v12  ;;  %v2608_v57 = vmax.f32 %v2576_v29, 0.0 }
 0x213   : > { %2642 = vst.msk [vmem:[%s4413_s7 + $0xf8] sm:$0xff] %vm476_vm0, %v2610_v20 }
 0x214   : > { %2640 = vst.msk [vmem:[%s4413_s7 + $0xe8] sm:$0xff] %vm476_vm0, %v2608_v57 }
 0x215 PF: > { %s13_s12 = sadd.s32 1, %s3683_s12  }
 0x216   : > { %p10_p4 = scmp.ge.s32.totalorder %s13_s12, 4  }
 0x218   :  { %12 = sbr.rel (!%p10_p4) target bundleno = 1 (0x1), region = 70 }

// kernel: _lambda_.7
= control target key start
LH: loop header
LB: loop body
LE: loop exit
PB: predicated region body
PF: predicated region fallthrough
CT: control target
= control target key end

     0   :  { %s3455_s30 = smov 0   ;;  %s4058_s0 = inlined_call_operand.vmem [shape: f32[2,16,128], index: 0, kind: input, shape index: {}]   ;;  %s4059_s1 = inlined_call_operand.vmem [shape: bf16[4,128,32], index: 1, kind: input, shape index: {}]   ;;  %s4060_s2 = inlined_call_operand.vmem [shape: f32[4,1,32], index: 2, kind: input, shape index: {}]   ;;  %s4061_s3 = inlined_call_operand.vmem [shape: bf16[4,128,32], index: 3, kind: input, shape index: {}]   ;;  %s4062_s4 = inlined_call_operand.vmem [shape: f32[4,1,32], index: 4, kind: input, shape index: {}]   ;;  %s4063_s5 = inlined_call_operand.vmem [shape: bf16[4,128,32], index: 5, kind: input, shape index: {}]   ;;  %s4064_s6 = inlined_call_operand.vmem [shape: f32[4,1,32], index: 6, kind: input, shape index: {}]   ;;  %s4065_s7 = inlined_call_operand.vmem [shape: bf16[4,32,128], index: 7, kind: input, shape index: {}]   ;;  %s4066_s8 = inlined_call_operand.vmem [shape: f32[1,128], index: 8, kind: input, shape index: {}]   ;;  %s4067_s9 = inlined_call_operand.vmem [shape: f32[2,16,128], index: 9, kind: output, shape index: {}]  }
   0x1 LB: > { %s2486_s10 = sadd.s32 4294967295, %s3401_s30   ;;  %p2490_p0 = scmp.ge.s32.totalorder %s3401_s30, 1  ;;  %s3401_s30 = sphi %s3455_s30, %s19_s30  }
   0x2   : > { %p287_p1 = scmp.lt.s32.totalorder %s3401_s30, 3 }
   0x4   : > { %p288_p2 = pnand %p2490_p0, %p287_p1 }
   0x5   : > { %v3259_v0 = vld [vmem:[%s4061_s3] sm:$0xff] (!%p288_p2)   ;;  %v3403_v1 = vmov (!%p288_p2), 0.0   ;;  %v3260_v2 = vld [vmem:[%s4061_s3 + $0x8] sm:$0xff] (!%p288_p2)   ;;  %vm3404_vm0 = vmmov (!%p288_p2), 0   ;;  %v3262_v5 = vld [vmem:[%s4061_s3 + $0x10] sm:$0xff] (!%p288_p2)   ;;  %p323_p3 = scmp.lt.s32.totalorder (!%p288_p2), %s2486_s10, 1 }
   0x6   : > { %291 = sbr.rel (%p288_p2) target bundleno = 4003 (0xfa3), region = 56  ;;  %2949 = vmatprep.subr.bf16.mxu1 (!%p288_p2), %v3403_v1  ;;  %2929 = vmatprep.subr.bf16.mxu0 (!%p288_p2), %v3403_v1  ;;  %v3261_v3 = vld [vmem:[%s4059_s1] sm:$0xff] (!%p288_p2)   ;;  %v3263_v4 = vld [vmem:[%s4059_s1 + $0x8] sm:$0xff] (!%p288_p2)   ;;  %v3265_v6 = vld [vmem:[%s4059_s1 + $0x10] sm:$0xff] (!%p288_p2)   ;;  %vm675_vm1 = vcmask (!%p288_p2), 261120   ;;  %vm723_vm2 = vcmask (!%p288_p2), 130048  }
   0x7   : > { %2950 = vmatpush3.bf16.msra.mxu1 (!%p288_p2), %v3259_v0  ;;  %2965 = vmatprep.mubr.msk.bf16.mxu1 (!%p288_p2), %vm3404_vm0, %v3403_v1  ;;  %v3264_v7 = vld [vmem:[%s4061_s3 + $0x18] sm:$0xff] (!%p288_p2)   ;;  %v3266_v9 = vld [vmem:[%s4061_s3 + $0x20] sm:$0xff] (!%p288_p2)   ;;  %v3268_v10 = vld [vmem:[%s4061_s3 + $0x28] sm:$0xff] (!%p288_p2)  }
   0x8   : > { %2951 = vmatprep.subr.bf16.mxu1 (!%p288_p2), %v3403_v1  ;;  %2945 = vmatprep.mubr.msk.bf16.mxu0 (!%p288_p2), %vm3404_vm0, %v3403_v1  ;;  %v3267_v8 = vld [vmem:[%s4059_s1 + $0x18] sm:$0xff] (!%p288_p2)   ;;  %v3269_v11 = vld [vmem:[%s4059_s1 + $0x20] sm:$0xff] (!%p288_p2)   ;;  %v3271_v12 = vld [vmem:[%s4059_s1 + $0x28] sm:$0xff] (!%p288_p2)  }
   0x9   : > { %2930 = vmatpush3.bf16.msra.mxu0 (!%p288_p2), %v3261_v3  ;;  %v3270_v13 = vld [vmem:[%s4061_s3 + $0x30] sm:$0xff] (!%p288_p2)   ;;  %v3272_v15 = vld [vmem:[%s4061_s3 + $0x38] sm:$0xff] (!%p288_p2)   ;;  %v2504_v20 = vld [vmem:[%s4062_s4] ss:$0 sm:$0xff] (!%p288_p2) }
   0xa   : > { %2931 = vmatprep.subr.bf16.mxu0 (!%p288_p2), %v3403_v1  ;;  %v3273_v14 = vld [vmem:[%s4059_s1 + $0x30] sm:$0xff] (!%p288_p2)   ;;  %v3274_v18 = vld [vmem:[%s4059_s1 + $0x38] sm:$0xff] (!%p288_p2)   ;;  %v2495_v22 = vld [vmem:[%s4060_s2] ss:$0 sm:$0xff] (!%p288_p2) }
   0xb   : > { %2952 = vmatpush3.bf16.msra.mxu1 (!%p288_p2), %v3260_v2  ;;  %v3275_v37 = vld [vmem:[%s4063_s5] sm:$0xff] (!%p288_p2)   ;;  %v3276_v38 = vld [vmem:[%s4063_s5 + $0x8] sm:$0xff] (!%p288_p2)   ;;  %v3277_v39 = vld [vmem:[%s4063_s5 + $0x10] sm:$0xff] (!%p288_p2)  }
   0xc   : > { %2953 = vmatprep.subr.bf16.mxu1 (!%p288_p2), %v3403_v1  ;;  %v3278_v40 = vld [vmem:[%s4063_s5 + $0x18] sm:$0xff] (!%p288_p2)   ;;  %v3279_v41 = vld [vmem:[%s4063_s5 + $0x20] sm:$0xff] (!%p288_p2)   ;;  %v3280_v42 = vld [vmem:[%s4063_s5 + $0x28] sm:$0xff] (!%p288_p2)  }
   0xd   : > { %2932 = vmatpush3.bf16.msra.mxu0 %v3263_v4  ;;  %s4069_s10 = smov (!%p323_p3, %s2486_s10), 1  ;;  %v3281_v43 = vld [vmem:[%s4063_s5 + $0x30] sm:$0xff]   ;;  %v3282_v44 = vld [vmem:[%s4063_s5 + $0x38] sm:$0xff]   ;;  %v3283_v63 = vld [vmem:[%s4061_s3 + $0x40] sm:$0xff]  }
   0xe   : > { %2933 = vmatprep.subr.bf16.mxu0 %v3403_v1  ;;  %s2791_s14 = sshll.u32 %s4069_s10, 4  ;;  %v2513_v2 = vld [vmem:[%s4064_s6] ss:$0 sm:$0xff] }
   0xf   : > { %2954 = vmatpush3.bf16.msra.mxu1 %v3262_v5  ;;  %s327_s21 = scalar_lea.vmem %s4058_s0, %s2791_s14  ;;  %s332_s16 = scalar_lea.vmem %s4067_s9, %s2791_s14 }
  0x10   : > { %2955 = vmatprep.subr.bf16.mxu1 %v3403_v1  ;;  %v334_v16 = vld [vmem:[%s327_s21] sm:$0xff]  ;;  %v335_v17 = vld [vmem:[%s327_s21 + $0x8] sm:$0xff] }
  0x11   : > { %2934 = vmatpush3.bf16.msra.mxu0 %v3265_v6  ;;  %v3542_v19 = vpack.c.bf16 %v335_v17, %v334_v16  ;;  %v3284_v6 = vld [vmem:[%s4061_s3 + $0x48] sm:$0xff]  }
  0x12   : > { %2935 = vmatprep.subr.bf16.mxu0 %v3403_v1 }
  0x13   : > { %2956 = vmatpush3.bf16.msra.mxu1 %v3264_v7 }
  0x14   : > { %2957 = vmatprep.subr.bf16.mxu1 %v3403_v1 }
  0x15   : > { %2936 = vmatpush3.bf16.msra.mxu0 %v3267_v8  ;;  %v3285_v8 = vld [vmem:[%s4061_s3 + $0x50] sm:$0xff]  }
  0x16   : > { %2937 = vmatprep.subr.bf16.mxu0 %v3403_v1 }
  0x17   : > { %2958 = vmatpush3.bf16.msra.mxu1 %v3266_v9  ;;  %v3287_v9 = vld [vmem:[%s4061_s3 + $0x58] sm:$0xff]  }
  0x18   : > { %2959 = vmatprep.subr.bf16.mxu1 %v3403_v1 }
  0x19   : > { %2938 = vmatpush3.bf16.msra.mxu0 %v3269_v11  ;;  %v3291_v11 = vld [vmem:[%s4061_s3 + $0x68] sm:$0xff]  }
  0x1a   : > { %2939 = vmatprep.subr.bf16.mxu0 %v3403_v1 }
  0x1b   : > { %2960 = vmatpush3.bf16.msra.mxu1 %v3268_v10  ;;  %v3289_v10 = vld [vmem:[%s4061_s3 + $0x60] sm:$0xff]  }
  0x1c   : > { %2961 = vmatprep.subr.bf16.mxu1 %v3403_v1 }
  0x1d   : > { %2940 = vmatpush3.bf16.msra.mxu0 %v3271_v12  ;;  %v3293_v12 = vld [vmem:[%s4061_s3 + $0x70] sm:$0xff]  }
  0x1e   : > { %2941 = vmatprep.subr.bf16.mxu0 %v3403_v1 }
  0x1f   : > { %2962 = vmatpush3.bf16.msra.mxu1 %v3270_v13  ;;  %v3295_v13 = vld [vmem:[%s4061_s3 + $0x78] sm:$0xff]  }
  0x20   : > { %2963 = vmatprep.subr.bf16.mxu1 %v3403_v1 }
  0x21   : > { %2942 = vmatpush3.bf16.msra.mxu0 %v3273_v14 }
  0x22   : > { %2943 = vmatprep.subr.bf16.mxu0 %v3403_v1 }
  0x23   : > { %2964 = vmatpush3.bf16.msra.mxu1 %v3272_v15 }
  0x24   : > { %2989 = vmatprep.subr.bf16.mxu1 %v3403_v1 }
  0x25   : > { %2944 = vmatpush3.bf16.msra.mxu0 %v3274_v18 }
  0x26   : > { %2966 = vmatmul.mubr.bf16.vlgmr.msra.gmra.mrb[0].mxu1 %v3542_v19  ;;  %2969 = vmatprep.subr.bf16.mxu0 %v3403_v1 }
  0x27   : > { %2991 = vmatprep.mubr.msk.bf16.mxu1 %vm3404_vm0, %v3403_v1 }
  0x28   : > { %2946 = vmatmul.mubr.bf16.vlgmr.msra.gmra.mrb[0].mxu0 %v3542_v19 }
  0x29   : > { %2985 = vmatprep.mubr.msk.bf16.mxu0 %vm3404_vm0, %v3403_v1  ;;  %2970 = vmatpush3.bf16.msra.mxu0 %v3275_v37  ;;  %v3306_v37 = vld [vmem:[%s4063_s5 + $0x78] sm:$0xff]  }
  0x2a   : > { %2971 = vmatprep.subr.bf16.mxu0 %v3403_v1 }
  0x2d   : > { %2972 = vmatpush3.bf16.msra.mxu0 %v3276_v38  ;;  %v3307_v38 = vld [vmem:[%s4065_s7] sm:$0xff]  }
  0x2e   : > { %2973 = vmatprep.subr.bf16.mxu0 %v3403_v1 }
  0x31   : > { %2974 = vmatpush3.bf16.msra.mxu0 %v3277_v39  ;;  %v3308_v39 = vld [vmem:[%s4065_s7 + $0x8] sm:$0xff]  }
  0x32   : > { %2975 = vmatprep.subr.bf16.mxu0 %v3403_v1 }
  0x35   : > { %2976 = vmatpush3.bf16.msra.mxu0 %v3278_v40  ;;  %v2567_v40 = vld [vmem:[%s4062_s4 + $0x1] ss:$0 sm:$0xff] }
  0x36   : > { %2977 = vmatprep.subr.bf16.mxu0 %v3403_v1 }
  0x39   : > { %2978 = vmatpush3.bf16.msra.mxu0 %v3279_v41 }
  0x3a   : > { %2979 = vmatprep.subr.bf16.mxu0 %v3403_v1 }
  0x3d   : > { %2980 = vmatpush3.bf16.msra.mxu0 %v3280_v42 }
  0x3e   : > { %2981 = vmatprep.subr.bf16.mxu0 %v3403_v1 }
  0x41   : > { %2982 = vmatpush3.bf16.msra.mxu0 %v3281_v43 }
  0x42   : > { %2983 = vmatprep.subr.bf16.mxu0 %v3403_v1 }
  0x45   : > { %2984 = vmatpush3.bf16.msra.mxu0 %v3282_v44 }
  0x46   : > { %3021 = vmatprep.subr.bf16.mxu0 %v3403_v1 }
  0x48   : > { %2986 = vmatmul.mubr.bf16.vlgmr.msra.gmra.mrb[4].mxu0 %v3542_v19 }
  0x49   : > { %3037 = vmatprep.mubr.msk.bf16.mxu0 %vm3404_vm0, %v3403_v1  ;;  %3022 = vmatpush3.bf16.msra.mxu0 %v3283_v63 }
  0x4a   : > { %3023 = vmatprep.subr.bf16.mxu0 %v3403_v1 }
  0x4d   : > { %3024 = vmatpush3.bf16.msra.mxu0 %v3284_v6 }
  0x4e   : > { %3025 = vmatprep.subr.bf16.mxu0 %v3403_v1 }
  0x51   : > { %3026 = vmatpush3.bf16.msra.mxu0 %v3285_v8 }
  0x52   : > { %3027 = vmatprep.subr.bf16.mxu0 %v3403_v1 }
  0x55   : > { %3028 = vmatpush3.bf16.msra.mxu0 %v3287_v9 }
  0x56   : > { %3029 = vmatprep.subr.bf16.mxu0 %v3403_v1 }
  0x59   : > { %3030 = vmatpush3.bf16.msra.mxu0 %v3289_v10 }
  0x5a   : > { %3031 = vmatprep.subr.bf16.mxu0 %v3403_v1 }
  0x5d   : > { %3032 = vmatpush3.bf16.msra.mxu0 %v3291_v11 }
  0x5e   : > { %3033 = vmatprep.subr.bf16.mxu0 %v3403_v1 }
  0x61   : > { %3034 = vmatpush3.bf16.msra.mxu0 %v3293_v12 }
  0x62   : > { %3035 = vmatprep.subr.bf16.mxu0 %v3403_v1 }
  0x65   : > { %3036 = vmatpush3.bf16.msra.mxu0 %v3295_v13 }
  0x66   : > { %3061 = vmatprep.subr.bf16.mxu0 %v3403_v1 }
  0x68   : > { %3038 = vmatmul.mubr.bf16.vlgmr.msra.gmra.mrb[8].mxu0 %v3542_v19 }
  0x69   : > { %3063 = vmatprep.mubr.msk.bf16.mxu0 %vm3404_vm0, %v3403_v1 }
  0xf9   : > { %v554_v21 = vpop.f32.mrb[0].mxu1 }
  0xfa   : > { %v2967_v23 = vpop.f32.mrb[1].mxu1  ;;  %v555_v26 = vadd.f32 %v2504_v20, %v554_v21  ;;  %v3286_v21 = vld [vmem:[%s4059_s1 + $0x40] sm:$0xff]  }
  0xfb   : > { %v557_v24 = vpop.f32.mrb[2].mxu1  ;;  %v442_v25 = vpop.f32.mrb[0].mxu0  ;;  %v3288_v23 = vld [vmem:[%s4059_s1 + $0x48] sm:$0xff]  }
  0xfc   : > { %v558_v27 = vadd.f32 %v2504_v20, %v557_v24  ;;  %v2968_v28 = vpop.f32.mrb[3].mxu1  ;;  %v443_v29 = vadd.f32 %v2495_v22, %v442_v25  ;;  %v2947_v30 = vpop.f32.mrb[1].mxu0  ;;  %v3290_v24 = vld [vmem:[%s4059_s1 + $0x50] sm:$0xff]   ;;  %v3292_v25 = vld [vmem:[%s4059_s1 + $0x58] sm:$0xff]  }
  0xfd   : > { %v445_v31 = vpop.f32.mrb[2].mxu0  ;;  %v3297_v28 = vld [vmem:[%s4059_s1 + $0x70] sm:$0xff]   ;;  %v3299_v30 = vld [vmem:[%s4063_s5 + $0x40] sm:$0xff]  }
  0xfe   : > { %v674_v32 = vpack.c.bf16 %v558_v27, %v555_v26  ;;  %v446_v33 = vadd.f32 %v2495_v22, %v445_v31  ;;  %v2948_v34 = vpop.f32.mrb[3].mxu0  ;;  %v3294_v26 = vld [vmem:[%s4059_s1 + $0x60] sm:$0xff]   ;;  %v3296_v27 = vld [vmem:[%s4059_s1 + $0x68] sm:$0xff]  }
  0xff   : > { %v3300_v31 = vld [vmem:[%s4063_s5 + $0x48] sm:$0xff]   ;;  %v3303_v34 = vld [vmem:[%s4063_s5 + $0x60] sm:$0xff]  }
 0x100   : > { %v673_v35 = vpack.c.bf16 %v446_v33, %v443_v29  ;;  %v680_v36 = vsel %vm675_vm1, %v674_v32, 0  ;;  %v3298_v29 = vld [vmem:[%s4059_s1 + $0x78] sm:$0xff]   ;;  %v3301_v32 = vld [vmem:[%s4063_s5 + $0x50] sm:$0xff]  }
 0x101   : > { %2990 = vmatpush3.bf16.xpose.msra.mxu1 %v680_v36  ;;  %v3302_v33 = vld [vmem:[%s4063_s5 + $0x58] sm:$0xff]   ;;  %v3305_v36 = vld [vmem:[%s4063_s5 + $0x70] sm:$0xff]  }
 0x102   : > { %2995 = vmatprep.subr.bf16.mxu1 %v3403_v1 }
 0x108   : > { %2992 = vmatmul.mubr.msk.bf16.vlgmr.msra.gmra.mrb[4].mxu1 %vm675_vm1, %v673_v35  ;;  %v3304_v35 = vld [vmem:[%s4063_s5 + $0x68] sm:$0xff]  }
 0x109   : > { %2997 = vmatprep.mubr.msk.bf16.mxu1 %vm3404_vm0, %v3403_v1 }
 0x11b   : > { %v666_v61 = vpop.f32.mrb[4].mxu0 }
 0x11c   : > { %v2987_v62 = vpop.f32.mrb[5].mxu0  ;;  %v667_v4 = vadd.f32 %v2513_v2, %v666_v61 }
 0x11d   : > { %v669_v0 = vpop.f32.mrb[6].mxu0  ;;  %v2593_v62 = vld [vmem:[%s4064_s6 + $0x1] ss:$0 sm:$0xff] }
 0x11e   : > { %v2988_v3 = vpop.f32.mrb[7].mxu0  ;;  %v670_v5 = vadd.f32 %v2513_v2, %v669_v0 }
 0x120   : > { %v747_v7 = vpack.c.bf16 %v670_v5, %v667_v4 }
 0x122   : > { %2996 = vmatpush3.bf16.msra.mxu1 %v747_v7 }
 0x123   : > { %3001 = vmatprep.subr.bf16.mxu1 %v3403_v1 }
 0x13b   : > { %v1018_v41 = vpop.f32.mrb[8].mxu0 }
 0x13c   : > { %v1019_v42 = vadd.f32 %v2567_v40, %v1018_v41  ;;  %v3039_v43 = vpop.f32.mrb[9].mxu0  ;;  %v3317_v41 = vld [vmem:[%s4061_s3 + $0xa0] sm:$0xff]  }
 0x13d   : > { %v1021_v44 = vpop.f32.mrb[10].mxu0  ;;  %v3321_v43 = vld [vmem:[%s4061_s3 + $0xb0] sm:$0xff]  }
 0x1db   : > { %v716_v45 = vpop.f32.mrb[4].mxu1 }
 0x1dc   : > { %v2993_v46 = vpop.f32.mrb[5].mxu1  ;;  %v724_v47 = vsel %vm723_vm2, %v716_v45, -inf }
 0x1dd   : > { %725 = vmax.xlane.f32.xlu0 %v724_v47  ;;  %v719_v48 = vpop.f32.mrb[6].mxu1  ;;  %v3040_v46 = vpop.f32.mrb[11].mxu0 }
 0x1de   : > { %v2994_v49 = vpop.f32.mrb[7].mxu1  ;;  %v727_v50 = vsel %vm723_vm2, %v719_v48, -inf }
 0x1e1   : > { %728 = vmax.xlane.f32.xlu0 %v727_v50 }
 0x26a   : > { %v726_v51 = vpop.xlane.xlu0 %725 }
 0x26b   : > { %v730_v52 = vsub.f32 %v716_v45, %v726_v51  ;;  %v1022_v45 = vadd.f32 %v2567_v40, %v1021_v44  ;;  %v3315_v40 = vld [vmem:[%s4061_s3 + $0x98] sm:$0xff]  }
 0x26c   : > { %v3323_v44 = vld [vmem:[%s4061_s3 + $0xb8] sm:$0xff]  }
 0x26d   : > { %v732_v53 = vmul.f32 1.442695, %v730_v52  ;;  %v1140_v47 = vpack.c.bf16 %v1022_v45, %v1019_v42  ;;  %v3319_v42 = vld [vmem:[%s4061_s3 + $0xa8] sm:$0xff]  }
 0x26e   : > { %v729_v54 = vpop.xlane.xlu0 %728 }
 0x26f   : > { %3363 = vpow2.f32 %v732_v53  ;;  %v731_v55 = vsub.f32 %v719_v48, %v729_v54  ;;  %v1145_v48 = vsel %vm675_vm1, %v1140_v47, 0  ;;  %v2541_v54 = vld [vmem:[%s4060_s2 + $0x1] ss:$0 sm:$0xff] }
 0x270   : > { %3062 = vmatpush3.bf16.xpose.msra.mxu0 %v1145_v48  ;;  %v3314_v48 = vld [vmem:[%s4059_s1 + $0x80] sm:$0xff]  }
 0x271   : > { %v734_v56 = vmul.f32 1.442695, %v731_v55  ;;  %3067 = vmatprep.subr.bf16.mxu0 %v3403_v1 }
 0x273   : > { %3365 = vpow2.f32 %v734_v56 }
 0x279   : > { %v3364_v57 = vpop.eup %3363 }
 0x27a   : > { %v736_v58 = vsel %vm723_vm2, %v3364_v57, 0.0 }
 0x27b   : > { %737 = vadd.xlane.f32.xlu1 %v736_v58 }
 0x27d   : > { %v3366_v59 = vpop.eup %3365 }
 0x27e   : > { %v739_v60 = vsel %vm723_vm2, %v3366_v59, 0.0 }
 0x27f   : > { %740 = vadd.xlane.f32.xlu1 %v739_v60 }
 0x308   : > { %v738_v14 = vpop.xlane.xlu1 %737 }
 0x309   : > { %3367 = vrcp.f32 %v738_v14 }
 0x30c   : > { %v741_v15 = vpop.xlane.xlu1 %740 }
 0x30d   : > { %3369 = vrcp.f32 %v741_v15 }
 0x313   : > { %v3368_v16 = vpop.eup %3367 }
 0x314   : > { %v744_v18 = vmul.f32 %v3368_v16, %v3364_v57 }
 0x317   : > { %v3370_v17 = vpop.eup %3369 }
 0x318   : > { %v745_v20 = vmul.f32 %v3370_v17, %v3366_v59 }
 0x31a   : > { %v746_v22 = vpack.c.bf16 %v745_v20, %v744_v18 }
 0x31c   : > { %2998 = vmatmul.mubr.msk.bf16.vlgmr.msra.gmra.mrb[8].mxu1 %vm723_vm2, %v746_v22 }
 0x31d   : > { %3002 = vmatpush3.bf16.msra.mxu1 %v3286_v21  ;;  %3017 = vmatprep.mubr.msk.bf16.mxu1 %vm3404_vm0, %v3403_v1 }
 0x31e   : > { %3003 = vmatprep.subr.bf16.mxu1 %v3403_v1 }
 0x321   : > { %3004 = vmatpush3.bf16.msra.mxu1 %v3288_v23 }
 0x322   : > { %3005 = vmatprep.subr.bf16.mxu1 %v3403_v1 }
 0x325   : > { %3006 = vmatpush3.bf16.msra.mxu1 %v3290_v24 }
 0x326   : > { %3007 = vmatprep.subr.bf16.mxu1 %v3403_v1 }
 0x329   : > { %3008 = vmatpush3.bf16.msra.mxu1 %v3292_v25 }
 0x32a   : > { %3009 = vmatprep.subr.bf16.mxu1 %v3403_v1 }
 0x32d   : > { %3010 = vmatpush3.bf16.msra.mxu1 %v3294_v26 }
 0x32e   : > { %3011 = vmatprep.subr.bf16.mxu1 %v3403_v1 }
 0x331   : > { %3012 = vmatpush3.bf16.msra.mxu1 %v3296_v27 }
 0x332   : > { %3013 = vmatprep.subr.bf16.mxu1 %v3403_v1 }
 0x335   : > { %3014 = vmatpush3.bf16.msra.mxu1 %v3297_v28  ;;  %v3309_v28 = vld [vmem:[%s4061_s3 + $0x80] sm:$0xff]  }
 0x336   : > { %3015 = vmatprep.subr.bf16.mxu1 %v3403_v1 }
 0x339   : > { %3016 = vmatpush3.bf16.msra.mxu1 %v3298_v29  ;;  %v3311_v29 = vld [vmem:[%s4061_s3 + $0x88] sm:$0xff]  }
 0x33a   : > { %3041 = vmatprep.subr.bf16.mxu1 %v3403_v1 }
 0x33c   : > { %3018 = vmatmul.mubr.bf16.vlgmr.msra.gmra.mrb[12].mxu1 %v3542_v19 }
 0x33d   : > { %3042 = vmatpush3.bf16.msra.mxu1 %v3299_v30  ;;  %3057 = vmatprep.mubr.msk.bf16.mxu1 %vm3404_vm0, %v3403_v1 }
 0x33e   : > { %3043 = vmatprep.subr.bf16.mxu1 %v3403_v1 }
 0x341   : > { %3044 = vmatpush3.bf16.msra.mxu1 %v3300_v31 }
 0x342   : > { %3045 = vmatprep.subr.bf16.mxu1 %v3403_v1 }
 0x345   : > { %3046 = vmatpush3.bf16.msra.mxu1 %v3301_v32 }
 0x346   : > { %3047 = vmatprep.subr.bf16.mxu1 %v3403_v1 }
 0x349   : > { %3048 = vmatpush3.bf16.msra.mxu1 %v3302_v33 }
 0x34a   : > { %3049 = vmatprep.subr.bf16.mxu1 %v3403_v1 }
 0x34d   : > { %3050 = vmatpush3.bf16.msra.mxu1 %v3303_v34 }
 0x34e   : > { %3051 = vmatprep.subr.bf16.mxu1 %v3403_v1 }
 0x351   : > { %3052 = vmatpush3.bf16.msra.mxu1 %v3304_v35 }
 0x352   : > { %3053 = vmatprep.subr.bf16.mxu1 %v3403_v1 }
 0x355   : > { %3054 = vmatpush3.bf16.msra.mxu1 %v3305_v36  ;;  %v3310_v36 = vld [vmem:[%s4065_s7 + $0x10] sm:$0xff]  }
 0x356   : > { %3055 = vmatprep.subr.bf16.mxu1 %v3403_v1 }
 0x359   : > { %3056 = vmatpush3.bf16.msra.mxu1 %v3306_v37 }
 0x35a   : > { %3081 = vmatprep.subr.bf16.mxu1 %v3403_v1 }
 0x35c   : > { %3058 = vmatmul.mubr.bf16.vlgmr.msra.gmra.mrb[16].mxu1 %v3542_v19 }
 0x35d   : > { %3082 = vmatpush3.bf16.msra.mxu1 %v3307_v38  ;;  %3085 = vmatprep.mubr.msk.bf16.mxu1 %vm3404_vm0, %v3403_v1  ;;  %v3312_v38 = vld [vmem:[%s4065_s7 + $0x18] sm:$0xff]  }
 0x35e   : > { %3083 = vmatprep.subr.bf16.mxu1 %v3403_v1 }
 0x361   : > { %3084 = vmatpush3.bf16.msra.mxu1 %v3308_v39  ;;  %v3313_v39 = vld [vmem:[%s4061_s3 + $0x90] sm:$0xff]  }
 0x362   : > { %3109 = vmatprep.subr.bf16.mxu1 %v3403_v1 }
 0x3ef   : > { %v785_v49 = vpop.f32.mrb[8].mxu1 }
 0x3f0   : > { %v2999_v50 = vpop.f32.mrb[9].mxu1 }
 0x3f1   : > { %v788_v51 = vpop.f32.mrb[10].mxu1 }
 0x3f2   : > { %v792_v52 = vpack.c.bf16 %v788_v51, %v785_v49  ;;  %v3000_v53 = vpop.f32.mrb[11].mxu1  ;;  %v3316_v51 = vld [vmem:[%s4059_s1 + $0x88] sm:$0xff]  }
 0x3f3   : > { %v3320_v53 = vld [vmem:[%s4059_s1 + $0x98] sm:$0xff]  }
 0x3f4   : > { %3086 = vmatmul.mubr.msk.bf16.vlgmr.msra.gmra.mrb[20].mxu1 %vm675_vm1, %v792_v52  ;;  %v3318_v52 = vld [vmem:[%s4059_s1 + $0x90] sm:$0xff]  }
 0x3f5   : > { %3125 = vmatprep.mubr.msk.bf16.mxu1 %vm3404_vm0, %v3403_v1  ;;  %3110 = vmatpush3.bf16.msra.mxu1 %v3309_v28 }
 0x3f6   : > { %3111 = vmatprep.subr.bf16.mxu1 %v3403_v1 }
 0x3f9   : > { %3112 = vmatpush3.bf16.msra.mxu1 %v3311_v29 }
 0x3fa   : > { %3113 = vmatprep.subr.bf16.mxu1 %v3403_v1 }
 0x3fd   : > { %3114 = vmatpush3.bf16.msra.mxu1 %v3313_v39 }
 0x3fe   : > { %3115 = vmatprep.subr.bf16.mxu1 %v3403_v1 }
 0x401   : > { %3116 = vmatpush3.bf16.msra.mxu1 %v3315_v40 }
 0x402   : > { %3117 = vmatprep.subr.bf16.mxu1 %v3403_v1 }
 0x405   : > { %3118 = vmatpush3.bf16.msra.mxu1 %v3317_v41 }
 0x406   : > { %3119 = vmatprep.subr.bf16.mxu1 %v3403_v1 }
 0x409   : > { %3120 = vmatpush3.bf16.msra.mxu1 %v3319_v42 }
 0x40a   : > { %3121 = vmatprep.subr.bf16.mxu1 %v3403_v1 }
 0x40d   : > { %3122 = vmatpush3.bf16.msra.mxu1 %v3321_v43 }
 0x40e   : > { %3123 = vmatprep.subr.bf16.mxu1 %v3403_v1 }
 0x40f   : > { %v904_v55 = vpop.f32.mrb[12].mxu1 }
 0x410   : > { %v3019_v56 = vpop.f32.mrb[13].mxu1  ;;  %v905_v58 = vadd.f32 %v2541_v54, %v904_v55  ;;  %v3324_v55 = vld [vmem:[%s4059_s1 + $0xa8] sm:$0xff]  }
 0x411   : > { %v907_v57 = vpop.f32.mrb[14].mxu1  ;;  %3124 = vmatpush3.bf16.msra.mxu1 %v3323_v44  ;;  %v3325_v56 = vld [vmem:[%s4059_s1 + $0xb0] sm:$0xff]  }
 0x412   : > { %v908_v59 = vadd.f32 %v2541_v54, %v907_v57  ;;  %v3020_v60 = vpop.f32.mrb[15].mxu1  ;;  %3149 = vmatprep.subr.bf16.mxu1 %v3403_v1  ;;  %v3322_v54 = vld [vmem:[%s4059_s1 + $0xa0] sm:$0xff]   ;;  %v3326_v57 = vld [vmem:[%s4059_s1 + $0xb8] sm:$0xff]  }
 0x414   : > { %v1139_v61 = vpack.c.bf16 %v908_v59, %v905_v58  ;;  %3126 = vmatmul.mubr.bf16.vlgmr.msra.gmra.mrb[24].mxu1 %v3542_v19  ;;  %v2657_v58 = vld [vmem:[%s4062_s4 + $0x2] ss:$0 sm:$0xff] }
 0x415   : > { %3151 = vmatprep.mubr.msk.bf16.mxu1 %vm3404_vm0, %v3403_v1 }
 0x416   : > { %3064 = vmatmul.mubr.msk.bf16.vlgmr.msra.gmra.mrb[12].mxu0 %vm675_vm1, %v1139_v61 }
 0x417   : > { %3069 = vmatprep.mubr.msk.bf16.mxu0 %vm3404_vm0, %v3403_v1 }
 0x42f   : > { %v1132_v63 = vpop.f32.mrb[16].mxu1 }
 0x430   : > { %v1133_v0 = vadd.f32 %v2593_v62, %v1132_v63  ;;  %v3059_v2 = vpop.f32.mrb[17].mxu1 }
 0x431   : > { %v1135_v3 = vpop.f32.mrb[18].mxu1 }
 0x432   : > { %v1136_v4 = vadd.f32 %v2593_v62, %v1135_v3  ;;  %v3060_v5 = vpop.f32.mrb[19].mxu1 }
 0x434   : > { %v1211_v6 = vpack.c.bf16 %v1136_v4, %v1133_v0 }
 0x436   : > { %3068 = vmatpush3.bf16.msra.mxu0 %v1211_v6 }
 0x437   : > { %3073 = vmatprep.subr.bf16.mxu0 %v3403_v1 }
 0x4c7   : > { %v3741_v7 = vpop.f32.mrb[20].mxu1 }
 0x4c8   : > { %v3087_v8 = vpop.f32.mrb[21].mxu1 }
 0x4c9   : > { %v3743_v9 = vpop.f32.mrb[22].mxu1 }
 0x4ca   : > { %v3088_v10 = vpop.f32.mrb[23].mxu1 }
 0x4e7   : > { %v1595_v59 = vpop.f32.mrb[24].mxu1 }
 0x4e8   : > { %v1596_v60 = vadd.f32 %v2657_v58, %v1595_v59  ;;  %v3127_v61 = vpop.f32.mrb[25].mxu1  ;;  %v3336_v59 = vld [vmem:[%s4065_s7 + $0x20] sm:$0xff]  }
 0x4e9   : > { %v1181_v11 = vpop.f32.mrb[12].mxu0  ;;  %v1598_v62 = vpop.f32.mrb[26].mxu1  ;;  %v3338_v61 = vld [vmem:[%s4065_s7 + $0x28] sm:$0xff]  }
 0x4ea   : > { %v3065_v12 = vpop.f32.mrb[13].mxu0  ;;  %v1188_v13 = vsel %vm723_vm2, %v1181_v11, -inf  ;;  %v1599_v63 = vadd.f32 %v2657_v58, %v1598_v62  ;;  %v3128_v0 = vpop.f32.mrb[27].mxu1  ;;  %v3339_v62 = vld [vmem:[%s4061_s3 + $0xd0] sm:$0xff]  }
 0x4eb   : > { %1189 = vmax.xlane.f32.xlu0 %v1188_v13  ;;  %v1184_v14 = vpop.f32.mrb[14].mxu0  ;;  %v2631_v12 = vld [vmem:[%s4060_s2 + $0x2] ss:$0 sm:$0xff] }
 0x4ec   : > { %v3066_v15 = vpop.f32.mrb[15].mxu0  ;;  %v1191_v16 = vsel %vm723_vm2, %v1184_v14, -inf  ;;  %v1717_v2 = vpack.c.bf16 %v1599_v63, %v1596_v60  ;;  %v3341_v63 = vld [vmem:[%s4061_s3 + $0xd8] sm:$0xff]   ;;  %v3343_v0 = vld [vmem:[%s4061_s3 + $0xe0] sm:$0xff]  }
 0x4ed   : > { %1192 = vmax.xlane.f32.xlu1 %v1191_v16 }
 0x4ee   : > { %v1722_v3 = vsel %vm675_vm1, %v1717_v2, 0  ;;  %v3345_v2 = vld [vmem:[%s4061_s3 + $0xe8] sm:$0xff]  }
 0x4ef   : > { %3150 = vmatpush3.bf16.xpose.msra.mxu1 %v1722_v3  ;;  %v3347_v3 = vld [vmem:[%s4061_s3 + $0xf0] sm:$0xff]  }
 0x4f0   : > { %3155 = vmatprep.subr.bf16.mxu1 %v3403_v1 }
 0x578   : > { %v1190_v17 = vpop.xlane.xlu0 %1189 }
 0x579   : > { %v1194_v18 = vsub.f32 %v1181_v11, %v1190_v17 }
 0x57a   : > { %v1193_v20 = vpop.xlane.xlu1 %1192 }
 0x57b   : > { %v1196_v21 = vmul.f32 1.442695, %v1194_v18  ;;  %v1195_v22 = vsub.f32 %v1184_v14, %v1193_v20 }
 0x57d   : > { %3371 = vpow2.f32 %v1196_v21  ;;  %v1198_v23 = vmul.f32 1.442695, %v1195_v22  ;;  %v3329_v21 = vld [vmem:[%s4063_s5 + $0x90] sm:$0xff]   ;;  %v3330_v22 = vld [vmem:[%s4063_s5 + $0x98] sm:$0xff]  }
 0x57f   : > { %3373 = vpow2.f32 %v1198_v23  ;;  %v3331_v23 = vld [vmem:[%s4063_s5 + $0xa0] sm:$0xff]  }
 0x587   : > { %v3372_v24 = vpop.eup %3371 }
 0x588   : > { %v1200_v25 = vsel %vm723_vm2, %v3372_v24, 0.0 }
 0x589   : > { %v3374_v26 = vpop.eup %3373  ;;  %1201 = vadd.xlane.f32.xlu0 %v1200_v25  ;;  %v3333_v25 = vld [vmem:[%s4063_s5 + $0xb0] sm:$0xff]  }
 0x58a   : > { %v1203_v27 = vsel %vm723_vm2, %v3374_v26, 0.0 }
 0x58b   : > { %1204 = vadd.xlane.f32.xlu1 %v1203_v27 }
 0x616   : > { %v1202_v30 = vpop.xlane.xlu0 %1201 }
 0x617   : > { %3375 = vrcp.f32 %v1202_v30 }
 0x618   : > { %v1205_v31 = vpop.xlane.xlu1 %1204 }
 0x619   : > { %3377 = vrcp.f32 %v1205_v31 }
 0x621   : > { %v3376_v32 = vpop.eup %3375 }
 0x622   : > { %v1208_v34 = vmul.f32 %v3376_v32, %v3372_v24  ;;  %v3332_v24 = vld [vmem:[%s4063_s5 + $0xa8] sm:$0xff]  }
 0x623   : > { %v3378_v33 = vpop.eup %3377 }
 0x624   : > { %v1209_v35 = vmul.f32 %v3378_v33, %v3374_v26  ;;  %v3334_v26 = vld [vmem:[%s4063_s5 + $0xb8] sm:$0xff]  }
 0x626   : > { %v1210_v37 = vpack.c.bf16 %v1209_v35, %v1208_v34 }
 0x628   : > { %3070 = vmatmul.mubr.msk.bf16.vlgmr.msra.gmra.mrb[16].mxu0 %vm723_vm2, %v1210_v37 }
 0x629   : > { %3074 = vmatpush3.bf16.msra.mxu0 %v3310_v36  ;;  %3077 = vmatprep.mubr.msk.bf16.mxu0 %vm3404_vm0, %v3403_v1 }
 0x62a   : > { %3075 = vmatprep.subr.bf16.mxu0 %v3403_v1 }
 0x62d   : > { %3076 = vmatpush3.bf16.msra.mxu0 %v3312_v38 }
 0x62e   : > { %3089 = vmatprep.subr.bf16.mxu0 %v3403_v1 }
 0x6fb   : > { %v1249_v45 = vpop.f32.mrb[16].mxu0 }
 0x6fc   : > { %v3071_v46 = vpop.f32.mrb[17].mxu0 }
 0x6fd   : > { %v1252_v47 = vpop.f32.mrb[18].mxu0  ;;  %v2683_v46 = vld [vmem:[%s4064_s6 + $0x2] ss:$0 sm:$0xff] }
 0x6fe   : > { %v1256_v49 = vpack.c.bf16 %v1252_v47, %v1249_v45  ;;  %v3072_v50 = vpop.f32.mrb[19].mxu0 }
 0x700   : > { %3078 = vmatmul.mubr.msk.bf16.vlgmr.msra.gmra.mrb[20].mxu0 %vm675_vm1, %v1256_v49 }
 0x701   : > { %3090 = vmatpush3.bf16.msra.mxu0 %v3314_v48  ;;  %3105 = vmatprep.mubr.msk.bf16.mxu0 %vm3404_vm0, %v3403_v1 }
 0x702   : > { %3091 = vmatprep.subr.bf16.mxu0 %v3403_v1 }
 0x705   : > { %3092 = vmatpush3.bf16.msra.mxu0 %v3316_v51  ;;  %v3335_v51 = vld [vmem:[%s4061_s3 + $0xc0] sm:$0xff]  }
 0x706   : > { %3093 = vmatprep.subr.bf16.mxu0 %v3403_v1 }
 0x709   : > { %3094 = vmatpush3.bf16.msra.mxu0 %v3318_v52  ;;  %v3337_v52 = vld [vmem:[%s4061_s3 + $0xc8] sm:$0xff]  }
 0x70a   : > { %3095 = vmatprep.subr.bf16.mxu0 %v3403_v1 }
 0x70d   : > { %3096 = vmatpush3.bf16.msra.mxu0 %v3320_v53 }
 0x70e   : > { %3097 = vmatprep.subr.bf16.mxu0 %v3403_v1 }
 0x711   : > { %3098 = vmatpush3.bf16.msra.mxu0 %v3322_v54 }
 0x712   : > { %3099 = vmatprep.subr.bf16.mxu0 %v3403_v1 }
 0x715   : > { %3100 = vmatpush3.bf16.msra.mxu0 %v3324_v55 }
 0x716   : > { %3101 = vmatprep.subr.bf16.mxu0 %v3403_v1 }
 0x719   : > { %3102 = vmatpush3.bf16.msra.mxu0 %v3325_v56 }
 0x71a   : > { %3103 = vmatprep.subr.bf16.mxu0 %v3403_v1 }
 0x71d   : > { %3104 = vmatpush3.bf16.msra.mxu0 %v3326_v57 }
 0x71e   : > { %3129 = vmatprep.subr.bf16.mxu0 %v3403_v1 }
 0x720   : > { %3106 = vmatmul.mubr.bf16.vlgmr.msra.gmra.mrb[24].mxu0 %v3542_v19 }
 0x721   : > { %3145 = vmatprep.mubr.msk.bf16.mxu0 %vm3404_vm0, %v3403_v1 }
 0x7d3   : > { %v1311_v4 = vpop.f32.mrb[20].mxu0 }
 0x7d4   : > { %v3839_v5 = vadd.f32 %v3741_v7, %v1311_v4  ;;  %v3079_v6 = vpop.f32.mrb[21].mxu0  ;;  %v3327_v7 = vld [vmem:[%s4063_s5 + $0x80] sm:$0xff]   ;;  %v3349_v4 = vld [vmem:[%s4061_s3 + $0xf8] sm:$0xff]  }
 0x7d5   : > { %v1314_v8 = vpop.f32.mrb[22].mxu0  ;;  %3130 = vmatpush3.bf16.msra.mxu0 %v3327_v7  ;;  %v3351_v7 = vld [vmem:[%s4059_s1 + $0xf0] sm:$0xff]  }
 0x7d6   : > { %v3842_v10 = vadd.f32 %v3743_v9, %v1314_v8  ;;  %v3080_v11 = vpop.f32.mrb[23].mxu0  ;;  %v3328_v9 = vld [vmem:[%s4063_s5 + $0x88] sm:$0xff]   ;;  %3131 = vmatprep.subr.bf16.mxu0 %v3403_v1 }
 0x7d9   : > { %3132 = vmatpush3.bf16.msra.mxu0 %v3328_v9  ;;  %v3352_v9 = vld [vmem:[%s4059_s1 + $0xf8] sm:$0xff]  }
 0x7da   : > { %3133 = vmatprep.subr.bf16.mxu0 %v3403_v1 }
 0x7dd   : > { %3134 = vmatpush3.bf16.msra.mxu0 %v3329_v21  ;;  %v2744_v21 = vld [vmem:[%s4062_s4 + $0x3] ss:$0 sm:$0xff] }
 0x7de   : > { %3135 = vmatprep.subr.bf16.mxu0 %v3403_v1 }
 0x7e1   : > { %3136 = vmatpush3.bf16.msra.mxu0 %v3330_v22 }
 0x7e2   : > { %3137 = vmatprep.subr.bf16.mxu0 %v3403_v1 }
 0x7e5   : > { %3138 = vmatpush3.bf16.msra.mxu0 %v3331_v23 }
 0x7e6   : > { %3139 = vmatprep.subr.bf16.mxu0 %v3403_v1 }
 0x7e9   : > { %3140 = vmatpush3.bf16.msra.mxu0 %v3332_v24 }
 0x7ea   : > { %3141 = vmatprep.subr.bf16.mxu0 %v3403_v1 }
 0x7ed   : > { %3142 = vmatpush3.bf16.msra.mxu0 %v3333_v25 }
 0x7ee   : > { %3143 = vmatprep.subr.bf16.mxu0 %v3403_v1 }
 0x7f1   : > { %3144 = vmatpush3.bf16.msra.mxu0 %v3334_v26 }
 0x7f2   : > { %3189 = vmatprep.subr.bf16.mxu0 %v3403_v1 }
 0x7f3   : > { %v1481_v13 = vpop.f32.mrb[24].mxu0 }
 0x7f4   : > { %v3107_v14 = vpop.f32.mrb[25].mxu0  ;;  %v1482_v16 = vadd.f32 %v2631_v12, %v1481_v13  ;;  %3146 = vmatmul.mubr.bf16.vlgmr.msra.gmra.mrb[28].mxu0 %v3542_v19 }
 0x7f5   : > { %v1484_v15 = vpop.f32.mrb[26].mxu0  ;;  %3205 = vmatprep.mubr.msk.bf16.mxu0 %vm3404_vm0, %v3403_v1  ;;  %3190 = vmatpush3.bf16.msra.mxu0 %v3335_v51 }
 0x7f6   : > { %v1485_v17 = vadd.f32 %v2631_v12, %v1484_v15  ;;  %v3108_v18 = vpop.f32.mrb[27].mxu0  ;;  %3191 = vmatprep.subr.bf16.mxu0 %v3403_v1  ;;  %v3340_v12 = vld [vmem:[%s4059_s1 + $0xc0] sm:$0xff]   ;;  %v3342_v15 = vld [vmem:[%s4059_s1 + $0xc8] sm:$0xff]  }
 0x7f7   : > { %v3348_v18 = vld [vmem:[%s4059_s1 + $0xe0] sm:$0xff]  }
 0x7f8   : > { %v1716_v20 = vpack.c.bf16 %v1485_v17, %v1482_v16  ;;  %v3344_v16 = vld [vmem:[%s4059_s1 + $0xd0] sm:$0xff]   ;;  %v3346_v17 = vld [vmem:[%s4059_s1 + $0xd8] sm:$0xff]  }
 0x7f9   : > { %3192 = vmatpush3.bf16.msra.mxu0 %v3337_v52 }
 0x7fa   : > { %3152 = vmatmul.mubr.msk.bf16.vlgmr.msra.gmra.mrb[28].mxu1 %vm675_vm1, %v1716_v20  ;;  %3193 = vmatprep.subr.bf16.mxu0 %v3403_v1  ;;  %v3350_v20 = vld [vmem:[%s4059_s1 + $0xe8] sm:$0xff]  }
 0x7fb   : > { %3157 = vmatprep.mubr.msk.bf16.mxu1 %vm3404_vm0, %v3403_v1 }
 0x7fd   : > { %3194 = vmatpush3.bf16.msra.mxu0 %v3339_v62 }
 0x7fe   : > { %3195 = vmatprep.subr.bf16.mxu0 %v3403_v1 }
 0x801   : > { %3196 = vmatpush3.bf16.msra.mxu0 %v3341_v63 }
 0x802   : > { %3197 = vmatprep.subr.bf16.mxu0 %v3403_v1 }
 0x805   : > { %3198 = vmatpush3.bf16.msra.mxu0 %v3343_v0 }
 0x806   : > { %3199 = vmatprep.subr.bf16.mxu0 %v3403_v1 }
 0x809   : > { %3200 = vmatpush3.bf16.msra.mxu0 %v3345_v2 }
 0x80a   : > { %3201 = vmatprep.subr.bf16.mxu0 %v3403_v1 }
 0x80d   : > { %3202 = vmatpush3.bf16.msra.mxu0 %v3347_v3 }
 0x80e   : > { %3203 = vmatprep.subr.bf16.mxu0 %v3403_v1 }
 0x811   : > { %3204 = vmatpush3.bf16.msra.mxu0 %v3349_v4 }
 0x812   : > { %3229 = vmatprep.subr.bf16.mxu0 %v3403_v1 }
 0x814   : > { %3206 = vmatmul.mubr.bf16.vlgmr.msra.gmra.mrb[32].mxu0 %v3542_v19 }
 0x815   : > { %3231 = vmatprep.mubr.msk.bf16.mxu0 %vm3404_vm0, %v3403_v1 }
 0x8c7   : > { %v1709_v43 = vpop.f32.mrb[28].mxu0 }
 0x8c8   : > { %v3147_v44 = vpop.f32.mrb[29].mxu0  ;;  %v1710_v48 = vadd.f32 %v2683_v46, %v1709_v43 }
 0x8c9   : > { %v1712_v45 = vpop.f32.mrb[30].mxu0  ;;  %v3355_v44 = vld [vmem:[%s4063_s5 + $0xd0] sm:$0xff]  }
 0x8ca   : > { %v3148_v47 = vpop.f32.mrb[31].mxu0  ;;  %v1713_v49 = vadd.f32 %v2683_v46, %v1712_v45  ;;  %v3356_v45 = vld [vmem:[%s4063_s5 + $0xd8] sm:$0xff]   ;;  %v3357_v46 = vld [vmem:[%s4063_s5 + $0xe0] sm:$0xff]  }
 0x8cb   : > { %v3358_v47 = vld [vmem:[%s4063_s5 + $0xe8] sm:$0xff]  }
 0x8cc   : > { %v1788_v50 = vpack.c.bf16 %v1713_v49, %v1710_v48  ;;  %v3359_v48 = vld [vmem:[%s4063_s5 + $0xf0] sm:$0xff]   ;;  %v3360_v49 = vld [vmem:[%s4063_s5 + $0xf8] sm:$0xff]  }
 0x8cd   : > { %v1758_v27 = vpop.f32.mrb[28].mxu1 }
 0x8ce   : > { %v3153_v28 = vpop.f32.mrb[29].mxu1  ;;  %v1765_v29 = vsel %vm723_vm2, %v1758_v27, -inf  ;;  %3156 = vmatpush3.bf16.msra.mxu1 %v1788_v50 }
 0x8cf   : > { %1766 = vmax.xlane.f32.xlu0 %v1765_v29  ;;  %v1761_v30 = vpop.f32.mrb[30].mxu1  ;;  %3161 = vmatprep.subr.bf16.mxu1 %v3403_v1 }
 0x8d0   : > { %v3154_v31 = vpop.f32.mrb[31].mxu1  ;;  %v1768_v32 = vsel %vm723_vm2, %v1761_v30, -inf }
 0x8d1   : > { %1769 = vmax.xlane.f32.xlu1 %v1768_v32 }
 0x8e7   : > { %v2118_v22 = vpop.f32.mrb[32].mxu0 }
 0x8e8   : > { %v2119_v23 = vadd.f32 %v2744_v21, %v2118_v22  ;;  %v3207_v24 = vpop.f32.mrb[33].mxu0 }
 0x8e9   : > { %v2121_v25 = vpop.f32.mrb[34].mxu0 }
 0x8ea   : > { %v2122_v26 = vadd.f32 %v2744_v21, %v2121_v25  ;;  %v3362_v21 = vld [vmem:[%s4065_s7 + $0x38] sm:$0xff]  }
 0x8ec   : > { %v2240_v28 = vpack.c.bf16 %v2122_v26, %v2119_v23 }
 0x8ee   : > { %v2245_v29 = vsel %vm675_vm1, %v2240_v28, 0  ;;  %v2788_v28 = vld [vmem:[%s4066_s8] ss:$0 sm:$0xff] }
 0x8ef   : > { %3230 = vmatpush3.bf16.xpose.msra.mxu0 %v2245_v29 }
 0x8f0   : > { %3235 = vmatprep.subr.bf16.mxu0 %v3403_v1 }
 0x95c   : > { %v1767_v33 = vpop.xlane.xlu0 %1766 }
 0x95d   : > { %v1771_v34 = vsub.f32 %v1758_v27, %v1767_v33  ;;  %v3208_v27 = vpop.f32.mrb[35].mxu0 }
 0x95e   : > { %v1770_v35 = vpop.xlane.xlu1 %1769 }
 0x95f   : > { %v1773_v36 = vmul.f32 1.442695, %v1771_v34  ;;  %v1772_v37 = vsub.f32 %v1761_v30, %v1770_v35 }
 0x961   : > { %3379 = vpow2.f32 %v1773_v36  ;;  %v1775_v38 = vmul.f32 1.442695, %v1772_v37  ;;  %v2718_v36 = vld [vmem:[%s4060_s2 + $0x3] ss:$0 sm:$0xff] }
 0x963   : > { %3381 = vpow2.f32 %v1775_v38 }
 0x96b   : > { %v3380_v39 = vpop.eup %3379 }
 0x96c   : > { %v1777_v40 = vsel %vm723_vm2, %v3380_v39, 0.0 }
 0x96d   : > { %v3382_v41 = vpop.eup %3381  ;;  %1778 = vadd.xlane.f32.xlu0 %v1777_v40 }
 0x96e   : > { %v1780_v42 = vsel %vm723_vm2, %v3382_v41, 0.0 }
 0x96f   : > { %1781 = vadd.xlane.f32.xlu1 %v1780_v42 }
 0x9fa   : > { %v1779_v53 = vpop.xlane.xlu0 %1778 }
 0x9fb   : > { %3383 = vrcp.f32 %v1779_v53 }
 0x9fc   : > { %v1782_v54 = vpop.xlane.xlu1 %1781 }
 0x9fd   : > { %3385 = vrcp.f32 %v1782_v54 }
 0xa05   : > { %v3384_v55 = vpop.eup %3383 }
 0xa06   : > { %v1785_v57 = vmul.f32 %v3384_v55, %v3380_v39 }
 0xa07   : > { %v3386_v56 = vpop.eup %3385 }
 0xa08   : > { %v1786_v58 = vmul.f32 %v3386_v56, %v3382_v41 }
 0xa0a   : > { %v1787_v60 = vpack.c.bf16 %v1786_v58, %v1785_v57 }
 0xa0c   : > { %3158 = vmatmul.mubr.msk.bf16.vlgmr.msra.gmra.mrb[32].mxu1 %vm723_vm2, %v1787_v60 }
 0xa0d   : > { %3162 = vmatpush3.bf16.msra.mxu1 %v3336_v59  ;;  %3165 = vmatprep.mubr.msk.bf16.mxu1 %vm3404_vm0, %v3403_v1 }
 0xa0e   : > { %3163 = vmatprep.subr.bf16.mxu1 %v3403_v1 }
 0xa11   : > { %3164 = vmatpush3.bf16.msra.mxu1 %v3338_v61 }
 0xa12   : > { %3169 = vmatprep.subr.bf16.mxu1 %v3403_v1 }
 0xadf   : > { %v1826_v6 = vpop.f32.mrb[32].mxu1 }
 0xae0   : > { %v3159_v8 = vpop.f32.mrb[33].mxu1 }
 0xae1   : > { %v1829_v11 = vpop.f32.mrb[34].mxu1 }
 0xae2   : > { %v1833_v13 = vpack.c.bf16 %v1829_v11, %v1826_v6  ;;  %v3160_v14 = vpop.f32.mrb[35].mxu1  ;;  %v2770_v6 = vld [vmem:[%s4064_s6 + $0x3] ss:$0 sm:$0xff] }
 0xae4   : > { %3166 = vmatmul.mubr.msk.bf16.vlgmr.msra.gmra.mrb[36].mxu1 %vm675_vm1, %v1833_v13 }
 0xae5   : > { %3170 = vmatpush3.bf16.msra.mxu1 %v3340_v12  ;;  %3185 = vmatprep.mubr.msk.bf16.mxu1 %vm3404_vm0, %v3403_v1 }
 0xae6   : > { %3171 = vmatprep.subr.bf16.mxu1 %v3403_v1 }
 0xae9   : > { %3172 = vmatpush3.bf16.msra.mxu1 %v3342_v15 }
 0xaea   : > { %3173 = vmatprep.subr.bf16.mxu1 %v3403_v1 }
 0xaed   : > { %3174 = vmatpush3.bf16.msra.mxu1 %v3344_v16 }
 0xaee   : > { %3175 = vmatprep.subr.bf16.mxu1 %v3403_v1 }
 0xaf1   : > { %3176 = vmatpush3.bf16.msra.mxu1 %v3346_v17 }
 0xaf2   : > { %3177 = vmatprep.subr.bf16.mxu1 %v3403_v1 }
 0xaf5   : > { %3178 = vmatpush3.bf16.msra.mxu1 %v3348_v18 }
 0xaf6   : > { %3179 = vmatprep.subr.bf16.mxu1 %v3403_v1 }
 0xaf9   : > { %3180 = vmatpush3.bf16.msra.mxu1 %v3350_v20 }
 0xafa   : > { %3181 = vmatprep.subr.bf16.mxu1 %v3403_v1 }
 0xafd   : > { %3182 = vmatpush3.bf16.msra.mxu1 %v3351_v7  ;;  %v3361_v7 = vld [vmem:[%s4065_s7 + $0x30] sm:$0xff]  }
 0xafe   : > { %3183 = vmatprep.subr.bf16.mxu1 %v3403_v1 }
 0xb01   : > { %3184 = vmatpush3.bf16.msra.mxu1 %v3352_v9 }
 0xb02   : > { %3209 = vmatprep.subr.bf16.mxu1 %v3403_v1 }
 0xb04   : > { %3186 = vmatmul.mubr.bf16.vlgmr.msra.gmra.mrb[40].mxu1 %v3542_v19 }
 0xb05   : > { %3225 = vmatprep.mubr.msk.bf16.mxu1 %vm3404_vm0, %v3403_v1 }
 0xbb7   : > { %v1888_v30 = vpop.f32.mrb[36].mxu1 }
 0xbb8   : > { %v3983_v31 = vadd.f32 %v1888_v30, %v3839_v5  ;;  %v3167_v32 = vpop.f32.mrb[37].mxu1  ;;  %v3353_v5 = vld [vmem:[%s4063_s5 + $0xc0] sm:$0xff]  }
 0xbb9   : > { %v1891_v33 = vpop.f32.mrb[38].mxu1  ;;  %3210 = vmatpush3.bf16.msra.mxu1 %v3353_v5 }
 0xbba   : > { %v3986_v34 = vadd.f32 %v1891_v33, %v3842_v10  ;;  %v3168_v35 = vpop.f32.mrb[39].mxu1  ;;  %v3354_v10 = vld [vmem:[%s4063_s5 + $0xc8] sm:$0xff]   ;;  %3211 = vmatprep.subr.bf16.mxu1 %v3403_v1 }
 0xbbd   : > { %3212 = vmatpush3.bf16.msra.mxu1 %v3354_v10 }
 0xbbe   : > { %3213 = vmatprep.subr.bf16.mxu1 %v3403_v1 }
 0xbc1   : > { %3214 = vmatpush3.bf16.msra.mxu1 %v3355_v44 }
 0xbc2   : > { %3215 = vmatprep.subr.bf16.mxu1 %v3403_v1 }
 0xbc5   : > { %3216 = vmatpush3.bf16.msra.mxu1 %v3356_v45 }
 0xbc6   : > { %3217 = vmatprep.subr.bf16.mxu1 %v3403_v1 }
 0xbc9   : > { %3218 = vmatpush3.bf16.msra.mxu1 %v3357_v46 }
 0xbca   : > { %3219 = vmatprep.subr.bf16.mxu1 %v3403_v1 }
 0xbcd   : > { %3220 = vmatpush3.bf16.msra.mxu1 %v3358_v47 }
 0xbce   : > { %3221 = vmatprep.subr.bf16.mxu1 %v3403_v1 }
 0xbd1   : > { %3222 = vmatpush3.bf16.msra.mxu1 %v3359_v48 }
 0xbd2   : > { %3223 = vmatprep.subr.bf16.mxu1 %v3403_v1 }
 0xbd5   : > { %3224 = vmatpush3.bf16.msra.mxu1 %v3360_v49 }
 0xbd7   : > { %v2004_v37 = vpop.f32.mrb[40].mxu1 }
 0xbd8   : > { %v3187_v38 = vpop.f32.mrb[41].mxu1  ;;  %v2005_v40 = vadd.f32 %v2718_v36, %v2004_v37  ;;  %3226 = vmatmul.mubr.bf16.vlgmr.msra.gmra.mrb[44].mxu1 %v3542_v19 }
 0xbd9   : > { %v2007_v39 = vpop.f32.mrb[42].mxu1 }
 0xbda   : > { %v2008_v41 = vadd.f32 %v2718_v36, %v2007_v39  ;;  %v3188_v42 = vpop.f32.mrb[43].mxu1 }
 0xbdc   : > { %v2239_v43 = vpack.c.bf16 %v2008_v41, %v2005_v40 }
 0xbde   : > { %3232 = vmatmul.mubr.msk.bf16.vlgmr.msra.gmra.mrb[36].mxu0 %vm675_vm1, %v2239_v43 }
 0xbdf   : > { %3237 = vmatprep.mubr.msk.bf16.mxu0 %vm3404_vm0, %v3403_v1 }
 0xcab   : > { %v2232_v2 = vpop.f32.mrb[44].mxu1 }
 0xcac   : > { %v3227_v3 = vpop.f32.mrb[45].mxu1  ;;  %v2233_v11 = vadd.f32 %v2770_v6, %v2232_v2 }
 0xcad   : > { %v2235_v4 = vpop.f32.mrb[46].mxu1 }
 0xcae   : > { %v3228_v8 = vpop.f32.mrb[47].mxu1  ;;  %v2236_v12 = vadd.f32 %v2770_v6, %v2235_v4 }
 0xcb0   : > { %v2311_v13 = vpack.c.bf16 %v2236_v12, %v2233_v11 }
 0xcb1   : > { %v2281_v50 = vpop.f32.mrb[36].mxu0 }
 0xcb2   : > { %v3233_v51 = vpop.f32.mrb[37].mxu0  ;;  %v2288_v52 = vsel %vm723_vm2, %v2281_v50, -inf  ;;  %3236 = vmatpush3.bf16.msra.mxu0 %v2311_v13 }
 0xcb3   : > { %2289 = vmax.xlane.f32.xlu0 %v2288_v52  ;;  %v2284_v53 = vpop.f32.mrb[38].mxu0  ;;  %3241 = vmatprep.subr.bf16.mxu0 %v3403_v1 }
 0xcb4   : > { %v3234_v54 = vpop.f32.mrb[39].mxu0  ;;  %v2291_v55 = vsel %vm723_vm2, %v2284_v53, -inf }
 0xcb5   : > { %2292 = vmax.xlane.f32.xlu1 %v2291_v55 }
 0xd40   : > { %v2290_v56 = vpop.xlane.xlu0 %2289 }
 0xd41   : > { %v2294_v57 = vsub.f32 %v2281_v50, %v2290_v56 }
 0xd42   : > { %v2293_v58 = vpop.xlane.xlu1 %2292 }
 0xd43   : > { %v2296_v59 = vmul.f32 1.442695, %v2294_v57  ;;  %v2295_v60 = vsub.f32 %v2284_v53, %v2293_v58 }
 0xd45   : > { %3387 = vpow2.f32 %v2296_v59  ;;  %v2298_v61 = vmul.f32 1.442695, %v2295_v60 }
 0xd47   : > { %3389 = vpow2.f32 %v2298_v61 }
 0xd4f   : > { %v3388_v62 = vpop.eup %3387 }
 0xd50   : > { %v2300_v19 = vsel %vm723_vm2, %v3388_v62, 0.0 }
 0xd51   : > { %v3390_v63 = vpop.eup %3389  ;;  %2301 = vadd.xlane.f32.xlu0 %v2300_v19 }
 0xd52   : > { %v2303_v0 = vsel %vm723_vm2, %v3390_v63, 0.0 }
 0xd53   : > { %2304 = vadd.xlane.f32.xlu1 %v2303_v0 }
 0xdde   : > { %v2302_v14 = vpop.xlane.xlu0 %2301 }
 0xddf   : > { %3391 = vrcp.f32 %v2302_v14 }
 0xde0   : > { %v2305_v15 = vpop.xlane.xlu1 %2304 }
 0xde1   : > { %3393 = vrcp.f32 %v2305_v15 }
 0xde9   : > { %v3392_v16 = vpop.eup %3391 }
 0xdea   : > { %v2308_v18 = vmul.f32 %v3392_v16, %v3388_v62 }
 0xdeb   : > { %v3394_v17 = vpop.eup %3393 }
 0xdec   : > { %v2309_v20 = vmul.f32 %v3394_v17, %v3390_v63 }
 0xdee   : > { %v2310_v9 = vpack.c.bf16 %v2309_v20, %v2308_v18 }
 0xdf0   : > { %3238 = vmatmul.mubr.msk.bf16.vlgmr.msra.gmra.mrb[40].mxu0 %vm723_vm2, %v2310_v9 }
 0xdf1   : > { %3242 = vmatpush3.bf16.msra.mxu0 %v3361_v7  ;;  %3245 = vmatprep.mubr.msk.bf16.mxu0 %vm3404_vm0, %v3403_v1 }
 0xdf2   : > { %3243 = vmatprep.subr.bf16.mxu0 %v3403_v1 }
 0xdf5   : > { %3244 = vmatpush3.bf16.msra.mxu0 %v3362_v21 }
 0xec3   : > { %v2349_v22 = vpop.f32.mrb[40].mxu0 }
 0xec4   : > { %v3239_v23 = vpop.f32.mrb[41].mxu0 }
 0xec5   : > { %v2352_v24 = vpop.f32.mrb[42].mxu0 }
 0xec6   : > { %v2356_v25 = vpack.c.bf16 %v2352_v24, %v2349_v22  ;;  %v3240_v26 = vpop.f32.mrb[43].mxu0 }
 0xec8   : > { %3246 = vmatmul.mubr.msk.bf16.vlgmr.msra.gmra.mrb[44].mxu0 %vm675_vm1, %v2356_v25 }
 0xf9b   : > { %v2411_v27 = vpop.f32.mrb[44].mxu0 }
 0xf9c   : > { %v2418_v29 = vadd.f32 %v2411_v27, %v3983_v31  ;;  %v3247_v1 = vpop.f32.mrb[45].mxu0 }
 0xf9d   : > { %v2414_v30 = vpop.f32.mrb[46].mxu0 }
 0xf9e   : > { %v2427_v32 = vadd.f32 %v2788_v28, %v2418_v29  ;;  %v2419_v33 = vadd.f32 %v2414_v30, %v3986_v34  ;;  %v3248_v35 = vpop.f32.mrb[47].mxu0 }
 0xfa0   : > { %2429 = vst [vmem:[%s332_s16] sm:$0xff] %v2427_v32  ;;  %v2428_v36 = vadd.f32 %v2788_v28, %v2419_v33 }
 0xfa2   : > { %2430 = vst [vmem:[%s332_s16 + $0x8] sm:$0xff] %v2428_v36 }
 0xfa3 PF: > { %s19_s30 = sadd.s32 1, %s3401_s30  }
 0xfa4   : > { %p16_p4 = scmp.ge.s32.totalorder %s19_s30, 4  }
 0xfa6   :  { %18 = sbr.rel (!%p16_p4) target bundleno = 1 (0x1), region = 107 }

// kernel: _lambda_.6
= control target key start
LH: loop header
LB: loop body
LE: loop exit
PB: predicated region body
PF: predicated region fallthrough
CT: control target
= control target key end

     0   :  { %s5849_s21 = smov 0   ;;  %s7006_s0 = inlined_call_operand.vmem [shape: f32[32,16,32], index: 0, kind: input, shape index: {}]   ;;  %s7007_s1 = inlined_call_operand.vmem [shape: bf16[4,32,8], index: 1, kind: input, shape index: {}]   ;;  %s7008_s2 = inlined_call_operand.vmem [shape: bf16[4,32,8], index: 2, kind: input, shape index: {}]   ;;  %s7009_s3 = inlined_call_operand.vmem [shape: f32[4,1,8], index: 3, kind: input, shape index: {}]   ;;  %s7010_s4 = inlined_call_operand.vmem [shape: f32[4,1,8], index: 4, kind: input, shape index: {}]   ;;  %s7011_s5 = inlined_call_operand.vmem [shape: f32[4,4,8], index: 5, kind: input, shape index: {}]   ;;  %s7012_s6 = inlined_call_operand.vmem [shape: f32[32,4,32], index: 6, kind: output, shape index: {}]  }
   0x1 LB: > { %s4694_s22 = sadd.s32 4294967295, %s5807_s21   ;;  %p4698_p0 = scmp.ge.s32.totalorder %s5807_s21, 1  ;;  %s5807_s21 = sphi %s5849_s21, %s16_s21  }
   0x2   : > { %p214_p1 = scmp.lt.s32.totalorder %s5807_s21, 5 }
   0x4   : > { %p215_p2 = pnand %p4698_p0, %p214_p1 }
   0x5   : > { %v5657_v0 = vld [vmem:[%s7007_s1] sm:$0xff] (!%p215_p2)   ;;  %s4699_s25 = sshll.u32 (!%p215_p2), %s4694_s22, 3  ;;  %v5658_v1 = vld [vmem:[%s7007_s1 + $0x8] sm:$0xff] (!%p215_p2)   ;;  %vm306_vm0 = vcmask (!%p215_p2), 261120   ;;  %v5809_v28 = vmov (!%p215_p2), 0.0   ;;  %vm5810_vm1 = vmmov (!%p215_p2), 0  }
   0x6   : > { %218 = sbr.rel (%p215_p2) target bundleno = 3491 (0xda3), region = 44  ;;  %p246_p3 = scmp.lt.s32.totalorder (!%p215_p2), %s4699_s25, 31  ;;  %5100 = vmatprep.subr.bf16.mxu0 (!%p215_p2), %v5657_v0  ;;  %v5659_v2 = vld [vmem:[%s7008_s2] sm:$0xff] (!%p215_p2)   ;;  %v5660_v3 = vld [vmem:[%s7008_s2 + $0x8] sm:$0xff] (!%p215_p2)   ;;  %vm558_vm2 = vcmask (!%p215_p2), 64512   ;;  %vm906_vm3 = vcmask (!%p215_p2), 125952  }
   0x7   : > { %5101 = vmatpush3.bf16.msra.mxu0 (!%p215_p2), %v5657_v0  ;;  %5120 = vmatprep.subr.bf16.mxu1 (!%p215_p2), %v5659_v2  ;;  %v5950_v30 = vld [vmem:[%s7009_s3] ss:$0 sm:$0xff] (!%p215_p2)  ;;  %vm1011_vm4 = vcmask (!%p215_p2), 130048   ;;  %vm1356_vm5 = vcmask (!%p215_p2), 60416   ;;  %s5811_s19 = smov (!%p215_p2), 8   ;;  %s5812_s20 = smov (!%p215_p2), 16  }
   0x8   : > { %5102 = vmatprep.subr.bf16.mxu0 (!%p215_p2), %v5658_v1  ;;  %5121 = vmatpush3.bf16.msra.mxu1 (!%p215_p2), %v5659_v2  ;;  %v548_v43 = vld [vmem:[%s7011_s5] sm:$0xf] (!%p215_p2)  ;;  %vm2447_vm6 = vcmask (!%p215_p2), 126016   ;;  %vm3538_vm7 = vcmask (!%p215_p2), 191616   ;;  %s5813_s22 = smov (!%p215_p2), 24   ;;  %vm4629_vm8 = vcmask (!%p215_p2), 257216  }
   0x9   : > { %5122 = vmatprep.subr.bf16.mxu1 (!%p215_p2), %v5660_v3  ;;  %v549_v49 = vpack.c.bf16 (!%p215_p2), %v548_v43, %v548_v43 }
   0xb   : > { %5103 = vmatpush3.bf16.msra.mxu0 (!%p215_p2), %v5658_v1 }
   0xc   : > { %5123 = vmatpush3.bf16.msra.mxu1 (!%p215_p2), %v5660_v3  ;;  %5140 = vmatprep.subr.bf16.mxu0 (!%p215_p2), %v5809_v28 }
   0xd   : > { %s7014_s25 = smov (!%p246_p3, %s4699_s25), 31  ;;  %5146 = vmatprep.subr.bf16.mxu1 %v5809_v28 }
   0xe   : > { %s4891_s8 = sshll.u32 %s7014_s25, 4  ;;  %s4703_s28 = sshll.u32 %s7014_s25, 2 }
   0xf   : > { %s5875_s11 = scalar_lea.vmem %s7006_s0, %s4891_s8  ;;  %s6180_s7 = scalar_lea.vmem %s7012_s6, %s4703_s28 }
  0x10   : > { %v259_v4 = vld [vmem:[%s5875_s11] sm:$0xff]  ;;  %v260_v5 = vld [vmem:[%s5875_s11 + $0x8] sm:$0xff]  ;;  %v261_v6 = vld [vmem:[%s5875_s11 + $0x10] sm:$0xff] }
  0x11   : > { %v5880_v7 = vpack.c.bf16 %v260_v5, %v259_v4  ;;  %v262_v8 = vld [vmem:[%s5875_s11 + $0x18] sm:$0xff]  ;;  %v263_v9 = vld [vmem:[%s5875_s11 + $0x20] sm:$0xff]  ;;  %v264_v10 = vld [vmem:[%s5875_s11 + $0x28] sm:$0xff] }
  0x12   : > { %v5885_v11 = vpack.c.bf16 %v262_v8, %v261_v6  ;;  %v5887_v12 = vpack.c.bf16 %v264_v10, %v263_v9  ;;  %v265_v13 = vld [vmem:[%s5875_s11 + $0x30] sm:$0xff]  ;;  %v266_v14 = vld [vmem:[%s5875_s11 + $0x38] sm:$0xff]  ;;  %v267_v15 = vld [vmem:[%s5875_s11 + $0x40] sm:$0xff] }
  0x13   : > { %5104 = vmatprep.mubr.msk.bf16.mxu0 %vm306_vm0, %v5880_v7  ;;  %5124 = vmatprep.mubr.msk.bf16.mxu1 %vm306_vm0, %v5880_v7  ;;  %v268_v16 = vld [vmem:[%s5875_s11 + $0x48] sm:$0xff]  ;;  %v5905_v17 = vpack.c.bf16 %v266_v14, %v265_v13  ;;  %v269_v19 = vld [vmem:[%s5875_s11 + $0x50] sm:$0xff]  ;;  %v270_v20 = vld [vmem:[%s5875_s11 + $0x58] sm:$0xff] }
  0x14   : > { %5105 = vmatmul.mubr.msk.bf16.vlgmr.msra.gmra.mrb[0].mxu0 %vm306_vm0, %v5885_v11  ;;  %5125 = vmatmul.mubr.msk.bf16.vlgmr.msra.gmra.mrb[0].mxu1 %vm306_vm0, %v5885_v11  ;;  %v5907_v18 = vpack.c.bf16 %v268_v16, %v267_v15  ;;  %v271_v21 = vld [vmem:[%s5875_s11 + $0x60] sm:$0xff]  ;;  %v272_v22 = vld [vmem:[%s5875_s11 + $0x68] sm:$0xff]  ;;  %v5921_v23 = vpack.c.bf16 %v270_v20, %v269_v19  ;;  %v273_v25 = vld [vmem:[%s5875_s11 + $0x70] sm:$0xff] }
  0x15   : > { %5108 = vmatprep.mubr.msk.bf16.mxu0 %vm306_vm0, %v5887_v12  ;;  %5128 = vmatprep.mubr.msk.bf16.mxu1 %vm306_vm0, %v5887_v12  ;;  %v5923_v24 = vpack.c.bf16 %v272_v22, %v271_v21  ;;  %v274_v26 = vld [vmem:[%s5875_s11 + $0x78] sm:$0xff] }
  0x16   : > { %v5935_v27 = vpack.c.bf16 %v274_v26, %v273_v25 }
  0x1c   : > { %5109 = vmatmul.mubr.msk.bf16.gmra.mrb[4].mxu0 %vm306_vm0, %v5905_v17  ;;  %5129 = vmatmul.mubr.msk.bf16.gmra.mrb[4].mxu1 %vm306_vm0, %v5905_v17 }
  0x1d   : > { %5112 = vmatprep.mubr.msk.bf16.mxu0 %vm306_vm0, %v5907_v18  ;;  %5132 = vmatprep.mubr.msk.bf16.mxu1 %vm306_vm0, %v5907_v18 }
  0x24   : > { %5113 = vmatmul.mubr.msk.bf16.gmra.mrb[8].mxu0 %vm306_vm0, %v5921_v23  ;;  %5133 = vmatmul.mubr.msk.bf16.gmra.mrb[8].mxu1 %vm306_vm0, %v5921_v23 }
  0x25   : > { %5116 = vmatprep.mubr.msk.bf16.mxu0 %vm306_vm0, %v5923_v24  ;;  %5136 = vmatprep.mubr.msk.bf16.mxu1 %vm306_vm0, %v5923_v24 }
  0x2c   : > { %5117 = vmatmul.mubr.msk.bf16.gmra.mrb[12].mxu0 %vm306_vm0, %v5935_v27  ;;  %5137 = vmatmul.mubr.msk.bf16.gmra.mrb[12].mxu1 %vm306_vm0, %v5935_v27 }
  0x2d   : > { %5142 = vmatprep.mubr.msk.bf16.mxu0 %vm5810_vm1, %v5809_v28  ;;  %5148 = vmatprep.mubr.msk.bf16.mxu1 %vm5810_vm1, %v5809_v28 }
  0xe7   : > { %v5106_v29 = vpop.f32.mrb[0].mxu0 }
  0xe8   : > { %v365_v31 = vpop.f32.mrb[1].mxu0  ;;  %v374_v33 = vadd.f32 %v5106_v29, %v5950_v30 }
  0xe9   : > { %v5107_v32 = vpop.f32.mrb[2].mxu0  ;;  %v366_v36 = vadd.f32 %v5950_v30, %v365_v31 }
  0xea   : > { %v377_v34 = vadd.f32 %v5107_v32, %v5950_v30  ;;  %v368_v35 = vpop.f32.mrb[3].mxu0 }
  0xeb   : > { %v369_v37 = vadd.f32 %v5950_v30, %v368_v35 }
  0xec   : > { %v551_v38 = vpack.c.bf16 %v377_v34, %v374_v33 }
  0xed   : > { %v550_v39 = vpack.c.bf16 %v369_v37, %v366_v36 }
  0xee   : > { %v606_v40 = vsel %vm558_vm2, %v551_v38, 0 }
  0xef   : > { %v5110_v41 = vpop.f32.mrb[4].mxu0  ;;  %5147 = vmatpush3.bf16.xpose.msra.mxu1 %v606_v40  ;;  %v563_v42 = vsel %vm558_vm2, %v550_v39, 0 }
  0xf0   : > { %v381_v44 = vpop.f32.mrb[5].mxu0  ;;  %5141 = vmatpush3.bf16.xpose.msra.mxu0 %v563_v42  ;;  %5158 = vmatprep.subr.bf16.mxu1 %v5809_v28  ;;  %v390_v46 = vadd.f32 %v5110_v41, %v5950_v30 }
  0xf1   : > { %v5111_v45 = vpop.f32.mrb[6].mxu0  ;;  %5152 = vmatprep.subr.bf16.mxu0 %v5809_v28  ;;  %v382_v50 = vadd.f32 %v5950_v30, %v381_v44 }
  0xf2   : > { %v393_v47 = vadd.f32 %v5111_v45, %v5950_v30  ;;  %v384_v48 = vpop.f32.mrb[7].mxu0  ;;  %v5126_v45 = vpop.f32.mrb[0].mxu1 }
  0xf3   : > { %v385_v51 = vadd.f32 %v5950_v30, %v384_v48 }
  0xf4   : > { %v553_v52 = vpack.c.bf16 %v393_v47, %v390_v46  ;;  %v485_v46 = vpop.f32.mrb[1].mxu1  ;;  %v4715_v47 = vld [vmem:[%s7010_s4] ss:$0 sm:$0xff] }
  0xf5   : > { %v552_v53 = vpack.c.bf16 %v385_v51, %v382_v50  ;;  %v5127_v48 = vpop.f32.mrb[2].mxu1  ;;  %v486_v50 = vadd.f32 %v4715_v47, %v485_v46 }
  0xf6   : > { %5149 = vmatmul.mubr.msk.bf16.vlgmr.msra.gmra.mrb[16].mxu1 %vm558_vm2, %v549_v49  ;;  %v692_v54 = vsel %vm558_vm2, %v553_v52, 0  ;;  %v497_v51 = vadd.f32 %v5127_v48, %v4715_v47  ;;  %v488_v52 = vpop.f32.mrb[3].mxu1 }
  0xf7   : > { %v5114_v55 = vpop.f32.mrb[8].mxu0  ;;  %5143 = vmatmul.mubr.msk.bf16.vlgmr.msra.gmra.mrb[16].mxu0 %vm558_vm2, %v549_v49  ;;  %5159 = vmatpush3.bf16.xpose.msra.mxu1 %v692_v54  ;;  %v649_v56 = vsel %vm558_vm2, %v552_v53, 0  ;;  %v489_v53 = vadd.f32 %v4715_v47, %v488_v52  ;;  %v5130_v54 = vpop.f32.mrb[4].mxu1 }
  0xf8   : > { %v397_v57 = vpop.f32.mrb[9].mxu0  ;;  %5153 = vmatpush3.bf16.xpose.msra.mxu0 %v649_v56  ;;  %5154 = vmatprep.mubr.msk.bf16.mxu0 %vm5810_vm1, %v5809_v28  ;;  %v406_v59 = vadd.f32 %v5114_v55, %v5950_v30  ;;  %v6030_v56 = vadd.f32 %v5130_v54, %v4715_v47 }
  0xf9   : > { %v5115_v58 = vpop.f32.mrb[10].mxu0  ;;  %5160 = vmatprep.mubr.msk.bf16.mxu1 %vm5810_vm1, %v5809_v28  ;;  %5170 = vmatprep.subr.bf16.mxu1 %v5809_v28  ;;  %v398_v62 = vadd.f32 %v5950_v30, %v397_v57  ;;  %v501_v57 = vpop.f32.mrb[5].mxu1 }
  0xfa   : > { %v409_v60 = vadd.f32 %v5115_v58, %v5950_v30  ;;  %v400_v61 = vpop.f32.mrb[11].mxu0  ;;  %5164 = vmatprep.subr.bf16.mxu0 %v5809_v28  ;;  %v1003_v58 = vpack.c.bf16 %v489_v53, %v486_v50 }
  0xfb   : > { %v401_v63 = vadd.f32 %v5950_v30, %v400_v61 }
  0xfc   : > { %v555_v0 = vpack.c.bf16 %v409_v60, %v406_v59  ;;  %v6032_v59 = vadd.f32 %v4715_v47, %v501_v57  ;;  %v5131_v60 = vpop.f32.mrb[6].mxu1 }
  0xfd   : > { %v554_v1 = vpack.c.bf16 %v401_v63, %v398_v62  ;;  %v504_v61 = vpop.f32.mrb[7].mxu1 }
  0xfe   : > { %5161 = vmatmul.mubr.msk.bf16.vlgmr.msra.gmra.mrb[20].mxu1 %vm558_vm2, %v549_v49  ;;  %v778_v2 = vsel %vm558_vm2, %v555_v0, 0  ;;  %v5134_v62 = vpop.f32.mrb[8].mxu1  ;;  %v6036_v0 = vadd.f32 %v5131_v60, %v4715_v47 }
  0xff   : > { %v5118_v3 = vpop.f32.mrb[12].mxu0  ;;  %5155 = vmatmul.mubr.msk.bf16.vlgmr.msra.gmra.mrb[20].mxu0 %vm558_vm2, %v549_v49  ;;  %5171 = vmatpush3.bf16.xpose.msra.mxu1 %v778_v2  ;;  %v735_v4 = vsel %vm558_vm2, %v554_v1, 0  ;;  %v517_v63 = vpop.f32.mrb[9].mxu1  ;;  %v6038_v1 = vadd.f32 %v4715_v47, %v504_v61  ;;  %v6040_v2 = vadd.f32 %v5134_v62, %v4715_v47 }
 0x100   : > { %v413_v5 = vpop.f32.mrb[13].mxu0  ;;  %5165 = vmatpush3.bf16.xpose.msra.mxu0 %v735_v4  ;;  %5166 = vmatprep.mubr.msk.bf16.mxu0 %vm5810_vm1, %v5809_v28  ;;  %v422_v8 = vadd.f32 %v5118_v3, %v5950_v30  ;;  %v6042_v3 = vadd.f32 %v4715_v47, %v517_v63  ;;  %v5135_v4 = vpop.f32.mrb[10].mxu1 }
 0x101   : > { %v5119_v6 = vpop.f32.mrb[14].mxu0  ;;  %5172 = vmatprep.mubr.msk.bf16.mxu1 %vm5810_vm1, %v5809_v28  ;;  %5182 = vmatprep.subr.bf16.mxu1 %v5809_v28  ;;  %v414_v13 = vadd.f32 %v5950_v30, %v413_v5  ;;  %v6044_v5 = vadd.f32 %v5135_v4, %v4715_v47 }
 0x102   : > { %v425_v9 = vadd.f32 %v5119_v6, %v5950_v30  ;;  %v416_v10 = vpop.f32.mrb[15].mxu0  ;;  %5176 = vmatprep.subr.bf16.mxu0 %v5809_v28  ;;  %v520_v6 = vpop.f32.mrb[11].mxu1 }
 0x103   : > { %v417_v14 = vadd.f32 %v5950_v30, %v416_v10  ;;  %v6050_v10 = vadd.f32 %v4715_v47, %v520_v6 }
 0x104   : > { %v557_v15 = vpack.c.bf16 %v425_v9, %v422_v8  ;;  %v1006_v8 = vpack.c.bf16 %v6036_v0, %v6030_v56  ;;  %v1005_v9 = vpack.c.bf16 %v6038_v1, %v6032_v59 }
 0x105   : > { %v556_v16 = vpack.c.bf16 %v417_v14, %v414_v13  ;;  %v5138_v13 = vpop.f32.mrb[12].mxu1  ;;  %v1008_v14 = vpack.c.bf16 %v6044_v5, %v6040_v2  ;;  %v5664_v5 = vld [vmem:[%s7008_s2 + $0x18] sm:$0xff]  }
 0x106   : > { %5173 = vmatmul.mubr.msk.bf16.vlgmr.msra.gmra.mrb[24].mxu1 %vm558_vm2, %v549_v49  ;;  %v864_v19 = vsel %vm558_vm2, %v557_v15, 0  ;;  %v6054_v15 = vadd.f32 %v5138_v13, %v4715_v47 }
 0x107   : > { %5167 = vmatmul.mubr.msk.bf16.vlgmr.msra.gmra.mrb[24].mxu0 %vm558_vm2, %v549_v49  ;;  %5183 = vmatpush3.bf16.xpose.msra.mxu1 %v864_v19  ;;  %v821_v20 = vsel %vm558_vm2, %v556_v16, 0  ;;  %v533_v16 = vpop.f32.mrb[13].mxu1  ;;  %v1007_v19 = vpack.c.bf16 %v6050_v10, %v6042_v3  ;;  %v5661_v3 = vld [vmem:[%s7007_s1 + $0x10] sm:$0xff]  }
 0x108   : > { %5177 = vmatpush3.bf16.xpose.msra.mxu0 %v821_v20  ;;  %5178 = vmatprep.mubr.msk.bf16.mxu0 %vm5810_vm1, %v5809_v28  ;;  %v6058_v20 = vadd.f32 %v4715_v47, %v533_v16 }
 0x109   : > { %5184 = vmatprep.mubr.msk.bf16.mxu1 %vm5810_vm1, %v5809_v28  ;;  %5188 = vmatprep.subr.bf16.mxu0 %v5809_v28 }
 0x10a   : > { %5194 = vmatprep.subr.bf16.mxu1 %v5809_v28 }
 0x10e   : > { %5185 = vmatmul.mubr.msk.bf16.vlgmr.msra.gmra.mrb[28].mxu1 %vm558_vm2, %v549_v49 }
 0x10f   : > { %5179 = vmatmul.mubr.msk.bf16.vlgmr.msra.gmra.mrb[28].mxu0 %vm558_vm2, %v549_v49  ;;  %5196 = vmatprep.mubr.msk.bf16.mxu1 %vm5810_vm1, %v5809_v28  ;;  %v494_v49 = vadd.f32 %v5126_v45, %v4715_v47 }
 0x110   : > { %5190 = vmatprep.mubr.msk.bf16.mxu0 %vm5810_vm1, %v5809_v28  ;;  %5189 = vmatpush3.bf16.msra.mxu0 %v1003_v58 }
 0x111   : > { %v1004_v55 = vpack.c.bf16 %v497_v51, %v494_v49  ;;  %5200 = vmatprep.subr.bf16.mxu0 %v5809_v28 }
 0x113   : > { %5195 = vmatpush3.bf16.msra.mxu1 %v1004_v55 }
 0x114   : > { %5206 = vmatprep.subr.bf16.mxu1 %v5809_v28 }
 0x1ca   : > { %v6011_v21 = vpop.f32.mrb[16].mxu0 }
 0x1cb   : > { %v5144_v22 = vpop.f32.mrb[17].mxu0  ;;  %v907_v25 = vsel %vm906_vm3, %v6011_v21, -inf }
 0x1cc   : > { %908 = vmax.xlane.f32.xlu0 %v907_v25  ;;  %v602_v26 = vpop.f32.mrb[18].mxu0  ;;  %v5139_v22 = vpop.f32.mrb[14].mxu1 }
 0x1cd   : > { %v5145_v29 = vpop.f32.mrb[19].mxu0  ;;  %v6060_v25 = vadd.f32 %v5139_v22, %v4715_v47  ;;  %v536_v26 = vpop.f32.mrb[15].mxu1 }
 0x1ce   : > { %v6062_v29 = vadd.f32 %v4715_v47, %v536_v26 }
 0x1d2   : > { %v6015_v30 = vpop.f32.mrb[20].mxu0 }
 0x1d3   : > { %v5156_v31 = vpop.f32.mrb[21].mxu0  ;;  %v913_v32 = vsel %vm906_vm3, %v6015_v30, -inf }
 0x1d4   : > { %914 = vmax.xlane.f32.xlu0 %v913_v32  ;;  %v688_v33 = vpop.f32.mrb[22].mxu0  ;;  %v6064_v31 = vpop.f32.mrb[16].mxu1  ;;  %v1010_v32 = vpack.c.bf16 %v6060_v25, %v6054_v15 }
 0x1d5   : > { %v5157_v34 = vpop.f32.mrb[23].mxu0  ;;  %v5150_v33 = vpop.f32.mrb[17].mxu1  ;;  %v910_v26 = vsel %vm906_vm3, %v6064_v31, -inf }
 0x1d6   : > { %v1009_v34 = vpack.c.bf16 %v6062_v29, %v6058_v20  ;;  %v5662_v20 = vld [vmem:[%s7007_s1 + $0x18] sm:$0xff]  }
 0x1da   : > { %v6019_v35 = vpop.f32.mrb[24].mxu0 }
 0x1db   : > { %v5168_v36 = vpop.f32.mrb[25].mxu0  ;;  %v919_v37 = vsel %vm906_vm3, %v6019_v35, -inf }
 0x1dc   : > { %920 = vmax.xlane.f32.xlu1 %v919_v37  ;;  %v774_v38 = vpop.f32.mrb[26].mxu0  ;;  %v645_v36 = vpop.f32.mrb[18].mxu1 }
 0x1dd   : > { %v5169_v39 = vpop.f32.mrb[27].mxu0  ;;  %v5151_v37 = vpop.f32.mrb[19].mxu1 }
 0x1de   : > { %v6070_v38 = vpop.f32.mrb[20].mxu1 }
 0x1df   : > { %v5162_v39 = vpop.f32.mrb[21].mxu1 }
 0x1e2   : > { %v6023_v40 = vpop.f32.mrb[28].mxu0 }
 0x1e3   : > { %v5180_v41 = vpop.f32.mrb[29].mxu0  ;;  %v925_v42 = vsel %vm906_vm3, %v6023_v40, -inf }
 0x1e4   : > { %926 = vmax.xlane.f32.xlu1 %v925_v42  ;;  %v860_v43 = vpop.f32.mrb[30].mxu0  ;;  %v731_v41 = vpop.f32.mrb[22].mxu1 }
 0x1e5   : > { %v5181_v44 = vpop.f32.mrb[31].mxu0  ;;  %v5163_v42 = vpop.f32.mrb[23].mxu1 }
 0x1e6   : > { %v6072_v43 = vpop.f32.mrb[24].mxu1 }
 0x1e7   : > { %v5174_v44 = vpop.f32.mrb[25].mxu1 }
 0x1e8   : > { %v817_v45 = vpop.f32.mrb[26].mxu1 }
 0x1e9   : > { %v5175_v46 = vpop.f32.mrb[27].mxu1 }
 0x1ea   : > { %v6074_v47 = vpop.f32.mrb[28].mxu1 }
 0x1eb   : > { %v5186_v48 = vpop.f32.mrb[29].mxu1  ;;  %v928_v37 = vsel %vm906_vm3, %v6074_v47, -inf }
 0x1ec   : > { %v903_v49 = vpop.f32.mrb[30].mxu1 }
 0x1ed   : > { %v5187_v50 = vpop.f32.mrb[31].mxu1 }
 0x259   : > { %v909_v51 = vpop.xlane.xlu0 %908 }
 0x25a   : > { %v931_v52 = vsub.f32 %v6011_v21, %v909_v51 }
 0x25c   : > { %v939_v53 = vmul.f32 1.442695, %v931_v52 }
 0x25e   : > { %5673 = vpow2.f32 %v939_v53 }
 0x261   : > { %v915_v54 = vpop.xlane.xlu0 %914 }
 0x262   : > { %v933_v55 = vsub.f32 %v6015_v30, %v915_v54 }
 0x264   : > { %v943_v57 = vmul.f32 1.442695, %v933_v55 }
 0x266   : > { %5675 = vpow2.f32 %v943_v57 }
 0x268   : > { %v5674_v58 = vpop.eup %5673 }
 0x269   : > { %v921_v60 = vpop.xlane.xlu1 %920  ;;  %v955_v61 = vsel %vm906_vm3, %v5674_v58, 0.0 }
 0x26a   : > { %v935_v62 = vsub.f32 %v6019_v35, %v921_v60  ;;  %956 = vadd.xlane.f32.xlu0 %v955_v61  ;;  %v922_v35 = vsel %vm906_vm3, %v6072_v43, -inf }
 0x26c   : > { %v947_v63 = vmul.f32 1.442695, %v935_v62 }
 0x26e   : > { %5677 = vpow2.f32 %v947_v63 }
 0x270   : > { %v5676_v4 = vpop.eup %5675 }
 0x271   : > { %v927_v6 = vpop.xlane.xlu1 %926  ;;  %v961_v21 = vsel %vm906_vm3, %v5676_v4, 0.0 }
 0x272   : > { %v937_v13 = vsub.f32 %v6023_v40, %v927_v6  ;;  %962 = vadd.xlane.f32.xlu1 %v961_v21  ;;  %v916_v40 = vsel %vm906_vm3, %v6070_v38, -inf }
 0x274   : > { %v951_v16 = vmul.f32 1.442695, %v937_v13 }
 0x276   : > { %5679 = vpow2.f32 %v951_v16 }
 0x278   : > { %v5678_v30 = vpop.eup %5677 }
 0x279   : > { %v967_v22 = vsel %vm906_vm3, %v5678_v30, 0.0 }
 0x27a   : > { %968 = vadd.xlane.f32.xlu0 %v967_v22 }
 0x27e   : > { %911 = vmax.xlane.f32.xlu0 %v910_v26 }
 0x280   : > { %v5680_v33 = vpop.eup %5679 }
 0x281   : > { %v973_v36 = vsel %vm906_vm3, %v5680_v33, 0.0 }
 0x282   : > { %974 = vadd.xlane.f32.xlu1 %v973_v36  ;;  %923 = vmax.xlane.f32.xlu0 %v922_v35 }
 0x286   : > { %917 = vmax.xlane.f32.xlu1 %v916_v40 }
 0x28a   : > { %929 = vmax.xlane.f32.xlu1 %v928_v37 }
 0x2f7   : > { %v957_v39 = vpop.xlane.xlu0 %956 }
 0x2f8   : > { %5681 = vrcp.f32 %v957_v39 }
 0x2ff   : > { %v963_v41 = vpop.xlane.xlu1 %962 }
 0x300   : > { %5683 = vrcp.f32 %v963_v41 }
 0x302   : > { %v5682_v42 = vpop.eup %5681 }
 0x303   : > { %v987_v44 = vmul.f32 %v5682_v42, %v5674_v58 }
 0x305   : > { %v995_v45 = vpack.c.bf16 %v987_v44, %v987_v44 }
 0x307   : > { %5191 = vmatmul.mubr.msk.bf16.vlgmr.msra.gmra.mrb[32].mxu0 %vm1011_vm4, %v995_v45  ;;  %v969_v46 = vpop.xlane.xlu0 %968 }
 0x308   : > { %5685 = vrcp.f32 %v969_v46  ;;  %5201 = vmatpush3.bf16.msra.mxu0 %v1005_v9  ;;  %5202 = vmatprep.mubr.msk.bf16.mxu0 %vm5810_vm1, %v5809_v28 }
 0x309   : > { %5212 = vmatprep.subr.bf16.mxu0 %v5809_v28 }
 0x30a   : > { %v5684_v48 = vpop.eup %5683 }
 0x30b   : > { %v989_v49 = vmul.f32 %v5684_v48, %v5676_v4  ;;  %v912_v50 = vpop.xlane.xlu0 %911 }
 0x30c   : > { %v932_v51 = vsub.f32 %v6064_v31, %v912_v50 }
 0x30d   : > { %v997_v52 = vpack.c.bf16 %v989_v49, %v989_v49 }
 0x30e   : > { %v941_v53 = vmul.f32 1.442695, %v932_v51 }
 0x30f   : > { %5203 = vmatmul.mubr.msk.bf16.vlgmr.msra.gmra.mrb[36].mxu0 %vm1011_vm4, %v997_v52  ;;  %v975_v54 = vpop.xlane.xlu1 %974  ;;  %v924_v55 = vpop.xlane.xlu0 %923 }
 0x310   : > { %5687 = vpow2.f32 %v941_v53  ;;  %5213 = vmatpush3.bf16.msra.mxu0 %v1007_v19  ;;  %5214 = vmatprep.mubr.msk.bf16.mxu0 %vm5810_vm1, %v5809_v28  ;;  %v936_v59 = vsub.f32 %v6072_v43, %v924_v55 }
 0x311   : > { %5689 = vrcp.f32 %v975_v54  ;;  %5224 = vmatprep.subr.bf16.mxu0 %v5809_v28 }
 0x312   : > { %v5686_v1 = vpop.eup %5685  ;;  %v949_v9 = vmul.f32 1.442695, %v936_v59 }
 0x313   : > { %v991_v31 = vmul.f32 %v5686_v1, %v5678_v30  ;;  %v918_v57 = vpop.xlane.xlu1 %917 }
 0x314   : > { %v934_v58 = vsub.f32 %v6070_v38, %v918_v57  ;;  %5691 = vpow2.f32 %v949_v9  ;;  %v6209_v57 = vld [vmem:[%s7009_s3 + $0x1] ss:$0 sm:$0xff] }
 0x315   : > { %v999_v60 = vpack.c.bf16 %v991_v31, %v991_v31 }
 0x316   : > { %v945_v10 = vmul.f32 1.442695, %v934_v58 }
 0x317   : > { %5215 = vmatmul.mubr.msk.bf16.vlgmr.msra.gmra.mrb[40].mxu0 %vm1011_vm4, %v999_v60  ;;  %v930_v19 = vpop.xlane.xlu1 %929 }
 0x318   : > { %5693 = vpow2.f32 %v945_v10  ;;  %5225 = vmatpush3.bf16.msra.mxu0 %v1009_v34  ;;  %5226 = vmatprep.mubr.msk.bf16.mxu0 %vm5810_vm1, %v5809_v28  ;;  %v938_v38 = vsub.f32 %v6074_v47, %v930_v19 }
 0x319   : > { %5236 = vmatprep.subr.bf16.mxu0 %v5661_v3 }
 0x31a   : > { %v5688_v43 = vpop.eup %5687  ;;  %v953_v61 = vmul.f32 1.442695, %v938_v38 }
 0x31b   : > { %v5690_v62 = vpop.eup %5689  ;;  %v958_v63 = vsel %vm906_vm3, %v5688_v43, 0.0 }
 0x31c   : > { %v993_v4 = vmul.f32 %v5690_v62, %v5680_v33  ;;  %959 = vadd.xlane.f32.xlu0 %v958_v63  ;;  %5695 = vpow2.f32 %v953_v61 }
 0x31e   : > { %v5692_v6 = vpop.eup %5691  ;;  %v1001_v21 = vpack.c.bf16 %v993_v4, %v993_v4 }
 0x31f   : > { %v970_v29 = vsel %vm906_vm3, %v5692_v6, 0.0 }
 0x320   : > { %5227 = vmatmul.mubr.msk.bf16.vlgmr.msra.gmra.mrb[44].mxu0 %vm1011_vm4, %v1001_v21  ;;  %971 = vadd.xlane.f32.xlu0 %v970_v29  ;;  %v4774_v21 = vld [vmem:[%s7011_s5 + $0x4] sm:$0xf] }
 0x321   : > { %5237 = vmatpush3.bf16.msra.mxu0 %v5661_v3  ;;  %5240 = vmatprep.mubr.msk.bf16.mxu0 %vm306_vm0, %v5880_v7 }
 0x322   : > { %v5694_v34 = vpop.eup %5693  ;;  %5238 = vmatprep.subr.bf16.mxu0 %v5662_v20 }
 0x323   : > { %v964_v47 = vsel %vm906_vm3, %v5694_v34, 0.0 }
 0x324   : > { %965 = vadd.xlane.f32.xlu1 %v964_v47 }
 0x325   : > { %5239 = vmatpush3.bf16.msra.mxu0 %v5662_v20 }
 0x326   : > { %v5696_v13 = vpop.eup %5695  ;;  %5276 = vmatprep.subr.bf16.mxu0 %v5809_v28 }
 0x327   : > { %v976_v16 = vsel %vm906_vm3, %v5696_v13, 0.0 }
 0x328   : > { %5241 = vmatmul.mubr.msk.bf16.vlgmr.msra.gmra.mrb[48].mxu0 %vm306_vm0, %v5885_v11  ;;  %977 = vadd.xlane.f32.xlu1 %v976_v16  ;;  %v1611_v16 = vpack.c.bf16 %v4774_v21, %v4774_v21 }
 0x329   : > { %5244 = vmatprep.mubr.msk.bf16.mxu0 %vm306_vm0, %v5887_v12 }
 0x330   : > { %5245 = vmatmul.mubr.msk.bf16.gmra.mrb[52].mxu0 %vm306_vm0, %v5905_v17 }
 0x331   : > { %5248 = vmatprep.mubr.msk.bf16.mxu0 %vm306_vm0, %v5907_v18 }
 0x338   : > { %5249 = vmatmul.mubr.msk.bf16.gmra.mrb[56].mxu0 %vm306_vm0, %v5921_v23 }
 0x339   : > { %5252 = vmatprep.mubr.msk.bf16.mxu0 %vm306_vm0, %v5923_v24 }
 0x340   : > { %5253 = vmatmul.mubr.msk.bf16.gmra.mrb[60].mxu0 %vm306_vm0, %v5935_v27 }
 0x341   : > { %5278 = vmatprep.mubr.msk.bf16.mxu0 %vm5810_vm1, %v5809_v28 }
 0x3a9   : > { %v960_v30 = vpop.xlane.xlu0 %959 }
 0x3aa   : > { %5697 = vrcp.f32 %v960_v30 }
 0x3ad   : > { %v972_v26 = vpop.xlane.xlu0 %971 }
 0x3b1   : > { %v966_v22 = vpop.xlane.xlu1 %965 }
 0x3b2   : > { %5699 = vrcp.f32 %v966_v22 }
 0x3b3   : > { %5701 = vrcp.f32 %v972_v26 }
 0x3b4   : > { %v5698_v35 = vpop.eup %5697 }
 0x3b5   : > { %v988_v33 = vmul.f32 %v5698_v35, %v5688_v43  ;;  %v978_v40 = vpop.xlane.xlu1 %977 }
 0x3b6   : > { %5703 = vrcp.f32 %v978_v40 }
 0x3b7   : > { %v996_v36 = vpack.c.bf16 %v988_v33, %v988_v33 }
 0x3b9   : > { %5197 = vmatmul.mubr.msk.bf16.vlgmr.msra.gmra.mrb[32].mxu1 %vm1011_vm4, %v996_v36 }
 0x3ba   : > { %5207 = vmatpush3.bf16.msra.mxu1 %v1006_v8  ;;  %5208 = vmatprep.mubr.msk.bf16.mxu1 %vm5810_vm1, %v5809_v28  ;;  %v5663_v8 = vld [vmem:[%s7008_s2 + $0x10] sm:$0xff]  }
 0x3bb   : > { %5218 = vmatprep.subr.bf16.mxu1 %v5809_v28 }
 0x3bc   : > { %v5700_v37 = vpop.eup %5699 }
 0x3bd   : > { %v990_v39 = vmul.f32 %v5700_v37, %v5694_v34  ;;  %v5702_v41 = vpop.eup %5701 }
 0x3be   : > { %v992_v44 = vmul.f32 %v5702_v41, %v5692_v6 }
 0x3bf   : > { %v998_v42 = vpack.c.bf16 %v990_v39, %v990_v39 }
 0x3c0   : > { %v1000_v56 = vpack.c.bf16 %v992_v44, %v992_v44  ;;  %v5704_v0 = vpop.eup %5703 }
 0x3c1   : > { %5209 = vmatmul.mubr.msk.bf16.vlgmr.msra.gmra.mrb[36].mxu1 %vm1011_vm4, %v998_v42  ;;  %v994_v45 = vmul.f32 %v5704_v0, %v5696_v13 }
 0x3c2   : > { %5219 = vmatpush3.bf16.msra.mxu1 %v1008_v14  ;;  %5220 = vmatprep.mubr.msk.bf16.mxu1 %vm5810_vm1, %v5809_v28 }
 0x3c3   : > { %5230 = vmatprep.subr.bf16.mxu1 %v5809_v28  ;;  %v1002_v2 = vpack.c.bf16 %v994_v45, %v994_v45 }
 0x3c9   : > { %5221 = vmatmul.mubr.msk.bf16.vlgmr.msra.gmra.mrb[40].mxu1 %vm1011_vm4, %v1000_v56 }
 0x3ca   : > { %5231 = vmatpush3.bf16.msra.mxu1 %v1010_v32  ;;  %5232 = vmatprep.mubr.msk.bf16.mxu1 %vm5810_vm1, %v5809_v28 }
 0x3cb   : > { %5256 = vmatprep.subr.bf16.mxu1 %v5663_v8 }
 0x3d1   : > { %5233 = vmatmul.mubr.msk.bf16.vlgmr.msra.gmra.mrb[44].mxu1 %vm1011_vm4, %v1002_v2 }
 0x3d2   : > { %5257 = vmatpush3.bf16.msra.mxu1 %v5663_v8  ;;  %5260 = vmatprep.mubr.msk.bf16.mxu1 %vm306_vm0, %v5880_v7 }
 0x3d3   : > { %5258 = vmatprep.subr.bf16.mxu1 %v5664_v5 }
 0x3d6   : > { %5259 = vmatpush3.bf16.msra.mxu1 %v5664_v5 }
 0x3d7   : > { %5282 = vmatprep.subr.bf16.mxu1 %v5809_v28 }
 0x3d9   : > { %5261 = vmatmul.mubr.msk.bf16.vlgmr.msra.gmra.mrb[48].mxu1 %vm306_vm0, %v5885_v11 }
 0x3da   : > { %v1049_v14 = vpop.f32.mrb[32].mxu0  ;;  %5264 = vmatprep.mubr.msk.bf16.mxu1 %vm306_vm0, %v5887_v12 }
 0x3db   : > { %1357 = vst.msk [vmem:[%s6180_s7] sm:$0xf] %vm1356_vm5, %v1049_v14  ;;  %v5192_v15 = vpop.f32.mrb[33].mxu0 }
 0x3dc   : > { %v1052_v25 = vpop.f32.mrb[34].mxu0 }
 0x3dd   : > { %v5193_v32 = vpop.f32.mrb[35].mxu0 }
 0x3e1   : > { %5265 = vmatmul.mubr.msk.bf16.gmra.mrb[52].mxu1 %vm306_vm0, %v5905_v17 }
 0x3e2   : > { %v1135_v46 = vpop.f32.mrb[36].mxu0  ;;  %5268 = vmatprep.mubr.msk.bf16.mxu1 %vm306_vm0, %v5907_v18 }
 0x3e3   : > { %1359 = vst.msk [vmem:[%s6180_s7 + $0x8] sm:$0xf] %vm1356_vm5, %v1135_v46  ;;  %v5204_v48 = vpop.f32.mrb[37].mxu0 }
 0x3e4   : > { %v1138_v49 = vpop.f32.mrb[38].mxu0 }
 0x3e5   : > { %v5205_v50 = vpop.f32.mrb[39].mxu0 }
 0x3e9   : > { %5269 = vmatmul.mubr.msk.bf16.gmra.mrb[56].mxu1 %vm306_vm0, %v5921_v23 }
 0x3ea   : > { %v1221_v51 = vpop.f32.mrb[40].mxu0  ;;  %5272 = vmatprep.mubr.msk.bf16.mxu1 %vm306_vm0, %v5923_v24 }
 0x3eb   : > { %1361 = vst.msk [vmem:[%s6180_s7 + $0x10] sm:$0xf] %vm1356_vm5, %v1221_v51  ;;  %v5216_v52 = vpop.f32.mrb[41].mxu0 }
 0x3ec   : > { %v1224_v53 = vpop.f32.mrb[42].mxu0 }
 0x3ed   : > { %v5217_v54 = vpop.f32.mrb[43].mxu0 }
 0x3f1   : > { %5273 = vmatmul.mubr.msk.bf16.gmra.mrb[60].mxu1 %vm306_vm0, %v5935_v27 }
 0x3f2   : > { %5284 = vmatprep.mubr.msk.bf16.mxu1 %vm5810_vm1, %v5809_v28 }
 0x3f3   : > { %v1307_v55 = vpop.f32.mrb[44].mxu0 }
 0x3f4   : > { %1363 = vst.msk [vmem:[%s6180_s7 + $0x18] sm:$0xf] %vm1356_vm5, %v1307_v55  ;;  %v5228_v59 = vpop.f32.mrb[45].mxu0 }
 0x3f5   : > { %v1310_v1 = vpop.f32.mrb[46].mxu0 }
 0x3f6   : > { %v5229_v9 = vpop.f32.mrb[47].mxu0 }
 0x3fb   : > { %v5242_v31 = vpop.f32.mrb[48].mxu0 }
 0x3fc   : > { %v1424_v58 = vpop.f32.mrb[49].mxu0  ;;  %v1433_v3 = vadd.f32 %v5242_v31, %v6209_v57 }
 0x3fd   : > { %v5243_v60 = vpop.f32.mrb[50].mxu0  ;;  %v1425_v38 = vadd.f32 %v6209_v57, %v1424_v58 }
 0x3fe   : > { %v1436_v10 = vadd.f32 %v5243_v60, %v6209_v57  ;;  %v1427_v19 = vpop.f32.mrb[51].mxu0 }
 0x3ff   : > { %v1428_v43 = vadd.f32 %v6209_v57, %v1427_v19 }
 0x400   : > { %v1613_v61 = vpack.c.bf16 %v1436_v10, %v1433_v3 }
 0x401   : > { %v1612_v62 = vpack.c.bf16 %v1428_v43, %v1425_v38 }
 0x402   : > { %v1667_v63 = vsel %vm558_vm2, %v1613_v61, 0 }
 0x403   : > { %v5246_v4 = vpop.f32.mrb[52].mxu0  ;;  %5283 = vmatpush3.bf16.xpose.msra.mxu1 %v1667_v63  ;;  %v1624_v6 = vsel %vm558_vm2, %v1612_v62, 0 }
 0x404   : > { %v1440_v20 = vpop.f32.mrb[53].mxu0  ;;  %5277 = vmatpush3.bf16.xpose.msra.mxu0 %v1624_v6  ;;  %5294 = vmatprep.subr.bf16.mxu1 %v5809_v28  ;;  %v1449_v34 = vadd.f32 %v5246_v4, %v6209_v57 }
 0x405   : > { %v5247_v29 = vpop.f32.mrb[54].mxu0  ;;  %5288 = vmatprep.subr.bf16.mxu0 %v5809_v28  ;;  %v1441_v30 = vadd.f32 %v6209_v57, %v1440_v20 }
 0x406   : > { %v1452_v47 = vadd.f32 %v5247_v29, %v6209_v57  ;;  %v1443_v13 = vpop.f32.mrb[55].mxu0 }
 0x407   : > { %v1444_v22 = vadd.f32 %v6209_v57, %v1443_v13 }
 0x408   : > { %v1615_v26 = vpack.c.bf16 %v1452_v47, %v1449_v34 }
 0x409   : > { %v1614_v35 = vpack.c.bf16 %v1444_v22, %v1441_v30 }
 0x40a   : > { %5285 = vmatmul.mubr.msk.bf16.vlgmr.msra.gmra.mrb[64].mxu1 %vm558_vm2, %v1611_v16  ;;  %v1753_v33 = vsel %vm558_vm2, %v1615_v26, 0 }
 0x40b   : > { %v5250_v36 = vpop.f32.mrb[56].mxu0  ;;  %5279 = vmatmul.mubr.msk.bf16.vlgmr.msra.gmra.mrb[64].mxu0 %vm558_vm2, %v1611_v16  ;;  %5295 = vmatpush3.bf16.xpose.msra.mxu1 %v1753_v33  ;;  %v1710_v40 = vsel %vm558_vm2, %v1614_v35, 0 }
 0x40c   : > { %v1456_v37 = vpop.f32.mrb[57].mxu0  ;;  %5289 = vmatpush3.bf16.xpose.msra.mxu0 %v1710_v40  ;;  %5290 = vmatprep.mubr.msk.bf16.mxu0 %vm5810_vm1, %v5809_v28  ;;  %v1465_v41 = vadd.f32 %v5250_v36, %v6209_v57 }
 0x40d   : > { %v5251_v39 = vpop.f32.mrb[58].mxu0  ;;  %5296 = vmatprep.mubr.msk.bf16.mxu1 %vm5810_vm1, %v5809_v28  ;;  %5306 = vmatprep.subr.bf16.mxu1 %v5809_v28  ;;  %v1457_v56 = vadd.f32 %v6209_v57, %v1456_v37 }
 0x40e   : > { %v1468_v42 = vadd.f32 %v5251_v39, %v6209_v57  ;;  %v1459_v44 = vpop.f32.mrb[59].mxu0  ;;  %5300 = vmatprep.subr.bf16.mxu0 %v5809_v28 }
 0x40f   : > { %v1460_v0 = vadd.f32 %v6209_v57, %v1459_v44 }
 0x410   : > { %v1617_v8 = vpack.c.bf16 %v1468_v42, %v1465_v41 }
 0x411   : > { %v1616_v45 = vpack.c.bf16 %v1460_v0, %v1457_v56  ;;  %v4763_v0 = vld [vmem:[%s7010_s4 + $0x1] ss:$0 sm:$0xff] }
 0x412   : > { %5297 = vmatmul.mubr.msk.bf16.vlgmr.msra.gmra.mrb[68].mxu1 %vm558_vm2, %v1611_v16  ;;  %v1839_v2 = vsel %vm558_vm2, %v1617_v8, 0 }
 0x413   : > { %v5254_v5 = vpop.f32.mrb[60].mxu0  ;;  %5291 = vmatmul.mubr.msk.bf16.vlgmr.msra.gmra.mrb[68].mxu0 %vm558_vm2, %v1611_v16  ;;  %5307 = vmatpush3.bf16.xpose.msra.mxu1 %v1839_v2  ;;  %v1796_v14 = vsel %vm558_vm2, %v1616_v45, 0 }
 0x414   : > { %v1472_v15 = vpop.f32.mrb[61].mxu0  ;;  %5301 = vmatpush3.bf16.xpose.msra.mxu0 %v1796_v14  ;;  %5302 = vmatprep.mubr.msk.bf16.mxu0 %vm5810_vm1, %v5809_v28  ;;  %v1481_v32 = vadd.f32 %v5254_v5, %v6209_v57 }
 0x415   : > { %v5255_v25 = vpop.f32.mrb[62].mxu0  ;;  %5308 = vmatprep.mubr.msk.bf16.mxu1 %vm5810_vm1, %v5809_v28  ;;  %5318 = vmatprep.subr.bf16.mxu1 %v5809_v28  ;;  %v1473_v49 = vadd.f32 %v6209_v57, %v1472_v15 }
 0x416   : > { %v1484_v46 = vadd.f32 %v5255_v25, %v6209_v57  ;;  %v1475_v48 = vpop.f32.mrb[63].mxu0  ;;  %5312 = vmatprep.subr.bf16.mxu0 %v5809_v28 }
 0x417   : > { %v1476_v50 = vadd.f32 %v6209_v57, %v1475_v48 }
 0x418   : > { %v1619_v51 = vpack.c.bf16 %v1484_v46, %v1481_v32 }
 0x419   : > { %v1618_v52 = vpack.c.bf16 %v1476_v50, %v1473_v49 }
 0x41a   : > { %5309 = vmatmul.mubr.msk.bf16.vlgmr.msra.gmra.mrb[72].mxu1 %vm558_vm2, %v1611_v16  ;;  %v1925_v53 = vsel %vm558_vm2, %v1619_v51, 0 }
 0x41b   : > { %5303 = vmatmul.mubr.msk.bf16.vlgmr.msra.gmra.mrb[72].mxu0 %vm558_vm2, %v1611_v16  ;;  %5319 = vmatpush3.bf16.xpose.msra.mxu1 %v1925_v53  ;;  %v1882_v54 = vsel %vm558_vm2, %v1618_v52, 0 }
 0x41c   : > { %5313 = vmatpush3.bf16.xpose.msra.mxu0 %v1882_v54  ;;  %5314 = vmatprep.mubr.msk.bf16.mxu0 %vm5810_vm1, %v5809_v28 }
 0x41d   : > { %5320 = vmatprep.mubr.msk.bf16.mxu1 %vm5810_vm1, %v5809_v28  ;;  %5324 = vmatprep.subr.bf16.mxu0 %v5809_v28 }
 0x41e   : > { %5330 = vmatprep.subr.bf16.mxu1 %v5809_v28 }
 0x422   : > { %5321 = vmatmul.mubr.msk.bf16.vlgmr.msra.gmra.mrb[76].mxu1 %vm558_vm2, %v1611_v16 }
 0x423   : > { %5315 = vmatmul.mubr.msk.bf16.vlgmr.msra.gmra.mrb[76].mxu0 %vm558_vm2, %v1611_v16  ;;  %5332 = vmatprep.mubr.msk.bf16.mxu1 %vm5810_vm1, %v5809_v28 }
 0x424   : > { %5326 = vmatprep.mubr.msk.bf16.mxu0 %vm5810_vm1, %v5809_v28 }
 0x48c   : > { %v1092_v55 = vpop.f32.mrb[32].mxu1 }
 0x48d   : > { %1358 = vst.msk [vmem:[%s6180_s7 + $0x4] sm:$0xf] %vm1356_vm5, %v1092_v55  ;;  %v5198_v59 = vpop.f32.mrb[33].mxu1 }
 0x48e   : > { %v1095_v1 = vpop.f32.mrb[34].mxu1 }
 0x48f   : > { %v5199_v9 = vpop.f32.mrb[35].mxu1 }
 0x494   : > { %v1178_v31 = vpop.f32.mrb[36].mxu1 }
 0x495   : > { %1360 = vst.msk [vmem:[%s6180_s7 + $0xc] sm:$0xf] %vm1356_vm5, %v1178_v31  ;;  %v5210_v57 = vpop.f32.mrb[37].mxu1 }
 0x496   : > { %v1181_v58 = vpop.f32.mrb[38].mxu1 }
 0x497   : > { %v5211_v60 = vpop.f32.mrb[39].mxu1 }
 0x49c   : > { %v1264_v3 = vpop.f32.mrb[40].mxu1 }
 0x49d   : > { %1362 = vst.msk [vmem:[%s6180_s7 + $0x14] sm:$0xf] %vm1356_vm5, %v1264_v3  ;;  %v5222_v10 = vpop.f32.mrb[41].mxu1 }
 0x49e   : > { %v1267_v19 = vpop.f32.mrb[42].mxu1 }
 0x49f   : > { %v5223_v38 = vpop.f32.mrb[43].mxu1 }
 0x4a4   : > { %v1350_v43 = vpop.f32.mrb[44].mxu1 }
 0x4a5   : > { %1364 = vst.msk [vmem:[%s6180_s7 + $0x1c] sm:$0xf] %vm1356_vm5, %v1350_v43  ;;  %v5234_v61 = vpop.f32.mrb[45].mxu1 }
 0x4a6   : > { %v1353_v62 = vpop.f32.mrb[46].mxu1 }
 0x4a7   : > { %v5235_v63 = vpop.f32.mrb[47].mxu1 }
 0x4ac   : > { %v5262_v44 = vpop.f32.mrb[48].mxu1 }
 0x4ad   : > { %v1546_v56 = vpop.f32.mrb[49].mxu1  ;;  %v1555_v2 = vadd.f32 %v5262_v44, %v4763_v0 }
 0x4ae   : > { %v5263_v8 = vpop.f32.mrb[50].mxu1  ;;  %v1547_v5 = vadd.f32 %v4763_v0, %v1546_v56 }
 0x4af   : > { %v1549_v45 = vpop.f32.mrb[51].mxu1  ;;  %v1558_v25 = vadd.f32 %v5263_v8, %v4763_v0 }
 0x4b0   : > { %v1550_v32 = vadd.f32 %v4763_v0, %v1549_v45 }
 0x4b1   : > { %v2064_v52 = vpack.c.bf16 %v1558_v25, %v1555_v2 }
 0x4b2   : > { %v2063_v53 = vpack.c.bf16 %v1550_v32, %v1547_v5 }
 0x4b3   : > { %5331 = vmatpush3.bf16.msra.mxu1 %v2064_v52 }
 0x4b4   : > { %v5266_v14 = vpop.f32.mrb[52].mxu1  ;;  %5325 = vmatpush3.bf16.msra.mxu0 %v2063_v53  ;;  %5342 = vmatprep.subr.bf16.mxu1 %v5809_v28 }
 0x4b5   : > { %v1562_v15 = vpop.f32.mrb[53].mxu1  ;;  %v6297_v46 = vadd.f32 %v5266_v14, %v4763_v0  ;;  %5336 = vmatprep.subr.bf16.mxu0 %v5809_v28 }
 0x4b6   : > { %v6299_v48 = vadd.f32 %v4763_v0, %v1562_v15  ;;  %v5267_v49 = vpop.f32.mrb[54].mxu1 }
 0x4b7   : > { %v6301_v50 = vadd.f32 %v5267_v49, %v4763_v0  ;;  %v1565_v51 = vpop.f32.mrb[55].mxu1 }
 0x4b8   : > { %v6303_v54 = vadd.f32 %v4763_v0, %v1565_v51 }
 0x4b9   : > { %v2066_v59 = vpack.c.bf16 %v6301_v50, %v6297_v46 }
 0x4ba   : > { %v2065_v31 = vpack.c.bf16 %v6303_v54, %v6299_v48 }
 0x4bc   : > { %v5270_v55 = vpop.f32.mrb[56].mxu1 }
 0x4bd   : > { %v6307_v1 = vadd.f32 %v5270_v55, %v4763_v0  ;;  %v1578_v9 = vpop.f32.mrb[57].mxu1 }
 0x4be   : > { %v6311_v57 = vadd.f32 %v4763_v0, %v1578_v9  ;;  %v5271_v58 = vpop.f32.mrb[58].mxu1 }
 0x4bf   : > { %v1581_v60 = vpop.f32.mrb[59].mxu1  ;;  %v6315_v19 = vadd.f32 %v5271_v58, %v4763_v0 }
 0x4c0   : > { %v6317_v38 = vadd.f32 %v4763_v0, %v1581_v60 }
 0x4c4   : > { %v5274_v3 = vpop.f32.mrb[60].mxu1 }
 0x4c5   : > { %v1594_v10 = vpop.f32.mrb[61].mxu1  ;;  %v6319_v43 = vadd.f32 %v5274_v3, %v4763_v0 }
 0x4c6   : > { %v6321_v61 = vadd.f32 %v4763_v0, %v1594_v10  ;;  %v5275_v62 = vpop.f32.mrb[62].mxu1 }
 0x4c7   : > { %v6323_v63 = vadd.f32 %v5275_v62, %v4763_v0 }
 0x4de   : > { %v6278_v4 = vpop.f32.mrb[64].mxu0 }
 0x4df   : > { %v5280_v6 = vpop.f32.mrb[65].mxu0  ;;  %v1967_v21 = vsel %vm906_vm3, %v6278_v4, -inf }
 0x4e0   : > { %1968 = vmax.xlane.f32.xlu0 %v1967_v21  ;;  %v1663_v20 = vpop.f32.mrb[66].mxu0  ;;  %v1597_v6 = vpop.f32.mrb[63].mxu1  ;;  %v2068_v21 = vpack.c.bf16 %v6315_v19, %v6307_v1 }
 0x4e1   : > { %v5281_v29 = vpop.f32.mrb[67].mxu0  ;;  %v2067_v20 = vpack.c.bf16 %v6317_v38, %v6311_v57 }
 0x4e2   : > { %v6329_v29 = vadd.f32 %v4763_v0, %v1597_v6 }
 0x4e6   : > { %v6282_v34 = vpop.f32.mrb[68].mxu0 }
 0x4e7   : > { %v5292_v47 = vpop.f32.mrb[69].mxu0  ;;  %v1973_v13 = vsel %vm906_vm3, %v6282_v34, -inf }
 0x4e8   : > { %1974 = vmax.xlane.f32.xlu1 %v1973_v13  ;;  %v1749_v16 = vpop.f32.mrb[70].mxu0  ;;  %v6331_v47 = vpop.f32.mrb[64].mxu1  ;;  %v2070_v13 = vpack.c.bf16 %v6323_v63, %v6319_v43 }
 0x4e9   : > { %v5293_v30 = vpop.f32.mrb[71].mxu0  ;;  %v5286_v16 = vpop.f32.mrb[65].mxu1  ;;  %v1970_v6 = vsel %vm906_vm3, %v6331_v47, -inf }
 0x4ea   : > { %v2069_v30 = vpack.c.bf16 %v6329_v29, %v6321_v61 }
 0x4ee   : > { %v6286_v22 = vpop.f32.mrb[72].mxu0 }
 0x4ef   : > { %v5304_v26 = vpop.f32.mrb[73].mxu0  ;;  %v1979_v35 = vsel %vm906_vm3, %v6286_v22, -inf }
 0x4f0   : > { %1980 = vmax.xlane.f32.xlu0 %v1979_v35  ;;  %v1835_v33 = vpop.f32.mrb[74].mxu0  ;;  %v1706_v26 = vpop.f32.mrb[66].mxu1 }
 0x4f1   : > { %v5305_v36 = vpop.f32.mrb[75].mxu0  ;;  %v5287_v35 = vpop.f32.mrb[67].mxu1 }
 0x4f2   : > { %v6337_v33 = vpop.f32.mrb[68].mxu1 }
 0x4f3   : > { %v5298_v36 = vpop.f32.mrb[69].mxu1 }
 0x4f6   : > { %v6290_v40 = vpop.f32.mrb[76].mxu0 }
 0x4f7   : > { %v5316_v37 = vpop.f32.mrb[77].mxu0  ;;  %v1985_v39 = vsel %vm906_vm3, %v6290_v40, -inf }
 0x4f8   : > { %1986 = vmax.xlane.f32.xlu1 %v1985_v39  ;;  %v1921_v41 = vpop.f32.mrb[78].mxu0  ;;  %v1792_v37 = vpop.f32.mrb[70].mxu1 }
 0x4f9   : > { %v5317_v42 = vpop.f32.mrb[79].mxu0  ;;  %v5299_v39 = vpop.f32.mrb[71].mxu1 }
 0x4fa   : > { %v6339_v41 = vpop.f32.mrb[72].mxu1 }
 0x4fb   : > { %v5310_v42 = vpop.f32.mrb[73].mxu1 }
 0x4fc   : > { %v1878_v44 = vpop.f32.mrb[74].mxu1 }
 0x4fd   : > { %v5311_v56 = vpop.f32.mrb[75].mxu1 }
 0x4fe   : > { %v6341_v0 = vpop.f32.mrb[76].mxu1 }
 0x4ff   : > { %v5322_v8 = vpop.f32.mrb[77].mxu1  ;;  %v1988_v35 = vsel %vm906_vm3, %v6341_v0, -inf }
 0x500   : > { %v1964_v45 = vpop.f32.mrb[78].mxu1 }
 0x501   : > { %v5323_v2 = vpop.f32.mrb[79].mxu1 }
 0x56d   : > { %v1969_v5 = vpop.xlane.xlu0 %1968 }
 0x56e   : > { %v1991_v14 = vsub.f32 %v6278_v4, %v1969_v5 }
 0x570   : > { %v1999_v15 = vmul.f32 1.442695, %v1991_v14 }
 0x572   : > { %5705 = vpow2.f32 %v1999_v15 }
 0x575   : > { %v1975_v25 = vpop.xlane.xlu1 %1974 }
 0x576   : > { %v1993_v32 = vsub.f32 %v6282_v34, %v1975_v25 }
 0x578   : > { %v2003_v49 = vmul.f32 1.442695, %v1993_v32 }
 0x57a   : > { %5707 = vpow2.f32 %v2003_v49 }
 0x57c   : > { %v5706_v51 = vpop.eup %5705 }
 0x57d   : > { %v1981_v52 = vpop.xlane.xlu0 %1980  ;;  %v2015_v53 = vsel %vm906_vm3, %v5706_v51, 0.0 }
 0x57e   : > { %v1995_v55 = vsub.f32 %v6286_v22, %v1981_v52  ;;  %2016 = vadd.xlane.f32.xlu0 %v2015_v53  ;;  %v1982_v22 = vsel %vm906_vm3, %v6339_v41, -inf }
 0x580   : > { %v2007_v9 = vmul.f32 1.442695, %v1995_v55 }
 0x582   : > { %5709 = vpow2.f32 %v2007_v9 }
 0x584   : > { %v5708_v58 = vpop.eup %5707 }
 0x585   : > { %v1987_v60 = vpop.xlane.xlu1 %1986  ;;  %v2021_v4 = vsel %vm906_vm3, %v5708_v58, 0.0 }
 0x586   : > { %v1997_v3 = vsub.f32 %v6290_v40, %v1987_v60  ;;  %2022 = vadd.xlane.f32.xlu1 %v2021_v4  ;;  %v1976_v40 = vsel %vm906_vm3, %v6337_v33, -inf }
 0x588   : > { %v2011_v10 = vmul.f32 1.442695, %v1997_v3 }
 0x58a   : > { %5711 = vpow2.f32 %v2011_v10 }
 0x58c   : > { %v5710_v34 = vpop.eup %5709 }
 0x58d   : > { %v2027_v62 = vsel %vm906_vm3, %v5710_v34, 0.0 }
 0x58e   : > { %2028 = vadd.xlane.f32.xlu0 %v2027_v62 }
 0x592   : > { %1971 = vmax.xlane.f32.xlu0 %v1970_v6 }
 0x594   : > { %v5712_v16 = vpop.eup %5711 }
 0x595   : > { %v2033_v26 = vsel %vm906_vm3, %v5712_v16, 0.0 }
 0x596   : > { %1983 = vmax.xlane.f32.xlu0 %v1982_v22  ;;  %2034 = vadd.xlane.f32.xlu1 %v2033_v26 }
 0x59a   : > { %1977 = vmax.xlane.f32.xlu1 %v1976_v40 }
 0x59e   : > { %1989 = vmax.xlane.f32.xlu1 %v1988_v35 }
 0x60b   : > { %v2017_v36 = vpop.xlane.xlu0 %2016 }
 0x60c   : > { %5713 = vrcp.f32 %v2017_v36 }
 0x613   : > { %v2023_v37 = vpop.xlane.xlu1 %2022 }
 0x614   : > { %5715 = vrcp.f32 %v2023_v37 }
 0x616   : > { %v5714_v39 = vpop.eup %5713 }
 0x617   : > { %v2047_v42 = vmul.f32 %v5714_v39, %v5706_v51 }
 0x619   : > { %v2055_v44 = vpack.c.bf16 %v2047_v42, %v2047_v42 }
 0x61b   : > { %5327 = vmatmul.mubr.msk.bf16.vlgmr.msra.gmra.mrb[80].mxu0 %vm1011_vm4, %v2055_v44  ;;  %v2029_v56 = vpop.xlane.xlu0 %2028 }
 0x61c   : > { %5717 = vrcp.f32 %v2029_v56  ;;  %5337 = vmatpush3.bf16.msra.mxu0 %v2065_v31  ;;  %5338 = vmatprep.mubr.msk.bf16.mxu0 %vm5810_vm1, %v5809_v28 }
 0x61d   : > { %5348 = vmatprep.subr.bf16.mxu0 %v5809_v28 }
 0x61e   : > { %v5716_v8 = vpop.eup %5715 }
 0x61f   : > { %v2049_v45 = vmul.f32 %v5716_v8, %v5708_v58  ;;  %v1972_v2 = vpop.xlane.xlu0 %1971 }
 0x620   : > { %v1992_v5 = vsub.f32 %v6331_v47, %v1972_v2 }
 0x621   : > { %v2057_v14 = vpack.c.bf16 %v2049_v45, %v2049_v45 }
 0x622   : > { %v2001_v15 = vmul.f32 1.442695, %v1992_v5 }
 0x623   : > { %v1984_v25 = vpop.xlane.xlu0 %1983  ;;  %5339 = vmatmul.mubr.msk.bf16.vlgmr.msra.gmra.mrb[84].mxu0 %vm1011_vm4, %v2057_v14  ;;  %v2035_v32 = vpop.xlane.xlu1 %2034 }
 0x624   : > { %5719 = vpow2.f32 %v2001_v15  ;;  %v1996_v48 = vsub.f32 %v6339_v41, %v1984_v25  ;;  %5349 = vmatpush3.bf16.msra.mxu0 %v2067_v20  ;;  %5350 = vmatprep.mubr.msk.bf16.mxu0 %vm5810_vm1, %v5809_v28  ;;  %v5665_v41 = vld [vmem:[%s7007_s1 + $0x20] sm:$0xff]  }
 0x625   : > { %5721 = vrcp.f32 %v2035_v32  ;;  %5360 = vmatprep.subr.bf16.mxu0 %v5809_v28 }
 0x626   : > { %v5718_v54 = vpop.eup %5717  ;;  %v2009_v31 = vmul.f32 1.442695, %v1996_v48 }
 0x627   : > { %v2051_v47 = vmul.f32 %v5718_v54, %v5710_v34  ;;  %v1978_v49 = vpop.xlane.xlu1 %1977 }
 0x628   : > { %5723 = vpow2.f32 %v2009_v31  ;;  %v1994_v51 = vsub.f32 %v6337_v33, %v1978_v49  ;;  %v6470_v49 = vld [vmem:[%s7009_s3 + $0x2] ss:$0 sm:$0xff] }
 0x629   : > { %v2059_v52 = vpack.c.bf16 %v2051_v47, %v2051_v47 }
 0x62a   : > { %v2005_v57 = vmul.f32 1.442695, %v1994_v51 }
 0x62b   : > { %5351 = vmatmul.mubr.msk.bf16.vlgmr.msra.gmra.mrb[88].mxu0 %vm1011_vm4, %v2059_v52  ;;  %v1990_v38 = vpop.xlane.xlu1 %1989 }
 0x62c   : > { %5725 = vpow2.f32 %v2005_v57  ;;  %v1998_v20 = vsub.f32 %v6341_v0, %v1990_v38  ;;  %5361 = vmatpush3.bf16.msra.mxu0 %v2069_v30  ;;  %5362 = vmatprep.mubr.msk.bf16.mxu0 %vm5810_vm1, %v5809_v28  ;;  %v5666_v0 = vld [vmem:[%s7007_s1 + $0x28] sm:$0xff]  }
 0x62d   : > { %5372 = vmatprep.subr.bf16.mxu0 %v5665_v41 }
 0x62e   : > { %v5720_v33 = vpop.eup %5719  ;;  %v2013_v53 = vmul.f32 1.442695, %v1998_v20 }
 0x62f   : > { %v5722_v55 = vpop.eup %5721  ;;  %v2018_v9 = vsel %vm906_vm3, %v5720_v33, 0.0 }
 0x630   : > { %v2053_v58 = vmul.f32 %v5722_v55, %v5712_v16  ;;  %5727 = vpow2.f32 %v2013_v53  ;;  %2019 = vadd.xlane.f32.xlu0 %v2018_v9 }
 0x632   : > { %v5724_v60 = vpop.eup %5723  ;;  %v2061_v4 = vpack.c.bf16 %v2053_v58, %v2053_v58 }
 0x633   : > { %v2030_v61 = vsel %vm906_vm3, %v5724_v60, 0.0 }
 0x634   : > { %5363 = vmatmul.mubr.msk.bf16.vlgmr.msra.gmra.mrb[92].mxu0 %vm1011_vm4, %v2061_v4  ;;  %2031 = vadd.xlane.f32.xlu0 %v2030_v61  ;;  %v4823_v4 = vld [vmem:[%s7011_s5 + $0x8] sm:$0xf] }
 0x635   : > { %5373 = vmatpush3.bf16.msra.mxu0 %v5665_v41  ;;  %5376 = vmatprep.mubr.msk.bf16.mxu0 %vm306_vm0, %v5880_v7 }
 0x636   : > { %v5726_v29 = vpop.eup %5725  ;;  %5374 = vmatprep.subr.bf16.mxu0 %v5666_v0 }
 0x637   : > { %v2024_v30 = vsel %vm906_vm3, %v5726_v29, 0.0 }
 0x638   : > { %2025 = vadd.xlane.f32.xlu1 %v2024_v30 }
 0x639   : > { %5375 = vmatpush3.bf16.msra.mxu0 %v5666_v0 }
 0x63a   : > { %v5728_v3 = vpop.eup %5727  ;;  %5412 = vmatprep.subr.bf16.mxu0 %v5809_v28 }
 0x63b   : > { %v2036_v10 = vsel %vm906_vm3, %v5728_v3, 0.0 }
 0x63c   : > { %5377 = vmatmul.mubr.msk.bf16.vlgmr.msra.gmra.mrb[96].mxu0 %vm306_vm0, %v5885_v11  ;;  %2037 = vadd.xlane.f32.xlu1 %v2036_v10  ;;  %v2702_v10 = vpack.c.bf16 %v4823_v4, %v4823_v4 }
 0x63d   : > { %5380 = vmatprep.mubr.msk.bf16.mxu0 %vm306_vm0, %v5887_v12 }
 0x644   : > { %5381 = vmatmul.mubr.msk.bf16.gmra.mrb[100].mxu0 %vm306_vm0, %v5905_v17 }
 0x645   : > { %5384 = vmatprep.mubr.msk.bf16.mxu0 %vm306_vm0, %v5907_v18 }
 0x64c   : > { %5385 = vmatmul.mubr.msk.bf16.gmra.mrb[104].mxu0 %vm306_vm0, %v5921_v23 }
 0x64d   : > { %5388 = vmatprep.mubr.msk.bf16.mxu0 %vm306_vm0, %v5923_v24 }
 0x654   : > { %5389 = vmatmul.mubr.msk.bf16.gmra.mrb[108].mxu0 %vm306_vm0, %v5935_v27 }
 0x655   : > { %5414 = vmatprep.mubr.msk.bf16.mxu0 %vm5810_vm1, %v5809_v28 }
 0x6bd   : > { %v2020_v34 = vpop.xlane.xlu0 %2019 }
 0x6be   : > { %5729 = vrcp.f32 %v2020_v34 }
 0x6c1   : > { %v2032_v6 = vpop.xlane.xlu0 %2031 }
 0x6c5   : > { %v2026_v62 = vpop.xlane.xlu1 %2025 }
 0x6c6   : > { %5731 = vrcp.f32 %v2026_v62 }
 0x6c7   : > { %5733 = vrcp.f32 %v2032_v6 }
 0x6c8   : > { %v5730_v22 = vpop.eup %5729 }
 0x6c9   : > { %v2048_v16 = vmul.f32 %v5730_v22, %v5720_v33  ;;  %v2038_v40 = vpop.xlane.xlu1 %2037 }
 0x6ca   : > { %5735 = vrcp.f32 %v2038_v40 }
 0x6cb   : > { %v2056_v26 = vpack.c.bf16 %v2048_v16, %v2048_v16 }
 0x6cd   : > { %5333 = vmatmul.mubr.msk.bf16.vlgmr.msra.gmra.mrb[80].mxu1 %vm1011_vm4, %v2056_v26 }
 0x6ce   : > { %5343 = vmatpush3.bf16.msra.mxu1 %v2066_v59  ;;  %5344 = vmatprep.mubr.msk.bf16.mxu1 %vm5810_vm1, %v5809_v28  ;;  %v5667_v59 = vld [vmem:[%s7008_s2 + $0x20] sm:$0xff]  }
 0x6cf   : > { %5354 = vmatprep.subr.bf16.mxu1 %v5809_v28 }
 0x6d0   : > { %v5732_v35 = vpop.eup %5731 }
 0x6d1   : > { %v2050_v36 = vmul.f32 %v5732_v35, %v5726_v29  ;;  %v5734_v39 = vpop.eup %5733 }
 0x6d2   : > { %v2052_v46 = vmul.f32 %v5734_v39, %v5724_v60 }
 0x6d3   : > { %v2058_v37 = vpack.c.bf16 %v2050_v36, %v2050_v36 }
 0x6d4   : > { %v2060_v50 = vpack.c.bf16 %v2052_v46, %v2052_v46  ;;  %v5736_v42 = vpop.eup %5735 }
 0x6d5   : > { %5345 = vmatmul.mubr.msk.bf16.vlgmr.msra.gmra.mrb[84].mxu1 %vm1011_vm4, %v2058_v37  ;;  %v2054_v1 = vmul.f32 %v5736_v42, %v5728_v3 }
 0x6d6   : > { %5355 = vmatpush3.bf16.msra.mxu1 %v2068_v21  ;;  %5356 = vmatprep.mubr.msk.bf16.mxu1 %vm5810_vm1, %v5809_v28  ;;  %v5668_v21 = vld [vmem:[%s7008_s2 + $0x28] sm:$0xff]  }
 0x6d7   : > { %5366 = vmatprep.subr.bf16.mxu1 %v5809_v28  ;;  %v2062_v19 = vpack.c.bf16 %v2054_v1, %v2054_v1 }
 0x6dd   : > { %5357 = vmatmul.mubr.msk.bf16.vlgmr.msra.gmra.mrb[88].mxu1 %vm1011_vm4, %v2060_v50 }
 0x6de   : > { %5367 = vmatpush3.bf16.msra.mxu1 %v2070_v13  ;;  %5368 = vmatprep.mubr.msk.bf16.mxu1 %vm5810_vm1, %v5809_v28 }
 0x6df   : > { %5392 = vmatprep.subr.bf16.mxu1 %v5667_v59 }
 0x6e5   : > { %5369 = vmatmul.mubr.msk.bf16.vlgmr.msra.gmra.mrb[92].mxu1 %vm1011_vm4, %v2062_v19 }
 0x6e6   : > { %5393 = vmatpush3.bf16.msra.mxu1 %v5667_v59  ;;  %5396 = vmatprep.mubr.msk.bf16.mxu1 %vm306_vm0, %v5880_v7 }
 0x6e7   : > { %5394 = vmatprep.subr.bf16.mxu1 %v5668_v21 }
 0x6ea   : > { %5395 = vmatpush3.bf16.msra.mxu1 %v5668_v21 }
 0x6eb   : > { %5418 = vmatprep.subr.bf16.mxu1 %v5809_v28 }
 0x6ed   : > { %5397 = vmatmul.mubr.msk.bf16.vlgmr.msra.gmra.mrb[96].mxu1 %vm306_vm0, %v5885_v11 }
 0x6ee   : > { %v6445_v43 = vpop.f32.mrb[80].mxu0  ;;  %5400 = vmatprep.mubr.msk.bf16.mxu1 %vm306_vm0, %v5887_v12 }
 0x6ef   : > { %v5328_v63 = vpop.f32.mrb[81].mxu0 }
 0x6f0   : > { %v2111_v13 = vpop.f32.mrb[82].mxu0 }
 0x6f1   : > { %v5329_v44 = vpop.f32.mrb[83].mxu0 }
 0x6f5   : > { %5401 = vmatmul.mubr.msk.bf16.gmra.mrb[100].mxu1 %vm306_vm0, %v5905_v17 }
 0x6f6   : > { %v6451_v56 = vpop.f32.mrb[84].mxu0  ;;  %5404 = vmatprep.mubr.msk.bf16.mxu1 %vm306_vm0, %v5907_v18 }
 0x6f7   : > { %v5340_v8 = vpop.f32.mrb[85].mxu0 }
 0x6f8   : > { %v2197_v45 = vpop.f32.mrb[86].mxu0 }
 0x6f9   : > { %v5341_v2 = vpop.f32.mrb[87].mxu0 }
 0x6fd   : > { %5405 = vmatmul.mubr.msk.bf16.gmra.mrb[104].mxu1 %vm306_vm0, %v5921_v23 }
 0x6fe   : > { %v6457_v5 = vpop.f32.mrb[88].mxu0  ;;  %5408 = vmatprep.mubr.msk.bf16.mxu1 %vm306_vm0, %v5923_v24 }
 0x6ff   : > { %v5352_v14 = vpop.f32.mrb[89].mxu0 }
 0x700   : > { %v2283_v15 = vpop.f32.mrb[90].mxu0 }
 0x701   : > { %v5353_v25 = vpop.f32.mrb[91].mxu0 }
 0x705   : > { %5409 = vmatmul.mubr.msk.bf16.gmra.mrb[108].mxu1 %vm306_vm0, %v5935_v27 }
 0x706   : > { %5420 = vmatprep.mubr.msk.bf16.mxu1 %vm5810_vm1, %v5809_v28 }
 0x707   : > { %v6465_v32 = vpop.f32.mrb[92].mxu0 }
 0x708   : > { %v5364_v48 = vpop.f32.mrb[93].mxu0 }
 0x709   : > { %v2369_v54 = vpop.f32.mrb[94].mxu0 }
 0x70a   : > { %v5365_v31 = vpop.f32.mrb[95].mxu0 }
 0x70f   : > { %v5378_v47 = vpop.f32.mrb[96].mxu0 }
 0x710   : > { %v2515_v51 = vpop.f32.mrb[97].mxu0  ;;  %v2524_v41 = vadd.f32 %v5378_v47, %v6470_v49 }
 0x711   : > { %v5379_v52 = vpop.f32.mrb[98].mxu0  ;;  %v2516_v20 = vadd.f32 %v6470_v49, %v2515_v51 }
 0x712   : > { %v2527_v57 = vadd.f32 %v5379_v52, %v6470_v49  ;;  %v2518_v38 = vpop.f32.mrb[99].mxu0 }
 0x713   : > { %v2519_v33 = vadd.f32 %v6470_v49, %v2518_v38 }
 0x714   : > { %v2704_v53 = vpack.c.bf16 %v2527_v57, %v2524_v41 }
 0x715   : > { %v2703_v55 = vpack.c.bf16 %v2519_v33, %v2516_v20 }
 0x716   : > { %v2758_v9 = vsel %vm558_vm2, %v2704_v53, 0 }
 0x717   : > { %v5382_v58 = vpop.f32.mrb[100].mxu0  ;;  %5419 = vmatpush3.bf16.xpose.msra.mxu1 %v2758_v9  ;;  %v2715_v60 = vsel %vm558_vm2, %v2703_v55, 0 }
 0x718   : > { %v2531_v0 = vpop.f32.mrb[101].mxu0  ;;  %5413 = vmatpush3.bf16.xpose.msra.mxu0 %v2715_v60  ;;  %5430 = vmatprep.subr.bf16.mxu1 %v5809_v28  ;;  %v2540_v29 = vadd.f32 %v5382_v58, %v6470_v49 }
 0x719   : > { %v5383_v61 = vpop.f32.mrb[102].mxu0  ;;  %5424 = vmatprep.subr.bf16.mxu0 %v5809_v28  ;;  %v2532_v34 = vadd.f32 %v6470_v49, %v2531_v0 }
 0x71a   : > { %v2543_v30 = vadd.f32 %v5383_v61, %v6470_v49  ;;  %v2534_v3 = vpop.f32.mrb[103].mxu0 }
 0x71b   : > { %v2535_v62 = vadd.f32 %v6470_v49, %v2534_v3 }
 0x71c   : > { %v2706_v6 = vpack.c.bf16 %v2543_v30, %v2540_v29 }
 0x71d   : > { %v2705_v22 = vpack.c.bf16 %v2535_v62, %v2532_v34 }
 0x71e   : > { %5421 = vmatmul.mubr.msk.bf16.vlgmr.msra.gmra.mrb[112].mxu1 %vm558_vm2, %v2702_v10  ;;  %v2844_v16 = vsel %vm558_vm2, %v2706_v6, 0 }
 0x71f   : > { %v5386_v26 = vpop.f32.mrb[104].mxu0  ;;  %5415 = vmatmul.mubr.msk.bf16.vlgmr.msra.gmra.mrb[112].mxu0 %vm558_vm2, %v2702_v10  ;;  %5431 = vmatpush3.bf16.xpose.msra.mxu1 %v2844_v16  ;;  %v2801_v40 = vsel %vm558_vm2, %v2705_v22, 0 }
 0x720   : > { %v2547_v35 = vpop.f32.mrb[105].mxu0  ;;  %5425 = vmatpush3.bf16.xpose.msra.mxu0 %v2801_v40  ;;  %5426 = vmatprep.mubr.msk.bf16.mxu0 %vm5810_vm1, %v5809_v28  ;;  %v2556_v37 = vadd.f32 %v5386_v26, %v6470_v49 }
 0x721   : > { %v5387_v36 = vpop.f32.mrb[106].mxu0  ;;  %5432 = vmatprep.mubr.msk.bf16.mxu1 %vm5810_vm1, %v5809_v28  ;;  %5442 = vmatprep.subr.bf16.mxu1 %v5809_v28  ;;  %v2548_v50 = vadd.f32 %v6470_v49, %v2547_v35 }
 0x722   : > { %v2559_v39 = vadd.f32 %v5387_v36, %v6470_v49  ;;  %v2550_v46 = vpop.f32.mrb[107].mxu0  ;;  %5436 = vmatprep.subr.bf16.mxu0 %v5809_v28 }
 0x723   : > { %v2551_v59 = vadd.f32 %v6470_v49, %v2550_v46 }
 0x724   : > { %v2708_v42 = vpack.c.bf16 %v2559_v39, %v2556_v37 }
 0x725   : > { %v2707_v1 = vpack.c.bf16 %v2551_v59, %v2548_v50 }
 0x726   : > { %5433 = vmatmul.mubr.msk.bf16.vlgmr.msra.gmra.mrb[116].mxu1 %vm558_vm2, %v2702_v10  ;;  %v2930_v19 = vsel %vm558_vm2, %v2708_v42, 0 }
 0x727   : > { %v5390_v21 = vpop.f32.mrb[108].mxu0  ;;  %5427 = vmatmul.mubr.msk.bf16.vlgmr.msra.gmra.mrb[116].mxu0 %vm558_vm2, %v2702_v10  ;;  %5443 = vmatpush3.bf16.xpose.msra.mxu1 %v2930_v19  ;;  %v2887_v63 = vsel %vm558_vm2, %v2707_v1, 0 }
 0x728   : > { %v2563_v13 = vpop.f32.mrb[109].mxu0  ;;  %5437 = vmatpush3.bf16.xpose.msra.mxu0 %v2887_v63  ;;  %5438 = vmatprep.mubr.msk.bf16.mxu0 %vm5810_vm1, %v5809_v28  ;;  %v2572_v8 = vadd.f32 %v5390_v21, %v6470_v49  ;;  %v4812_v21 = vld [vmem:[%s7010_s4 + $0x2] ss:$0 sm:$0xff] }
 0x729   : > { %v5391_v44 = vpop.f32.mrb[110].mxu0  ;;  %5444 = vmatprep.mubr.msk.bf16.mxu1 %vm5810_vm1, %v5809_v28  ;;  %5454 = vmatprep.subr.bf16.mxu1 %v5809_v28  ;;  %v2564_v14 = vadd.f32 %v6470_v49, %v2563_v13 }
 0x72a   : > { %v2575_v45 = vadd.f32 %v5391_v44, %v6470_v49  ;;  %v2566_v2 = vpop.f32.mrb[111].mxu0  ;;  %5448 = vmatprep.subr.bf16.mxu0 %v5809_v28 }
 0x72b   : > { %v2567_v15 = vadd.f32 %v6470_v49, %v2566_v2 }
 0x72c   : > { %v2710_v25 = vpack.c.bf16 %v2575_v45, %v2572_v8 }
 0x72d   : > { %v2709_v48 = vpack.c.bf16 %v2567_v15, %v2564_v14 }
 0x72e   : > { %5445 = vmatmul.mubr.msk.bf16.vlgmr.msra.gmra.mrb[120].mxu1 %vm558_vm2, %v2702_v10  ;;  %v3016_v54 = vsel %vm558_vm2, %v2710_v25, 0 }
 0x72f   : > { %5439 = vmatmul.mubr.msk.bf16.vlgmr.msra.gmra.mrb[120].mxu0 %vm558_vm2, %v2702_v10  ;;  %5455 = vmatpush3.bf16.xpose.msra.mxu1 %v3016_v54  ;;  %v2973_v31 = vsel %vm558_vm2, %v2709_v48, 0 }
 0x730   : > { %5449 = vmatpush3.bf16.xpose.msra.mxu0 %v2973_v31  ;;  %5450 = vmatprep.mubr.msk.bf16.mxu0 %vm5810_vm1, %v5809_v28 }
 0x731   : > { %5456 = vmatprep.mubr.msk.bf16.mxu1 %vm5810_vm1, %v5809_v28  ;;  %5460 = vmatprep.subr.bf16.mxu0 %v5809_v28 }
 0x732   : > { %5466 = vmatprep.subr.bf16.mxu1 %v5809_v28 }
 0x736   : > { %5457 = vmatmul.mubr.msk.bf16.vlgmr.msra.gmra.mrb[124].mxu1 %vm558_vm2, %v2702_v10 }
 0x737   : > { %5451 = vmatmul.mubr.msk.bf16.vlgmr.msra.gmra.mrb[124].mxu0 %vm558_vm2, %v2702_v10  ;;  %5468 = vmatprep.mubr.msk.bf16.mxu1 %vm5810_vm1, %v5809_v28 }
 0x738   : > { %5462 = vmatprep.mubr.msk.bf16.mxu0 %vm5810_vm1, %v5809_v28 }
 0x7a0   : > { %v6531_v47 = vpop.f32.mrb[80].mxu1 }
 0x7a1   : > { %v5334_v49 = vpop.f32.mrb[81].mxu1 }
 0x7a2   : > { %v2154_v51 = vpop.f32.mrb[82].mxu1 }
 0x7a3   : > { %v5335_v52 = vpop.f32.mrb[83].mxu1 }
 0x7a8   : > { %v6533_v41 = vpop.f32.mrb[84].mxu1 }
 0x7a9   : > { %v5346_v57 = vpop.f32.mrb[85].mxu1 }
 0x7aa   : > { %v2240_v38 = vpop.f32.mrb[86].mxu1 }
 0x7ab   : > { %v5347_v20 = vpop.f32.mrb[87].mxu1 }
 0x7b0   : > { %v6535_v33 = vpop.f32.mrb[88].mxu1 }
 0x7b1   : > { %v5358_v53 = vpop.f32.mrb[89].mxu1 }
 0x7b2   : > { %v2326_v55 = vpop.f32.mrb[90].mxu1 }
 0x7b3   : > { %v5359_v9 = vpop.f32.mrb[91].mxu1 }
 0x7b8   : > { %v6537_v58 = vpop.f32.mrb[92].mxu1 }
 0x7b9   : > { %v5370_v60 = vpop.f32.mrb[93].mxu1 }
 0x7ba   : > { %v2412_v4 = vpop.f32.mrb[94].mxu1 }
 0x7bb   : > { %v5371_v0 = vpop.f32.mrb[95].mxu1 }
 0x7c0   : > { %v5398_v1 = vpop.f32.mrb[96].mxu1 }
 0x7c1   : > { %v2637_v19 = vpop.f32.mrb[97].mxu1  ;;  %v2646_v44 = vadd.f32 %v5398_v1, %v4812_v21 }
 0x7c2   : > { %v5399_v63 = vpop.f32.mrb[98].mxu1  ;;  %v2638_v8 = vadd.f32 %v4812_v21, %v2637_v19 }
 0x7c3   : > { %v2640_v13 = vpop.f32.mrb[99].mxu1  ;;  %v2649_v14 = vadd.f32 %v5399_v63, %v4812_v21 }
 0x7c4   : > { %v2641_v15 = vadd.f32 %v4812_v21, %v2640_v13 }
 0x7c5   : > { %v3155_v51 = vpack.c.bf16 %v2649_v14, %v2646_v44 }
 0x7c6   : > { %v3154_v52 = vpack.c.bf16 %v2641_v15, %v2638_v8 }
 0x7c7   : > { %5467 = vmatpush3.bf16.msra.mxu1 %v3155_v51 }
 0x7c8   : > { %v5402_v45 = vpop.f32.mrb[100].mxu1  ;;  %5461 = vmatpush3.bf16.msra.mxu0 %v3154_v52  ;;  %5478 = vmatprep.subr.bf16.mxu1 %v5809_v28 }
 0x7c9   : > { %v2653_v2 = vpop.f32.mrb[101].mxu1  ;;  %v6558_v25 = vadd.f32 %v5402_v45, %v4812_v21  ;;  %5472 = vmatprep.subr.bf16.mxu0 %v5809_v28 }
 0x7ca   : > { %v6560_v48 = vadd.f32 %v4812_v21, %v2653_v2  ;;  %v5403_v54 = vpop.f32.mrb[102].mxu1 }
 0x7cb   : > { %v6562_v31 = vadd.f32 %v5403_v54, %v4812_v21  ;;  %v2656_v49 = vpop.f32.mrb[103].mxu1 }
 0x7cc   : > { %v6564_v57 = vadd.f32 %v4812_v21, %v2656_v49 }
 0x7cd   : > { %v3157_v20 = vpack.c.bf16 %v6562_v31, %v6558_v25 }
 0x7ce   : > { %v3156_v9 = vpack.c.bf16 %v6564_v57, %v6560_v48 }
 0x7d0   : > { %v5406_v38 = vpop.f32.mrb[104].mxu1 }
 0x7d1   : > { %v6568_v53 = vadd.f32 %v5406_v38, %v4812_v21  ;;  %v2669_v55 = vpop.f32.mrb[105].mxu1 }
 0x7d2   : > { %v6572_v60 = vadd.f32 %v4812_v21, %v2669_v55  ;;  %v5407_v4 = vpop.f32.mrb[106].mxu1 }
 0x7d3   : > { %v2672_v0 = vpop.f32.mrb[107].mxu1 }
 0x7f2   : > { %v6539_v61 = vpop.f32.mrb[112].mxu0 }
 0x7f3   : > { %v5416_v29 = vpop.f32.mrb[113].mxu0  ;;  %v3058_v30 = vsel %vm906_vm3, %v6539_v61, -inf }
 0x7f4   : > { %3059 = vmax.xlane.f32.xlu0 %v3058_v30  ;;  %v2754_v3 = vpop.f32.mrb[114].mxu0  ;;  %v5410_v29 = vpop.f32.mrb[108].mxu1 }
 0x7f5   : > { %v5417_v10 = vpop.f32.mrb[115].mxu0  ;;  %v2685_v30 = vpop.f32.mrb[109].mxu1  ;;  %v6576_v3 = vadd.f32 %v5407_v4, %v4812_v21 }
 0x7f6   : > { %v6578_v10 = vadd.f32 %v4812_v21, %v2672_v0 }
 0x7fa   : > { %v6543_v34 = vpop.f32.mrb[116].mxu0 }
 0x7fb   : > { %v5428_v62 = vpop.f32.mrb[117].mxu0  ;;  %v3064_v6 = vsel %vm906_vm3, %v6543_v34, -inf }
 0x7fc   : > { %3065 = vmax.xlane.f32.xlu1 %v3064_v6  ;;  %v2840_v22 = vpop.f32.mrb[118].mxu0  ;;  %v6580_v62 = vadd.f32 %v5410_v29, %v4812_v21  ;;  %v6582_v6 = vadd.f32 %v4812_v21, %v2685_v30 }
 0x7fd   : > { %v5429_v16 = vpop.f32.mrb[119].mxu0  ;;  %v5411_v22 = vpop.f32.mrb[110].mxu1 }
 0x7fe   : > { %v6584_v16 = vadd.f32 %v5411_v22, %v4812_v21 }
 0x802   : > { %v6547_v26 = vpop.f32.mrb[120].mxu0 }
 0x803   : > { %v5440_v40 = vpop.f32.mrb[121].mxu0  ;;  %v3070_v35 = vsel %vm906_vm3, %v6547_v26, -inf }
 0x804   : > { %3071 = vmax.xlane.f32.xlu0 %v3070_v35  ;;  %v2926_v36 = vpop.f32.mrb[122].mxu0  ;;  %v2688_v40 = vpop.f32.mrb[111].mxu1  ;;  %v3159_v35 = vpack.c.bf16 %v6576_v3, %v6568_v53 }
 0x805   : > { %v5441_v37 = vpop.f32.mrb[123].mxu0  ;;  %v3158_v36 = vpack.c.bf16 %v6578_v10, %v6572_v60 }
 0x806   : > { %v6590_v37 = vadd.f32 %v4812_v21, %v2688_v40 }
 0x80a   : > { %v6551_v39 = vpop.f32.mrb[124].mxu0 }
 0x80b   : > { %v5452_v46 = vpop.f32.mrb[125].mxu0  ;;  %v3076_v50 = vsel %vm906_vm3, %v6551_v39, -inf }
 0x80c   : > { %3077 = vmax.xlane.f32.xlu1 %v3076_v50  ;;  %v3012_v59 = vpop.f32.mrb[126].mxu0  ;;  %v6592_v46 = vpop.f32.mrb[112].mxu1  ;;  %v3161_v50 = vpack.c.bf16 %v6584_v16, %v6580_v62 }
 0x80d   : > { %v5453_v42 = vpop.f32.mrb[127].mxu0  ;;  %v5422_v59 = vpop.f32.mrb[113].mxu1 }
 0x80e   : > { %v3160_v42 = vpack.c.bf16 %v6590_v37, %v6582_v6  ;;  %v2797_v1 = vpop.f32.mrb[114].mxu1  ;;  %v5670_v6 = vld [vmem:[%s7007_s1 + $0x38] sm:$0xff]  }
 0x80f   : > { %v5423_v19 = vpop.f32.mrb[115].mxu1 }
 0x810   : > { %v6598_v63 = vpop.f32.mrb[116].mxu1 }
 0x811   : > { %v5434_v13 = vpop.f32.mrb[117].mxu1 }
 0x812   : > { %v2883_v44 = vpop.f32.mrb[118].mxu1 }
 0x813   : > { %v5435_v8 = vpop.f32.mrb[119].mxu1 }
 0x814   : > { %v6600_v45 = vpop.f32.mrb[120].mxu1 }
 0x815   : > { %v5446_v21 = vpop.f32.mrb[121].mxu1 }
 0x816   : > { %v2969_v2 = vpop.f32.mrb[122].mxu1 }
 0x817   : > { %v5447_v14 = vpop.f32.mrb[123].mxu1  ;;  %v3061_v2 = vsel %vm906_vm3, %v6592_v46, -inf }
 0x818   : > { %v6602_v15 = vpop.f32.mrb[124].mxu1 }
 0x819   : > { %v5458_v54 = vpop.f32.mrb[125].mxu1 }
 0x81a   : > { %v3055_v49 = vpop.f32.mrb[126].mxu1 }
 0x81b   : > { %v5459_v51 = vpop.f32.mrb[127].mxu1  ;;  %v3079_v49 = vsel %vm906_vm3, %v6602_v15, -inf }
 0x881   : > { %v3060_v52 = vpop.xlane.xlu0 %3059 }
 0x882   : > { %v3082_v38 = vsub.f32 %v6539_v61, %v3060_v52 }
 0x884   : > { %v3090_v55 = vmul.f32 1.442695, %v3082_v38 }
 0x886   : > { %5737 = vpow2.f32 %v3090_v55 }
 0x889   : > { %v3066_v4 = vpop.xlane.xlu1 %3065 }
 0x88a   : > { %v3084_v0 = vsub.f32 %v6543_v34, %v3066_v4 }
 0x88c   : > { %v3094_v29 = vmul.f32 1.442695, %v3084_v0 }
 0x88e   : > { %5739 = vpow2.f32 %v3094_v29 }
 0x890   : > { %v5738_v30 = vpop.eup %5737 }
 0x891   : > { %v3072_v22 = vpop.xlane.xlu0 %3071  ;;  %v3106_v40 = vsel %vm906_vm3, %v5738_v30, 0.0 }
 0x892   : > { %v3086_v59 = vsub.f32 %v6547_v26, %v3072_v22  ;;  %3107 = vadd.xlane.f32.xlu0 %v3106_v40  ;;  %v3073_v26 = vsel %vm906_vm3, %v6600_v45, -inf }
 0x894   : > { %v3098_v1 = vmul.f32 1.442695, %v3086_v59 }
 0x896   : > { %5741 = vpow2.f32 %v3098_v1 }
 0x898   : > { %v5740_v19 = vpop.eup %5739 }
 0x899   : > { %v3078_v13 = vpop.xlane.xlu1 %3077  ;;  %v3112_v61 = vsel %vm906_vm3, %v5740_v19, 0.0 }
 0x89a   : > { %v3088_v44 = vsub.f32 %v6551_v39, %v3078_v13  ;;  %3113 = vadd.xlane.f32.xlu1 %v3112_v61  ;;  %v3067_v39 = vsel %vm906_vm3, %v6598_v63, -inf }
 0x89c   : > { %v3102_v8 = vmul.f32 1.442695, %v3088_v44 }
 0x89e   : > { %5743 = vpow2.f32 %v3102_v8 }
 0x8a0   : > { %v5742_v34 = vpop.eup %5741 }
 0x8a1   : > { %v3118_v21 = vsel %vm906_vm3, %v5742_v34, 0.0 }
 0x8a2   : > { %3119 = vadd.xlane.f32.xlu0 %v3118_v21 }
 0x8a6   : > { %3062 = vmax.xlane.f32.xlu0 %v3061_v2 }
 0x8a8   : > { %v5744_v14 = vpop.eup %5743 }
 0x8a9   : > { %v3124_v54 = vsel %vm906_vm3, %v5744_v14, 0.0 }
 0x8aa   : > { %3074 = vmax.xlane.f32.xlu0 %v3073_v26  ;;  %3125 = vadd.xlane.f32.xlu1 %v3124_v54 }
 0x8ae   : > { %3068 = vmax.xlane.f32.xlu1 %v3067_v39 }
 0x8b2   : > { %3080 = vmax.xlane.f32.xlu1 %v3079_v49 }
 0x91f   : > { %v3108_v51 = vpop.xlane.xlu0 %3107 }
 0x920   : > { %5745 = vrcp.f32 %v3108_v51 }
 0x927   : > { %v3114_v52 = vpop.xlane.xlu1 %3113 }
 0x928   : > { %5747 = vrcp.f32 %v3114_v52 }
 0x92a   : > { %v5746_v38 = vpop.eup %5745 }
 0x92b   : > { %v3138_v55 = vmul.f32 %v5746_v38, %v5738_v30 }
 0x92d   : > { %v3146_v4 = vpack.c.bf16 %v3138_v55, %v3138_v55 }
 0x92f   : > { %5463 = vmatmul.mubr.msk.bf16.vlgmr.msra.gmra.mrb[128].mxu0 %vm1011_vm4, %v3146_v4  ;;  %v3120_v0 = vpop.xlane.xlu0 %3119 }
 0x930   : > { %5473 = vmatpush3.bf16.msra.mxu0 %v3156_v9  ;;  %5749 = vrcp.f32 %v3120_v0  ;;  %5474 = vmatprep.mubr.msk.bf16.mxu0 %vm5810_vm1, %v5809_v28 }
 0x931   : > { %5484 = vmatprep.subr.bf16.mxu0 %v5809_v28 }
 0x932   : > { %v5748_v29 = vpop.eup %5747 }
 0x933   : > { %v3140_v22 = vmul.f32 %v5748_v29, %v5740_v19  ;;  %v3063_v40 = vpop.xlane.xlu0 %3062 }
 0x934   : > { %v3083_v59 = vsub.f32 %v6592_v46, %v3063_v40 }
 0x935   : > { %v3148_v30 = vpack.c.bf16 %v3140_v22, %v3140_v22 }
 0x936   : > { %v3092_v1 = vmul.f32 1.442695, %v3083_v59 }
 0x937   : > { %v3075_v13 = vpop.xlane.xlu0 %3074  ;;  %5475 = vmatmul.mubr.msk.bf16.vlgmr.msra.gmra.mrb[132].mxu0 %vm1011_vm4, %v3148_v30  ;;  %v3126_v61 = vpop.xlane.xlu1 %3125 }
 0x938   : > { %5751 = vpow2.f32 %v3092_v1  ;;  %v3087_v48 = vsub.f32 %v6600_v45, %v3075_v13  ;;  %5485 = vmatpush3.bf16.msra.mxu0 %v3158_v36  ;;  %5486 = vmatprep.mubr.msk.bf16.mxu0 %vm5810_vm1, %v5809_v28  ;;  %v5669_v45 = vld [vmem:[%s7007_s1 + $0x30] sm:$0xff]  }
 0x939   : > { %5753 = vrcp.f32 %v3126_v61  ;;  %5496 = vmatprep.subr.bf16.mxu0 %v5809_v28 }
 0x93a   : > { %v5750_v57 = vpop.eup %5749  ;;  %v3100_v9 = vmul.f32 1.442695, %v3087_v48 }
 0x93b   : > { %v3142_v46 = vmul.f32 %v5750_v57, %v5742_v34  ;;  %v3069_v19 = vpop.xlane.xlu1 %3068 }
 0x93c   : > { %5755 = vpow2.f32 %v3100_v9  ;;  %v3085_v44 = vsub.f32 %v6598_v63, %v3069_v19 }
 0x93d   : > { %v3150_v8 = vpack.c.bf16 %v3142_v46, %v3142_v46 }
 0x93e   : > { %v3096_v60 = vmul.f32 1.442695, %v3085_v44 }
 0x93f   : > { %5487 = vmatmul.mubr.msk.bf16.vlgmr.msra.gmra.mrb[136].mxu0 %vm1011_vm4, %v3150_v8  ;;  %v3081_v10 = vpop.xlane.xlu1 %3080  ;;  %v6731_v8 = vld [vmem:[%s7009_s3 + $0x3] ss:$0 sm:$0xff] }
 0x940   : > { %5757 = vpow2.f32 %v3096_v60  ;;  %5497 = vmatpush3.bf16.msra.mxu0 %v3160_v42  ;;  %v3089_v36 = vsub.f32 %v6602_v15, %v3081_v10  ;;  %5498 = vmatprep.mubr.msk.bf16.mxu0 %vm5810_vm1, %v5809_v28 }
 0x941   : > { %5508 = vmatprep.subr.bf16.mxu0 %v5669_v45 }
 0x942   : > { %v5752_v63 = vpop.eup %5751  ;;  %v3104_v34 = vmul.f32 1.442695, %v3089_v36 }
 0x943   : > { %v5754_v21 = vpop.eup %5753  ;;  %v3109_v2 = vsel %vm906_vm3, %v5752_v63, 0.0 }
 0x944   : > { %v3144_v26 = vmul.f32 %v5754_v21, %v5744_v14  ;;  %5759 = vpow2.f32 %v3104_v34  ;;  %3110 = vadd.xlane.f32.xlu0 %v3109_v2 }
 0x946   : > { %v5756_v54 = vpop.eup %5755  ;;  %v3152_v39 = vpack.c.bf16 %v3144_v26, %v3144_v26 }
 0x947   : > { %v3121_v37 = vsel %vm906_vm3, %v5756_v54, 0.0 }
 0x948   : > { %5499 = vmatmul.mubr.msk.bf16.vlgmr.msra.gmra.mrb[140].mxu0 %vm1011_vm4, %v3152_v39  ;;  %3122 = vadd.xlane.f32.xlu0 %v3121_v37  ;;  %v4872_v39 = vld [vmem:[%s7011_s5 + $0xc] sm:$0xf] }
 0x949   : > { %5509 = vmatpush3.bf16.msra.mxu0 %v5669_v45  ;;  %5512 = vmatprep.mubr.msk.bf16.mxu0 %vm306_vm0, %v5880_v7 }
 0x94a   : > { %v5758_v42 = vpop.eup %5757  ;;  %5510 = vmatprep.subr.bf16.mxu0 %v5670_v6 }
 0x94b   : > { %v3115_v15 = vsel %vm906_vm3, %v5758_v42, 0.0 }
 0x94c   : > { %3116 = vadd.xlane.f32.xlu1 %v3115_v15 }
 0x94d   : > { %5511 = vmatpush3.bf16.msra.mxu0 %v5670_v6 }
 0x94e   : > { %v5760_v14 = vpop.eup %5759  ;;  %5548 = vmatprep.subr.bf16.mxu0 %v5809_v28 }
 0x94f   : > { %v3127_v49 = vsel %vm906_vm3, %v5760_v14, 0.0 }
 0x950   : > { %5513 = vmatmul.mubr.msk.bf16.vlgmr.msra.gmra.mrb[144].mxu0 %vm306_vm0, %v5885_v11  ;;  %3128 = vadd.xlane.f32.xlu1 %v3127_v49  ;;  %v3793_v49 = vpack.c.bf16 %v4872_v39, %v4872_v39 }
 0x951   : > { %5516 = vmatprep.mubr.msk.bf16.mxu0 %vm306_vm0, %v5887_v12 }
 0x958   : > { %5517 = vmatmul.mubr.msk.bf16.gmra.mrb[148].mxu0 %vm306_vm0, %v5905_v17 }
 0x959   : > { %5520 = vmatprep.mubr.msk.bf16.mxu0 %vm306_vm0, %v5907_v18 }
 0x960   : > { %5521 = vmatmul.mubr.msk.bf16.gmra.mrb[152].mxu0 %vm306_vm0, %v5921_v23 }
 0x961   : > { %5524 = vmatprep.mubr.msk.bf16.mxu0 %vm306_vm0, %v5923_v24 }
 0x968   : > { %5525 = vmatmul.mubr.msk.bf16.gmra.mrb[156].mxu0 %vm306_vm0, %v5935_v27 }
 0x969   : > { %5550 = vmatprep.mubr.msk.bf16.mxu0 %vm5810_vm1, %v5809_v28 }
 0x9d1   : > { %v3111_v51 = vpop.xlane.xlu0 %3110 }
 0x9d2   : > { %5761 = vrcp.f32 %v3111_v51 }
 0x9d5   : > { %v3123_v38 = vpop.xlane.xlu0 %3122 }
 0x9d9   : > { %v3117_v52 = vpop.xlane.xlu1 %3116 }
 0x9da   : > { %5763 = vrcp.f32 %v3117_v52 }
 0x9db   : > { %5765 = vrcp.f32 %v3123_v38 }
 0x9dc   : > { %v5762_v55 = vpop.eup %5761 }
 0x9dd   : > { %v3139_v4 = vmul.f32 %v5762_v55, %v5752_v63  ;;  %v3129_v29 = vpop.xlane.xlu1 %3128 }
 0x9de   : > { %5767 = vrcp.f32 %v3129_v29 }
 0x9df   : > { %v3147_v0 = vpack.c.bf16 %v3139_v4, %v3139_v4 }
 0x9e1   : > { %5469 = vmatmul.mubr.msk.bf16.vlgmr.msra.gmra.mrb[128].mxu1 %vm1011_vm4, %v3147_v0 }
 0x9e2   : > { %5479 = vmatpush3.bf16.msra.mxu1 %v3157_v20  ;;  %5480 = vmatprep.mubr.msk.bf16.mxu1 %vm5810_vm1, %v5809_v28  ;;  %v5671_v20 = vld [vmem:[%s7008_s2 + $0x30] sm:$0xff]  }
 0x9e3   : > { %5490 = vmatprep.subr.bf16.mxu1 %v5809_v28 }
 0x9e4   : > { %v5764_v22 = vpop.eup %5763 }
 0x9e5   : > { %v3141_v40 = vmul.f32 %v5764_v22, %v5758_v42  ;;  %v5766_v30 = vpop.eup %5765 }
 0x9e6   : > { %v3143_v25 = vmul.f32 %v5766_v30, %v5756_v54 }
 0x9e7   : > { %v3149_v59 = vpack.c.bf16 %v3141_v40, %v3141_v40 }
 0x9e8   : > { %v3151_v31 = vpack.c.bf16 %v3143_v25, %v3143_v25  ;;  %v5768_v1 = vpop.eup %5767 }
 0x9e9   : > { %5481 = vmatmul.mubr.msk.bf16.vlgmr.msra.gmra.mrb[132].mxu1 %vm1011_vm4, %v3149_v59  ;;  %v3145_v53 = vmul.f32 %v5768_v1, %v5760_v14 }
 0x9ea   : > { %5491 = vmatpush3.bf16.msra.mxu1 %v3159_v35  ;;  %5492 = vmatprep.mubr.msk.bf16.mxu1 %vm5810_vm1, %v5809_v28  ;;  %v5672_v35 = vld [vmem:[%s7008_s2 + $0x38] sm:$0xff]  }
 0x9eb   : > { %5502 = vmatprep.subr.bf16.mxu1 %v5809_v28  ;;  %v3153_v3 = vpack.c.bf16 %v3145_v53, %v3145_v53 }
 0x9f1   : > { %5493 = vmatmul.mubr.msk.bf16.vlgmr.msra.gmra.mrb[136].mxu1 %vm1011_vm4, %v3151_v31 }
 0x9f2   : > { %5503 = vmatpush3.bf16.msra.mxu1 %v3161_v50  ;;  %5504 = vmatprep.mubr.msk.bf16.mxu1 %vm5810_vm1, %v5809_v28 }
 0x9f3   : > { %5528 = vmatprep.subr.bf16.mxu1 %v5671_v20 }
 0x9f9   : > { %5505 = vmatmul.mubr.msk.bf16.vlgmr.msra.gmra.mrb[140].mxu1 %vm1011_vm4, %v3153_v3 }
 0x9fa   : > { %5529 = vmatpush3.bf16.msra.mxu1 %v5671_v20  ;;  %5532 = vmatprep.mubr.msk.bf16.mxu1 %vm306_vm0, %v5880_v7 }
 0x9fb   : > { %5530 = vmatprep.subr.bf16.mxu1 %v5672_v35 }
 0x9fe   : > { %5531 = vmatpush3.bf16.msra.mxu1 %v5672_v35 }
 0x9ff   : > { %5554 = vmatprep.subr.bf16.mxu1 %v5809_v28 }
 0xa01   : > { %5533 = vmatmul.mubr.msk.bf16.vlgmr.msra.gmra.mrb[144].mxu1 %vm306_vm0, %v5885_v11 }
 0xa02   : > { %v6706_v62 = vpop.f32.mrb[128].mxu0  ;;  %5536 = vmatprep.mubr.msk.bf16.mxu1 %vm306_vm0, %v5887_v12 }
 0xa03   : > { %v5464_v16 = vpop.f32.mrb[129].mxu0 }
 0xa04   : > { %v3202_v50 = vpop.f32.mrb[130].mxu0 }
 0xa05   : > { %v5465_v13 = vpop.f32.mrb[131].mxu0 }
 0xa09   : > { %5537 = vmatmul.mubr.msk.bf16.gmra.mrb[148].mxu1 %vm306_vm0, %v5905_v17 }
 0xa0a   : > { %v6712_v61 = vpop.f32.mrb[132].mxu0  ;;  %5540 = vmatprep.mubr.msk.bf16.mxu1 %vm306_vm0, %v5907_v18 }
 0xa0b   : > { %v5476_v7 = vpop.f32.mrb[133].mxu0 }
 0xa0c   : > { %v3288_v48 = vpop.f32.mrb[134].mxu0 }
 0xa0d   : > { %v5477_v57 = vpop.f32.mrb[135].mxu0 }
 0xa11   : > { %5541 = vmatmul.mubr.msk.bf16.gmra.mrb[152].mxu1 %vm306_vm0, %v5921_v23 }
 0xa12   : > { %v6718_v11 = vpop.f32.mrb[136].mxu0  ;;  %5544 = vmatprep.mubr.msk.bf16.mxu1 %vm306_vm0, %v5923_v24 }
 0xa13   : > { %v5488_v12 = vpop.f32.mrb[137].mxu0 }
 0xa14   : > { %v3374_v9 = vpop.f32.mrb[138].mxu0 }
 0xa15   : > { %v5489_v46 = vpop.f32.mrb[139].mxu0 }
 0xa19   : > { %5545 = vmatmul.mubr.msk.bf16.gmra.mrb[156].mxu1 %vm306_vm0, %v5935_v27 }
 0xa1a   : > { %5556 = vmatprep.mubr.msk.bf16.mxu1 %vm5810_vm1, %v5809_v28 }
 0xa1b   : > { %v6726_v17 = vpop.f32.mrb[140].mxu0 }
 0xa1c   : > { %v5500_v18 = vpop.f32.mrb[141].mxu0 }
 0xa1d   : > { %v3460_v19 = vpop.f32.mrb[142].mxu0 }
 0xa1e   : > { %v5501_v44 = vpop.f32.mrb[143].mxu0 }
 0xa23   : > { %v5514_v23 = vpop.f32.mrb[144].mxu0 }
 0xa24   : > { %v3606_v24 = vpop.f32.mrb[145].mxu0  ;;  %v3615_v60 = vadd.f32 %v5514_v23, %v6731_v8 }
 0xa25   : > { %v5515_v45 = vpop.f32.mrb[146].mxu0  ;;  %v3607_v36 = vadd.f32 %v6731_v8, %v3606_v24 }
 0xa26   : > { %v3618_v27 = vadd.f32 %v5515_v45, %v6731_v8  ;;  %v3609_v10 = vpop.f32.mrb[147].mxu0 }
 0xa27   : > { %v3610_v63 = vadd.f32 %v6731_v8, %v3609_v10 }
 0xa28   : > { %v3795_v34 = vpack.c.bf16 %v3618_v27, %v3615_v60 }
 0xa29   : > { %v3794_v21 = vpack.c.bf16 %v3610_v63, %v3607_v36 }
 0xa2a   : > { %v3849_v2 = vsel %vm558_vm2, %v3795_v34, 0 }
 0xa2b   : > { %v5518_v26 = vpop.f32.mrb[148].mxu0  ;;  %5555 = vmatpush3.bf16.xpose.msra.mxu1 %v3849_v2  ;;  %v3806_v54 = vsel %vm558_vm2, %v3794_v21, 0 }
 0xa2c   : > { %v3622_v6 = vpop.f32.mrb[149].mxu0  ;;  %5549 = vmatpush3.bf16.xpose.msra.mxu0 %v3806_v54  ;;  %5566 = vmatprep.subr.bf16.mxu1 %v5809_v28  ;;  %v3631_v42 = vadd.f32 %v5518_v26, %v6731_v8 }
 0xa2d   : > { %v5519_v37 = vpop.f32.mrb[150].mxu0  ;;  %5560 = vmatprep.subr.bf16.mxu0 %v5809_v28  ;;  %v3623_v51 = vadd.f32 %v6731_v8, %v3622_v6 }
 0xa2e   : > { %v3634_v15 = vadd.f32 %v5519_v37, %v6731_v8  ;;  %v3625_v14 = vpop.f32.mrb[151].mxu0  ;;  %v4861_v37 = vld [vmem:[%s7010_s4 + $0x3] ss:$0 sm:$0xff] }
 0xa2f   : > { %v3626_v52 = vadd.f32 %v6731_v8, %v3625_v14 }
 0xa30   : > { %v3797_v38 = vpack.c.bf16 %v3634_v15, %v3631_v42 }
 0xa31   : > { %v3796_v55 = vpack.c.bf16 %v3626_v52, %v3623_v51 }
 0xa32   : > { %5557 = vmatmul.mubr.msk.bf16.vlgmr.msra.gmra.mrb[160].mxu1 %vm558_vm2, %v3793_v49  ;;  %v3935_v4 = vsel %vm558_vm2, %v3797_v38, 0 }
 0xa33   : > { %v5522_v0 = vpop.f32.mrb[152].mxu0  ;;  %5551 = vmatmul.mubr.msk.bf16.vlgmr.msra.gmra.mrb[160].mxu0 %vm558_vm2, %v3793_v49  ;;  %5567 = vmatpush3.bf16.xpose.msra.mxu1 %v3935_v4  ;;  %v3892_v29 = vsel %vm558_vm2, %v3796_v55, 0 }
 0xa34   : > { %v3638_v22 = vpop.f32.mrb[153].mxu0  ;;  %5561 = vmatpush3.bf16.xpose.msra.mxu0 %v3892_v29  ;;  %5568 = vmatprep.mubr.msk.bf16.mxu1 %vm5810_vm1, %v5809_v28  ;;  %v3647_v59 = vadd.f32 %v5522_v0, %v6731_v8 }
 0xa35   : > { %v5523_v40 = vpop.f32.mrb[154].mxu0  ;;  %5562 = vmatprep.mubr.msk.bf16.mxu0 %vm5810_vm1, %v5809_v28  ;;  %5578 = vmatprep.subr.bf16.mxu1 %v5809_v28  ;;  %v3639_v31 = vadd.f32 %v6731_v8, %v3638_v22 }
 0xa36   : > { %v3650_v30 = vadd.f32 %v5523_v40, %v6731_v8  ;;  %v3641_v25 = vpop.f32.mrb[155].mxu0  ;;  %5572 = vmatprep.subr.bf16.mxu0 %v5809_v28 }
 0xa37   : > { %v3642_v20 = vadd.f32 %v6731_v8, %v3641_v25 }
 0xa38   : > { %v3799_v1 = vpack.c.bf16 %v3650_v30, %v3647_v59 }
 0xa39   : > { %v3798_v53 = vpack.c.bf16 %v3642_v20, %v3639_v31 }
 0xa3a   : > { %5569 = vmatmul.mubr.msk.bf16.vlgmr.msra.gmra.mrb[164].mxu1 %vm558_vm2, %v3793_v49  ;;  %v4021_v3 = vsel %vm558_vm2, %v3799_v1, 0 }
 0xa3b   : > { %v5526_v35 = vpop.f32.mrb[156].mxu0  ;;  %5563 = vmatmul.mubr.msk.bf16.vlgmr.msra.gmra.mrb[164].mxu0 %vm558_vm2, %v3793_v49  ;;  %5579 = vmatpush3.bf16.xpose.msra.mxu1 %v4021_v3  ;;  %v3978_v16 = vsel %vm558_vm2, %v3798_v53, 0 }
 0xa3c   : > { %v3654_v50 = vpop.f32.mrb[157].mxu0  ;;  %5573 = vmatpush3.bf16.xpose.msra.mxu0 %v3978_v16  ;;  %5580 = vmatprep.mubr.msk.bf16.mxu1 %vm5810_vm1, %v5809_v28  ;;  %v3663_v7 = vadd.f32 %v5526_v35, %v6731_v8 }
 0xa3d   : > { %v5527_v13 = vpop.f32.mrb[158].mxu0  ;;  %5574 = vmatprep.mubr.msk.bf16.mxu0 %vm5810_vm1, %v5809_v28  ;;  %5590 = vmatprep.subr.bf16.mxu1 %v5809_v28  ;;  %v3655_v12 = vadd.f32 %v6731_v8, %v3654_v50 }
 0xa3e   : > { %v3666_v48 = vadd.f32 %v5527_v13, %v6731_v8  ;;  %v3657_v57 = vpop.f32.mrb[159].mxu0  ;;  %5584 = vmatprep.subr.bf16.mxu0 %v5809_v28 }
 0xa3f   : > { %v3658_v9 = vadd.f32 %v6731_v8, %v3657_v57 }
 0xa40   : > { %v3801_v46 = vpack.c.bf16 %v3666_v48, %v3663_v7 }
 0xa41   : > { %v3800_v18 = vpack.c.bf16 %v3658_v9, %v3655_v12 }
 0xa42   : > { %5581 = vmatmul.mubr.msk.bf16.vlgmr.msra.gmra.mrb[168].mxu1 %vm558_vm2, %v3793_v49  ;;  %v4107_v19 = vsel %vm558_vm2, %v3801_v46, 0 }
 0xa43   : > { %5575 = vmatmul.mubr.msk.bf16.vlgmr.msra.gmra.mrb[168].mxu0 %vm558_vm2, %v3793_v49  ;;  %5591 = vmatpush3.bf16.xpose.msra.mxu1 %v4107_v19  ;;  %v4064_v44 = vsel %vm558_vm2, %v3800_v18, 0 }
 0xa44   : > { %5585 = vmatpush3.bf16.xpose.msra.mxu0 %v4064_v44  ;;  %5592 = vmatprep.mubr.msk.bf16.mxu1 %vm5810_vm1, %v5809_v28 }
 0xa45   : > { %5586 = vmatprep.mubr.msk.bf16.mxu0 %vm5810_vm1, %v5809_v28  ;;  %5596 = vmatprep.subr.bf16.mxu0 %v5809_v28 }
 0xa46   : > { %5602 = vmatprep.subr.bf16.mxu1 %v5809_v28 }
 0xa4a   : > { %5593 = vmatmul.mubr.msk.bf16.vlgmr.msra.gmra.mrb[172].mxu1 %vm558_vm2, %v3793_v49 }
 0xa4b   : > { %5587 = vmatmul.mubr.msk.bf16.vlgmr.msra.gmra.mrb[172].mxu0 %vm558_vm2, %v3793_v49  ;;  %5604 = vmatprep.mubr.msk.bf16.mxu1 %vm5810_vm1, %v5809_v28 }
 0xa4c   : > { %5598 = vmatprep.mubr.msk.bf16.mxu0 %vm5810_vm1, %v5809_v28 }
 0xab4   : > { %v6792_v23 = vpop.f32.mrb[128].mxu1 }
 0xab5   : > { %v5470_v8 = vpop.f32.mrb[129].mxu1 }
 0xab6   : > { %v3245_v24 = vpop.f32.mrb[130].mxu1 }
 0xab7   : > { %v5471_v45 = vpop.f32.mrb[131].mxu1 }
 0xabc   : > { %v6794_v60 = vpop.f32.mrb[132].mxu1 }
 0xabd   : > { %v5482_v27 = vpop.f32.mrb[133].mxu1 }
 0xabe   : > { %v3331_v10 = vpop.f32.mrb[134].mxu1 }
 0xabf   : > { %v5483_v36 = vpop.f32.mrb[135].mxu1 }
 0xac4   : > { %v6796_v63 = vpop.f32.mrb[136].mxu1 }
 0xac5   : > { %v5494_v34 = vpop.f32.mrb[137].mxu1 }
 0xac6   : > { %v3417_v21 = vpop.f32.mrb[138].mxu1 }
 0xac7   : > { %v5495_v2 = vpop.f32.mrb[139].mxu1 }
 0xacc   : > { %v6798_v26 = vpop.f32.mrb[140].mxu1 }
 0xacd   : > { %v5506_v54 = vpop.f32.mrb[141].mxu1 }
 0xace   : > { %v3503_v39 = vpop.f32.mrb[142].mxu1 }
 0xacf   : > { %v5507_v6 = vpop.f32.mrb[143].mxu1 }
 0xad4   : > { %v5534_v42 = vpop.f32.mrb[144].mxu1 }
 0xad5   : > { %v3737_v15 = vadd.f32 %v5534_v42, %v4861_v37  ;;  %v3728_v14 = vpop.f32.mrb[145].mxu1 }
 0xad6   : > { %v3729_v49 = vadd.f32 %v4861_v37, %v3728_v14  ;;  %v5535_v51 = vpop.f32.mrb[146].mxu1 }
 0xad7   : > { %v3740_v52 = vadd.f32 %v5535_v51, %v4861_v37  ;;  %v3731_v38 = vpop.f32.mrb[147].mxu1 }
 0xad8   : > { %v3732_v55 = vadd.f32 %v4861_v37, %v3731_v38 }
 0xad9   : > { %v4246_v4 = vpack.c.bf16 %v3740_v52, %v3737_v15 }
 0xada   : > { %v4245_v0 = vpack.c.bf16 %v3732_v55, %v3729_v49 }
 0xadb   : > { %5603 = vmatpush3.bf16.msra.mxu1 %v4246_v4 }
 0xadc   : > { %v5538_v29 = vpop.f32.mrb[148].mxu1  ;;  %5597 = vmatpush3.bf16.msra.mxu0 %v4245_v0  ;;  %5614 = vmatprep.subr.bf16.mxu1 %v5809_v28 }
 0xadd   : > { %v6804_v22 = vadd.f32 %v5538_v29, %v4861_v37  ;;  %v3744_v40 = vpop.f32.mrb[149].mxu1  ;;  %5608 = vmatprep.subr.bf16.mxu0 %v5809_v28 }
 0xade   : > { %v6807_v59 = vadd.f32 %v4861_v37, %v3744_v40  ;;  %v5539_v30 = vpop.f32.mrb[150].mxu1 }
 0xadf   : > { %v6809_v25 = vadd.f32 %v5539_v30, %v4861_v37  ;;  %v3747_v31 = vpop.f32.mrb[151].mxu1 }
 0xae0   : > { %v6811_v20 = vadd.f32 %v4861_v37, %v3747_v31 }
 0xae1   : > { %v4248_v1 = vpack.c.bf16 %v6809_v25, %v6804_v22 }
 0xae2   : > { %v4247_v53 = vpack.c.bf16 %v6811_v20, %v6807_v59 }
 0xae4   : > { %v5542_v3 = vpop.f32.mrb[152].mxu1 }
 0xae5   : > { %v6817_v35 = vadd.f32 %v5542_v3, %v4861_v37  ;;  %v3760_v16 = vpop.f32.mrb[153].mxu1 }
 0xae6   : > { %v6819_v50 = vadd.f32 %v4861_v37, %v3760_v16  ;;  %v5543_v13 = vpop.f32.mrb[154].mxu1 }
 0xae7   : > { %v6821_v7 = vadd.f32 %v5543_v13, %v4861_v37  ;;  %v3763_v48 = vpop.f32.mrb[155].mxu1 }
 0xae8   : > { %v6823_v57 = vadd.f32 %v4861_v37, %v3763_v48 }
 0xae9   : > { %v4250_v12 = vpack.c.bf16 %v6821_v7, %v6817_v35 }
 0xaea   : > { %v4249_v9 = vpack.c.bf16 %v6823_v57, %v6819_v50 }
 0xaec   : > { %v5546_v46 = vpop.f32.mrb[156].mxu1 }
 0xaed   : > { %v6829_v18 = vadd.f32 %v5546_v46, %v4861_v37  ;;  %v3776_v19 = vpop.f32.mrb[157].mxu1 }
 0xaee   : > { %v6831_v44 = vadd.f32 %v4861_v37, %v3776_v19  ;;  %v5547_v8 = vpop.f32.mrb[158].mxu1 }
 0xaef   : > { %v6833_v24 = vadd.f32 %v5547_v8, %v4861_v37  ;;  %v3779_v45 = vpop.f32.mrb[159].mxu1 }
 0xaf0   : > { %v6835_v27 = vadd.f32 %v4861_v37, %v3779_v45 }
 0xaf1   : > { %v4252_v10 = vpack.c.bf16 %v6833_v24, %v6829_v18 }
 0xaf2   : > { %v4251_v36 = vpack.c.bf16 %v6835_v27, %v6831_v44 }
 0xb05   : > { %v3885_v34 = vpop.f32.mrb[160].mxu1 }
 0xb06   : > { %v3842_v21 = vpop.f32.mrb[160].mxu0  ;;  %v4152_v2 = vsel %vm906_vm3, %v3885_v34, -inf  ;;  %v5558_v54 = vpop.f32.mrb[161].mxu1 }
 0xb07   : > { %4153 = vmax.xlane.f32.xlu1 %v4152_v2  ;;  %v4149_v39 = vsel %vm906_vm3, %v3842_v21, -inf  ;;  %v5552_v6 = vpop.f32.mrb[161].mxu0  ;;  %v3888_v42 = vpop.f32.mrb[162].mxu1 }
 0xb08   : > { %4150 = vmax.xlane.f32.xlu0 %v4149_v39  ;;  %v3845_v15 = vpop.f32.mrb[162].mxu0  ;;  %v5559_v37 = vpop.f32.mrb[163].mxu1 }
 0xb09   : > { %v5553_v14 = vpop.f32.mrb[163].mxu0 }
 0xb0d   : > { %v3971_v49 = vpop.f32.mrb[164].mxu1 }
 0xb0e   : > { %v3928_v51 = vpop.f32.mrb[164].mxu0  ;;  %v4158_v52 = vsel %vm906_vm3, %v3971_v49, -inf  ;;  %v5570_v38 = vpop.f32.mrb[165].mxu1 }
 0xb0f   : > { %4159 = vmax.xlane.f32.xlu1 %v4158_v52  ;;  %v4155_v55 = vsel %vm906_vm3, %v3928_v51, -inf  ;;  %v5564_v4 = vpop.f32.mrb[165].mxu0  ;;  %v3974_v0 = vpop.f32.mrb[166].mxu1 }
 0xb10   : > { %4156 = vmax.xlane.f32.xlu0 %v4155_v55  ;;  %v3931_v29 = vpop.f32.mrb[166].mxu0  ;;  %v5571_v40 = vpop.f32.mrb[167].mxu1 }
 0xb11   : > { %v5565_v30 = vpop.f32.mrb[167].mxu0 }
 0xb15   : > { %v4057_v31 = vpop.f32.mrb[168].mxu1 }
 0xb16   : > { %v4014_v3 = vpop.f32.mrb[168].mxu0  ;;  %v4164_v16 = vsel %vm906_vm3, %v4057_v31, -inf  ;;  %v5582_v13 = vpop.f32.mrb[169].mxu1 }
 0xb17   : > { %4165 = vmax.xlane.f32.xlu1 %v4164_v16  ;;  %v4161_v48 = vsel %vm906_vm3, %v4014_v3, -inf  ;;  %v5576_v46 = vpop.f32.mrb[169].mxu0  ;;  %v4060_v19 = vpop.f32.mrb[170].mxu1 }
 0xb18   : > { %4162 = vmax.xlane.f32.xlu0 %v4161_v48  ;;  %v4017_v8 = vpop.f32.mrb[170].mxu0  ;;  %v5583_v45 = vpop.f32.mrb[171].mxu1 }
 0xb19   : > { %v5577_v2 = vpop.f32.mrb[171].mxu0 }
 0xb1d   : > { %v4143_v54 = vpop.f32.mrb[172].mxu1 }
 0xb1e   : > { %v4100_v39 = vpop.f32.mrb[172].mxu0  ;;  %v4170_v6 = vsel %vm906_vm3, %v4143_v54, -inf  ;;  %v5594_v42 = vpop.f32.mrb[173].mxu1 }
 0xb1f   : > { %4171 = vmax.xlane.f32.xlu1 %v4170_v6  ;;  %v4167_v15 = vsel %vm906_vm3, %v4100_v39, -inf  ;;  %v5588_v37 = vpop.f32.mrb[173].mxu0  ;;  %v4146_v14 = vpop.f32.mrb[174].mxu1 }
 0xb20   : > { %4168 = vmax.xlane.f32.xlu0 %v4167_v15  ;;  %v4103_v52 = vpop.f32.mrb[174].mxu0  ;;  %v5595_v38 = vpop.f32.mrb[175].mxu1 }
 0xb21   : > { %v5589_v55 = vpop.f32.mrb[175].mxu0 }
 0xb94   : > { %v4154_v4 = vpop.xlane.xlu1 %4153 }
 0xb95   : > { %v4174_v0 = vsub.f32 %v3885_v34, %v4154_v4  ;;  %v4151_v29 = vpop.xlane.xlu0 %4150 }
 0xb96   : > { %v4173_v40 = vsub.f32 %v3842_v21, %v4151_v29 }
 0xb97   : > { %v4183_v30 = vmul.f32 1.442695, %v4174_v0 }
 0xb98   : > { %v4181_v16 = vmul.f32 1.442695, %v4173_v40 }
 0xb99   : > { %5769 = vpow2.f32 %v4183_v30 }
 0xb9a   : > { %5771 = vpow2.f32 %v4181_v16 }
 0xb9c   : > { %v4160_v13 = vpop.xlane.xlu1 %4159 }
 0xb9d   : > { %v4176_v48 = vsub.f32 %v3971_v49, %v4160_v13  ;;  %v4157_v46 = vpop.xlane.xlu0 %4156 }
 0xb9e   : > { %v4175_v19 = vsub.f32 %v3928_v51, %v4157_v46 }
 0xb9f   : > { %v4187_v8 = vmul.f32 1.442695, %v4176_v48 }
 0xba0   : > { %v4185_v45 = vmul.f32 1.442695, %v4175_v19 }
 0xba1   : > { %5773 = vpow2.f32 %v4187_v8 }
 0xba2   : > { %5775 = vpow2.f32 %v4185_v45 }
 0xba3   : > { %v6849_v2 = vpop.eup %5769 }
 0xba4   : > { %v6851_v6 = vpop.eup %5771  ;;  %v4166_v42 = vpop.xlane.xlu1 %4165  ;;  %v4200_v34 = vsel %vm906_vm3, %v6849_v2, 0.0 }
 0xba5   : > { %v4178_v21 = vsub.f32 %v4057_v31, %v4166_v42  ;;  %4201 = vadd.xlane.f32.xlu1 %v4200_v34  ;;  %v4163_v15 = vpop.xlane.xlu0 %4162  ;;  %v4197_v49 = vsel %vm906_vm3, %v6851_v6, 0.0 }
 0xba6   : > { %v4177_v37 = vsub.f32 %v4014_v3, %v4163_v15  ;;  %4198 = vadd.xlane.f32.xlu0 %v4197_v49 }
 0xba7   : > { %v4191_v51 = vmul.f32 1.442695, %v4178_v21 }
 0xba8   : > { %v4189_v14 = vmul.f32 1.442695, %v4177_v37 }
 0xba9   : > { %5777 = vpow2.f32 %v4191_v51 }
 0xbaa   : > { %5779 = vpow2.f32 %v4189_v14 }
 0xbab   : > { %v6857_v52 = vpop.eup %5773 }
 0xbac   : > { %v6859_v38 = vpop.eup %5775  ;;  %v4172_v55 = vpop.xlane.xlu1 %4171  ;;  %v4206_v4 = vsel %vm906_vm3, %v6857_v52, 0.0 }
 0xbad   : > { %v4180_v31 = vsub.f32 %v4143_v54, %v4172_v55  ;;  %4207 = vadd.xlane.f32.xlu1 %v4206_v4  ;;  %v4169_v0 = vpop.xlane.xlu0 %4168  ;;  %v4203_v29 = vsel %vm906_vm3, %v6859_v38, 0.0 }
 0xbae   : > { %v4179_v3 = vsub.f32 %v4100_v39, %v4169_v0  ;;  %4204 = vadd.xlane.f32.xlu0 %v4203_v29 }
 0xbaf   : > { %v4195_v40 = vmul.f32 1.442695, %v4180_v31 }
 0xbb0   : > { %v4193_v30 = vmul.f32 1.442695, %v4179_v3 }
 0xbb1   : > { %5781 = vpow2.f32 %v4195_v40 }
 0xbb2   : > { %5783 = vpow2.f32 %v4193_v30 }
 0xbb3   : > { %v6865_v16 = vpop.eup %5777 }
 0xbb4   : > { %v6867_v13 = vpop.eup %5779  ;;  %v4212_v48 = vsel %vm906_vm3, %v6865_v16, 0.0 }
 0xbb5   : > { %4213 = vadd.xlane.f32.xlu1 %v4212_v48  ;;  %v4209_v54 = vsel %vm906_vm3, %v6867_v13, 0.0 }
 0xbb6   : > { %4210 = vadd.xlane.f32.xlu0 %v4209_v54 }
 0xbbb   : > { %v6873_v46 = vpop.eup %5781 }
 0xbbc   : > { %v6875_v39 = vpop.eup %5783  ;;  %v4218_v19 = vsel %vm906_vm3, %v6873_v46, 0.0 }
 0xbbd   : > { %4219 = vadd.xlane.f32.xlu1 %v4218_v19  ;;  %v4215_v8 = vsel %vm906_vm3, %v6875_v39, 0.0 }
 0xbbe   : > { %4216 = vadd.xlane.f32.xlu0 %v4215_v8 }
 0xbce   : > { %2425 = vrot.lane.b32.xlu1 %v6531_v47, %s5811_s19 }
 0xbd2   : > { %2427 = vrot.lane.b32.xlu1 %v6451_v56, %s5811_s19 }
 0xbd4   : > { %2423 = vrot.lane.b32.xlu0 %v6445_v43, %s5811_s19 }
 0xbd6   : > { %2429 = vrot.lane.b32.xlu1 %v6533_v41, %s5811_s19 }
 0xbd8   : > { %2431 = vrot.lane.b32.xlu0 %v6457_v5, %s5811_s19 }
 0xbda   : > { %2433 = vrot.lane.b32.xlu1 %v6535_v33, %s5811_s19 }
 0xbdc   : > { %2435 = vrot.lane.b32.xlu0 %v6465_v32, %s5811_s19 }
 0xbde   : > { %2437 = vrot.lane.b32.xlu1 %v6537_v58, %s5811_s19 }
 0xbe0   : > { %3514 = vrot.lane.b32.xlu0 %v6706_v62, %s5812_s20 }
 0xbe2   : > { %3516 = vrot.lane.b32.xlu1 %v6792_v23, %s5812_s20 }
 0xbe4   : > { %3518 = vrot.lane.b32.xlu0 %v6712_v61, %s5812_s20 }
 0xbe6   : > { %3520 = vrot.lane.b32.xlu1 %v6794_v60, %s5812_s20 }
 0xbe8   : > { %3522 = vrot.lane.b32.xlu0 %v6718_v11, %s5812_s20 }
 0xbea   : > { %3524 = vrot.lane.b32.xlu1 %v6796_v63, %s5812_s20 }
 0xbec   : > { %3526 = vrot.lane.b32.xlu0 %v6726_v17, %s5812_s20 }
 0xbee   : > { %3528 = vrot.lane.b32.xlu1 %v6798_v26, %s5812_s20 }
 0xc32   : > { %v4202_v43 = vpop.xlane.xlu1 %4201 }
 0xc33   : > { %5785 = vrcp.f32 %v4202_v43  ;;  %v4199_v56 = vpop.xlane.xlu0 %4198 }
 0xc34   : > { %5787 = vrcp.f32 %v4199_v56 }
 0xc3a   : > { %v4208_v5 = vpop.xlane.xlu1 %4207 }
 0xc3b   : > { %5789 = vrcp.f32 %v4208_v5  ;;  %v4205_v32 = vpop.xlane.xlu0 %4204 }
 0xc3c   : > { %5791 = vrcp.f32 %v4205_v32 }
 0xc3d   : > { %v5786_v47 = vpop.eup %5785 }
 0xc3e   : > { %v5788_v41 = vpop.eup %5787  ;;  %v4230_v33 = vmul.f32 %v5786_v47, %v6849_v2 }
 0xc3f   : > { %v4229_v58 = vmul.f32 %v5788_v41, %v6851_v6 }
 0xc40   : > { %v4238_v62 = vpack.c.bf16 %v4230_v33, %v4230_v33 }
 0xc41   : > { %v4237_v61 = vpack.c.bf16 %v4229_v58, %v4229_v58 }
 0xc42   : > { %5605 = vmatmul.mubr.msk.bf16.vlgmr.msra.gmra.mrb[176].mxu1 %vm1011_vm4, %v4238_v62  ;;  %v4214_v11 = vpop.xlane.xlu1 %4213 }
 0xc43   : > { %5615 = vmatpush3.bf16.msra.mxu1 %v4248_v1  ;;  %5793 = vrcp.f32 %v4214_v11  ;;  %5599 = vmatmul.mubr.msk.bf16.vlgmr.msra.gmra.mrb[176].mxu0 %vm1011_vm4, %v4237_v61  ;;  %v4211_v17 = vpop.xlane.xlu0 %4210 }
 0xc44   : > { %5609 = vmatpush3.bf16.msra.mxu0 %v4247_v53  ;;  %5795 = vrcp.f32 %v4211_v17  ;;  %5616 = vmatprep.mubr.msk.bf16.mxu1 %vm5810_vm1, %v5809_v28 }
 0xc45   : > { %v5790_v23 = vpop.eup %5789  ;;  %5626 = vmatprep.subr.bf16.mxu1 %v5809_v28  ;;  %5610 = vmatprep.mubr.msk.bf16.mxu0 %vm5810_vm1, %v5809_v28 }
 0xc46   : > { %v5792_v60 = vpop.eup %5791  ;;  %v4232_v63 = vmul.f32 %v5790_v23, %v6857_v52  ;;  %5620 = vmatprep.subr.bf16.mxu0 %v5809_v28 }
 0xc47   : > { %v4231_v26 = vmul.f32 %v5792_v60, %v6859_v38 }
 0xc48   : > { %v4240_v22 = vpack.c.bf16 %v4232_v63, %v4232_v63 }
 0xc49   : > { %v4239_v59 = vpack.c.bf16 %v4231_v26, %v4231_v26 }
 0xc4a   : > { %5617 = vmatmul.mubr.msk.bf16.vlgmr.msra.gmra.mrb[180].mxu1 %vm1011_vm4, %v4240_v22  ;;  %v4220_v25 = vpop.xlane.xlu1 %4219 }
 0xc4b   : > { %5627 = vmatpush3.bf16.msra.mxu1 %v4250_v12  ;;  %5797 = vrcp.f32 %v4220_v25  ;;  %5611 = vmatmul.mubr.msk.bf16.vlgmr.msra.gmra.mrb[180].mxu0 %vm1011_vm4, %v4239_v59  ;;  %v4217_v20 = vpop.xlane.xlu0 %4216 }
 0xc4c   : > { %5621 = vmatpush3.bf16.msra.mxu0 %v4249_v9  ;;  %5799 = vrcp.f32 %v4217_v20  ;;  %5628 = vmatprep.mubr.msk.bf16.mxu1 %vm5810_vm1, %v5809_v28 }
 0xc4d   : > { %v5794_v1 = vpop.eup %5793  ;;  %5638 = vmatprep.subr.bf16.mxu1 %v5809_v28  ;;  %5622 = vmatprep.mubr.msk.bf16.mxu0 %vm5810_vm1, %v5809_v28 }
 0xc4e   : > { %v5796_v53 = vpop.eup %5795  ;;  %v4234_v35 = vmul.f32 %v5794_v1, %v6865_v16  ;;  %v2426_v7 = vpop.permute.xlu1 %2425  ;;  %5632 = vmatprep.subr.bf16.mxu0 %v5809_v28 }
 0xc4f   : > { %v4233_v50 = vmul.f32 %v5796_v53, %v6867_v13  ;;  %2449 = vst.msk [vmem:[%s6180_s7 + $0x4] sm:$0xf] %vm2447_vm6, %v2426_v7  ;;  %v2424_v57 = vpop.permute.xlu0 %2423 }
 0xc50   : > { %2448 = vst.msk [vmem:[%s6180_s7] sm:$0xf] %vm2447_vm6, %v2424_v57  ;;  %v4242_v12 = vpack.c.bf16 %v4234_v35, %v4234_v35 }
 0xc51   : > { %v4241_v9 = vpack.c.bf16 %v4233_v50, %v4233_v50 }
 0xc52   : > { %5629 = vmatmul.mubr.msk.bf16.vlgmr.msra.gmra.mrb[184].mxu1 %vm1011_vm4, %v4242_v12  ;;  %v2428_v45 = vpop.permute.xlu1 %2427 }
 0xc53   : > { %5639 = vmatpush3.bf16.msra.mxu1 %v4252_v10  ;;  %2450 = vst.msk [vmem:[%s6180_s7 + $0x8] sm:$0xf] %vm2447_vm6, %v2428_v45  ;;  %5623 = vmatmul.mubr.msk.bf16.vlgmr.msra.gmra.mrb[184].mxu0 %vm1011_vm4, %v4241_v9  ;;  %v2432_v2 = vpop.permute.xlu0 %2431 }
 0xc54   : > { %5633 = vmatpush3.bf16.msra.mxu0 %v4251_v36  ;;  %2452 = vst.msk [vmem:[%s6180_s7 + $0x10] sm:$0xf] %vm2447_vm6, %v2432_v2  ;;  %5640 = vmatprep.mubr.msk.bf16.mxu1 %vm5810_vm1, %v5809_v28 }
 0xc55   : > { %v5798_v6 = vpop.eup %5797  ;;  %5634 = vmatprep.mubr.msk.bf16.mxu0 %vm5810_vm1, %v5809_v28 }
 0xc56   : > { %v5800_v18 = vpop.eup %5799  ;;  %v4236_v24 = vmul.f32 %v5798_v6, %v6873_v46  ;;  %v2430_v10 = vpop.permute.xlu1 %2429 }
 0xc57   : > { %v4235_v42 = vmul.f32 %v5800_v18, %v6875_v39  ;;  %2451 = vst.msk [vmem:[%s6180_s7 + $0xc] sm:$0xf] %vm2447_vm6, %v2430_v10  ;;  %v2436_v44 = vpop.permute.xlu0 %2435 }
 0xc58   : > { %2454 = vst.msk [vmem:[%s6180_s7 + $0x18] sm:$0xf] %vm2447_vm6, %v2436_v44  ;;  %v4244_v27 = vpack.c.bf16 %v4236_v24, %v4236_v24 }
 0xc59   : > { %v4243_v36 = vpack.c.bf16 %v4235_v42, %v4235_v42 }
 0xc5a   : > { %5641 = vmatmul.mubr.msk.bf16.vlgmr.msra.gmra.mrb[188].mxu1 %vm1011_vm4, %v4244_v27  ;;  %v2434_v28 = vpop.permute.xlu1 %2433 }
 0xc5b   : > { %2453 = vst.msk [vmem:[%s6180_s7 + $0x14] sm:$0xf] %vm2447_vm6, %v2434_v28  ;;  %5635 = vmatmul.mubr.msk.bf16.vlgmr.msra.gmra.mrb[188].mxu0 %vm1011_vm4, %v4243_v36  ;;  %v3515_v34 = vpop.permute.xlu0 %3514 }
 0xc5c   : > { %3539 = vst.msk [vmem:[%s6180_s7] sm:$0xf] %vm3538_vm7, %v3515_v34 }
 0xc5e   : > { %v2438_v21 = vpop.permute.xlu1 %2437 }
 0xc5f   : > { %2455 = vst.msk [vmem:[%s6180_s7 + $0x1c] sm:$0xf] %vm2447_vm6, %v2438_v21  ;;  %v3519_v15 = vpop.permute.xlu0 %3518 }
 0xc60   : > { %3541 = vst.msk [vmem:[%s6180_s7 + $0x8] sm:$0xf] %vm3538_vm7, %v3519_v15 }
 0xc62   : > { %v3517_v49 = vpop.permute.xlu1 %3516 }
 0xc63   : > { %3540 = vst.msk [vmem:[%s6180_s7 + $0x4] sm:$0xf] %vm3538_vm7, %v3517_v49  ;;  %v3523_v37 = vpop.permute.xlu0 %3522 }
 0xc64   : > { %3543 = vst.msk [vmem:[%s6180_s7 + $0x10] sm:$0xf] %vm3538_vm7, %v3523_v37 }
 0xc66   : > { %v3521_v51 = vpop.permute.xlu1 %3520 }
 0xc67   : > { %3542 = vst.msk [vmem:[%s6180_s7 + $0xc] sm:$0xf] %vm3538_vm7, %v3521_v51  ;;  %v3527_v14 = vpop.permute.xlu0 %3526 }
 0xc68   : > { %3545 = vst.msk [vmem:[%s6180_s7 + $0x18] sm:$0xf] %vm3538_vm7, %v3527_v14 }
 0xc6a   : > { %v3525_v52 = vpop.permute.xlu1 %3524 }
 0xc6b   : > { %3544 = vst.msk [vmem:[%s6180_s7 + $0x14] sm:$0xf] %vm3538_vm7, %v3525_v52 }
 0xc6e   : > { %v3529_v38 = vpop.permute.xlu1 %3528 }
 0xc6f   : > { %3546 = vst.msk [vmem:[%s6180_s7 + $0x1c] sm:$0xf] %vm3538_vm7, %v3529_v38 }
 0xd15   : > { %v4333_v55 = vpop.f32.mrb[176].mxu1 }
 0xd16   : > { %4607 = vrot.lane.b32.xlu1 %v4333_v55, %s5813_s22  ;;  %v4290_v4 = vpop.f32.mrb[176].mxu0  ;;  %v5606_v31 = vpop.f32.mrb[177].mxu1 }
 0xd17   : > { %v4336_v0 = vpop.f32.mrb[178].mxu1  ;;  %4605 = vrot.lane.b32.xlu0 %v4290_v4, %s5813_s22  ;;  %v5600_v29 = vpop.f32.mrb[177].mxu0 }
 0xd18   : > { %v4293_v3 = vpop.f32.mrb[178].mxu0  ;;  %v5607_v40 = vpop.f32.mrb[179].mxu1 }
 0xd19   : > { %v5601_v30 = vpop.f32.mrb[179].mxu0 }
 0xd1d   : > { %v4419_v16 = vpop.f32.mrb[180].mxu1 }
 0xd1e   : > { %4611 = vrot.lane.b32.xlu1 %v4419_v16, %s5813_s22  ;;  %v4376_v13 = vpop.f32.mrb[180].mxu0  ;;  %v5618_v48 = vpop.f32.mrb[181].mxu1 }
 0xd1f   : > { %v4422_v54 = vpop.f32.mrb[182].mxu1  ;;  %4609 = vrot.lane.b32.xlu0 %v4376_v13, %s5813_s22  ;;  %v5612_v46 = vpop.f32.mrb[181].mxu0 }
 0xd20   : > { %v4379_v39 = vpop.f32.mrb[182].mxu0  ;;  %v5619_v19 = vpop.f32.mrb[183].mxu1 }
 0xd21   : > { %v5613_v8 = vpop.f32.mrb[183].mxu0 }
 0xd25   : > { %v4505_v43 = vpop.f32.mrb[184].mxu1 }
 0xd26   : > { %4615 = vrot.lane.b32.xlu1 %v4505_v43, %s5813_s22  ;;  %v4462_v56 = vpop.f32.mrb[184].mxu0  ;;  %v5630_v5 = vpop.f32.mrb[185].mxu1 }
 0xd27   : > { %v4508_v32 = vpop.f32.mrb[186].mxu1  ;;  %4613 = vrot.lane.b32.xlu0 %v4462_v56, %s5813_s22  ;;  %v5624_v47 = vpop.f32.mrb[185].mxu0 }
 0xd28   : > { %v4465_v41 = vpop.f32.mrb[186].mxu0  ;;  %v5631_v33 = vpop.f32.mrb[187].mxu1 }
 0xd29   : > { %v5625_v58 = vpop.f32.mrb[187].mxu0 }
 0xd2d   : > { %v4591_v62 = vpop.f32.mrb[188].mxu1 }
 0xd2e   : > { %4619 = vrot.lane.b32.xlu1 %v4591_v62, %s5813_s22  ;;  %v4548_v61 = vpop.f32.mrb[188].mxu0  ;;  %v5642_v11 = vpop.f32.mrb[189].mxu1 }
 0xd2f   : > { %v4594_v17 = vpop.f32.mrb[190].mxu1  ;;  %4617 = vrot.lane.b32.xlu0 %v4548_v61, %s5813_s22  ;;  %v5636_v23 = vpop.f32.mrb[189].mxu0 }
 0xd30   : > { %v4551_v60 = vpop.f32.mrb[190].mxu0  ;;  %v5643_v63 = vpop.f32.mrb[191].mxu1 }
 0xd31   : > { %v5637_v26 = vpop.f32.mrb[191].mxu0 }
 0xd88   : > { %v4608_v22 = vpop.permute.xlu1 %4607 }
 0xd89   : > { %4631 = vst.msk [vmem:[%s6180_s7 + $0x4] sm:$0xf] %vm4629_vm8, %v4608_v22  ;;  %v4606_v59 = vpop.permute.xlu0 %4605 }
 0xd8a   : > { %4630 = vst.msk [vmem:[%s6180_s7] sm:$0xf] %vm4629_vm8, %v4606_v59 }
 0xd90   : > { %v4612_v25 = vpop.permute.xlu1 %4611 }
 0xd91   : > { %4633 = vst.msk [vmem:[%s6180_s7 + $0xc] sm:$0xf] %vm4629_vm8, %v4612_v25  ;;  %v4610_v20 = vpop.permute.xlu0 %4609 }
 0xd92   : > { %4632 = vst.msk [vmem:[%s6180_s7 + $0x8] sm:$0xf] %vm4629_vm8, %v4610_v20 }
 0xd98   : > { %v4616_v1 = vpop.permute.xlu1 %4615 }
 0xd99   : > { %4635 = vst.msk [vmem:[%s6180_s7 + $0x14] sm:$0xf] %vm4629_vm8, %v4616_v1  ;;  %v4614_v53 = vpop.permute.xlu0 %4613 }
 0xd9a   : > { %4634 = vst.msk [vmem:[%s6180_s7 + $0x10] sm:$0xf] %vm4629_vm8, %v4614_v53 }
 0xda0   : > { %v4620_v35 = vpop.permute.xlu1 %4619 }
 0xda1   : > { %4637 = vst.msk [vmem:[%s6180_s7 + $0x1c] sm:$0xf] %vm4629_vm8, %v4620_v35  ;;  %v4618_v7 = vpop.permute.xlu0 %4617 }
 0xda2   : > { %4636 = vst.msk [vmem:[%s6180_s7 + $0x18] sm:$0xf] %vm4629_vm8, %v4618_v7 }
 0xda3 PF: > { %s16_s21 = sadd.s32 1, %s5807_s21  }
 0xda4   : > { %p13_p4 = scmp.ge.s32.totalorder %s16_s21, 6  }
 0xda6   :  { %15 = sbr.rel (!%p13_p4) target bundleno = 1 (0x1), region = 89 }

// kernel: _lambda_.9
= control target key start
LH: loop header
LB: loop body
LE: loop exit
PB: predicated region body
PF: predicated region fallthrough
CT: control target
= control target key end

     0   :  { %9 = vsyncpa [#allocation3], 0  ;;  %s4865_s0 = inlined_call_operand.vmem [shape: f32[2,18,18,32], index: 0, kind: input, shape index: {}]   ;;  %s4866_s1 = inlined_call_operand.vmem [shape: bf16[9,32,32], index: 1, kind: input, shape index: {}]   ;;  %s4867_s2 = inlined_call_operand.vmem [shape: f32[1,32], index: 2, kind: input, shape index: {}]   ;;  %s4868_s3 = inlined_call_operand.vmem [shape: f32[2,256,32], index: 3, kind: input, shape index: {}]   ;;  %s4869_s4 = inlined_call_operand.hbm [shape: f32[2,256,32], index: 4, kind: output, shape index: {}]  }
   0x1   :  { %11 = vsyncpa [#allocation3 + $0x1], 0  ;;  %s3916_s15 = smov 0   ;;  %s3918_s16 = smov 0  }
   0x2   :  { %s3920_s17 = smov 0   ;;  %s3922_s18 = smov 0  }
   0x3 LB: > { %s3937_s19 = sadd.s32 4294967295, %s3886_s18   ;;  %s2808_s20 = sadd.s32 4294967294, %s3886_s18   ;;  %s3886_s18 = sphi %s3922_s18, %s4879_s18   ;;  %s3882_s17 = sphi %s3920_s17, %s4878_s17   ;;  %s3878_s16 = sphi %s3918_s16, %s4877_s16   ;;  %s3874_s15 = sphi %s3916_s15, %s4876_s15  }
   0x4   : > { %s3941_s21 = sadd.s32 1, %s3886_s18   ;;  %s118_s22 = sadd.s32 1, %s3882_s17 }
   0x5   : > { %s115_s23 = ssub.s32 %s3886_s18, %s3941_s21  ;;  %p128_p0 = scmp.ne.s32.totalorder %s3882_s17, %s3878_s16 }
   0x6   : > { %p116_p1 = scmp.eq.s32.totalorder %s115_s23, 0  ;;  %p129_p2 = scmp.eq.s32.totalorder %s3937_s19, 1 }
   0x7   : > { %p134_p3 = scmp.ne.s32.totalorder %s3878_s16, %s3874_s15  ;;  %p135_p4 = scmp.eq.s32.totalorder %s2808_s20, 1 }
   0x8   : > { %s3952_s24 = scalar_select %p116_p1, %s3882_s17, %s118_s22  }
   0x9   : > { %p3954_p5 = por %p129_p2, %p128_p0  ;;  %p3958_p6 = por %p135_p4, %p134_p3 }
   0xa   : > { %p2811_p7 = scmp.ge.s32.totalorder %s3886_s18, 1  ;;  %p175_p8 = scmp.lt.s32.totalorder %s3886_s18, 3 }
   0xc   : > { %p176_p9 = pnand %p2811_p7, %p175_p8 }
   0xe   : > { %179 = sbr.rel (%p176_p9) target bundleno = 556 (0x22c), region = 36 }
  0x15   : > { %v3806_v0 = vld [vmem:[%s4866_s1 + $0x10] sm:$0xff]   ;;  %p206_p10 = scmp.lt.s32.totalorder %s3937_s19, 1  ;;  %v3971_v1 = vld [vmem:[%s4866_s1 + $0x40] sm:$0xff]   ;;  %v3808_v2 = vld [vmem:[%s4866_s1 + $0x18] sm:$0xff]   ;;  %vm521_vm0 = vcmask 261120   ;;  %vm968_vm2 = vcmask 1046528  }
  0x16   : > { %3180 = vmatprep.subr.bf16.mxu1 %v3806_v0  ;;  %3324 = vmatprep.subr.bf16.mxu0 %v3971_v1  ;;  %v3983_v3 = vld [vmem:[%s4866_s1 + $0x48] sm:$0xff]   ;;  %v3990_v4 = vld [vmem:[%s4866_s1] sm:$0xff]   ;;  %v4001_v5 = vld [vmem:[%s4866_s1 + $0x50] sm:$0xff]   ;;  %vm311_vm1 = vsmask.f32 7424  ;;  %s203_s11 = sand.u32 1, %s3878_s16  }
  0x17   : > { %s3977_s7 = scalar_select %p206_p10, %s3937_s19, 1  ;;  %3181 = vmatpush3.bf16.msra.mxu1 %v3806_v0  ;;  %4874 = vst [vmem:[#allocation5_spill] sm:$0xff] %v3983_v3  ;;  %3325 = vmatpush3.bf16.msra.mxu0 %v3971_v1  ;;  %v3812_v55 = vld [vmem:[%s4866_s1 + $0x58] sm:$0xff]  }
  0x18   : > { %3182 = vmatprep.subr.bf16.mxu1 %v3808_v2  ;;  %3326 = vmatprep.subr.bf16.mxu0 %v3983_v3  ;;  %s2812_s27 = sshll.u32 %s203_s11, 8  ;;  %s3017_s28 = sshll.u32 %s3937_s19, 12 }
  0x19   : > { %s3764_s10 = smul.u32 432, %s3977_s7  ;;  %s4812_s6 = scalar_lea.hbm %s4869_s4, %s3017_s28 }
  0x1a   : > { %s4824_s19 = scalar_lea.sflag [#allocation3], %s203_s11  ;;  %s3888_s9 = smov [#allocation2]  }
  0x1b   : > { %s3996_s20 = scalar_lea.vmem %s4865_s0, %s3764_s10  ;;  %3183 = vmatpush3.bf16.msra.mxu1 %v3808_v2  ;;  %3327 = vmatpush3.bf16.msra.mxu0 %v3983_v3  ;;  %s3828_s10 = sshll.u32 %s3888_s9, 4  ;;  %s3829_s10 = int_to_ptr.vmem [resolvable:$false] %s3828_s10 }
  0x1c   : > { %v217_v6 = vld [vmem:[%s3996_s20] sm:$0xff]  ;;  %v218_v7 = vld [vmem:[%s3996_s20 + $0x8] sm:$0xff]  ;;  %v219_v8 = vld [vmem:[%s3996_s20 + $0x10] sm:$0x3]  ;;  %3216 = vmatprep.subr.bf16.mxu1 %v3990_v4  ;;  %3360 = vmatprep.subr.bf16.mxu0 %v4001_v5 }
  0x1d   : > { %v4007_v9 = vpack.c.bf16 %v218_v7, %v217_v6  ;;  %v4009_v10 = vpack.c.bf16 %v219_v8, %v219_v8  ;;  %v220_v11 = vld [vmem:[%s3996_s20 + $0x18] sm:$0xff]  ;;  %v221_v12 = vld [vmem:[%s3996_s20 + $0x20] sm:$0xff]  ;;  %v222_v13 = vld [vmem:[%s3996_s20 + $0x28] sm:$0x3] }
  0x1e   : > { %v4015_v14 = vpack.c.bf16 %v221_v12, %v220_v11  ;;  %v4017_v15 = vpack.c.bf16 %v222_v13, %v222_v13  ;;  %v223_v16 = vld [vmem:[%s3996_s20 + $0x30] sm:$0xff]  ;;  %v224_v17 = vld [vmem:[%s3996_s20 + $0x38] sm:$0xff]  ;;  %v225_v18 = vld [vmem:[%s3996_s20 + $0x40] sm:$0x3] }
  0x1f   : > { %v313_v19 = vshrl.u32 %v4007_v9, 16  ;;  %v315_v20 = vshll.u32 %v4007_v9, 16  ;;  %v320_v21 = vshll.u32 %v4009_v10, 16  ;;  %v4026_v22 = vpack.c.bf16 %v224_v17, %v223_v16  ;;  %v226_v23 = vld [vmem:[%s3996_s20 + $0x48] sm:$0xff]  ;;  %v227_v24 = vld [vmem:[%s3996_s20 + $0x50] sm:$0xff]  ;;  %v229_v25 = vld [vmem:[%s3996_s20 + $0x60] sm:$0xff] }
  0x20   : > { %v325_v26 = vshrl.u32 %v4015_v14, 16  ;;  %v327_v27 = vshll.u32 %v4015_v14, 16  ;;  %v332_v28 = vshll.u32 %v4017_v15, 16  ;;  %v4034_v29 = vpack.c.bf16 %v225_v18, %v225_v18  ;;  %v228_v30 = vld [vmem:[%s3996_s20 + $0x58] sm:$0x3]  ;;  %v230_v31 = vld [vmem:[%s3996_s20 + $0x68] sm:$0xff] }
  0x21   : > { %v317_v32 = vrot.slane %v315_v20, 1  ;;  %v322_v33 = vrot.slane %v320_v21, 1  ;;  %v337_v34 = vshrl.u32 %v4026_v22, 16  ;;  %v339_v35 = vshll.u32 %v4026_v22, 16  ;;  %v231_v36 = vld [vmem:[%s3996_s20 + $0x70] sm:$0x3] }
  0x22   : > { %v329_v37 = vrot.slane %v327_v27, 1  ;;  %v334_v38 = vrot.slane %v332_v28, 1  ;;  %v344_v39 = vshll.u32 %v4034_v29, 16  ;;  %v4042_v42 = vpack.c.bf16 %v227_v24, %v226_v23  ;;  %v232_v48 = vld [vmem:[%s3996_s20 + $0x78] sm:$0xff]  ;;  %v233_v49 = vld [vmem:[%s3996_s20 + $0x80] sm:$0xff]  ;;  %v235_v56 = vld [vmem:[%s3996_s20 + $0x90] sm:$0xff] }
  0x23   : > { %v318_v40 = vor.u32 %v317_v32, %v313_v19  ;;  %v341_v41 = vrot.slane %v339_v35, 1  ;;  %v4044_v43 = vpack.c.bf16 %v228_v30, %v228_v30  ;;  %v4046_v46 = vpack.c.bf16 %v230_v31, %v229_v25  ;;  %v234_v50 = vld [vmem:[%s3996_s20 + $0x88] sm:$0x3]  ;;  %v236_v57 = vld [vmem:[%s3996_s20 + $0x98] sm:$0xff]  ;;  %v237_v62 = vld [vmem:[%s3996_s20 + $0xa0] sm:$0x3] }
  0x24   : > { %v330_v44 = vor.u32 %v329_v37, %v325_v26  ;;  %v346_v45 = vrot.slane %v344_v39, 1  ;;  %v4048_v47 = vpack.c.bf16 %v231_v36, %v231_v36  ;;  %v349_v53 = vshrl.u32 %v4042_v42, 16  ;;  %v238_v63 = vld [vmem:[%s3996_s20 + $0xa8] sm:$0xff]  ;;  %v240_v8 = vld [vmem:[%s3996_s20 + $0xb8] sm:$0x3]  ;;  %v239_v17 = vld [vmem:[%s3996_s20 + $0xb0] sm:$0xff] }
  0x25   : > { %v323_v51 = vsel %vm311_vm1, %v318_v40, %v322_v33  ;;  %v342_v52 = vor.u32 %v341_v41, %v337_v34  ;;  %v351_v54 = vshll.u32 %v4042_v42, 16  ;;  %v356_v59 = vshll.u32 %v4044_v43, 16  ;;  %v3813_v18 = vld [vmem:[%s4866_s1 + $0x8] sm:$0xff]   ;;  %v241_v31 = vld [vmem:[%s3996_s20 + $0xc0] sm:$0xff] }
  0x26   : > { %3184 = vmatprep.mubr.msk.bf16.mxu1 %vm521_vm0, %v323_v51  ;;  %v335_v58 = vsel %vm311_vm1, %v330_v44, %v334_v38  ;;  %v361_v60 = vshrl.u32 %v4046_v46, 16  ;;  %v363_v61 = vshll.u32 %v4046_v46, 16  ;;  %v368_v6 = vshll.u32 %v4048_v47, 16  ;;  %v242_v32 = vld [vmem:[%s3996_s20 + $0xc8] sm:$0xff]  ;;  %v244_v51 = vld [vmem:[%s3996_s20 + $0xd8] sm:$0xff] }
  0x27   : > { %3328 = vmatprep.mubr.msk.bf16.mxu0 %vm521_vm0, %v335_v58  ;;  %3185 = vmatmul.mubr.msk.bf16.vlgmr.msra.gmra.mrb[0].mxu1 %vm521_vm0, %v335_v58  ;;  %v4071_v0 = vsel %vm311_vm1, %v342_v52, %v346_v45  ;;  %v353_v2 = vrot.slane %v351_v54, 1  ;;  %v4074_v7 = vpack.c.bf16 %v233_v49, %v232_v48  ;;  %v358_v11 = vrot.slane %v356_v59, 1  ;;  %v243_v45 = vld [vmem:[%s3996_s20 + $0xd0] sm:$0x3]  ;;  %v245_v52 = vld [vmem:[%s3996_s20 + $0xe0] sm:$0xff]  ;;  %v248_v58 = vld [vmem:[%s3996_s20 + $0xf8] sm:$0xff] }
  0x28   : > { %3217 = vmatpush3.bf16.msra.mxu1 %v3990_v4  ;;  %3329 = vmatmul.mubr.msk.bf16.vlgmr.msra.gmra.mrb[0].mxu0 %vm521_vm0, %v4071_v0  ;;  %v365_v12 = vrot.slane %v363_v61, 1  ;;  %v4080_v13 = vpack.c.bf16 %v234_v50, %v234_v50  ;;  %v4082_v16 = vpack.c.bf16 %v236_v57, %v235_v56  ;;  %v370_v19 = vrot.slane %v368_v6, 1  ;;  %v4146_v59 = vld [vmem:[%s4866_s1 + $0x20] sm:$0xff]  }
  0x29   : > { %3361 = vmatpush3.bf16.msra.mxu0 %v4001_v5  ;;  %3188 = vmatprep.mubr.msk.bf16.mxu1 %vm521_vm0, %v4071_v0  ;;  %v354_v4 = vor.u32 %v353_v2, %v349_v53  ;;  %v373_v20 = vshrl.u32 %v4074_v7, 16  ;;  %v375_v21 = vshll.u32 %v4074_v7, 16  ;;  %v4094_v25 = vpack.c.bf16 %v237_v62, %v237_v62  ;;  %v4099_v5 = vld [vmem:[%s4866_s1 + $0x60] sm:$0xff]   ;;  %v247_v53 = vld [vmem:[%s3996_s20 + $0xf0] sm:$0xff]  ;;  %v246_v62 = vld [vmem:[%s3996_s20 + $0xe8] sm:$0x3] }
  0x2a   : > { %v366_v23 = vor.u32 %v365_v12, %v361_v60  ;;  %v380_v24 = vshll.u32 %v4080_v13, 16  ;;  %3362 = vmatprep.subr.bf16.mxu0 %v3812_v55  ;;  %3218 = vmatprep.subr.bf16.mxu1 %v3813_v18  ;;  %v387_v28 = vshll.u32 %v4082_v16, 16  ;;  %v4105_v30 = vpack.c.bf16 %v239_v17, %v238_v63  ;;  %v249_v2 = vld [vmem:[%s3996_s20 + $0x100] sm:$0x3] }
  0x2b   : > { %v4102_v26 = vsel %vm311_vm1, %v354_v4, %v358_v11  ;;  %v377_v27 = vrot.slane %v375_v21, 1  ;;  %v385_v35 = vshrl.u32 %v4082_v16, 16  ;;  %v4115_v36 = vpack.c.bf16 %v240_v8, %v240_v8 }
  0x2c   : > { %3332 = vmatprep.mubr.msk.bf16.mxu0 %vm521_vm0, %v4102_v26  ;;  %v4112_v33 = vsel %vm311_vm1, %v366_v23, %v370_v19  ;;  %v382_v34 = vrot.slane %v380_v24, 1  ;;  %3219 = vmatpush3.bf16.msra.mxu1 %v3813_v18  ;;  %v389_v38 = vrot.slane %v387_v28, 1  ;;  %v392_v39 = vshll.u32 %v4094_v25, 16  ;;  %v250_v23 = vld [vmem:[%s3996_s20 + $0x108] sm:$0xff]  ;;  %v251_v24 = vld [vmem:[%s3996_s20 + $0x110] sm:$0xff] }
  0x2d   : > { %v378_v37 = vor.u32 %v377_v27, %v373_v20  ;;  %3363 = vmatpush3.bf16.msra.mxu0 %v3812_v55  ;;  %v399_v40 = vshll.u32 %v4105_v30, 16  ;;  %v397_v41 = vshrl.u32 %v4105_v30, 16  ;;  %v404_v44 = vshll.u32 %v4115_v36, 16  ;;  %3252 = vmatprep.subr.bf16.mxu1 %v4146_v59 }
  0x2e   : > { %v4122_v48 = vpack.c.bf16 %v242_v32, %v241_v31  ;;  %3396 = vmatprep.subr.bf16.mxu0 %v4099_v5  ;;  %v390_v54 = vor.u32 %v389_v38, %v385_v35  ;;  %v394_v55 = vrot.slane %v392_v39, 1  ;;  %v4139_v56 = vpack.c.bf16 %v243_v45, %v243_v45  ;;  %v253_v31 = vld [vmem:[%s3996_s20 + $0x120] sm:$0xff]  ;;  %v254_v32 = vld [vmem:[%s3996_s20 + $0x128] sm:$0xff]  ;;  %v252_v39 = vld [vmem:[%s3996_s20 + $0x118] sm:$0x3] }
  0x2f   : > { %3189 = vmatmul.mubr.msk.bf16.gmra.mrb[4].mxu1 %vm521_vm0, %v4102_v26  ;;  %v4128_v49 = vsel %vm311_vm1, %v378_v37, %v382_v34  ;;  %v401_v50 = vrot.slane %v399_v40, 1  ;;  %v406_v61 = vrot.slane %v404_v44, 1  ;;  %v4150_v63 = vpack.c.bf16 %v245_v52, %v244_v51 }
  0x30   : > { %3333 = vmatmul.mubr.msk.bf16.gmra.mrb[4].mxu0 %vm521_vm0, %v4112_v33  ;;  %3192 = vmatprep.mubr.msk.bf16.mxu1 %vm521_vm0, %v4112_v33  ;;  %v411_v57 = vshll.u32 %v4122_v48, 16  ;;  %v4153_v6 = vpack.c.bf16 %v248_v58, %v247_v53  ;;  %v4156_v8 = vsel %vm311_vm1, %v390_v54, %v394_v55  ;;  %v409_v11 = vshrl.u32 %v4122_v48, 16  ;;  %v255_v53 = vld [vmem:[%s3996_s20 + $0x130] sm:$0x3] }
  0x31   : > { %3336 = vmatprep.mubr.msk.bf16.mxu0 %vm521_vm0, %v4128_v49  ;;  %v402_v60 = vor.u32 %v401_v50, %v397_v41  ;;  %v416_v17 = vshll.u32 %v4139_v56, 16  ;;  %v4165_v4 = vpack.c.bf16 %v246_v62, %v246_v62  ;;  %v423_v19 = vshll.u32 %v4150_v63, 16 }
  0x32   : > { %v413_v12 = vrot.slane %v411_v57, 1  ;;  %v4172_v20 = vpack.c.bf16 %v249_v2, %v249_v2  ;;  %v435_v21 = vshll.u32 %v4153_v6, 16  ;;  %v972_v34 = vrot.slane %v4015_v14, 1 }
  0x33   : > { %v4161_v18 = vsel %vm311_vm1, %v402_v60, %v406_v61  ;;  %v418_v28 = vrot.slane %v416_v17, 1  ;;  %v973_v35 = vrot.slane %v4017_v15, 1  ;;  %v421_v37 = vshrl.u32 %v4150_v63, 16  ;;  %v257_v17 = vld [vmem:[%s3996_s20 + $0x140] sm:$0xff] }
  0x34   : > { %v414_v27 = vor.u32 %v413_v12, %v409_v11  ;;  %v428_v38 = vshll.u32 %v4165_v4, 16  ;;  %v4186_v40 = vpack.c.bf16 %v251_v24, %v250_v23  ;;  %v425_v41 = vrot.slane %v423_v19, 1  ;;  %v256_v12 = vld [vmem:[%s3996_s20 + $0x138] sm:$0xff]  ;;  %v259_v23 = vld [vmem:[%s3996_s20 + $0x150] sm:$0xff] }
  0x35   : > { %v433_v44 = vshrl.u32 %v4153_v6, 16  ;;  %v437_v45 = vrot.slane %v435_v21, 1  ;;  %v440_v50 = vshll.u32 %v4172_v20, 16  ;;  %v4193_v52 = vpack.c.bf16 %v254_v32, %v253_v31  ;;  %v260_v24 = vld [vmem:[%s3996_s20 + $0x158] sm:$0xff] }
  0x36   : > { %v4191_v51 = vsel %vm311_vm1, %v414_v27, %v418_v28  ;;  %v4196_v15 = vsel %vm968_vm2, %v972_v34, %v973_v35  ;;  %v976_v54 = vrot.slane %v4034_v29, 1  ;;  %v975_v55 = vrot.slane %v4026_v22, 1 }
  0x37   : > { %3193 = vmatmul.mubr.msk.bf16.gmra.mrb[8].mxu1 %vm521_vm0, %v4128_v49  ;;  %v4203_v57 = vpack.c.bf16 %v252_v39, %v252_v39  ;;  %v447_v58 = vshll.u32 %v4186_v40, 16  ;;  %v426_v60 = vor.u32 %v425_v41, %v421_v37  ;;  %v430_v61 = vrot.slane %v428_v38, 1  ;;  %v258_v41 = vld [vmem:[%s3996_s20 + $0x148] sm:$0x3] }
  0x38   : > { %3337 = vmatmul.mubr.msk.bf16.gmra.mrb[8].mxu0 %vm521_vm0, %v4156_v8  ;;  %3196 = vmatprep.mubr.msk.bf16.mxu1 %vm521_vm0, %v4156_v8  ;;  %v438_v29 = vor.u32 %v437_v45, %v433_v44  ;;  %v442_v62 = vrot.slane %v440_v50, 1  ;;  %v4212_v2 = vpack.c.bf16 %v255_v53, %v255_v53  ;;  %v459_v11 = vshll.u32 %v4193_v52, 16  ;;  %v261_v50 = vld [vmem:[%s3996_s20 + $0x160] sm:$0x3]  ;;  %v3816_v53 = vld [vmem:[%s4866_s1 + $0x68] sm:$0xff]  }
  0x39   : > { %3340 = vmatprep.mubr.msk.bf16.mxu0 %vm521_vm0, %v4161_v18  ;;  %v978_v19 = vrot.slane %v4042_v42, 1  ;;  %v979_v21 = vrot.slane %v4044_v43, 1  ;;  %v445_v27 = vshrl.u32 %v4186_v40, 16  ;;  %v449_v28 = vrot.slane %v447_v58, 1 }
  0x3a   : > { %v452_v31 = vshll.u32 %v4203_v57, 16  ;;  %v4224_v32 = vsel %vm311_vm1, %v426_v60, %v430_v61  ;;  %v4227_v34 = vsel %vm968_vm2, %v975_v55, %v976_v54  ;;  %v4230_v35 = vsel %vm311_vm1, %v438_v29, %v442_v62 }
  0x3b   : > { %v4232_v37 = vpack.c.bf16 %v257_v17, %v256_v12  ;;  %v457_v43 = vshrl.u32 %v4193_v52, 16  ;;  %v461_v38 = vrot.slane %v459_v11, 1  ;;  %v464_v39 = vshll.u32 %v4212_v2, 16  ;;  %v262_v17 = vld [vmem:[%s3996_s20 + $0x168] sm:$0xff] }
  0x3c   : > { %v4237_v44 = vpack.c.bf16 %v260_v24, %v259_v23  ;;  %v4240_v45 = vsel %vm968_vm2, %v978_v19, %v979_v21  ;;  %v450_v54 = vor.u32 %v449_v28, %v445_v27  ;;  %v454_v55 = vrot.slane %v452_v31, 1  ;;  %v263_v19 = vld [vmem:[%s3996_s20 + $0x170] sm:$0xff] }
  0x3d   : > { %v981_v58 = vrot.slane %v4046_v46, 1  ;;  %v982_v60 = vrot.slane %v4048_v47, 1  ;;  %v4254_v61 = vpack.c.bf16 %v258_v41, %v258_v41  ;;  %v471_v29 = vshll.u32 %v4232_v37, 16 }
  0x3e   : > { %v462_v62 = vor.u32 %v461_v38, %v457_v43  ;;  %v466_v11 = vrot.slane %v464_v39, 1  ;;  %v4260_v12 = vpack.c.bf16 %v261_v50, %v261_v50  ;;  %v483_v47 = vshll.u32 %v4237_v44, 16 }
  0x3f   : > { %3197 = vmatmul.mubr.msk.bf16.gmra.mrb[12].mxu1 %vm521_vm0, %v4161_v18  ;;  %v984_v21 = vrot.slane %v4074_v7, 1  ;;  %v985_v23 = vrot.slane %v4080_v13, 1  ;;  %v4273_v24 = vsel %vm311_vm1, %v450_v54, %v454_v55  ;;  %v4276_v27 = vsel %vm968_vm2, %v981_v58, %v982_v60  ;;  %v264_v54 = vld [vmem:[%s3996_s20 + $0x178] sm:$0x3] }
  0x40   : > { %3341 = vmatmul.mubr.msk.bf16.gmra.mrb[12].mxu0 %vm521_vm0, %v4191_v51  ;;  %3200 = vmatprep.mubr.msk.bf16.mxu1 %vm521_vm0, %v4191_v51  ;;  %v469_v28 = vshrl.u32 %v4232_v37, 16  ;;  %v473_v31 = vrot.slane %v471_v29, 1  ;;  %v476_v43 = vshll.u32 %v4254_v61, 16  ;;  %v4280_v38 = vpack.c.bf16 %v263_v19, %v262_v17 }
  0x41   : > { %3364 = vmatprep.mubr.msk.bf16.mxu0 %vm521_vm0, %v4196_v15  ;;  %v4283_v13 = vsel %vm311_vm1, %v462_v62, %v466_v11  ;;  %v481_v39 = vshrl.u32 %v4237_v44, 16  ;;  %v485_v41 = vrot.slane %v483_v47, 1  ;;  %v488_v50 = vshll.u32 %v4260_v12, 16 }
  0x42   : > { %v4289_v55 = vsel %vm968_vm2, %v984_v21, %v985_v23  ;;  %v474_v58 = vor.u32 %v473_v31, %v469_v28  ;;  %v478_v60 = vrot.slane %v476_v43, 1  ;;  %v4298_v29 = vpack.c.bf16 %v264_v54, %v264_v54 }
  0x43   : > { %v987_v62 = vrot.slane %v4082_v16, 1  ;;  %v988_v11 = vrot.slane %v4094_v25, 1  ;;  %v486_v47 = vor.u32 %v485_v41, %v481_v39  ;;  %v490_v17 = vrot.slane %v488_v50, 1 }
  0x44   : > { %v990_v19 = vrot.slane %v4105_v30, 1  ;;  %v991_v21 = vrot.slane %v4115_v36, 1  ;;  %v4308_v23 = vsel %vm311_vm1, %v474_v58, %v478_v60  ;;  %v493_v28 = vshrl.u32 %v4280_v38, 16 }
  0x45   : > { %v500_v43 = vshll.u32 %v4298_v29, 16  ;;  %v4313_v54 = vsel %vm968_vm2, %v987_v62, %v988_v11  ;;  %v4316_v3 = vsel %vm311_vm1, %v486_v47, %v490_v17  ;;  %v993_v41 = vrot.slane %v4122_v48, 1 }
  0x46   : > { %v4319_v25 = vsel %vm968_vm2, %v990_v19, %v991_v21  ;;  %v994_v50 = vrot.slane %v4139_v56, 1  ;;  %v996_v58 = vrot.slane %v4150_v63, 1  ;;  %v997_v60 = vrot.slane %v4165_v4, 1 }
  0x47   : > { %3201 = vmatmul.mubr.msk.bf16.gmra.mrb[16].mxu1 %vm521_vm0, %v4224_v32  ;;  %v502_v39 = vrot.slane %v500_v43, 1  ;;  %v999_v56 = vrot.slane %v4153_v6, 1  ;;  %v1000_v4 = vrot.slane %v4172_v20, 1  ;;  %v1002_v47 = vrot.slane %v4186_v40, 1 }
  0x48   : > { %3365 = vmatmul.mubr.msk.bf16.vlgmr.msra.gmra.mrb[0].mxu0 %vm521_vm0, %v4227_v34  ;;  %3204 = vmatprep.mubr.msk.bf16.mxu1 %vm521_vm0, %v4230_v35  ;;  %v4337_v62 = vsel %vm968_vm2, %v993_v41, %v994_v50  ;;  %v4340_v11 = vsel %vm968_vm2, %v996_v58, %v997_v60  ;;  %v1003_v17 = vrot.slane %v4203_v57, 1  ;;  %v1005_v20 = vrot.slane %v4193_v52, 1  ;;  %v265_v58 = vld [vmem:[%s3996_s20 + $0x180] sm:$0xff]  ;;  %v266_v60 = vld [vmem:[%s3996_s20 + $0x188] sm:$0xff] }
  0x49   : > { %3397 = vmatpush3.bf16.msra.mxu0 %v4099_v5  ;;  %3368 = vmatprep.mubr.msk.bf16.mxu0 %vm521_vm0, %v4240_v45  ;;  %v4270_v5 = vld [vmem:[%s4866_s1 + $0x70] sm:$0xff]   ;;  %v4355_v19 = vsel %vm968_vm2, %v999_v56, %v1000_v4  ;;  %v1006_v57 = vrot.slane %v4212_v2, 1  ;;  %v1009_v43 = vrot.slane %v4254_v61, 1  ;;  %v1011_v2 = vrot.slane %v4237_v44, 1 }
  0x4a   : > { %3398 = vmatprep.subr.bf16.mxu0 %v3816_v53  ;;  %v4358_v21 = vsel %vm968_vm2, %v1002_v47, %v1003_v17  ;;  %v1012_v61 = vrot.slane %v4260_v12, 1  ;;  %v1014_v41 = vrot.slane %v4280_v38, 1  ;;  %v1015_v50 = vrot.slane %v4298_v29, 1  ;;  %v267_v56 = vld [vmem:[%s3996_s20 + $0x190] sm:$0x3] }
  0x4b   : > { %v4403_v47 = vpack.c.bf16 %v266_v60, %v265_v58  ;;  %v4405_v17 = vpack.c.bf16 %v267_v56, %v267_v56 }
  0x4c   : > { %v4401_v4 = vsel %vm968_vm2, %v1011_v2, %v1012_v61  ;;  %v3821_v61 = vld [vmem:[%s4866_s1 + $0x38] sm:$0xff]  }
  0x4d   : > { %3399 = vmatpush3.bf16.msra.mxu0 %v3816_v53  ;;  %v495_v53 = vshll.u32 %v4280_v38, 16  ;;  %v1714_v12 = vrot.slane %v4403_v47, 1  ;;  %v1715_v29 = vrot.slane %v4405_v17, 1 }
  0x4e   : > { %3432 = vmatprep.subr.bf16.mxu0 %v4270_v5 }
  0x4f   : > { %3205 = vmatmul.mubr.msk.bf16.gmra.mrb[20].mxu1 %vm521_vm0, %v4273_v24  ;;  %v497_v31 = vrot.slane %v495_v53, 1 }
  0x50   : > { %3369 = vmatmul.mubr.msk.bf16.gmra.mrb[4].mxu0 %vm521_vm0, %v4276_v27  ;;  %3208 = vmatprep.mubr.msk.bf16.mxu1 %vm521_vm0, %v4283_v13 }
  0x51   : > { %3372 = vmatprep.mubr.msk.bf16.mxu0 %vm521_vm0, %v4289_v55  ;;  %v498_v36 = vor.u32 %v497_v31, %v493_v28  ;;  %v3817_v28 = vld [vmem:[%s4866_s1 + $0x28] sm:$0xff]   ;;  %v3819_v31 = vld [vmem:[%s4866_s1 + $0x30] sm:$0xff]  }
  0x53   : > { %v4334_v53 = vsel %vm311_vm1, %v498_v36, %v502_v39  ;;  %v4380_v36 = vsel %vm968_vm2, %v1005_v20, %v1006_v57  ;;  %v4421_v20 = vsel %vm968_vm2, %v1714_v12, %v1715_v29  ;;  %v3820_v57 = vld [vmem:[%s4866_s1 + $0x78] sm:$0xff]  }
  0x57   : > { %3209 = vmatmul.mubr.msk.bf16.gmra.mrb[24].mxu1 %vm521_vm0, %v4308_v23 }
  0x58   : > { %3373 = vmatmul.mubr.msk.bf16.gmra.mrb[8].mxu0 %vm521_vm0, %v4313_v54  ;;  %3212 = vmatprep.mubr.msk.bf16.mxu1 %vm521_vm0, %v4316_v3 }
  0x59   : > { %3376 = vmatprep.mubr.msk.bf16.mxu0 %vm521_vm0, %v4319_v25 }
  0x5f   : > { %3213 = vmatmul.mubr.msk.bf16.gmra.mrb[28].mxu1 %vm521_vm0, %v4334_v53 }
  0x60   : > { %3377 = vmatmul.mubr.msk.bf16.gmra.mrb[12].mxu0 %vm521_vm0, %v4337_v62  ;;  %3220 = vmatprep.mubr.msk.bf16.mxu1 %vm521_vm0, %v4007_v9 }
  0x61   : > { %3380 = vmatprep.mubr.msk.bf16.mxu0 %vm521_vm0, %v4340_v11 }
  0x67   : > { %3221 = vmatmul.mubr.msk.bf16.vlgmr.msra.gmra.mrb[0].mxu1 %vm521_vm0, %v4015_v14 }
  0x68   : > { %3253 = vmatpush3.bf16.msra.mxu1 %v4146_v59  ;;  %3381 = vmatmul.mubr.msk.bf16.gmra.mrb[16].mxu0 %vm521_vm0, %v4355_v19  ;;  %v1008_v59 = vrot.slane %v4232_v37, 1 }
  0x69   : > { %3224 = vmatprep.mubr.msk.bf16.mxu1 %vm521_vm0, %v4026_v22  ;;  %3384 = vmatprep.mubr.msk.bf16.mxu0 %vm521_vm0, %v4358_v21 }
  0x6a   : > { %3254 = vmatprep.subr.bf16.mxu1 %v3817_v28  ;;  %v4383_v39 = vsel %vm968_vm2, %v1008_v59, %v1009_v43  ;;  %v3822_v59 = vld [vmem:[%s4866_s1 + $0x80] sm:$0xff]   ;;  %v970_v43 = vrot.slane %v4009_v10, 1 }
  0x6b   : > { %v269_v10 = vld [vmem:[%s3996_s20 + $0x1a0] sm:$0xff] }
  0x6c   : > { %3255 = vmatpush3.bf16.msra.mxu1 %v3817_v28  ;;  %v4408_v28 = vsel %vm968_vm2, %v1014_v41, %v1015_v50 }
  0x6d   : > { %3288 = vmatprep.subr.bf16.mxu1 %v3819_v31 }
  0x6f   : > { %3225 = vmatmul.mubr.msk.bf16.gmra.mrb[4].mxu1 %vm521_vm0, %v4042_v42 }
  0x70   : > { %3385 = vmatmul.mubr.msk.bf16.gmra.mrb[20].mxu0 %vm521_vm0, %v4380_v36  ;;  %3228 = vmatprep.mubr.msk.bf16.mxu1 %vm521_vm0, %v4046_v46 }
  0x71   : > { %3388 = vmatprep.mubr.msk.bf16.mxu0 %vm521_vm0, %v4383_v39 }
  0x77   : > { %3229 = vmatmul.mubr.msk.bf16.gmra.mrb[8].mxu1 %vm521_vm0, %v4074_v7 }
  0x78   : > { %3389 = vmatmul.mubr.msk.bf16.gmra.mrb[24].mxu0 %vm521_vm0, %v4401_v4  ;;  %3232 = vmatprep.mubr.msk.bf16.mxu1 %vm521_vm0, %v4082_v16 }
  0x79   : > { %3392 = vmatprep.mubr.msk.bf16.mxu0 %vm521_vm0, %v4408_v28 }
  0x7f   : > { %3233 = vmatmul.mubr.msk.bf16.gmra.mrb[12].mxu1 %vm521_vm0, %v4105_v30 }
  0x80   : > { %3393 = vmatmul.mubr.msk.bf16.gmra.mrb[28].mxu0 %vm521_vm0, %v4421_v20  ;;  %3236 = vmatprep.mubr.msk.bf16.mxu1 %vm521_vm0, %v4122_v48 }
  0x81   : > { %3400 = vmatprep.mubr.msk.bf16.mxu0 %vm521_vm0, %v4026_v22 }
  0x87   : > { %3237 = vmatmul.mubr.msk.bf16.gmra.mrb[16].mxu1 %vm521_vm0, %v4150_v63 }
  0x88   : > { %3401 = vmatmul.mubr.msk.bf16.vlgmr.msra.gmra.mrb[0].mxu0 %vm521_vm0, %v4042_v42  ;;  %3240 = vmatprep.mubr.msk.bf16.mxu1 %vm521_vm0, %v4153_v6 }
  0x89   : > { %3433 = vmatpush3.bf16.msra.mxu0 %v4270_v5  ;;  %3404 = vmatprep.mubr.msk.bf16.mxu0 %vm521_vm0, %v4046_v46  ;;  %v969_v5 = vrot.slane %v4007_v9, 1  ;;  %v268_v9 = vld [vmem:[%s3996_s20 + $0x198] sm:$0xff] }
  0x8a   : > { %3434 = vmatprep.subr.bf16.mxu0 %v3820_v57 }
  0x8b   : > { %v971_v2 = vsel %vm968_vm2, %v969_v5, %v970_v43 }
  0x8d   : > { %3435 = vmatpush3.bf16.msra.mxu0 %v3820_v57 }
  0x8e   : > { %3468 = vmatprep.subr.bf16.mxu0 %v3822_v59 }
  0x8f   : > { %3241 = vmatmul.mubr.msk.bf16.gmra.mrb[20].mxu1 %vm521_vm0, %v4186_v40 }
  0x90   : > { %3405 = vmatmul.mubr.msk.bf16.gmra.mrb[4].mxu0 %vm521_vm0, %v4074_v7  ;;  %3244 = vmatprep.mubr.msk.bf16.mxu1 %vm521_vm0, %v4193_v52 }
  0x91   : > { %3408 = vmatprep.mubr.msk.bf16.mxu0 %vm521_vm0, %v4082_v16 }
  0x97   : > { %3245 = vmatmul.mubr.msk.bf16.gmra.mrb[24].mxu1 %vm521_vm0, %v4232_v37 }
  0x98   : > { %3409 = vmatmul.mubr.msk.bf16.gmra.mrb[8].mxu0 %vm521_vm0, %v4105_v30  ;;  %3248 = vmatprep.mubr.msk.bf16.mxu1 %vm521_vm0, %v4237_v44 }
  0x99   : > { %3412 = vmatprep.mubr.msk.bf16.mxu0 %vm521_vm0, %v4122_v48 }
  0x9f   : > { %3249 = vmatmul.mubr.msk.bf16.gmra.mrb[28].mxu1 %vm521_vm0, %v4280_v38 }
  0xa0   : > { %3413 = vmatmul.mubr.msk.bf16.gmra.mrb[12].mxu0 %vm521_vm0, %v4150_v63  ;;  %3256 = vmatprep.mubr.msk.bf16.mxu1 %vm521_vm0, %v971_v2 }
  0xa1   : > { %3416 = vmatprep.mubr.msk.bf16.mxu0 %vm521_vm0, %v4153_v6 }
  0xa7   : > { %3257 = vmatmul.mubr.msk.bf16.vlgmr.msra.gmra.mrb[0].mxu1 %vm521_vm0, %v4196_v15  ;;  %v4502_v15 = vpack.c.bf16 %v269_v10, %v268_v9 }
  0xa8   : > { %3289 = vmatpush3.bf16.msra.mxu1 %v3819_v31  ;;  %3417 = vmatmul.mubr.msk.bf16.gmra.mrb[16].mxu0 %vm521_vm0, %v4186_v40  ;;  %v3823_v31 = vld [vmem:[%s4866_s1 + $0x88] sm:$0xff]  }
  0xa9   : > { %3260 = vmatprep.mubr.msk.bf16.mxu1 %vm521_vm0, %v4227_v34  ;;  %3420 = vmatprep.mubr.msk.bf16.mxu0 %vm521_vm0, %v4193_v52 }
  0xaa   : > { %3290 = vmatprep.subr.bf16.mxu1 %v3821_v61 }
  0xac   : > { %3291 = vmatpush3.bf16.msra.mxu1 %v3821_v61 }
  0xad   : > { %3504 = vmatprep.subr.bf16.mxu1 %v3971_v1 }
  0xaf   : > { %3261 = vmatmul.mubr.msk.bf16.gmra.mrb[4].mxu1 %vm521_vm0, %v4240_v45 }
  0xb0   : > { %3421 = vmatmul.mubr.msk.bf16.gmra.mrb[20].mxu0 %vm521_vm0, %v4232_v37  ;;  %3264 = vmatprep.mubr.msk.bf16.mxu1 %vm521_vm0, %v4276_v27 }
  0xb1   : > { %3424 = vmatprep.mubr.msk.bf16.mxu0 %vm521_vm0, %v4237_v44 }
  0xb7   : > { %3265 = vmatmul.mubr.msk.bf16.gmra.mrb[8].mxu1 %vm521_vm0, %v4289_v55 }
  0xb8   : > { %3425 = vmatmul.mubr.msk.bf16.gmra.mrb[24].mxu0 %vm521_vm0, %v4280_v38  ;;  %3268 = vmatprep.mubr.msk.bf16.mxu1 %vm521_vm0, %v4313_v54 }
  0xb9   : > { %3428 = vmatprep.mubr.msk.bf16.mxu0 %vm521_vm0, %v4403_v47 }
  0xbf   : > { %3269 = vmatmul.mubr.msk.bf16.gmra.mrb[12].mxu1 %vm521_vm0, %v4319_v25 }
  0xc0   : > { %3429 = vmatmul.mubr.msk.bf16.gmra.mrb[28].mxu0 %vm521_vm0, %v4502_v15  ;;  %3272 = vmatprep.mubr.msk.bf16.mxu1 %vm521_vm0, %v4337_v62 }
  0xc1   : > { %3436 = vmatprep.mubr.msk.bf16.mxu0 %vm521_vm0, %v4071_v0  ;;  %v1490_v0 = vshll.u32 %v4403_v47, 16 }
  0xc7   : > { %3273 = vmatmul.mubr.msk.bf16.gmra.mrb[16].mxu1 %vm521_vm0, %v4340_v11 }
  0xc8   : > { %3437 = vmatmul.mubr.msk.bf16.vlgmr.msra.gmra.mrb[0].mxu0 %vm521_vm0, %v4102_v26  ;;  %3276 = vmatprep.mubr.msk.bf16.mxu1 %vm521_vm0, %v4355_v19  ;;  %v1488_v26 = vshrl.u32 %v4403_v47, 16 }
  0xc9   : > { %3469 = vmatpush3.bf16.msra.mxu0 %v3822_v59  ;;  %3440 = vmatprep.mubr.msk.bf16.mxu0 %vm521_vm0, %v4112_v33  ;;  %v270_v33 = vld [vmem:[%s3996_s20 + $0x1a8] sm:$0x3]  ;;  %s3016_s20 = sshll.u32 %s3977_s7, 8  ;;  %s4684_s7 = scalar_lea.vmem [#allocation2], %s2812_s27 }
  0xca   : > { %3470 = vmatprep.subr.bf16.mxu0 %v3823_v31  ;;  %s4667_s14 = scalar_lea.vmem %s4868_s3, %s3016_s20  ;;  %s2734_s29 = sshll.u32 %s4684_s7, 4  ;;  %s4814_s29 = int_to_ptr.vmem [resolvable:$true] %s2734_s29 }
  0xcb   : > { %v2625_v29 = vld [vmem:[%s4667_s14 + $0x8] sm:$0xff]  ;;  %v2630_v9 = vld [vmem:[%s4667_s14 + $0x30] sm:$0xff]  ;;  %s3824_s8 = scalar_lea.vmem %s4814_s29, 4096  ;;  %s3830_s20 = scalar_lea.vmem %s3829_s10, 8192 }
  0xcc   : > { %p3825_p11 = scmp.ne.s32.totalorder %s4814_s29, %s3824_s8  ;;  %p3831_p0 = scmp.lt.s32.totalorder %s4814_s29, %s3829_s10 }
  0xcd   : > { %3471 = vmatpush3.bf16.msra.mxu0 %v3823_v31  ;;  %p3832_p1 = scmp.lt.s32.totalorder %s3830_s20, %s3824_s8 }
  0xce   : > { %p3826_p12 = pnand %p3825_p11, %p3954_p5 }
  0xcf   : > { %3277 = vmatmul.mubr.msk.bf16.gmra.mrb[20].mxu1 %vm521_vm0, %v4358_v21  ;;  %p3833_p2 = por %p3832_p1, %p3831_p0 }
  0xd0   : > { %3441 = vmatmul.mubr.msk.bf16.gmra.mrb[4].mxu0 %vm521_vm0, %v4128_v49  ;;  %3280 = vmatprep.mubr.msk.bf16.mxu1 %vm521_vm0, %v4380_v36  ;;  %v2145_v49 = vshll.u32 %v4502_v15, 16  ;;  %p3827_p13 = pneg %p3826_p12 }
  0xd1   : > { %3444 = vmatprep.mubr.msk.bf16.mxu0 %vm521_vm0, %v4156_v8 }
  0xd2   : > { %v2147_v41 = vrot.slane %v2145_v49, 1  ;;  %p3834_p3 = pnand %p3833_p2, %p3827_p13 }
  0xd7   : > { %3281 = vmatmul.mubr.msk.bf16.gmra.mrb[24].mxu1 %vm521_vm0, %v4383_v39 }
  0xd8   : > { %3445 = vmatmul.mubr.msk.bf16.gmra.mrb[8].mxu0 %vm521_vm0, %v4161_v18  ;;  %3284 = vmatprep.mubr.msk.bf16.mxu1 %vm521_vm0, %v4401_v4 }
  0xd9   : > { %3448 = vmatprep.mubr.msk.bf16.mxu0 %vm521_vm0, %v4191_v51  ;;  %v2143_v51 = vshrl.u32 %v4502_v15, 16 }
  0xdf   : > { %3285 = vmatmul.mubr.msk.bf16.gmra.mrb[28].mxu1 %vm521_vm0, %v4408_v28 }
  0xe0   : > { %3449 = vmatmul.mubr.msk.bf16.gmra.mrb[12].mxu0 %vm521_vm0, %v4224_v32  ;;  %3292 = vmatprep.mubr.msk.bf16.mxu1 %vm521_vm0, %v4015_v14  ;;  %v4875_v14 = vld [vmem:[#allocation5_spill] sm:$0xff] }
  0xe1   : > { %3452 = vmatprep.mubr.msk.bf16.mxu0 %vm521_vm0, %v4230_v35 }
  0xe7   : > { %3293 = vmatmul.mubr.msk.bf16.vlgmr.msra.gmra.mrb[0].mxu1 %vm521_vm0, %v4026_v22  ;;  %v1492_v22 = vrot.slane %v1490_v0, 1  ;;  %v2628_v0 = vld [vmem:[%s4667_s14 + $0x20] sm:$0xff] }
  0xe8   : > { %3506 = vmatpush3.bf16.msra.mxu1 %v3971_v1  ;;  %3453 = vmatmul.mubr.msk.bf16.gmra.mrb[16].mxu0 %vm521_vm0, %v4273_v24  ;;  %v1495_v1 = vshll.u32 %v4405_v17, 16 }
  0xe9   : > { %3296 = vmatprep.mubr.msk.bf16.mxu1 %vm521_vm0, %v4042_v42  ;;  %3456 = vmatprep.mubr.msk.bf16.mxu0 %vm521_vm0, %v4283_v13  ;;  %v306_v42 = vpack.c.bf16 %v270_v33, %v270_v33  ;;  %v1493_v8 = vor.u32 %v1492_v22, %v1488_v26 }
  0xea   : > { %3505 = vmatprep.subr.bf16.mxu1 %v4875_v14  ;;  %v1497_v18 = vrot.slane %v1495_v1, 1  ;;  %v2631_v1 = vld [vmem:[%s4667_s14 + $0x38] sm:$0xff] }
  0xeb   : > { %v2150_v50 = vshll.u32 %v306_v42, 16 }
  0xec   : > { %3507 = vmatpush3.bf16.msra.mxu1 %v4875_v14 }
  0xed   : > { %v2152_v58 = vrot.slane %v2150_v50, 1 }
  0xef   : > { %3297 = vmatmul.mubr.msk.bf16.gmra.mrb[4].mxu1 %vm521_vm0, %v4046_v46  ;;  %v1498_v46 = vsel %vm311_vm1, %v1493_v8, %v1497_v18  ;;  %v2629_v8 = vld [vmem:[%s4667_s14 + $0x28] sm:$0xff] }
  0xf0   : > { %3457 = vmatmul.mubr.msk.bf16.gmra.mrb[20].mxu0 %vm521_vm0, %v4308_v23  ;;  %3300 = vmatprep.mubr.msk.bf16.mxu1 %vm521_vm0, %v4074_v7  ;;  %v2148_v7 = vor.u32 %v2147_v41, %v2143_v51 }
  0xf1   : > { %3460 = vmatprep.mubr.msk.bf16.mxu0 %vm521_vm0, %v4316_v3 }
  0xf2   : > { %v2153_v60 = vsel %vm311_vm1, %v2148_v7, %v2152_v58 }
  0xf7   : > { %3301 = vmatmul.mubr.msk.bf16.gmra.mrb[8].mxu1 %vm521_vm0, %v4082_v16  ;;  %v2369_v16 = vrot.slane %v4502_v15, 1 }
  0xf8   : > { %3461 = vmatmul.mubr.msk.bf16.gmra.mrb[24].mxu0 %vm521_vm0, %v4334_v53  ;;  %3304 = vmatprep.mubr.msk.bf16.mxu1 %vm521_vm0, %v4105_v30  ;;  %v2370_v30 = vrot.slane %v306_v42, 1 }
  0xf9   : > { %3464 = vmatprep.mubr.msk.bf16.mxu0 %vm521_vm0, %v1498_v46 }
  0xff   : > { %3305 = vmatmul.mubr.msk.bf16.gmra.mrb[12].mxu1 %vm521_vm0, %v4122_v48  ;;  %v2371_v48 = vsel %vm968_vm2, %v2369_v16, %v2370_v30 }
 0x100   : > { %3465 = vmatmul.mubr.msk.bf16.gmra.mrb[28].mxu0 %vm521_vm0, %v2153_v60  ;;  %3308 = vmatprep.mubr.msk.bf16.mxu1 %vm521_vm0, %v4150_v63  ;;  %v2634_v60 = vld [vmem:[%s4667_s14 + $0x50] sm:$0xff] }
 0x101   : > { %3472 = vmatprep.mubr.msk.bf16.mxu0 %vm521_vm0, %v4227_v34 }
 0x107   : > { %3309 = vmatmul.mubr.msk.bf16.gmra.mrb[16].mxu1 %vm521_vm0, %v4153_v6 }
 0x108   : > { %3473 = vmatmul.mubr.msk.bf16.vlgmr.msra.gmra.mrb[0].mxu0 %vm521_vm0, %v4240_v45  ;;  %3312 = vmatprep.mubr.msk.bf16.mxu1 %vm521_vm0, %v4186_v40 }
 0x109   : > { %3476 = vmatprep.mubr.msk.bf16.mxu0 %vm521_vm0, %v4276_v27 }
 0x10f   : > { %3313 = vmatmul.mubr.msk.bf16.gmra.mrb[20].mxu1 %vm521_vm0, %v4193_v52 }
 0x110   : > { %3477 = vmatmul.mubr.msk.bf16.gmra.mrb[4].mxu0 %vm521_vm0, %v4289_v55  ;;  %3316 = vmatprep.mubr.msk.bf16.mxu1 %vm521_vm0, %v4232_v37 }
 0x111   : > { %3480 = vmatprep.mubr.msk.bf16.mxu0 %vm521_vm0, %v4313_v54  ;;  %v4672_v54 = vld [vmem:[%s4867_s2] ss:$0 sm:$0xff] }
 0x117   : > { %3317 = vmatmul.mubr.msk.bf16.gmra.mrb[24].mxu1 %vm521_vm0, %v4237_v44 }
 0x118   : > { %3481 = vmatmul.mubr.msk.bf16.gmra.mrb[8].mxu0 %vm521_vm0, %v4319_v25  ;;  %3320 = vmatprep.mubr.msk.bf16.mxu1 %vm521_vm0, %v4280_v38 }
 0x119   : > { %3484 = vmatprep.mubr.msk.bf16.mxu0 %vm521_vm0, %v4337_v62  ;;  %v2626_v62 = vld [vmem:[%s4667_s14 + $0x10] sm:$0xff] }
 0x11f   : > { %3321 = vmatmul.mubr.msk.bf16.gmra.mrb[28].mxu1 %vm521_vm0, %v4403_v47  ;;  %v2627_v47 = vld [vmem:[%s4667_s14 + $0x18] sm:$0xff] }
 0x120   : > { %3485 = vmatmul.mubr.msk.bf16.gmra.mrb[12].mxu0 %vm521_vm0, %v4340_v11  ;;  %3344 = vmatprep.mubr.msk.bf16.mxu1 %vm521_vm0, %v4224_v32 }
 0x121   : > { %3488 = vmatprep.mubr.msk.bf16.mxu0 %vm521_vm0, %v4355_v19 }
 0x127   : > { %3345 = vmatmul.mubr.msk.bf16.vlgmr.msra.gmra.mrb[16].mxu1 %vm521_vm0, %v4230_v35 }
 0x128   : > { %3489 = vmatmul.mubr.msk.bf16.gmra.mrb[16].mxu0 %vm521_vm0, %v4358_v21  ;;  %3348 = vmatprep.mubr.msk.bf16.mxu1 %vm521_vm0, %v4273_v24 }
 0x129   : > { %3492 = vmatprep.mubr.msk.bf16.mxu0 %vm521_vm0, %v4380_v36  ;;  %v2624_v36 = vld [vmem:[%s4667_s14] sm:$0xff] }
 0x12f   : > { %3349 = vmatmul.mubr.msk.bf16.gmra.mrb[20].mxu1 %vm521_vm0, %v4283_v13 }
 0x130   : > { %3493 = vmatmul.mubr.msk.bf16.gmra.mrb[20].mxu0 %vm521_vm0, %v4383_v39  ;;  %3352 = vmatprep.mubr.msk.bf16.mxu1 %vm521_vm0, %v4308_v23 }
 0x131   : > { %3496 = vmatprep.mubr.msk.bf16.mxu0 %vm521_vm0, %v4401_v4 }
 0x137   : > { %3353 = vmatmul.mubr.msk.bf16.gmra.mrb[24].mxu1 %vm521_vm0, %v4316_v3 }
 0x138   : > { %3497 = vmatmul.mubr.msk.bf16.gmra.mrb[24].mxu0 %vm521_vm0, %v4408_v28  ;;  %3356 = vmatprep.mubr.msk.bf16.mxu1 %vm521_vm0, %v4334_v53 }
 0x139   : > { %3500 = vmatprep.mubr.msk.bf16.mxu0 %vm521_vm0, %v4421_v20 }
 0x13f   : > { %3357 = vmatmul.mubr.msk.bf16.gmra.mrb[28].mxu1 %vm521_vm0, %v1498_v46 }
 0x140   : > { %3501 = vmatmul.mubr.msk.bf16.gmra.mrb[28].mxu0 %vm521_vm0, %v2371_v48 }
 0x1ba   : > { %v3294_v63 = vpop.f32.mrb[0].mxu1 }
 0x1bb   : > { %v1329_v3 = vpop.f32.mrb[1].mxu1 }
 0x1bc   : > { %v3295_v6 = vpop.f32.mrb[2].mxu1 }
 0x1bd   : > { %v1332_v40 = vpop.f32.mrb[3].mxu1 }
 0x1c2   : > { %v3298_v52 = vpop.f32.mrb[4].mxu1 }
 0x1c3   : > { %v1345_v32 = vpop.f32.mrb[5].mxu1 }
 0x1c4   : > { %v3299_v34 = vpop.f32.mrb[6].mxu1 }
 0x1c5   : > { %v1348_v35 = vpop.f32.mrb[7].mxu1 }
 0x1ca   : > { %v3302_v37 = vpop.f32.mrb[8].mxu1 }
 0x1cb   : > { %v4648_v44 = vpop.f32.mrb[9].mxu1 }
 0x1cc   : > { %v4650_v45 = vpop.f32.mrb[10].mxu1 }
 0x1cd   : > { %v4652_v24 = vpop.f32.mrb[11].mxu1 }
 0x1d2   : > { %v4654_v27 = vpop.f32.mrb[12].mxu1 }
 0x1d3   : > { %v4656_v38 = vpop.f32.mrb[13].mxu1 }
 0x1d4   : > { %v4658_v13 = vpop.f32.mrb[14].mxu1 }
 0x1d5   : > { %v4660_v55 = vpop.f32.mrb[15].mxu1 }
 0x1db   : > { %v3474_v23 = vpop.f32.mrb[0].mxu0 }
 0x1dc   : > { %v3508_v25 = vadd.f32 %v3474_v23, %v3294_v63  ;;  %v2426_v53 = vpop.f32.mrb[1].mxu0  ;;  %v2632_v63 = vld [vmem:[%s4667_s14 + $0x40] sm:$0xff] }
 0x1dd   : > { %v3509_v11 = vadd.f32 %v2426_v53, %v1329_v3  ;;  %v3475_v19 = vpop.f32.mrb[2].mxu0 }
 0x1de   : > { %v2594_v21 = vadd.f32 %v3508_v25, %v4672_v54  ;;  %v3510_v39 = vadd.f32 %v3475_v19, %v3295_v6  ;;  %v2429_v56 = vpop.f32.mrb[3].mxu0 }
 0x1df   : > { %v2592_v4 = vadd.f32 %v3509_v11, %v4672_v54  ;;  %v3511_v17 = vadd.f32 %v2429_v56, %v1332_v40  ;;  %v2638_v11 = vld [vmem:[%s4667_s14 + $0x70] sm:$0xff] }
 0x1e0   : > { %v2658_v28 = vadd.f32 %v2626_v62, %v2594_v21  ;;  %v2595_v12 = vadd.f32 %v3510_v39, %v4672_v54  ;;  %v2636_v39 = vld [vmem:[%s4667_s14 + $0x60] sm:$0xff] }
 0x1e1   : > { %v2656_v20 = vadd.f32 %v2624_v36, %v2592_v4  ;;  %v2593_v57 = vadd.f32 %v3511_v17, %v4672_v54  ;;  %v2639_v17 = vld [vmem:[%s4667_s14 + $0x78] sm:$0xff] }
 0x1e2   : > { %2690 = vst.msk [vmem:[%s4684_s7 + $0x10] sm:$0xff] %vm521_vm0, %v2658_v28  ;;  %v2659_v59 = vadd.f32 %v2627_v47, %v2595_v12 }
 0x1e3   : > { %2688 = vst.msk [vmem:[%s4684_s7] sm:$0xff] %vm521_vm0, %v2656_v20  ;;  %v2657_v5 = vadd.f32 %v2625_v29, %v2593_v57  ;;  %v3478_v43 = vpop.f32.mrb[4].mxu0 }
 0x1e4   : > { %2691 = vst.msk [vmem:[%s4684_s7 + $0x18] sm:$0xff] %vm521_vm0, %v2659_v59  ;;  %v3512_v2 = vadd.f32 %v3478_v43, %v3298_v52  ;;  %v2442_v61 = vpop.f32.mrb[5].mxu0  ;;  %v2635_v52 = vld [vmem:[%s4667_s14 + $0x58] sm:$0xff] }
 0x1e5   : > { %2689 = vst.msk [vmem:[%s4684_s7 + $0x8] sm:$0xff] %vm521_vm0, %v2657_v5  ;;  %v3513_v10 = vadd.f32 %v2442_v61, %v1345_v32  ;;  %v3479_v15 = vpop.f32.mrb[6].mxu0 }
 0x1e6   : > { %v2598_v31 = vadd.f32 %v3512_v2, %v4672_v54  ;;  %v3514_v14 = vadd.f32 %v3479_v15, %v3299_v34  ;;  %v2445_v26 = vpop.f32.mrb[7].mxu0 }
 0x1e7   : > { %v2596_v22 = vadd.f32 %v3513_v10, %v4672_v54  ;;  %v3515_v33 = vadd.f32 %v2445_v26, %v1348_v35 }
 0x1e8   : > { %v2662_v42 = vadd.f32 %v2630_v9, %v2598_v31  ;;  %v2599_v49 = vadd.f32 %v3514_v14, %v4672_v54  ;;  %v2642_v9 = vld [vmem:[%s4667_s14 + $0x90] sm:$0xff]  ;;  %v2640_v14 = vld [vmem:[%s4667_s14 + $0x80] sm:$0xff] }
 0x1e9   : > { %v2660_v18 = vadd.f32 %v2628_v0, %v2596_v22  ;;  %v2597_v51 = vadd.f32 %v3515_v33, %v4672_v54  ;;  %v2643_v33 = vld [vmem:[%s4667_s14 + $0x98] sm:$0xff] }
 0x1ea   : > { %2694 = vst.msk [vmem:[%s4684_s7 + $0x30] sm:$0xff] %vm521_vm0, %v2662_v42  ;;  %v2663_v41 = vadd.f32 %v2631_v1, %v2599_v49 }
 0x1eb   : > { %2692 = vst.msk [vmem:[%s4684_s7 + $0x20] sm:$0xff] %vm521_vm0, %v2660_v18  ;;  %v2661_v50 = vadd.f32 %v2629_v8, %v2597_v51  ;;  %v3482_v46 = vpop.f32.mrb[8].mxu0  ;;  %v2641_v18 = vld [vmem:[%s4667_s14 + $0x88] sm:$0xff] }
 0x1ec   : > { %2695 = vst.msk [vmem:[%s4684_s7 + $0x38] sm:$0xff] %vm521_vm0, %v2663_v41  ;;  %v3516_v7 = vadd.f32 %v3482_v46, %v3302_v37  ;;  %v2458_v58 = vpop.f32.mrb[9].mxu0  ;;  %v2633_v37 = vld [vmem:[%s4667_s14 + $0x48] sm:$0xff] }
 0x1ed   : > { %2693 = vst.msk [vmem:[%s4684_s7 + $0x28] sm:$0xff] %vm521_vm0, %v2661_v50  ;;  %v3517_v16 = vadd.f32 %v2458_v58, %v4648_v44  ;;  %v3483_v30 = vpop.f32.mrb[10].mxu0 }
 0x1ee   : > { %v2602_v48 = vadd.f32 %v3516_v7, %v4672_v54  ;;  %v3518_v3 = vadd.f32 %v3483_v30, %v4650_v45  ;;  %v2461_v6 = vpop.f32.mrb[11].mxu0 }
 0x1ef   : > { %v2600_v40 = vadd.f32 %v3517_v16, %v4672_v54  ;;  %v3519_v32 = vadd.f32 %v2461_v6, %v4652_v24 }
 0x1f0   : > { %v2666_v34 = vadd.f32 %v2634_v60, %v2602_v48  ;;  %v2603_v35 = vadd.f32 %v3518_v3, %v4672_v54 }
 0x1f1   : > { %v2664_v44 = vadd.f32 %v2632_v63, %v2600_v40  ;;  %v2601_v23 = vadd.f32 %v3519_v32, %v4672_v54  ;;  %v2646_v63 = vld [vmem:[%s4667_s14 + $0xb0] sm:$0xff]  ;;  %v2644_v32 = vld [vmem:[%s4667_s14 + $0xa0] sm:$0xff] }
 0x1f2   : > { %2698 = vst.msk [vmem:[%s4684_s7 + $0x50] sm:$0xff] %vm521_vm0, %v2666_v34  ;;  %v2667_v25 = vadd.f32 %v2635_v52, %v2603_v35 }
 0x1f3   : > { %2696 = vst.msk [vmem:[%s4684_s7 + $0x40] sm:$0xff] %vm521_vm0, %v2664_v44  ;;  %v2665_v45 = vadd.f32 %v2633_v37, %v2601_v23  ;;  %v3486_v53 = vpop.f32.mrb[12].mxu0  ;;  %v2647_v44 = vld [vmem:[%s4667_s14 + $0xb8] sm:$0xff] }
 0x1f4   : > { %2699 = vst.msk [vmem:[%s4684_s7 + $0x58] sm:$0xff] %vm521_vm0, %v2667_v25  ;;  %v3520_v24 = vadd.f32 %v3486_v53, %v4654_v27  ;;  %v2474_v62 = vpop.f32.mrb[13].mxu0  ;;  %v2645_v53 = vld [vmem:[%s4667_s14 + $0xa8] sm:$0xff] }
 0x1f5   : > { %2697 = vst.msk [vmem:[%s4684_s7 + $0x48] sm:$0xff] %vm521_vm0, %v2665_v45  ;;  %v3521_v19 = vadd.f32 %v2474_v62, %v4656_v38  ;;  %v3487_v21 = vpop.f32.mrb[14].mxu0  ;;  %v2637_v38 = vld [vmem:[%s4667_s14 + $0x68] sm:$0xff] }
 0x1f6   : > { %v2606_v36 = vadd.f32 %v3520_v24, %v4672_v54  ;;  %v3522_v56 = vadd.f32 %v3487_v21, %v4658_v13  ;;  %v2477_v4 = vpop.f32.mrb[15].mxu0 }
 0x1f7   : > { %v2604_v47 = vadd.f32 %v3521_v19, %v4672_v54  ;;  %v3523_v27 = vadd.f32 %v2477_v4, %v4660_v55 }
 0x1f8   : > { %v2670_v28 = vadd.f32 %v2638_v11, %v2606_v36  ;;  %v2607_v12 = vadd.f32 %v3522_v56, %v4672_v54 }
 0x1f9   : > { %v2668_v29 = vadd.f32 %v2636_v39, %v2604_v47  ;;  %v2605_v20 = vadd.f32 %v3523_v27, %v4672_v54 }
 0x1fa   : > { %2702 = vst.msk [vmem:[%s4684_s7 + $0x70] sm:$0xff] %vm521_vm0, %v2670_v28  ;;  %v2671_v57 = vadd.f32 %v2639_v17, %v2607_v12  ;;  %v3346_v13 = vpop.f32.mrb[16].mxu1  ;;  %v2650_v17 = vld [vmem:[%s4667_s14 + $0xd0] sm:$0xff] }
 0x1fb   : > { %2700 = vst.msk [vmem:[%s4684_s7 + $0x60] sm:$0xff] %vm521_vm0, %v2668_v29  ;;  %v2669_v59 = vadd.f32 %v2637_v38, %v2605_v20  ;;  %v3490_v5 = vpop.f32.mrb[16].mxu0  ;;  %v1617_v55 = vpop.f32.mrb[17].mxu1  ;;  %v2648_v29 = vld [vmem:[%s4667_s14 + $0xc0] sm:$0xff] }
 0x1fc   : > { %2703 = vst.msk [vmem:[%s4684_s7 + $0x78] sm:$0xff] %vm521_vm0, %v2671_v57  ;;  %v3524_v43 = vadd.f32 %v3490_v5, %v3346_v13  ;;  %v2490_v2 = vpop.f32.mrb[17].mxu0  ;;  %v3347_v61 = vpop.f32.mrb[18].mxu1 }
 0x1fd   : > { %2701 = vst.msk [vmem:[%s4684_s7 + $0x68] sm:$0xff] %vm521_vm0, %v2669_v59  ;;  %v3525_v10 = vadd.f32 %v2490_v2, %v1617_v55  ;;  %v3491_v15 = vpop.f32.mrb[18].mxu0  ;;  %v1620_v31 = vpop.f32.mrb[19].mxu1  ;;  %v2651_v59 = vld [vmem:[%s4667_s14 + $0xd8] sm:$0xff]  ;;  %v2649_v2 = vld [vmem:[%s4667_s14 + $0xc8] sm:$0xff] }
 0x1fe   : > { %v2610_v0 = vadd.f32 %v3524_v43, %v4672_v54  ;;  %v3526_v26 = vadd.f32 %v3491_v15, %v3347_v61  ;;  %v2493_v22 = vpop.f32.mrb[19].mxu0 }
 0x1ff   : > { %v2608_v1 = vadd.f32 %v3525_v10, %v4672_v54  ;;  %v3527_v42 = vadd.f32 %v2493_v22, %v1620_v31 }
 0x200   : > { %v2674_v49 = vadd.f32 %v2642_v9, %v2610_v0  ;;  %v2611_v8 = vadd.f32 %v3526_v26, %v4672_v54 }
 0x201   : > { %v2672_v51 = vadd.f32 %v2640_v14, %v2608_v1  ;;  %v2609_v41 = vadd.f32 %v3527_v42, %v4672_v54 }
 0x202   : > { %2706 = vst.msk [vmem:[%s4684_s7 + $0x90] sm:$0xff] %vm521_vm0, %v2674_v49  ;;  %v2675_v50 = vadd.f32 %v2643_v33, %v2611_v8  ;;  %v3350_v46 = vpop.f32.mrb[20].mxu1  ;;  %v2654_v33 = vld [vmem:[%s4667_s14 + $0xf0] sm:$0xff] }
 0x203   : > { %2704 = vst.msk [vmem:[%s4684_s7 + $0x80] sm:$0xff] %vm521_vm0, %v2672_v51  ;;  %v2673_v7 = vadd.f32 %v2641_v18, %v2609_v41  ;;  %v3494_v58 = vpop.f32.mrb[20].mxu0  ;;  %v1633_v60 = vpop.f32.mrb[21].mxu1  ;;  %v2652_v51 = vld [vmem:[%s4667_s14 + $0xe0] sm:$0xff] }
 0x204   : > { %2707 = vst.msk [vmem:[%s4684_s7 + $0x98] sm:$0xff] %vm521_vm0, %v2675_v50  ;;  %v3528_v16 = vadd.f32 %v3494_v58, %v3350_v46  ;;  %v2506_v30 = vpop.f32.mrb[21].mxu0  ;;  %v3351_v48 = vpop.f32.mrb[22].mxu1 }
 0x205   : > { %2705 = vst.msk [vmem:[%s4684_s7 + $0x88] sm:$0xff] %vm521_vm0, %v2673_v7  ;;  %v3529_v3 = vadd.f32 %v2506_v30, %v1633_v60  ;;  %v3495_v6 = vpop.f32.mrb[22].mxu0  ;;  %v1636_v40 = vpop.f32.mrb[23].mxu1  ;;  %v2655_v7 = vld [vmem:[%s4667_s14 + $0xf8] sm:$0xff]  ;;  %v2653_v30 = vld [vmem:[%s4667_s14 + $0xe8] sm:$0xff] }
 0x206   : > { %v2614_v52 = vadd.f32 %v3528_v16, %v4672_v54  ;;  %v3530_v34 = vadd.f32 %v3495_v6, %v3351_v48  ;;  %v2509_v35 = vpop.f32.mrb[23].mxu0 }
 0x207   : > { %v2612_v37 = vadd.f32 %v3529_v3, %v4672_v54  ;;  %v3531_v23 = vadd.f32 %v2509_v35, %v1636_v40 }
 0x208   : > { %v2678_v25 = vadd.f32 %v2646_v63, %v2614_v52  ;;  %v2615_v45 = vadd.f32 %v3530_v34, %v4672_v54 }
 0x209   : > { %v2676_v24 = vadd.f32 %v2644_v32, %v2612_v37  ;;  %v2613_v62 = vadd.f32 %v3531_v23, %v4672_v54 }
 0x20a   : > { %2710 = vst.msk [vmem:[%s4684_s7 + $0xb0] sm:$0xff] %vm521_vm0, %v2678_v25  ;;  %v2679_v11 = vadd.f32 %v2647_v44, %v2615_v45  ;;  %v3354_v19 = vpop.f32.mrb[24].mxu1 }
 0x20b   : > { %2708 = vst.msk [vmem:[%s4684_s7 + $0xa0] sm:$0xff] %vm521_vm0, %v2676_v24  ;;  %v2677_v21 = vadd.f32 %v2645_v53, %v2613_v62  ;;  %v3498_v36 = vpop.f32.mrb[24].mxu0  ;;  %v1649_v39 = vpop.f32.mrb[25].mxu1 }
 0x20c   : > { %2711 = vst.msk [vmem:[%s4684_s7 + $0xb8] sm:$0xff] %vm521_vm0, %v2679_v11  ;;  %v3532_v56 = vadd.f32 %v3498_v36, %v3354_v19  ;;  %v2522_v4 = vpop.f32.mrb[25].mxu0  ;;  %v3355_v47 = vpop.f32.mrb[26].mxu1 }
 0x20d   : > { %2709 = vst.msk [vmem:[%s4684_s7 + $0xa8] sm:$0xff] %vm521_vm0, %v2677_v21  ;;  %v3533_v27 = vadd.f32 %v2522_v4, %v1649_v39  ;;  %v3499_v28 = vpop.f32.mrb[26].mxu0  ;;  %v1652_v12 = vpop.f32.mrb[27].mxu1 }
 0x20e   : > { %v2618_v38 = vadd.f32 %v3532_v56, %v4672_v54  ;;  %v3534_v20 = vadd.f32 %v3499_v28, %v3355_v47  ;;  %v2525_v57 = vpop.f32.mrb[27].mxu0 }
 0x20f   : > { %v2616_v13 = vadd.f32 %v3533_v27, %v4672_v54  ;;  %v3535_v5 = vadd.f32 %v2525_v57, %v1652_v12 }
 0x210   : > { %v2682_v55 = vadd.f32 %v2650_v17, %v2618_v38  ;;  %v2619_v43 = vadd.f32 %v3534_v20, %v4672_v54 }
 0x211   : > { %v2680_v61 = vadd.f32 %v2648_v29, %v2616_v13  ;;  %v2617_v9 = vadd.f32 %v3535_v5, %v4672_v54 }
 0x212   : > { %2714 = vst.msk [vmem:[%s4684_s7 + $0xd0] sm:$0xff] %vm521_vm0, %v2682_v55  ;;  %v2683_v10 = vadd.f32 %v2651_v59, %v2619_v43  ;;  %v3358_v15 = vpop.f32.mrb[28].mxu1 }
 0x213   : > { %2712 = vst.msk [vmem:[%s4684_s7 + $0xc0] sm:$0xff] %vm521_vm0, %v2680_v61  ;;  %v2681_v31 = vadd.f32 %v2649_v2, %v2617_v9  ;;  %v3502_v0 = vpop.f32.mrb[28].mxu0  ;;  %v1665_v14 = vpop.f32.mrb[29].mxu1 }
 0x214   : > { %2715 = vst.msk [vmem:[%s4684_s7 + $0xd8] sm:$0xff] %vm521_vm0, %v2683_v10  ;;  %v3536_v26 = vadd.f32 %v3502_v0, %v3358_v15  ;;  %v2538_v22 = vpop.f32.mrb[29].mxu0  ;;  %v3359_v1 = vpop.f32.mrb[30].mxu1 }
 0x215   : > { %2713 = vst.msk [vmem:[%s4684_s7 + $0xc8] sm:$0xff] %vm521_vm0, %v2681_v31  ;;  %v3537_v42 = vadd.f32 %v2538_v22, %v1665_v14  ;;  %v3503_v49 = vpop.f32.mrb[30].mxu0  ;;  %v1668_v8 = vpop.f32.mrb[31].mxu1 }
 0x216   : > { %v2622_v18 = vadd.f32 %v3536_v26, %v4672_v54  ;;  %v3538_v41 = vadd.f32 %v3503_v49, %v3359_v1  ;;  %v2541_v50 = vpop.f32.mrb[31].mxu0 }
 0x217   : > { %v2620_v46 = vadd.f32 %v3537_v42, %v4672_v54  ;;  %v3539_v58 = vadd.f32 %v2541_v50, %v1668_v8 }
 0x218   : > { %v2686_v60 = vadd.f32 %v2654_v33, %v2622_v18  ;;  %v2623_v16 = vadd.f32 %v3538_v41, %v4672_v54 }
 0x219   : > { %v2684_v48 = vadd.f32 %v2652_v51, %v2620_v46  ;;  %v2621_v63 = vadd.f32 %v3539_v58, %v4672_v54 }
 0x21a   : > { %2718 = vst.msk [vmem:[%s4684_s7 + $0xf0] sm:$0xff] %vm521_vm0, %v2686_v60  ;;  %v2687_v3 = vadd.f32 %v2655_v7, %v2623_v16 }
 0x21b   : > { %2716 = vst.msk [vmem:[%s4684_s7 + $0xe0] sm:$0xff] %vm521_vm0, %v2684_v48  ;;  %v2685_v6 = vadd.f32 %v2653_v30, %v2621_v63 }
 0x21c   : > { %2719 = vst.msk [vmem:[%s4684_s7 + $0xf8] sm:$0xff] %vm521_vm0, %v2687_v3 }
 0x21d   : > { %2717 = vst.msk [vmem:[%s4684_s7 + $0xe8] sm:$0xff] %vm521_vm0, %v2685_v6 }
 0x21e   : > { %3837 = shalt.err (!%p3834_p3)
}
 0x21f   : > { %s3838_s11 = scalar_lea.hbm %s4812_s6, 4096  ;;  %s3842_s14 = scalar_lea.hbm %s4869_s4, 8192 }
 0x220   : > { %p3839_p4 = scmp.ne.s32.totalorder %s4812_s6, %s3838_s11  ;;  %p3843_p9 = scmp.lt.u32.totalorder %s4812_s6, %s4869_s4 }
 0x221   : > { %p3844_p10 = scmp.lt.u32.totalorder %s3842_s14, %s3838_s11  ;;  %p3846_p12 = scmp.lt.u32.totalorder %s3838_s11, %s4812_s6 }
 0x222   : > { %p3840_p7 = pnand %p3839_p4, %p3954_p5 }
 0x223   : > { %p3845_p11 = por %p3844_p10, %p3843_p9 }
 0x224   : > { %p3841_p8 = pneg %p3840_p7 }
 0x225   : > { %p3847_p13 = por %p3846_p12, %p3845_p11 }
 0x227   : > { %p3848_p0 = pnand %p3847_p13, %p3841_p8 }
 0x229   : > { %3851 = shalt.err (!%p3848_p0)
}
 0x22a   : > { %s3889_s27 = smov 128   ;;  %s3890_s7 = smov 8  }
 0x22b   : > { %3765 = dma.vmem_to_hbm [thread:$0]  (%p3954_p5), %s4814_s29, 4096, %s4812_s6, %s4824_s19, %s3889_s27, %s3889_s27, %s3890_s7  }
 0x22c PF: > { %p3771_p1 = scmp.ge.s32.totalorder %s3886_s18, 2  ;;  %s2749_s28 = sand.u32 1, %s3874_s15  }
 0x22d   : > { %s2750_s30 = scalar_lea.sflag [#allocation3], %s2749_s28 }
 0x22e   : > { %p3768_p2 = pnand %p3771_p1, %p3958_p6 }
 0x230   : > { %3869 = dma.done.wait (!%p3768_p2), %s2750_s30, 4096  }
 0x231   : > { %3871 = vsyncadd (!%p3768_p2), %s2750_s30, 4294963200  ;;  %p14_p3 = scmp.ge.s32.totalorder %s3941_s21, 4   ;;  %s4876_s15 = smov %s3878_s16 }
 0x232   : > { %s4877_s16 = smov %s3882_s17  ;;  %s4878_s17 = smov %s3952_s24 }
 0x233   : > { %s4879_s18 = smov %s3941_s21  ;;  %16 = sbr.rel (!%p14_p3) target bundleno = 3 (0x3), region = 82 }
 0x23a   :  { %2755 = vsyncpa [#allocation3], 1 }
 0x23b   :  { %2757 = vsyncpa [#allocation3 + $0x1], 1 }

// kernel: _lambda_.8
= control target key start
LH: loop header
LB: loop body
LE: loop exit
PB: predicated region body
PF: predicated region fallthrough
CT: control target
= control target key end

     0   :  { %s7053_s27 = smov 0   ;;  %s8630_s0 = inlined_call_operand.vmem [shape: f32[32,16,32], index: 0, kind: input, shape index: {}]   ;;  %s8631_s1 = inlined_call_operand.vmem [shape: f32[32,4,32], index: 1, kind: input, shape index: {}]   ;;  %s8632_s2 = inlined_call_operand.vmem [shape: bf16[4,32,8], index: 2, kind: input, shape index: {}]   ;;  %s8633_s3 = inlined_call_operand.vmem [shape: f32[4,1,8], index: 3, kind: input, shape index: {}]   ;;  %s8634_s4 = inlined_call_operand.vmem [shape: bf16[4,32,8], index: 4, kind: input, shape index: {}]   ;;  %s8635_s5 = inlined_call_operand.vmem [shape: f32[4,1,8], index: 5, kind: input, shape index: {}]   ;;  %s8636_s6 = inlined_call_operand.vmem [shape: bf16[4,32,8], index: 6, kind: input, shape index: {}]   ;;  %s8637_s7 = inlined_call_operand.vmem [shape: f32[4,1,8], index: 7, kind: input, shape index: {}]   ;;  %s8638_s8 = inlined_call_operand.vmem [shape: f32[32,16,32], index: 8, kind: output, shape index: {}]  }
   0x1 LB: > { %s5760_s28 = sadd.s32 4294967295, %s7001_s27   ;;  %p5764_p0 = scmp.ge.s32.totalorder %s7001_s27, 1  ;;  %s7001_s27 = sphi %s7053_s27, %s18_s27  }
   0x2   : > { %p275_p1 = scmp.lt.s32.totalorder %s7001_s27, 5 }
   0x4   : > { %p276_p2 = pnand %p5764_p0, %p275_p1 }
   0x6   : > { %279 = sbr.rel (%p276_p2) target bundleno = 3527 (0xdc7), region = 52 }
   0xd   : > { %v6711_v0 = vld [vmem:[%s8634_s4] sm:$0xff]   ;;  %s5765_s9 = sshll.u32 %s5760_s28, 3  ;;  %v6713_v2 = vld [vmem:[%s8634_s4 + $0x8] sm:$0xff]   ;;  %vm410_vm0 = vcmask 261120   ;;  %v8639_v36 = vmov 0.0   ;;  %vm7004_vm1 = vmmov 0  }
   0xe   : > { %v6712_v1 = vld [vmem:[%s8632_s2] sm:$0xff]   ;;  %p317_p3 = scmp.lt.s32.totalorder %s5765_s9, 31  ;;  %6190 = vmatprep.subr.bf16.mxu1 %v6711_v0  ;;  %v6714_v3 = vld [vmem:[%s8632_s2 + $0x8] sm:$0xff]   ;;  %vm722_vm2 = vcmask 64512   ;;  %vm1295_vm3 = vcmask 1041408   ;;  %vm1099_vm4 = vcmask 31744  }
   0xf   : > { %6170 = vmatprep.subr.bf16.mxu0 %v6712_v1  ;;  %6191 = vmatpush3.bf16.msra.mxu1 %v6711_v0  ;;  %v6719_v4 = vld [vmem:[%s8636_s6] sm:$0xff]   ;;  %v6720_v20 = vld [vmem:[%s8636_s6 + $0x8] sm:$0xff]   ;;  %s7005_s10 = smov 8   ;;  %s7006_s11 = smov 16   ;;  %vm3003_vm5 = vcmask 130112   ;;  %vm4338_vm6 = vcmask 195712  }
  0x10   : > { %s8646_s9 = smov (!%p317_p3, %s5765_s9), 31  ;;  %6171 = vmatpush3.bf16.msra.mxu0 %v6712_v1  ;;  %6192 = vmatprep.subr.bf16.mxu1 %v6713_v2  ;;  %v7162_v37 = vld [vmem:[%s8633_s3] ss:$0 sm:$0xff]  ;;  %s7007_s12 = smov 24   ;;  %vm5673_vm7 = vcmask 261312  }
  0x11   : > { %6172 = vmatprep.subr.bf16.mxu0 %v6714_v3  ;;  %s5968_s18 = sshll.u32 %s8646_s9, 4  ;;  %s5769_s19 = sshll.u32 %s8646_s9, 2  ;;  %v5784_v38 = vld [vmem:[%s8635_s5] ss:$0 sm:$0xff] }
  0x12   : > { %s7085_s22 = scalar_lea.vmem %s8630_s0, %s5968_s18  ;;  %s327_s25 = scalar_lea.vmem %s8631_s1, %s5769_s19  ;;  %v5789_v57 = vld [vmem:[%s8637_s7] ss:$0 sm:$0xff] }
  0x13   : > { %6193 = vmatpush3.bf16.msra.mxu1 %v6713_v2  ;;  %v6715_v5 = vld [vmem:[%s327_s25] sm:$0xff]   ;;  %v6716_v6 = vld [vmem:[%s327_s25 + $0x8] sm:$0xff]   ;;  %v6717_v11 = vld [vmem:[%s327_s25 + $0x10] sm:$0xff]   ;;  %s7484_s30 = scalar_lea.vmem %s8638_s8, %s5968_s18 }
  0x14   : > { %6173 = vmatpush3.bf16.msra.mxu0 %v6714_v3  ;;  %6198 = vmatprep.subr.bf16.mxu1 %v6719_v4  ;;  %v337_v7 = vld [vmem:[%s7085_s22] sm:$0xff]  ;;  %v338_v8 = vld [vmem:[%s7085_s22 + $0x8] sm:$0xff]  ;;  %v7092_v9 = vpack.c.bf16 %v6716_v6, %v6715_v5  ;;  %v6718_v12 = vld [vmem:[%s327_s25 + $0x18] sm:$0xff]  }
  0x15   : > { %v7094_v10 = vpack.c.bf16 %v338_v8, %v337_v7  ;;  %v339_v13 = vld [vmem:[%s7085_s22 + $0x10] sm:$0xff]  ;;  %v340_v14 = vld [vmem:[%s7085_s22 + $0x18] sm:$0xff]  ;;  %v341_v15 = vld [vmem:[%s7085_s22 + $0x20] sm:$0xff]  ;;  %v7104_v17 = vpack.c.bf16 %v6718_v12, %v6717_v11  ;;  %6218 = vmatprep.subr.bf16.mxu0 %v8639_v36 }
  0x16   : > { %6194 = vmatprep.mubr.msk.bf16.mxu1 %vm410_vm0, %v7092_v9  ;;  %v342_v16 = vld [vmem:[%s7085_s22 + $0x28] sm:$0xff]  ;;  %v7106_v18 = vpack.c.bf16 %v340_v14, %v339_v13  ;;  %v343_v21 = vld [vmem:[%s7085_s22 + $0x30] sm:$0xff]  ;;  %v344_v22 = vld [vmem:[%s7085_s22 + $0x38] sm:$0xff] }
  0x17   : > { %6174 = vmatprep.mubr.msk.bf16.mxu0 %vm410_vm0, %v7094_v10  ;;  %v7108_v19 = vpack.c.bf16 %v342_v16, %v341_v15  ;;  %6195 = vmatmul.mubr.msk.bf16.vlgmr.msra.gmra.mrb[0].mxu1 %vm410_vm0, %v7104_v17  ;;  %v345_v23 = vld [vmem:[%s7085_s22 + $0x40] sm:$0xff]  ;;  %v346_v24 = vld [vmem:[%s7085_s22 + $0x48] sm:$0xff]  ;;  %v7125_v25 = vpack.c.bf16 %v344_v22, %v343_v21  ;;  %v347_v27 = vld [vmem:[%s7085_s22 + $0x50] sm:$0xff] }
  0x18   : > { %6175 = vmatmul.mubr.msk.bf16.vlgmr.msra.gmra.mrb[0].mxu0 %vm410_vm0, %v7106_v18  ;;  %6199 = vmatpush3.bf16.msra.mxu1 %v6719_v4  ;;  %v7127_v26 = vpack.c.bf16 %v346_v24, %v345_v23  ;;  %v348_v28 = vld [vmem:[%s7085_s22 + $0x58] sm:$0xff]  ;;  %v349_v29 = vld [vmem:[%s7085_s22 + $0x60] sm:$0xff]  ;;  %v350_v30 = vld [vmem:[%s7085_s22 + $0x68] sm:$0xff] }
  0x19   : > { %6178 = vmatprep.mubr.msk.bf16.mxu0 %vm410_vm0, %v7108_v19  ;;  %6200 = vmatprep.subr.bf16.mxu1 %v6720_v20  ;;  %v7139_v31 = vpack.c.bf16 %v348_v28, %v347_v27  ;;  %v7141_v32 = vpack.c.bf16 %v350_v30, %v349_v29  ;;  %v351_v33 = vld [vmem:[%s7085_s22 + $0x70] sm:$0xff]  ;;  %v352_v34 = vld [vmem:[%s7085_s22 + $0x78] sm:$0xff] }
  0x1a   : > { %6202 = vmatprep.mubr.msk.bf16.mxu1 %vm410_vm0, %v7092_v9  ;;  %v7149_v35 = vpack.c.bf16 %v352_v34, %v351_v33 }
  0x1c   : > { %6201 = vmatpush3.bf16.msra.mxu1 %v6720_v20 }
  0x1d   : > { %6206 = vmatprep.subr.bf16.mxu1 %v8639_v36 }
  0x1f   : > { %6203 = vmatmul.mubr.msk.bf16.vlgmr.msra.gmra.mrb[4].mxu1 %vm410_vm0, %v7104_v17 }
  0x20   : > { %6179 = vmatmul.mubr.msk.bf16.gmra.mrb[4].mxu0 %vm410_vm0, %v7125_v25  ;;  %6208 = vmatprep.mubr.msk.bf16.mxu1 %vm7004_vm1, %v8639_v36 }
  0x21   : > { %6182 = vmatprep.mubr.msk.bf16.mxu0 %vm410_vm0, %v7127_v26 }
  0x28   : > { %6183 = vmatmul.mubr.msk.bf16.gmra.mrb[8].mxu0 %vm410_vm0, %v7139_v31 }
  0x29   : > { %6186 = vmatprep.mubr.msk.bf16.mxu0 %vm410_vm0, %v7141_v32 }
  0x30   : > { %6187 = vmatmul.mubr.msk.bf16.gmra.mrb[12].mxu0 %vm410_vm0, %v7149_v35 }
  0x31   : > { %6220 = vmatprep.mubr.msk.bf16.mxu0 %vm7004_vm1, %v8639_v36 }
  0xea   : > { %v6196_v39 = vpop.f32.mrb[0].mxu1 }
  0xeb   : > { %v6176_v40 = vpop.f32.mrb[0].mxu0  ;;  %v595_v41 = vpop.f32.mrb[1].mxu1  ;;  %v604_v60 = vadd.f32 %v6196_v39, %v5784_v38 }
  0xec   : > { %v7168_v42 = vadd.f32 %v6176_v40, %v7162_v37  ;;  %v469_v43 = vpop.f32.mrb[1].mxu0  ;;  %v596_v44 = vadd.f32 %v5784_v38, %v595_v41  ;;  %v6197_v45 = vpop.f32.mrb[2].mxu1 }
  0xed   : > { %v470_v46 = vadd.f32 %v7162_v37, %v469_v43  ;;  %v6177_v47 = vpop.f32.mrb[2].mxu0  ;;  %v598_v48 = vpop.f32.mrb[3].mxu1  ;;  %v718_v14 = vpack.c.bf16 %v604_v60, %v604_v60  ;;  %v607_v24 = vadd.f32 %v6197_v45, %v5784_v38  ;;  %v616_v45 = vcombine.high %v604_v60, %v604_v60 }
  0xee   : > { %v7172_v49 = vadd.f32 %v6177_v47, %v7162_v37  ;;  %v472_v50 = vpop.f32.mrb[3].mxu0  ;;  %v714_v51 = vpack.c.bf16 %v596_v44, %v596_v44  ;;  %v599_v52 = vadd.f32 %v5784_v38, %v598_v48  ;;  %v614_v58 = vcombine.high %v596_v44, %v596_v44 }
  0xef   : > { %v473_v53 = vadd.f32 %v7162_v37, %v472_v50  ;;  %v915_v28 = vsel %vm722_vm2, %v718_v14, 0  ;;  %v720_v41 = vpack.c.bf16 %v607_v24, %v607_v24 }
  0xf0   : > { %v707_v54 = vpack.c.bf16 %v7172_v49, %v7168_v42  ;;  %v716_v55 = vpack.c.bf16 %v599_v52, %v599_v52  ;;  %v727_v59 = vsel %vm722_vm2, %v714_v51, 0  ;;  %v715_v7 = vpack.c.bf16 %v614_v58, %v614_v58 }
  0xf1   : > { %v706_v56 = vpack.c.bf16 %v473_v53, %v470_v46  ;;  %6207 = vmatpush3.bf16.xpose.msra.mxu1 %v727_v59  ;;  %v615_v22 = vcombine.high %v599_v52, %v599_v52  ;;  %v1009_v48 = vsel %vm722_vm2, %v720_v41, 0 }
  0xf2   : > { %v821_v62 = vsel %vm722_vm2, %v716_v55, 0  ;;  %v6204_v63 = vpop.f32.mrb[4].mxu1  ;;  %6212 = vmatprep.subr.bf16.mxu1 %v8639_v36  ;;  %v774_v23 = vsel %vm722_vm2, %v715_v7, 0 }
  0xf3   : > { %v6180_v61 = vpop.f32.mrb[4].mxu0  ;;  %6219 = vmatpush3.bf16.xpose.msra.mxu0 %v821_v62  ;;  %v7186_v2 = vadd.f32 %v6204_v63, %v5789_v57  ;;  %v679_v3 = vpop.f32.mrb[5].mxu1  ;;  %v717_v38 = vpack.c.bf16 %v615_v22, %v615_v22 }
  0xf4   : > { %v7183_v0 = vadd.f32 %v6180_v61, %v7162_v37  ;;  %v485_v1 = vpop.f32.mrb[5].mxu0  ;;  %6230 = vmatprep.subr.bf16.mxu0 %v8639_v36  ;;  %v6205_v6 = vpop.f32.mrb[6].mxu1  ;;  %v680_v47 = vadd.f32 %v5789_v57, %v679_v3  ;;  %v617_v61 = vcombine.high %v607_v24, %v607_v24 }
  0xf5   : > { %v486_v4 = vadd.f32 %v7162_v37, %v485_v1  ;;  %v6181_v5 = vpop.f32.mrb[6].mxu0  ;;  %v7191_v12 = vadd.f32 %v6205_v6, %v5789_v57  ;;  %v682_v13 = vpop.f32.mrb[7].mxu1  ;;  %v868_v46 = vsel %vm722_vm2, %v717_v38, 0 }
  0xf6   : > { %v497_v8 = vadd.f32 %v6181_v5, %v7162_v37  ;;  %v488_v11 = vpop.f32.mrb[7].mxu0  ;;  %v7194_v16 = vadd.f32 %v5789_v57, %v682_v13  ;;  %v1284_v57 = vpack.c.bf16 %v680_v47, %v680_v47  ;;  %v698_v1 = vcombine.high %v680_v47, %v680_v47 }
  0xf7   : > { %v489_v15 = vadd.f32 %v7162_v37, %v488_v11 }
  0xf8   : > { %v709_v20 = vpack.c.bf16 %v497_v8, %v7183_v0  ;;  %6209 = vmatmul.mubr.msk.bf16.vlgmr.msra.gmra.mrb[8].mxu1 %vm722_vm2, %v706_v56  ;;  %v1297_v63 = vsel %vm1295_vm3, %v1284_v57, 0  ;;  %v1285_v3 = vpack.c.bf16 %v698_v1, %v698_v1 }
  0xf9   : > { %v708_v21 = vpack.c.bf16 %v489_v15, %v486_v4  ;;  %6213 = vmatpush3.bf16.xpose.msra.mxu1 %v774_v23  ;;  %6214 = vmatprep.mubr.msk.bf16.mxu1 %vm7004_vm1, %v8639_v36 }
  0xfa   : > { %6224 = vmatprep.subr.bf16.mxu1 %v8639_v36  ;;  %v1344_v4 = vsel %vm1295_vm3, %v1285_v3, 0 }
  0xfb   : > { %v6184_v27 = vpop.f32.mrb[8].mxu0  ;;  %6221 = vmatmul.mubr.msk.bf16.vlgmr.msra.gmra.mrb[16].mxu0 %vm722_vm2, %v708_v21 }
  0xfc   : > { %v510_v29 = vadd.f32 %v6184_v27, %v7162_v37  ;;  %6231 = vmatpush3.bf16.xpose.msra.mxu0 %v915_v28  ;;  %v501_v30 = vpop.f32.mrb[9].mxu0  ;;  %6232 = vmatprep.mubr.msk.bf16.mxu0 %vm7004_vm1, %v8639_v36 }
  0xfd   : > { %v502_v33 = vadd.f32 %v7162_v37, %v501_v30  ;;  %v6185_v34 = vpop.f32.mrb[10].mxu0  ;;  %6242 = vmatprep.subr.bf16.mxu0 %v8639_v36 }
  0xfe   : > { %v513_v39 = vadd.f32 %v6185_v34, %v7162_v37  ;;  %v504_v40 = vpop.f32.mrb[11].mxu0 }
  0xff   : > { %v505_v42 = vadd.f32 %v7162_v37, %v504_v40 }
 0x100   : > { %v711_v43 = vpack.c.bf16 %v513_v39, %v510_v29  ;;  %6215 = vmatmul.mubr.msk.bf16.vlgmr.msra.gmra.mrb[12].mxu1 %vm722_vm2, %v707_v54  ;;  %v719_v54 = vpack.c.bf16 %v616_v45, %v616_v45 }
 0x101   : > { %v710_v44 = vpack.c.bf16 %v505_v42, %v502_v33  ;;  %6225 = vmatpush3.bf16.xpose.msra.mxu1 %v868_v46  ;;  %6226 = vmatprep.mubr.msk.bf16.mxu1 %vm7004_vm1, %v8639_v36 }
 0x102   : > { %6236 = vmatprep.subr.bf16.mxu1 %v8639_v36  ;;  %v962_v62 = vsel %vm722_vm2, %v719_v54, 0 }
 0x103   : > { %6233 = vmatmul.mubr.msk.bf16.vlgmr.msra.gmra.mrb[20].mxu0 %vm722_vm2, %v710_v44  ;;  %v6188_v49 = vpop.f32.mrb[12].mxu0 }
 0x104   : > { %6243 = vmatpush3.bf16.xpose.msra.mxu0 %v1009_v48  ;;  %v526_v50 = vadd.f32 %v6188_v49, %v7162_v37  ;;  %v517_v51 = vpop.f32.mrb[13].mxu0  ;;  %6244 = vmatprep.mubr.msk.bf16.mxu0 %vm7004_vm1, %v8639_v36 }
 0x105   : > { %v518_v52 = vadd.f32 %v7162_v37, %v517_v51  ;;  %v6189_v53 = vpop.f32.mrb[14].mxu0  ;;  %6254 = vmatprep.subr.bf16.mxu0 %v8639_v36 }
 0x106   : > { %v529_v55 = vadd.f32 %v6189_v53, %v7162_v37  ;;  %v520_v56 = vpop.f32.mrb[15].mxu0 }
 0x107   : > { %v521_v58 = vadd.f32 %v7162_v37, %v520_v56  ;;  %v721_v37 = vpack.c.bf16 %v617_v61, %v617_v61 }
 0x108   : > { %v713_v59 = vpack.c.bf16 %v529_v55, %v526_v50  ;;  %6227 = vmatmul.mubr.msk.bf16.vlgmr.msra.gmra.mrb[16].mxu1 %vm722_vm2, %v709_v20 }
 0x109   : > { %v712_v60 = vpack.c.bf16 %v521_v58, %v518_v52  ;;  %6237 = vmatpush3.bf16.xpose.msra.mxu1 %v962_v62  ;;  %6238 = vmatprep.mubr.msk.bf16.mxu1 %vm7004_vm1, %v8639_v36  ;;  %v1056_v0 = vsel %vm722_vm2, %v721_v37, 0 }
 0x10a   : > { %6248 = vmatprep.subr.bf16.mxu1 %v8639_v36 }
 0x10b   : > { %6245 = vmatmul.mubr.msk.bf16.vlgmr.msra.gmra.mrb[24].mxu0 %vm722_vm2, %v712_v60 }
 0x10c   : > { %6255 = vmatpush3.bf16.msra.mxu0 %v1297_v63  ;;  %6256 = vmatprep.mubr.msk.bf16.mxu0 %vm7004_vm1, %v8639_v36 }
 0x10d   : > { %6266 = vmatprep.subr.bf16.mxu0 %v8639_v36 }
 0x110   : > { %6239 = vmatmul.mubr.msk.bf16.vlgmr.msra.gmra.mrb[20].mxu1 %vm722_vm2, %v711_v43 }
 0x111   : > { %6249 = vmatpush3.bf16.xpose.msra.mxu1 %v1056_v0  ;;  %6250 = vmatprep.mubr.msk.bf16.mxu1 %vm7004_vm1, %v8639_v36 }
 0x112   : > { %6260 = vmatprep.subr.bf16.mxu1 %v8639_v36 }
 0x118   : > { %6251 = vmatmul.mubr.msk.bf16.vlgmr.msra.gmra.mrb[24].mxu1 %vm722_vm2, %v713_v59 }
 0x119   : > { %6262 = vmatprep.mubr.msk.bf16.mxu1 %vm7004_vm1, %v8639_v36  ;;  %6261 = vmatpush3.bf16.msra.mxu1 %v1344_v4 }
 0x11a   : > { %6272 = vmatprep.subr.bf16.mxu1 %v8639_v36 }
 0x1cb   : > { %v7245_v5 = vpop.f32.mrb[8].mxu1 }
 0x1cc   : > { %v6210_v6 = vpop.f32.mrb[9].mxu1  ;;  %v1100_v7 = vsel %vm1099_vm4, %v7245_v5, -inf }
 0x1cd   : > { %1101 = vmax.xlane.f32.xlu1 %v1100_v7  ;;  %v7251_v11 = vpop.f32.mrb[10].mxu1 }
 0x1ce   : > { %v7249_v8 = vpop.f32.mrb[16].mxu0  ;;  %v6211_v14 = vpop.f32.mrb[11].mxu1  ;;  %v1103_v21 = vsel %vm1099_vm4, %v7251_v11, -inf }
 0x1cf   : > { %v6222_v13 = vpop.f32.mrb[17].mxu0  ;;  %v1112_v48 = vsel %vm1099_vm4, %v7249_v8, -inf }
 0x1d0   : > { %v7253_v15 = vpop.f32.mrb[18].mxu0 }
 0x1d1   : > { %v6223_v20 = vpop.f32.mrb[19].mxu0  ;;  %1104 = vmax.xlane.f32.xlu1 %v1103_v21  ;;  %v1115_v50 = vsel %vm1099_vm4, %v7253_v15, -inf }
 0x1d3   : > { %v810_v22 = vpop.f32.mrb[12].mxu1 }
 0x1d4   : > { %v6216_v23 = vpop.f32.mrb[13].mxu1  ;;  %v1106_v24 = vsel %vm1099_vm4, %v810_v22, -inf }
 0x1d5   : > { %1107 = vmax.xlane.f32.xlu0 %v1106_v24  ;;  %v813_v28 = vpop.f32.mrb[14].mxu1 }
 0x1d6   : > { %v7258_v27 = vpop.f32.mrb[20].mxu0  ;;  %v6217_v30 = vpop.f32.mrb[15].mxu1  ;;  %v1109_v38 = vsel %vm1099_vm4, %v813_v28, -inf }
 0x1d7   : > { %v6234_v29 = vpop.f32.mrb[21].mxu0  ;;  %v1124_v57 = vsel %vm1099_vm4, %v7258_v27, -inf }
 0x1d8   : > { %v7260_v33 = vpop.f32.mrb[22].mxu0 }
 0x1d9   : > { %v6235_v34 = vpop.f32.mrb[23].mxu0  ;;  %1110 = vmax.xlane.f32.xlu0 %v1109_v38  ;;  %v1127_v58 = vsel %vm1099_vm4, %v7260_v33, -inf }
 0x1db   : > { %v904_v39 = vpop.f32.mrb[16].mxu1 }
 0x1dc   : > { %v6228_v40 = vpop.f32.mrb[17].mxu1  ;;  %v1118_v41 = vsel %vm1099_vm4, %v904_v39, -inf }
 0x1dd   : > { %1119 = vmax.xlane.f32.xlu0 %v1118_v41  ;;  %v907_v42 = vpop.f32.mrb[18].mxu1 }
 0x1de   : > { %v7264_v43 = vpop.f32.mrb[24].mxu0  ;;  %v6229_v44 = vpop.f32.mrb[19].mxu1  ;;  %v1121_v45 = vsel %vm1099_vm4, %v907_v42, -inf }
 0x1df   : > { %v6246_v46 = vpop.f32.mrb[25].mxu0  ;;  %1122 = vmax.xlane.f32.xlu1 %v1121_v45  ;;  %v1136_v0 = vsel %vm1099_vm4, %v7264_v43, -inf }
 0x1e0   : > { %v7267_v47 = vpop.f32.mrb[26].mxu0 }
 0x1e1   : > { %v6247_v49 = vpop.f32.mrb[27].mxu0  ;;  %1113 = vmax.xlane.f32.xlu0 %v1112_v48  ;;  %v1139_v1 = vsel %vm1099_vm4, %v7267_v47, -inf }
 0x1e3   : > { %1116 = vmax.xlane.f32.xlu1 %v1115_v50  ;;  %v7273_v51 = vpop.f32.mrb[20].mxu1 }
 0x1e4   : > { %v6240_v52 = vpop.f32.mrb[21].mxu1  ;;  %v1130_v53 = vsel %vm1099_vm4, %v7273_v51, -inf }
 0x1e5   : > { %1131 = vmax.xlane.f32.xlu0 %v1130_v53  ;;  %v7277_v54 = vpop.f32.mrb[22].mxu1 }
 0x1e6   : > { %v6241_v55 = vpop.f32.mrb[23].mxu1  ;;  %v1133_v56 = vsel %vm1099_vm4, %v7277_v54, -inf }
 0x1e7   : > { %1134 = vmax.xlane.f32.xlu1 %v1133_v56 }
 0x1e9   : > { %1125 = vmax.xlane.f32.xlu0 %v1124_v57 }
 0x1eb   : > { %1128 = vmax.xlane.f32.xlu1 %v1127_v58  ;;  %v7285_v59 = vpop.f32.mrb[24].mxu1 }
 0x1ec   : > { %v6252_v60 = vpop.f32.mrb[25].mxu1  ;;  %v1142_v61 = vsel %vm1099_vm4, %v7285_v59, -inf }
 0x1ed   : > { %1143 = vmax.xlane.f32.xlu0 %v1142_v61  ;;  %v7289_v62 = vpop.f32.mrb[26].mxu1 }
 0x1ee   : > { %v6253_v63 = vpop.f32.mrb[27].mxu1  ;;  %v1145_v37 = vsel %vm1099_vm4, %v7289_v62, -inf }
 0x1ef   : > { %1146 = vmax.xlane.f32.xlu1 %v1145_v37 }
 0x1f1   : > { %1137 = vmax.xlane.f32.xlu0 %v1136_v0 }
 0x1f3   : > { %1140 = vmax.xlane.f32.xlu1 %v1139_v1 }
 0x25a   : > { %v1102_v3 = vpop.xlane.xlu1 %1101 }
 0x25b   : > { %v1148_v4 = vsub.f32 %v7245_v5, %v1102_v3 }
 0x25d   : > { %v1164_v14 = vmul.f32 1.442695, %v1148_v4 }
 0x25e   : > { %v1105_v6 = vpop.xlane.xlu1 %1104 }
 0x25f   : > { %v1149_v20 = vsub.f32 %v7251_v11, %v1105_v6 }
 0x261   : > { %v1166_v29 = vmul.f32 1.442695, %v1149_v20 }
 0x262   : > { %v1108_v7 = vpop.xlane.xlu0 %1107 }
 0x263   : > { %v1150_v13 = vsub.f32 %v810_v22, %v1108_v7 }
 0x265   : > { %v1168_v21 = vmul.f32 1.442695, %v1150_v13 }
 0x266   : > { %v1111_v23 = vpop.xlane.xlu0 %1110 }
 0x267   : > { %6739 = vpow2.f32 %v1168_v21  ;;  %v1151_v24 = vsub.f32 %v813_v28, %v1111_v23 }
 0x268   : > { %6741 = vpow2.f32 %v1164_v14 }
 0x269   : > { %v1170_v30 = vmul.f32 1.442695, %v1151_v24 }
 0x26a   : > { %v1120_v34 = vpop.xlane.xlu0 %1119 }
 0x26b   : > { %6743 = vpow2.f32 %v1170_v30  ;;  %v1154_v38 = vsub.f32 %v904_v39, %v1120_v34 }
 0x26c   : > { %v1123_v40 = vpop.xlane.xlu1 %1122  ;;  %6745 = vpow2.f32 %v1166_v29 }
 0x26d   : > { %v1176_v41 = vmul.f32 1.442695, %v1154_v38  ;;  %v1155_v5 = vsub.f32 %v907_v42, %v1123_v40 }
 0x26e   : > { %v1114_v44 = vpop.xlane.xlu0 %1113 }
 0x26f   : > { %6747 = vpow2.f32 %v1176_v41  ;;  %v1178_v22 = vmul.f32 1.442695, %v1155_v5  ;;  %v1152_v45 = vsub.f32 %v7249_v8, %v1114_v44 }
 0x270   : > { %v1117_v11 = vpop.xlane.xlu1 %1116 }
 0x271   : > { %v7300_v46 = vpop.eup %6739  ;;  %6749 = vpow2.f32 %v1178_v22  ;;  %v1172_v28 = vmul.f32 1.442695, %v1152_v45  ;;  %v1153_v48 = vsub.f32 %v7253_v15, %v1117_v11 }
 0x272   : > { %v1132_v49 = vpop.xlane.xlu0 %1131  ;;  %v1202_v39 = vsel %vm1099_vm4, %v7300_v46, 0.0  ;;  %v7305_v50 = vpop.eup %6741 }
 0x273   : > { %6751 = vpow2.f32 %v1172_v28  ;;  %v1174_v42 = vmul.f32 1.442695, %v1153_v48  ;;  %v1158_v52 = vsub.f32 %v7273_v51, %v1132_v49  ;;  %1203 = vadd.xlane.f32.xlu0 %v1202_v39  ;;  %v1196_v15 = vsel %vm1099_vm4, %v7305_v50, 0.0 }
 0x274   : > { %v1135_v53 = vpop.xlane.xlu1 %1134 }
 0x275   : > { %v7308_v8 = vpop.eup %6743  ;;  %6753 = vpow2.f32 %v1174_v42  ;;  %v1184_v55 = vmul.f32 1.442695, %v1158_v52  ;;  %v1159_v56 = vsub.f32 %v7277_v54, %v1135_v53 }
 0x276   : > { %v1126_v57 = vpop.xlane.xlu0 %1125  ;;  %v1205_v58 = vsel %vm1099_vm4, %v7308_v8, 0.0  ;;  %v7315_v60 = vpop.eup %6745 }
 0x277   : > { %6755 = vpow2.f32 %v1184_v55  ;;  %v1186_v61 = vmul.f32 1.442695, %v1159_v56  ;;  %v1156_v51 = vsub.f32 %v7258_v27, %v1126_v57  ;;  %1197 = vadd.xlane.f32.xlu0 %v1196_v15  ;;  %1206 = vadd.xlane.f32.xlu1 %v1205_v58  ;;  %v1199_v4 = vsel %vm1099_vm4, %v7315_v60, 0.0 }
 0x278   : > { %v1129_v63 = vpop.xlane.xlu1 %1128 }
 0x279   : > { %v7318_v37 = vpop.eup %6747  ;;  %6757 = vpow2.f32 %v1186_v61  ;;  %v1180_v54 = vmul.f32 1.442695, %v1156_v51  ;;  %v1157_v0 = vsub.f32 %v7260_v33, %v1129_v63 }
 0x27a   : > { %v1144_v1 = vpop.xlane.xlu0 %1143  ;;  %v1214_v3 = vsel %vm1099_vm4, %v7318_v37, 0.0 }
 0x27b   : > { %v7325_v6 = vpop.eup %6749  ;;  %6759 = vpow2.f32 %v1180_v54  ;;  %v1182_v27 = vmul.f32 1.442695, %v1157_v0  ;;  %v1162_v7 = vsub.f32 %v7285_v59, %v1144_v1  ;;  %1215 = vadd.xlane.f32.xlu0 %v1214_v3  ;;  %1200 = vadd.xlane.f32.xlu1 %v1199_v4  ;;  %v699_v0 = vcombine.high %v7194_v16, %v7194_v16 }
 0x27c   : > { %v1147_v13 = vpop.xlane.xlu1 %1146  ;;  %v1217_v24 = vsel %vm1099_vm4, %v7325_v6, 0.0 }
 0x27d   : > { %v7328_v14 = vpop.eup %6751  ;;  %6761 = vpow2.f32 %v1182_v27  ;;  %v1192_v33 = vmul.f32 1.442695, %v1162_v7  ;;  %v1163_v20 = vsub.f32 %v7289_v62, %v1147_v13  ;;  %v1287_v7 = vpack.c.bf16 %v699_v0, %v699_v0 }
 0x27e   : > { %v1138_v21 = vpop.xlane.xlu0 %1137  ;;  %v1208_v23 = vsel %vm1099_vm4, %v7328_v14, 0.0 }
 0x27f   : > { %v7335_v29 = vpop.eup %6753  ;;  %6763 = vpow2.f32 %v1192_v33  ;;  %v1194_v59 = vmul.f32 1.442695, %v1163_v20  ;;  %v1160_v30 = vsub.f32 %v7264_v43, %v1138_v21  ;;  %1209 = vadd.xlane.f32.xlu0 %v1208_v23  ;;  %1218 = vadd.xlane.f32.xlu1 %v1217_v24  ;;  %v700_v24 = vcombine.high %v7186_v2, %v7186_v2 }
 0x280   : > { %v1141_v34 = vpop.xlane.xlu1 %1140  ;;  %v1211_v5 = vsel %vm1099_vm4, %v7335_v29, 0.0 }
 0x281   : > { %v7338_v38 = vpop.eup %6755  ;;  %6765 = vpow2.f32 %v1194_v59  ;;  %v1188_v62 = vmul.f32 1.442695, %v1160_v30  ;;  %v1161_v40 = vsub.f32 %v7267_v47, %v1141_v34  ;;  %v1286_v34 = vpack.c.bf16 %v7194_v16, %v7194_v16 }
 0x282   : > { %v1226_v41 = vsel %vm1099_vm4, %v7338_v38, 0.0 }
 0x283   : > { %v7345_v44 = vpop.eup %6757  ;;  %6767 = vpow2.f32 %v1188_v62  ;;  %v1190_v22 = vmul.f32 1.442695, %v1161_v40  ;;  %1227 = vadd.xlane.f32.xlu0 %v1226_v41  ;;  %1212 = vadd.xlane.f32.xlu1 %v1211_v5 }
 0x284   : > { %v1229_v47 = vsel %vm1099_vm4, %v7345_v44, 0.0 }
 0x285   : > { %v7347_v43 = vpop.eup %6759  ;;  %6769 = vpow2.f32 %v1190_v22 }
 0x286   : > { %v1220_v45 = vsel %vm1099_vm4, %v7347_v43, 0.0 }
 0x287   : > { %v7353_v11 = vpop.eup %6761  ;;  %1221 = vadd.xlane.f32.xlu0 %v1220_v45  ;;  %1230 = vadd.xlane.f32.xlu1 %v1229_v47  ;;  %v1391_v47 = vsel %vm1295_vm3, %v1286_v34, 0  ;;  %v6723_v34 = vld [vmem:[%s8634_s4 + $0x18] sm:$0xff]  }
 0x288   : > { %v1223_v49 = vsel %vm1099_vm4, %v7353_v11, 0.0 }
 0x289   : > { %v7355_v28 = vpop.eup %6763 }
 0x28a   : > { %v1238_v48 = vsel %vm1099_vm4, %v7355_v28, 0.0 }
 0x28b   : > { %v7361_v39 = vpop.eup %6765  ;;  %1239 = vadd.xlane.f32.xlu0 %v1238_v48  ;;  %1224 = vadd.xlane.f32.xlu1 %v1223_v49 }
 0x28c   : > { %v1241_v53 = vsel %vm1099_vm4, %v7361_v39, 0.0 }
 0x28d   : > { %v7363_v42 = vpop.eup %6767 }
 0x28e   : > { %v1232_v52 = vsel %vm1099_vm4, %v7363_v42, 0.0 }
 0x28f   : > { %v7369_v55 = vpop.eup %6769  ;;  %1233 = vadd.xlane.f32.xlu0 %v1232_v52  ;;  %1242 = vadd.xlane.f32.xlu1 %v1241_v53  ;;  %v701_v53 = vcombine.high %v7191_v12, %v7191_v12 }
 0x290   : > { %v1235_v56 = vsel %vm1099_vm4, %v7369_v55, 0.0 }
 0x293   : > { %1236 = vadd.xlane.f32.xlu1 %v1235_v56  ;;  %v1288_v56 = vpack.c.bf16 %v7186_v2, %v7186_v2  ;;  %v1291_v2 = vpack.c.bf16 %v701_v53, %v701_v53 }
 0x295   : > { %v1485_v0 = vsel %vm1295_vm3, %v1288_v56, 0 }
 0x300   : > { %v1204_v57 = vpop.xlane.xlu0 %1203 }
 0x301   : > { %6771 = vrcp.f32 %v1204_v57 }
 0x304   : > { %v1198_v15 = vpop.xlane.xlu0 %1197  ;;  %v1207_v58 = vpop.xlane.xlu1 %1206 }
 0x305   : > { %6773 = vrcp.f32 %v1207_v58 }
 0x306   : > { %6775 = vrcp.f32 %v1198_v15 }
 0x308   : > { %v1216_v61 = vpop.xlane.xlu0 %1215  ;;  %v1201_v51 = vpop.xlane.xlu1 %1200 }
 0x309   : > { %6777 = vrcp.f32 %v1201_v51 }
 0x30a   : > { %6779 = vrcp.f32 %v1216_v61 }
 0x30b   : > { %v6772_v1 = vpop.eup %6771 }
 0x30c   : > { %v1210_v63 = vpop.xlane.xlu0 %1209  ;;  %v1219_v54 = vpop.xlane.xlu1 %1218  ;;  %v1262_v13 = vmul.f32 %v6772_v1, %v7300_v46  ;;  %v1438_v46 = vsel %vm1295_vm3, %v1287_v7, 0 }
 0x30d   : > { %6781 = vrcp.f32 %v1219_v54 }
 0x30e   : > { %6783 = vrcp.f32 %v1210_v63 }
 0x30f   : > { %v6774_v3 = vpop.eup %6773 }
 0x310   : > { %v1228_v4 = vpop.xlane.xlu0 %1227  ;;  %v1213_v27 = vpop.xlane.xlu1 %1212  ;;  %v1263_v33 = vmul.f32 %v6774_v3, %v7308_v8 }
 0x311   : > { %v6776_v20 = vpop.eup %6775  ;;  %6785 = vrcp.f32 %v1213_v27 }
 0x312   : > { %v1277_v21 = vpack.c.bf16 %v1263_v33, %v1262_v13  ;;  %6787 = vrcp.f32 %v1228_v4  ;;  %v1260_v62 = vmul.f32 %v6776_v20, %v7305_v50  ;;  %v1289_v50 = vpack.c.bf16 %v700_v24, %v700_v24  ;;  %v6721_v4 = vld [vmem:[%s8634_s4 + $0x10] sm:$0xff]  }
 0x313   : > { %v6778_v23 = vpop.eup %6777  ;;  %v1626_v13 = vsel %vm1295_vm3, %v1291_v2, 0 }
 0x314   : > { %v1222_v59 = vpop.xlane.xlu0 %1221  ;;  %v1231_v30 = vpop.xlane.xlu1 %1230  ;;  %v1261_v40 = vmul.f32 %v6778_v23, %v7315_v60  ;;  %6263 = vmatmul.mubr.msk.bf16.vlgmr.msra.gmra.mrb[28].mxu1 %vm1099_vm4, %v1277_v21  ;;  %v1532_v58 = vsel %vm1295_vm3, %v1289_v50, 0  ;;  %v6722_v21 = vld [vmem:[%s8632_s2 + $0x10] sm:$0xff]  }
 0x315   : > { %v6780_v8 = vpop.eup %6779  ;;  %6273 = vmatpush3.bf16.msra.mxu1 %v1438_v46  ;;  %6789 = vrcp.f32 %v1231_v30  ;;  %6274 = vmatprep.mubr.msk.bf16.mxu1 %vm7004_vm1, %v8639_v36 }
 0x316   : > { %v1276_v41 = vpack.c.bf16 %v1261_v40, %v1260_v62  ;;  %6284 = vmatprep.subr.bf16.mxu1 %v8639_v36  ;;  %6791 = vrcp.f32 %v1222_v59  ;;  %v1266_v60 = vmul.f32 %v6780_v8, %v7318_v37  ;;  %v6724_v40 = vld [vmem:[%s8632_s2 + $0x18] sm:$0xff]  }
 0x317   : > { %v6782_v5 = vpop.eup %6781 }
 0x318   : > { %v1240_v16 = vpop.xlane.xlu0 %1239  ;;  %v1225_v22 = vpop.xlane.xlu1 %1224  ;;  %v1267_v45 = vmul.f32 %v6782_v5, %v7325_v6  ;;  %6257 = vmatmul.mubr.msk.bf16.vlgmr.msra.gmra.mrb[28].mxu0 %vm1099_vm4, %v1276_v41 }
 0x319   : > { %v6784_v48 = vpop.eup %6783  ;;  %6267 = vmatpush3.bf16.msra.mxu0 %v1391_v47  ;;  %6793 = vrcp.f32 %v1225_v22  ;;  %6268 = vmatprep.mubr.msk.bf16.mxu0 %vm7004_vm1, %v8639_v36 }
 0x31a   : > { %v1279_v49 = vpack.c.bf16 %v1267_v45, %v1266_v60  ;;  %6278 = vmatprep.subr.bf16.mxu0 %v8639_v36  ;;  %6795 = vrcp.f32 %v1240_v16  ;;  %v1264_v57 = vmul.f32 %v6784_v48, %v7328_v14 }
 0x31b   : > { %v6786_v52 = vpop.eup %6785 }
 0x31c   : > { %v1234_v37 = vpop.xlane.xlu0 %1233  ;;  %v1243_v6 = vpop.xlane.xlu1 %1242  ;;  %v1265_v15 = vmul.f32 %v6786_v52, %v7335_v29  ;;  %6275 = vmatmul.mubr.msk.bf16.vlgmr.msra.gmra.mrb[32].mxu1 %vm1099_vm4, %v1279_v49 }
 0x31d   : > { %v6788_v61 = vpop.eup %6787  ;;  %6285 = vmatpush3.bf16.msra.mxu1 %v1532_v58  ;;  %6797 = vrcp.f32 %v1243_v6  ;;  %6286 = vmatprep.mubr.msk.bf16.mxu1 %vm7004_vm1, %v8639_v36 }
 0x31e   : > { %6799 = vrcp.f32 %v1234_v37  ;;  %v1278_v51 = vpack.c.bf16 %v1265_v15, %v1264_v57  ;;  %6296 = vmatprep.subr.bf16.mxu1 %v8639_v36  ;;  %v1270_v14 = vmul.f32 %v6788_v61, %v7338_v38 }
 0x31f   : > { %v6790_v63 = vpop.eup %6789 }
 0x320   : > { %v1237_v54 = vpop.xlane.xlu1 %1236  ;;  %v1271_v29 = vmul.f32 %v6790_v63, %v7345_v44  ;;  %6269 = vmatmul.mubr.msk.bf16.vlgmr.msra.gmra.mrb[32].mxu0 %vm1099_vm4, %v1278_v51  ;;  %v6792_v1 = vpop.eup %6791  ;;  %v1290_v44 = vpack.c.bf16 %v7191_v12, %v7191_v12 }
 0x321   : > { %6801 = vrcp.f32 %v1237_v54  ;;  %6279 = vmatpush3.bf16.msra.mxu0 %v1485_v0  ;;  %6280 = vmatprep.mubr.msk.bf16.mxu0 %vm7004_vm1, %v8639_v36  ;;  %v1268_v27 = vmul.f32 %v6792_v1, %v7347_v43 }
 0x322   : > { %v1281_v3 = vpack.c.bf16 %v1271_v29, %v1270_v14  ;;  %6290 = vmatprep.subr.bf16.mxu0 %v8639_v36  ;;  %v1579_v24 = vsel %vm1295_vm3, %v1290_v44, 0  ;;  %v5831_v44 = vld [vmem:[%s8635_s5 + $0x1] ss:$0 sm:$0xff] }
 0x323   : > { %v6794_v38 = vpop.eup %6793 }
 0x324   : > { %v1269_v7 = vmul.f32 %v6794_v38, %v7353_v11  ;;  %6287 = vmatmul.mubr.msk.bf16.vlgmr.msra.gmra.mrb[36].mxu1 %vm1099_vm4, %v1281_v3  ;;  %v6796_v33 = vpop.eup %6795 }
 0x325   : > { %6297 = vmatpush3.bf16.msra.mxu1 %v1626_v13  ;;  %6298 = vmatprep.mubr.msk.bf16.mxu1 %vm7004_vm1, %v8639_v36  ;;  %v1274_v43 = vmul.f32 %v6796_v33, %v7355_v28 }
 0x326   : > { %v1280_v20 = vpack.c.bf16 %v1269_v7, %v1268_v27  ;;  %6322 = vmatprep.subr.bf16.mxu1 %v6721_v4 }
 0x327   : > { %v6798_v12 = vpop.eup %6797 }
 0x328   : > { %v6800_v23 = vpop.eup %6799  ;;  %v1275_v11 = vmul.f32 %v6798_v12, %v7361_v39  ;;  %6281 = vmatmul.mubr.msk.bf16.vlgmr.msra.gmra.mrb[36].mxu0 %vm1099_vm4, %v1280_v20  ;;  %v7524_v20 = vld [vmem:[%s8633_s3 + $0x1] ss:$0 sm:$0xff] }
 0x329   : > { %6291 = vmatpush3.bf16.msra.mxu0 %v1579_v24  ;;  %6292 = vmatprep.mubr.msk.bf16.mxu0 %vm7004_vm1, %v8639_v36  ;;  %v1272_v62 = vmul.f32 %v6800_v23, %v7363_v42  ;;  %v6725_v42 = vld [vmem:[%s8636_s6 + $0x10] sm:$0xff]  }
 0x32a   : > { %v1283_v30 = vpack.c.bf16 %v1275_v11, %v1274_v43  ;;  %6302 = vmatprep.subr.bf16.mxu0 %v6722_v21 }
 0x32b   : > { %v6802_v59 = vpop.eup %6801 }
 0x32c   : > { %v1273_v28 = vmul.f32 %v6802_v59, %v7369_v55  ;;  %6299 = vmatmul.mubr.msk.bf16.vlgmr.msra.gmra.mrb[40].mxu1 %vm1099_vm4, %v1283_v30  ;;  %v6726_v55 = vld [vmem:[%s8636_s6 + $0x18] sm:$0xff]  }
 0x32d   : > { %6323 = vmatpush3.bf16.msra.mxu1 %v6721_v4  ;;  %6326 = vmatprep.mubr.msk.bf16.mxu1 %vm410_vm0, %v7092_v9 }
 0x32e   : > { %v1282_v39 = vpack.c.bf16 %v1273_v28, %v1272_v62  ;;  %6324 = vmatprep.subr.bf16.mxu1 %v6723_v34 }
 0x330   : > { %6293 = vmatmul.mubr.msk.bf16.vlgmr.msra.gmra.mrb[40].mxu0 %vm1099_vm4, %v1282_v39 }
 0x331   : > { %6303 = vmatpush3.bf16.msra.mxu0 %v6722_v21  ;;  %6325 = vmatpush3.bf16.msra.mxu1 %v6723_v34 }
 0x332   : > { %6304 = vmatprep.subr.bf16.mxu0 %v6724_v40  ;;  %6306 = vmatprep.mubr.msk.bf16.mxu0 %vm410_vm0, %v7094_v10 }
 0x333   : > { %6330 = vmatprep.subr.bf16.mxu1 %v6725_v42 }
 0x334   : > { %6327 = vmatmul.mubr.msk.bf16.vlgmr.msra.gmra.mrb[44].mxu1 %vm410_vm0, %v7104_v17 }
 0x335   : > { %6305 = vmatpush3.bf16.msra.mxu0 %v6724_v40  ;;  %6334 = vmatprep.mubr.msk.bf16.mxu1 %vm410_vm0, %v7092_v9 }
 0x336   : > { %6350 = vmatprep.subr.bf16.mxu0 %v8639_v36  ;;  %6331 = vmatpush3.bf16.msra.mxu1 %v6725_v42 }
 0x337   : > { %6332 = vmatprep.subr.bf16.mxu1 %v6726_v55 }
 0x338   : > { %6307 = vmatmul.mubr.msk.bf16.vlgmr.msra.gmra.mrb[44].mxu0 %vm410_vm0, %v7106_v18 }
 0x339   : > { %6310 = vmatprep.mubr.msk.bf16.mxu0 %vm410_vm0, %v7108_v19 }
 0x33a   : > { %6333 = vmatpush3.bf16.msra.mxu1 %v6726_v55 }
 0x33b   : > { %6338 = vmatprep.subr.bf16.mxu1 %v8639_v36 }
 0x33d   : > { %6335 = vmatmul.mubr.msk.bf16.vlgmr.msra.gmra.mrb[48].mxu1 %vm410_vm0, %v7104_v17 }
 0x33e   : > { %6340 = vmatprep.mubr.msk.bf16.mxu1 %vm7004_vm1, %v8639_v36 }
 0x340   : > { %6311 = vmatmul.mubr.msk.bf16.gmra.mrb[48].mxu0 %vm410_vm0, %v7125_v25 }
 0x341   : > { %6314 = vmatprep.mubr.msk.bf16.mxu0 %vm410_vm0, %v7127_v26 }
 0x348   : > { %6315 = vmatmul.mubr.msk.bf16.gmra.mrb[52].mxu0 %vm410_vm0, %v7139_v31 }
 0x349   : > { %6318 = vmatprep.mubr.msk.bf16.mxu0 %vm410_vm0, %v7141_v32 }
 0x350   : > { %6319 = vmatmul.mubr.msk.bf16.gmra.mrb[56].mxu0 %vm410_vm0, %v7149_v35 }
 0x351   : > { %6352 = vmatprep.mubr.msk.bf16.mxu0 %vm7004_vm1, %v8639_v36 }
 0x3e7   : > { %v1380_v46 = vpop.f32.mrb[28].mxu1 }
 0x3e8   : > { %1671 = vst.msk [vmem:[%s7484_s30 + $0x10] sm:$0xff] %vm722_vm2, %v1380_v46  ;;  %v6264_v8 = vpop.f32.mrb[29].mxu1 }
 0x3e9   : > { %v1383_v41 = vpop.f32.mrb[30].mxu1 }
 0x3ea   : > { %1672 = vst.msk [vmem:[%s7484_s30 + $0x18] sm:$0xff] %vm722_vm2, %v1383_v41  ;;  %v6265_v5 = vpop.f32.mrb[31].mxu1 }
 0x3eb   : > { %v1333_v16 = vpop.f32.mrb[28].mxu0 }
 0x3ec   : > { %1669 = vst.msk [vmem:[%s7484_s30] sm:$0xff] %vm722_vm2, %v1333_v16  ;;  %v6258_v22 = vpop.f32.mrb[29].mxu0 }
 0x3ed   : > { %v1336_v50 = vpop.f32.mrb[30].mxu0 }
 0x3ee   : > { %1670 = vst.msk [vmem:[%s7484_s30 + $0x8] sm:$0xff] %vm722_vm2, %v1336_v50  ;;  %v6259_v60 = vpop.f32.mrb[31].mxu0 }
 0x3ef   : > { %v1474_v45 = vpop.f32.mrb[32].mxu1 }
 0x3f0   : > { %1675 = vst.msk [vmem:[%s7484_s30 + $0x30] sm:$0xff] %vm722_vm2, %v1474_v45  ;;  %v6276_v47 = vpop.f32.mrb[33].mxu1 }
 0x3f1   : > { %v1477_v48 = vpop.f32.mrb[34].mxu1 }
 0x3f2   : > { %1676 = vst.msk [vmem:[%s7484_s30 + $0x38] sm:$0xff] %vm722_vm2, %v1477_v48  ;;  %v6277_v49 = vpop.f32.mrb[35].mxu1 }
 0x3f3   : > { %v1427_v52 = vpop.f32.mrb[32].mxu0 }
 0x3f4   : > { %1673 = vst.msk [vmem:[%s7484_s30 + $0x20] sm:$0xff] %vm722_vm2, %v1427_v52  ;;  %v6270_v53 = vpop.f32.mrb[33].mxu0 }
 0x3f5   : > { %v1430_v37 = vpop.f32.mrb[34].mxu0 }
 0x3f6   : > { %1674 = vst.msk [vmem:[%s7484_s30 + $0x28] sm:$0xff] %vm722_vm2, %v1430_v37  ;;  %v6271_v6 = vpop.f32.mrb[35].mxu0 }
 0x3f7   : > { %v1568_v56 = vpop.f32.mrb[36].mxu1 }
 0x3f8   : > { %1679 = vst.msk [vmem:[%s7484_s30 + $0x50] sm:$0xff] %vm722_vm2, %v1568_v56  ;;  %v6288_v57 = vpop.f32.mrb[37].mxu1 }
 0x3f9   : > { %v1571_v15 = vpop.f32.mrb[38].mxu1 }
 0x3fa   : > { %1680 = vst.msk [vmem:[%s7484_s30 + $0x58] sm:$0xff] %vm722_vm2, %v1571_v15  ;;  %v6289_v58 = vpop.f32.mrb[39].mxu1 }
 0x3fb   : > { %v1521_v61 = vpop.f32.mrb[36].mxu0 }
 0x3fc   : > { %1677 = vst.msk [vmem:[%s7484_s30 + $0x40] sm:$0xff] %vm722_vm2, %v1521_v61  ;;  %v6282_v51 = vpop.f32.mrb[37].mxu0 }
 0x3fd   : > { %v1524_v63 = vpop.f32.mrb[38].mxu0 }
 0x3fe   : > { %1678 = vst.msk [vmem:[%s7484_s30 + $0x48] sm:$0xff] %vm722_vm2, %v1524_v63  ;;  %v6283_v2 = vpop.f32.mrb[39].mxu0 }
 0x3ff   : > { %v1662_v54 = vpop.f32.mrb[40].mxu1 }
 0x400   : > { %1683 = vst.msk [vmem:[%s7484_s30 + $0x70] sm:$0xff] %vm722_vm2, %v1662_v54  ;;  %v6300_v14 = vpop.f32.mrb[41].mxu1 }
 0x401   : > { %v1665_v29 = vpop.f32.mrb[42].mxu1 }
 0x402   : > { %1684 = vst.msk [vmem:[%s7484_s30 + $0x78] sm:$0xff] %vm722_vm2, %v1665_v29  ;;  %v6301_v0 = vpop.f32.mrb[43].mxu1 }
 0x403   : > { %v1615_v1 = vpop.f32.mrb[40].mxu0 }
 0x404   : > { %1681 = vst.msk [vmem:[%s7484_s30 + $0x60] sm:$0xff] %vm722_vm2, %v1615_v1  ;;  %v6294_v3 = vpop.f32.mrb[41].mxu0 }
 0x405   : > { %v1618_v4 = vpop.f32.mrb[42].mxu0 }
 0x406   : > { %1682 = vst.msk [vmem:[%s7484_s30 + $0x68] sm:$0xff] %vm722_vm2, %v1618_v4  ;;  %v6295_v38 = vpop.f32.mrb[43].mxu0 }
 0x407   : > { %v6328_v27 = vpop.f32.mrb[44].mxu1 }
 0x408   : > { %v1866_v7 = vpop.f32.mrb[45].mxu1  ;;  %v1875_v5 = vadd.f32 %v6328_v27, %v5831_v44 }
 0x409   : > { %v1867_v13 = vadd.f32 %v5831_v44, %v1866_v7  ;;  %v6329_v33 = vpop.f32.mrb[46].mxu1 }
 0x40a   : > { %v1869_v21 = vpop.f32.mrb[47].mxu1  ;;  %v1991_v53 = vpack.c.bf16 %v1875_v5, %v1875_v5  ;;  %v1878_v15 = vadd.f32 %v6329_v33, %v5831_v44  ;;  %v1887_v14 = vcombine.high %v1875_v5, %v1875_v5 }
 0x40b   : > { %v1987_v12 = vpack.c.bf16 %v1867_v13, %v1867_v13  ;;  %v1870_v23 = vadd.f32 %v5831_v44, %v1869_v21  ;;  %v6308_v43 = vpop.f32.mrb[44].mxu0  ;;  %v1885_v62 = vcombine.high %v1867_v13, %v1867_v13 }
 0x40c   : > { %v1753_v11 = vadd.f32 %v6308_v43, %v7524_v20  ;;  %v1744_v24 = vpop.f32.mrb[45].mxu0  ;;  %v2187_v61 = vsel %vm722_vm2, %v1991_v53, 0  ;;  %v1993_v3 = vpack.c.bf16 %v1878_v15, %v1878_v15  ;;  %v1992_v27 = vpack.c.bf16 %v1887_v14, %v1887_v14 }
 0x40d   : > { %v1989_v59 = vpack.c.bf16 %v1870_v23, %v1870_v23  ;;  %v1745_v30 = vadd.f32 %v7524_v20, %v1744_v24  ;;  %v6309_v34 = vpop.f32.mrb[46].mxu0  ;;  %v1999_v40 = vsel %vm722_vm2, %v1987_v12, 0  ;;  %v1988_v41 = vpack.c.bf16 %v1885_v62, %v1885_v62 }
 0x40e   : > { %v1756_v28 = vadd.f32 %v6309_v34, %v7524_v20  ;;  %v1747_v39 = vpop.f32.mrb[47].mxu0  ;;  %6339 = vmatpush3.bf16.xpose.msra.mxu1 %v1999_v40  ;;  %v1886_v47 = vcombine.high %v1870_v23, %v1870_v23  ;;  %v2281_v7 = vsel %vm722_vm2, %v1993_v3, 0  ;;  %v1888_v43 = vcombine.high %v1878_v15, %v1878_v15 }
 0x40f   : > { %v1748_v42 = vadd.f32 %v7524_v20, %v1747_v39  ;;  %v2093_v55 = vsel %vm722_vm2, %v1989_v59, 0  ;;  %6344 = vmatprep.subr.bf16.mxu1 %v8639_v36  ;;  %v2046_v52 = vsel %vm722_vm2, %v1988_v41, 0 }
 0x410   : > { %v1980_v46 = vpack.c.bf16 %v1756_v28, %v1753_v11  ;;  %6351 = vmatpush3.bf16.xpose.msra.mxu0 %v2093_v55  ;;  %v1990_v57 = vpack.c.bf16 %v1886_v47, %v1886_v47  ;;  %v2234_v11 = vsel %vm722_vm2, %v1992_v27, 0  ;;  %v1994_v28 = vpack.c.bf16 %v1888_v43, %v1888_v43  ;;  %v6336_v40 = vpop.f32.mrb[48].mxu1 }
 0x411   : > { %v1979_v8 = vpack.c.bf16 %v1748_v42, %v1745_v30  ;;  %6362 = vmatprep.subr.bf16.mxu0 %v8639_v36  ;;  %v1952_v55 = vpop.f32.mrb[49].mxu1 }
 0x412   : > { %v2140_v1 = vsel %vm722_vm2, %v1990_v57, 0  ;;  %v2328_v39 = vsel %vm722_vm2, %v1994_v28, 0 }
 0x413   : > { %v6312_v16 = vpop.f32.mrb[48].mxu0 }
 0x414   : > { %v1769_v22 = vadd.f32 %v6312_v16, %v7524_v20  ;;  %v1760_v50 = vpop.f32.mrb[49].mxu0 }
 0x415   : > { %v1761_v60 = vadd.f32 %v7524_v20, %v1760_v50  ;;  %v6313_v45 = vpop.f32.mrb[50].mxu0  ;;  %6341 = vmatmul.mubr.msk.bf16.vlgmr.msra.gmra.mrb[52].mxu1 %vm722_vm2, %v1979_v8  ;;  %v6337_v8 = vpop.f32.mrb[50].mxu1 }
 0x416   : > { %v1772_v48 = vadd.f32 %v6313_v45, %v7524_v20  ;;  %v1763_v49 = vpop.f32.mrb[51].mxu0  ;;  %6345 = vmatpush3.bf16.xpose.msra.mxu1 %v2046_v52  ;;  %6346 = vmatprep.mubr.msk.bf16.mxu1 %vm7004_vm1, %v8639_v36  ;;  %v1955_v5 = vpop.f32.mrb[51].mxu1 }
 0x417   : > { %v1764_v37 = vadd.f32 %v7524_v20, %v1763_v49  ;;  %6356 = vmatprep.subr.bf16.mxu1 %v8639_v36 }
 0x418   : > { %v1982_v6 = vpack.c.bf16 %v1772_v48, %v1769_v22 }
 0x419   : > { %v1981_v56 = vpack.c.bf16 %v1764_v37, %v1761_v60 }
 0x41b   : > { %v6316_v58 = vpop.f32.mrb[52].mxu0  ;;  %6353 = vmatmul.mubr.msk.bf16.vlgmr.msra.gmra.mrb[60].mxu0 %vm722_vm2, %v1981_v56 }
 0x41c   : > { %v1785_v51 = vadd.f32 %v6316_v58, %v7524_v20  ;;  %6363 = vmatpush3.bf16.xpose.msra.mxu0 %v2187_v61  ;;  %v1776_v63 = vpop.f32.mrb[53].mxu0  ;;  %6364 = vmatprep.mubr.msk.bf16.mxu0 %vm7004_vm1, %v8639_v36 }
 0x41d   : > { %v1777_v2 = vadd.f32 %v7524_v20, %v1776_v63  ;;  %v6317_v54 = vpop.f32.mrb[54].mxu0  ;;  %6374 = vmatprep.subr.bf16.mxu0 %v8639_v36  ;;  %6347 = vmatmul.mubr.msk.bf16.vlgmr.msra.gmra.mrb[56].mxu1 %vm722_vm2, %v1980_v46 }
 0x41e   : > { %v1788_v29 = vadd.f32 %v6317_v54, %v7524_v20  ;;  %v1779_v0 = vpop.f32.mrb[55].mxu0  ;;  %6357 = vmatpush3.bf16.xpose.msra.mxu1 %v2140_v1  ;;  %6358 = vmatprep.mubr.msk.bf16.mxu1 %vm7004_vm1, %v8639_v36 }
 0x41f   : > { %v1780_v4 = vadd.f32 %v7524_v20, %v1779_v0  ;;  %6368 = vmatprep.subr.bf16.mxu1 %v8639_v36 }
 0x420   : > { %v1984_v38 = vpack.c.bf16 %v1788_v29, %v1785_v51 }
 0x421   : > { %v1983_v44 = vpack.c.bf16 %v1780_v4, %v1777_v2 }
 0x423   : > { %6365 = vmatmul.mubr.msk.bf16.vlgmr.msra.gmra.mrb[64].mxu0 %vm722_vm2, %v1983_v44  ;;  %v6320_v13 = vpop.f32.mrb[56].mxu0 }
 0x424   : > { %6375 = vmatpush3.bf16.xpose.msra.mxu0 %v2281_v7  ;;  %v1801_v33 = vadd.f32 %v6320_v13, %v7524_v20  ;;  %v1792_v21 = vpop.f32.mrb[57].mxu0  ;;  %6376 = vmatprep.mubr.msk.bf16.mxu0 %vm7004_vm1, %v8639_v36 }
 0x425   : > { %v1793_v12 = vadd.f32 %v7524_v20, %v1792_v21  ;;  %v6321_v23 = vpop.f32.mrb[58].mxu0  ;;  %6386 = vmatprep.subr.bf16.mxu0 %v8639_v36  ;;  %6359 = vmatmul.mubr.msk.bf16.vlgmr.msra.gmra.mrb[60].mxu1 %vm722_vm2, %v1982_v6 }
 0x426   : > { %v1804_v24 = vadd.f32 %v6321_v23, %v7524_v20  ;;  %v1795_v59 = vpop.f32.mrb[59].mxu0  ;;  %6369 = vmatpush3.bf16.xpose.msra.mxu1 %v2234_v11  ;;  %6370 = vmatprep.mubr.msk.bf16.mxu1 %vm7004_vm1, %v8639_v36 }
 0x427   : > { %v1796_v30 = vadd.f32 %v7524_v20, %v1795_v59  ;;  %6380 = vmatprep.subr.bf16.mxu1 %v8639_v36  ;;  %v5841_v20 = vld [vmem:[%s8637_s7 + $0x1] ss:$0 sm:$0xff] }
 0x428   : > { %v1986_v34 = vpack.c.bf16 %v1804_v24, %v1801_v33  ;;  %v7585_v42 = vadd.f32 %v6336_v40, %v5841_v20  ;;  %v1953_v46 = vadd.f32 %v5841_v20, %v1952_v55  ;;  %v7587_v41 = vadd.f32 %v6337_v8, %v5841_v20 }
 0x429   : > { %v1985_v62 = vpack.c.bf16 %v1796_v30, %v1793_v12  ;;  %v7589_v22 = vadd.f32 %v5841_v20, %v1955_v5 }
 0x42a   : > { %v2555_v16 = vpack.c.bf16 %v1953_v46, %v1953_v46  ;;  %v1971_v50 = vcombine.high %v1953_v46, %v1953_v46 }
 0x42b   : > { %6377 = vmatmul.mubr.msk.bf16.vlgmr.msra.gmra.mrb[68].mxu0 %vm722_vm2, %v1985_v62 }
 0x42c   : > { %6388 = vmatprep.mubr.msk.bf16.mxu0 %vm7004_vm1, %v8639_v36  ;;  %v2567_v60 = vsel %vm1295_vm3, %v2555_v16, 0  ;;  %v2556_v45 = vpack.c.bf16 %v1971_v50, %v1971_v50 }
 0x42d   : > { %6371 = vmatmul.mubr.msk.bf16.vlgmr.msra.gmra.mrb[64].mxu1 %vm722_vm2, %v1984_v38  ;;  %6387 = vmatpush3.bf16.msra.mxu0 %v2567_v60 }
 0x42e   : > { %6381 = vmatpush3.bf16.xpose.msra.mxu1 %v2328_v39  ;;  %6382 = vmatprep.mubr.msk.bf16.mxu1 %vm7004_vm1, %v8639_v36  ;;  %v2614_v47 = vsel %vm1295_vm3, %v2556_v45, 0 }
 0x42f   : > { %6392 = vmatprep.subr.bf16.mxu1 %v8639_v36  ;;  %6398 = vmatprep.subr.bf16.mxu0 %v8639_v36 }
 0x435   : > { %6383 = vmatmul.mubr.msk.bf16.vlgmr.msra.gmra.mrb[68].mxu1 %vm722_vm2, %v1986_v34 }
 0x436   : > { %6394 = vmatprep.mubr.msk.bf16.mxu1 %vm7004_vm1, %v8639_v36  ;;  %6393 = vmatpush3.bf16.msra.mxu1 %v2614_v47 }
 0x437   : > { %6404 = vmatprep.subr.bf16.mxu1 %v8639_v36 }
 0x4e8   : > { %v7595_v48 = vpop.f32.mrb[52].mxu1 }
 0x4e9   : > { %v6342_v49 = vpop.f32.mrb[53].mxu1  ;;  %v2371_v54 = vsel %vm1099_vm4, %v7595_v48, -inf }
 0x4ea   : > { %v7597_v52 = vpop.f32.mrb[54].mxu1 }
 0x4eb   : > { %v6343_v53 = vpop.f32.mrb[55].mxu1  ;;  %v2374_v0 = vsel %vm1099_vm4, %v7597_v52, -inf }
 0x4ee   : > { %v7599_v37 = vpop.f32.mrb[60].mxu0 }
 0x4ef   : > { %v6354_v6 = vpop.f32.mrb[61].mxu0  ;;  %v2383_v33 = vsel %vm1099_vm4, %v7599_v37, -inf }
 0x4f0   : > { %v7601_v56 = vpop.f32.mrb[62].mxu0  ;;  %v2082_v57 = vpop.f32.mrb[56].mxu1 }
 0x4f1   : > { %v6355_v15 = vpop.f32.mrb[63].mxu0  ;;  %v6348_v58 = vpop.f32.mrb[57].mxu1  ;;  %v2377_v61 = vsel %vm1099_vm4, %v2082_v57, -inf  ;;  %v2386_v23 = vsel %vm1099_vm4, %v7601_v56, -inf }
 0x4f2   : > { %2378 = vmax.xlane.f32.xlu0 %v2377_v61  ;;  %v2085_v51 = vpop.f32.mrb[58].mxu1 }
 0x4f3   : > { %v6349_v63 = vpop.f32.mrb[59].mxu1  ;;  %v2380_v2 = vsel %vm1099_vm4, %v2085_v51, -inf }
 0x4f4   : > { %2381 = vmax.xlane.f32.xlu1 %v2380_v2 }
 0x4f6   : > { %v7607_v14 = vpop.f32.mrb[64].mxu0  ;;  %2372 = vmax.xlane.f32.xlu0 %v2371_v54 }
 0x4f7   : > { %v6366_v29 = vpop.f32.mrb[65].mxu0  ;;  %v2395_v39 = vsel %vm1099_vm4, %v7607_v14, -inf }
 0x4f8   : > { %v7611_v1 = vpop.f32.mrb[66].mxu0  ;;  %2375 = vmax.xlane.f32.xlu1 %v2374_v0  ;;  %v2176_v3 = vpop.f32.mrb[60].mxu1 }
 0x4f9   : > { %v6367_v4 = vpop.f32.mrb[67].mxu0  ;;  %v6360_v38 = vpop.f32.mrb[61].mxu1  ;;  %v2389_v44 = vsel %vm1099_vm4, %v2176_v3, -inf  ;;  %v2398_v20 = vsel %vm1099_vm4, %v7611_v1, -inf }
 0x4fa   : > { %2390 = vmax.xlane.f32.xlu0 %v2389_v44  ;;  %v2179_v27 = vpop.f32.mrb[62].mxu1 }
 0x4fb   : > { %v6361_v7 = vpop.f32.mrb[63].mxu1  ;;  %v2392_v13 = vsel %vm1099_vm4, %v2179_v27, -inf }
 0x4fc   : > { %2393 = vmax.xlane.f32.xlu1 %v2392_v13 }
 0x4fe   : > { %v7617_v21 = vpop.f32.mrb[68].mxu0  ;;  %2384 = vmax.xlane.f32.xlu0 %v2383_v33 }
 0x4ff   : > { %v6378_v12 = vpop.f32.mrb[69].mxu0  ;;  %v2407_v50 = vsel %vm1099_vm4, %v7617_v21, -inf }
 0x500   : > { %v7621_v43 = vpop.f32.mrb[70].mxu0  ;;  %2387 = vmax.xlane.f32.xlu1 %v2386_v23  ;;  %v7623_v11 = vpop.f32.mrb[64].mxu1 }
 0x501   : > { %v6379_v24 = vpop.f32.mrb[71].mxu0  ;;  %v6372_v59 = vpop.f32.mrb[65].mxu1  ;;  %v2401_v30 = vsel %vm1099_vm4, %v7623_v11, -inf  ;;  %v2410_v60 = vsel %vm1099_vm4, %v7621_v43, -inf }
 0x502   : > { %2402 = vmax.xlane.f32.xlu0 %v2401_v30  ;;  %v7627_v34 = vpop.f32.mrb[66].mxu1 }
 0x503   : > { %v6373_v62 = vpop.f32.mrb[67].mxu1  ;;  %v2404_v28 = vsel %vm1099_vm4, %v7627_v34, -inf }
 0x504   : > { %2405 = vmax.xlane.f32.xlu1 %v2404_v28 }
 0x506   : > { %2396 = vmax.xlane.f32.xlu0 %v2395_v39 }
 0x508   : > { %2399 = vmax.xlane.f32.xlu1 %v2398_v20  ;;  %v7635_v40 = vpop.f32.mrb[68].mxu1 }
 0x509   : > { %v6384_v55 = vpop.f32.mrb[69].mxu1  ;;  %v2413_v46 = vsel %vm1099_vm4, %v7635_v40, -inf }
 0x50a   : > { %2414 = vmax.xlane.f32.xlu0 %v2413_v46  ;;  %v7639_v8 = vpop.f32.mrb[70].mxu1 }
 0x50b   : > { %v6385_v5 = vpop.f32.mrb[71].mxu1  ;;  %v2416_v16 = vsel %vm1099_vm4, %v7639_v8, -inf }
 0x50c   : > { %2417 = vmax.xlane.f32.xlu1 %v2416_v16 }
 0x50e   : > { %2408 = vmax.xlane.f32.xlu0 %v2407_v50 }
 0x510   : > { %2411 = vmax.xlane.f32.xlu1 %v2410_v60 }
 0x57f   : > { %v2379_v45 = vpop.xlane.xlu0 %2378 }
 0x580   : > { %v2421_v47 = vsub.f32 %v2082_v57, %v2379_v45 }
 0x581   : > { %v2382_v49 = vpop.xlane.xlu1 %2381 }
 0x582   : > { %v2439_v53 = vmul.f32 1.442695, %v2421_v47  ;;  %v2422_v6 = vsub.f32 %v2085_v51, %v2382_v49 }
 0x583   : > { %v2373_v15 = vpop.xlane.xlu0 %2372 }
 0x584   : > { %6803 = vpow2.f32 %v2439_v53  ;;  %v2441_v58 = vmul.f32 1.442695, %v2422_v6  ;;  %v2419_v61 = vsub.f32 %v7595_v48, %v2373_v15 }
 0x585   : > { %v2376_v63 = vpop.xlane.xlu1 %2375 }
 0x586   : > { %6805 = vpow2.f32 %v2441_v58  ;;  %v2435_v2 = vmul.f32 1.442695, %v2419_v61  ;;  %v2420_v54 = vsub.f32 %v7597_v52, %v2376_v63 }
 0x587   : > { %v2391_v29 = vpop.xlane.xlu0 %2390 }
 0x588   : > { %6807 = vpow2.f32 %v2435_v2  ;;  %v2437_v0 = vmul.f32 1.442695, %v2420_v54  ;;  %v2425_v4 = vsub.f32 %v2176_v3, %v2391_v29 }
 0x589   : > { %v2394_v38 = vpop.xlane.xlu1 %2393 }
 0x58a   : > { %6809 = vpow2.f32 %v2437_v0  ;;  %v2447_v57 = vmul.f32 1.442695, %v2425_v4  ;;  %v2426_v44 = vsub.f32 %v2179_v27, %v2394_v38 }
 0x58b   : > { %v2385_v7 = vpop.xlane.xlu0 %2384 }
 0x58c   : > { %6811 = vpow2.f32 %v2447_v57  ;;  %v2449_v51 = vmul.f32 1.442695, %v2426_v44  ;;  %v2423_v13 = vsub.f32 %v7599_v37, %v2385_v7 }
 0x58d   : > { %v2388_v33 = vpop.xlane.xlu1 %2387 }
 0x58e   : > { %v7650_v48 = vpop.eup %6803  ;;  %6813 = vpow2.f32 %v2449_v51  ;;  %v2443_v12 = vmul.f32 1.442695, %v2423_v13  ;;  %v2424_v52 = vsub.f32 %v7601_v56, %v2388_v33 }
 0x58f   : > { %v2403_v23 = vpop.xlane.xlu0 %2402  ;;  %v2473_v3 = vsel %vm1099_vm4, %v7650_v48, 0.0 }
 0x590   : > { %v7655_v24 = vpop.eup %6805  ;;  %6815 = vpow2.f32 %v2443_v12  ;;  %v2445_v27 = vmul.f32 1.442695, %v2424_v52  ;;  %v2429_v59 = vsub.f32 %v7623_v11, %v2403_v23  ;;  %2474 = vadd.xlane.f32.xlu0 %v2473_v3 }
 0x591   : > { %v2406_v30 = vpop.xlane.xlu1 %2405  ;;  %v2476_v37 = vsel %vm1099_vm4, %v7655_v24, 0.0 }
 0x592   : > { %v7660_v62 = vpop.eup %6807  ;;  %6817 = vpow2.f32 %v2445_v27  ;;  %v2455_v28 = vmul.f32 1.442695, %v2429_v59  ;;  %v2430_v56 = vsub.f32 %v7627_v34, %v2406_v30  ;;  %2477 = vadd.xlane.f32.xlu1 %v2476_v37 }
 0x593   : > { %v2397_v39 = vpop.xlane.xlu0 %2396  ;;  %v2467_v20 = vsel %vm1099_vm4, %v7660_v62, 0.0 }
 0x594   : > { %v7665_v55 = vpop.eup %6809  ;;  %6819 = vpow2.f32 %v2455_v28  ;;  %v2457_v11 = vmul.f32 1.442695, %v2430_v56  ;;  %v2427_v46 = vsub.f32 %v7607_v14, %v2397_v39  ;;  %2468 = vadd.xlane.f32.xlu0 %v2467_v20 }
 0x595   : > { %v2400_v5 = vpop.xlane.xlu1 %2399  ;;  %v2470_v16 = vsel %vm1099_vm4, %v7665_v55, 0.0 }
 0x596   : > { %v7670_v50 = vpop.eup %6811  ;;  %6821 = vpow2.f32 %v2457_v11  ;;  %v2451_v34 = vmul.f32 1.442695, %v2427_v46  ;;  %v2428_v60 = vsub.f32 %v7611_v1, %v2400_v5  ;;  %2471 = vadd.xlane.f32.xlu1 %v2470_v16  ;;  %v1972_v5 = vcombine.high %v7589_v22, %v7589_v22 }
 0x597   : > { %v2415_v45 = vpop.xlane.xlu0 %2414  ;;  %v2485_v47 = vsel %vm1099_vm4, %v7670_v50, 0.0 }
 0x598   : > { %v7675_v49 = vpop.eup %6813  ;;  %6823 = vpow2.f32 %v2451_v34  ;;  %v2453_v14 = vmul.f32 1.442695, %v2428_v60  ;;  %v2433_v53 = vsub.f32 %v7635_v40, %v2415_v45  ;;  %2486 = vadd.xlane.f32.xlu0 %v2485_v47  ;;  %v2558_v47 = vpack.c.bf16 %v1972_v5, %v1972_v5 }
 0x599   : > { %v2418_v6 = vpop.xlane.xlu1 %2417  ;;  %v2488_v15 = vsel %vm1099_vm4, %v7675_v49, 0.0 }
 0x59a   : > { %v7680_v58 = vpop.eup %6815  ;;  %6825 = vpow2.f32 %v2453_v14  ;;  %v2463_v1 = vmul.f32 1.442695, %v2433_v53  ;;  %v2434_v61 = vsub.f32 %v7639_v8, %v2418_v6  ;;  %2489 = vadd.xlane.f32.xlu1 %v2488_v15 }
 0x59b   : > { %v2409_v63 = vpop.xlane.xlu0 %2408  ;;  %v2479_v2 = vsel %vm1099_vm4, %v7680_v58, 0.0 }
 0x59c   : > { %v7685_v54 = vpop.eup %6817  ;;  %6827 = vpow2.f32 %v2463_v1  ;;  %v2465_v40 = vmul.f32 1.442695, %v2434_v61  ;;  %v2431_v29 = vsub.f32 %v7617_v21, %v2409_v63  ;;  %2480 = vadd.xlane.f32.xlu0 %v2479_v2  ;;  %v1973_v2 = vcombine.high %v7585_v42, %v7585_v42 }
 0x59d   : > { %v2412_v0 = vpop.xlane.xlu1 %2411  ;;  %v2482_v4 = vsel %vm1099_vm4, %v7685_v54, 0.0 }
 0x59e   : > { %v7690_v38 = vpop.eup %6819  ;;  %6829 = vpow2.f32 %v2465_v40  ;;  %v2459_v8 = vmul.f32 1.442695, %v2431_v29  ;;  %v2432_v57 = vsub.f32 %v7621_v43, %v2412_v0  ;;  %2483 = vadd.xlane.f32.xlu1 %v2482_v4  ;;  %v2557_v40 = vpack.c.bf16 %v7589_v22, %v7589_v22 }
 0x59f   : > { %v2497_v44 = vsel %vm1099_vm4, %v7690_v38, 0.0 }
 0x5a0   : > { %v7695_v7 = vpop.eup %6821  ;;  %6831 = vpow2.f32 %v2459_v8  ;;  %v2461_v51 = vmul.f32 1.442695, %v2432_v57  ;;  %2498 = vadd.xlane.f32.xlu0 %v2497_v44 }
 0x5a1   : > { %v2500_v21 = vsel %vm1099_vm4, %v7695_v7, 0.0 }
 0x5a2   : > { %v7699_v13 = vpop.eup %6823  ;;  %6833 = vpow2.f32 %v2461_v51  ;;  %2501 = vadd.xlane.f32.xlu1 %v2500_v21  ;;  %v2661_v51 = vsel %vm1295_vm3, %v2557_v40, 0 }
 0x5a3   : > { %v2491_v33 = vsel %vm1099_vm4, %v7699_v13, 0.0 }
 0x5a4   : > { %v7703_v43 = vpop.eup %6825  ;;  %2492 = vadd.xlane.f32.xlu0 %v2491_v33 }
 0x5a5   : > { %v2494_v12 = vsel %vm1099_vm4, %v7703_v43, 0.0 }
 0x5a6   : > { %v7707_v52 = vpop.eup %6827  ;;  %2495 = vadd.xlane.f32.xlu1 %v2494_v12 }
 0x5a7   : > { %v2509_v23 = vsel %vm1099_vm4, %v7707_v52, 0.0 }
 0x5a8   : > { %v7711_v3 = vpop.eup %6829  ;;  %2510 = vadd.xlane.f32.xlu0 %v2509_v23 }
 0x5a9   : > { %v2512_v27 = vsel %vm1099_vm4, %v7711_v3, 0.0 }
 0x5aa   : > { %v7715_v59 = vpop.eup %6831  ;;  %2513 = vadd.xlane.f32.xlu1 %v2512_v27 }
 0x5ab   : > { %v2503_v30 = vsel %vm1099_vm4, %v7715_v59, 0.0 }
 0x5ac   : > { %v7719_v37 = vpop.eup %6833  ;;  %2504 = vadd.xlane.f32.xlu0 %v2503_v30 }
 0x5ad   : > { %v2506_v28 = vsel %vm1099_vm4, %v7719_v37, 0.0 }
 0x5ae   : > { %2507 = vadd.xlane.f32.xlu1 %v2506_v28 }
 0x61d   : > { %v2475_v56 = vpop.xlane.xlu0 %2474 }
 0x61e   : > { %6835 = vrcp.f32 %v2475_v56 }
 0x61f   : > { %v2478_v39 = vpop.xlane.xlu1 %2477 }
 0x620   : > { %6837 = vrcp.f32 %v2478_v39 }
 0x621   : > { %v2469_v20 = vpop.xlane.xlu0 %2468 }
 0x622   : > { %6839 = vrcp.f32 %v2469_v20 }
 0x623   : > { %v2472_v11 = vpop.xlane.xlu1 %2471 }
 0x624   : > { %6841 = vrcp.f32 %v2472_v11 }
 0x625   : > { %v2487_v46 = vpop.xlane.xlu0 %2486 }
 0x626   : > { %6843 = vrcp.f32 %v2487_v46 }
 0x627   : > { %v2490_v16 = vpop.xlane.xlu1 %2489 }
 0x628   : > { %v6836_v34 = vpop.eup %6835  ;;  %6845 = vrcp.f32 %v2490_v16 }
 0x629   : > { %v2481_v60 = vpop.xlane.xlu0 %2480  ;;  %v2533_v14 = vmul.f32 %v6836_v34, %v7650_v48  ;;  %v2708_v48 = vsel %vm1295_vm3, %v2558_v47, 0 }
 0x62a   : > { %v6838_v45 = vpop.eup %6837  ;;  %6847 = vrcp.f32 %v2481_v60 }
 0x62b   : > { %v2534_v53 = vmul.f32 %v6838_v45, %v7655_v24  ;;  %v2484_v6 = vpop.xlane.xlu1 %2483 }
 0x62c   : > { %v6840_v15 = vpop.eup %6839  ;;  %6849 = vrcp.f32 %v2484_v6 }
 0x62d   : > { %v2499_v1 = vpop.xlane.xlu0 %2498  ;;  %v2548_v61 = vpack.c.bf16 %v2534_v53, %v2533_v14  ;;  %v2531_v29 = vmul.f32 %v6840_v15, %v7660_v62  ;;  %v2560_v62 = vpack.c.bf16 %v1973_v2, %v1973_v2 }
 0x62e   : > { %v6842_v63 = vpop.eup %6841  ;;  %6851 = vrcp.f32 %v2499_v1 }
 0x62f   : > { %v2532_v0 = vmul.f32 %v6842_v63, %v7665_v55  ;;  %6395 = vmatmul.mubr.msk.bf16.vlgmr.msra.gmra.mrb[72].mxu1 %vm1099_vm4, %v2548_v61  ;;  %v2502_v24 = vpop.xlane.xlu1 %2501  ;;  %v2802_v56 = vsel %vm1295_vm3, %v2560_v62, 0  ;;  %v6728_v61 = vld [vmem:[%s8632_s2 + $0x20] sm:$0xff]  }
 0x630   : > { %v6844_v4 = vpop.eup %6843  ;;  %6405 = vmatpush3.bf16.msra.mxu1 %v2708_v48  ;;  %6853 = vrcp.f32 %v2502_v24  ;;  %6406 = vmatprep.mubr.msk.bf16.mxu1 %vm7004_vm1, %v8639_v36  ;;  %v6730_v24 = vld [vmem:[%s8632_s2 + $0x28] sm:$0xff]  }
 0x631   : > { %v2493_v8 = vpop.xlane.xlu0 %2492  ;;  %v2547_v57 = vpack.c.bf16 %v2532_v0, %v2531_v29  ;;  %6416 = vmatprep.subr.bf16.mxu1 %v8639_v36  ;;  %v2537_v55 = vmul.f32 %v6844_v4, %v7670_v50  ;;  %v2559_v50 = vpack.c.bf16 %v7585_v42, %v7585_v42  ;;  %v6729_v29 = vld [vmem:[%s8634_s4 + $0x28] sm:$0xff]  }
 0x632   : > { %v6846_v22 = vpop.eup %6845  ;;  %6855 = vrcp.f32 %v2493_v8 }
 0x633   : > { %v2538_v44 = vmul.f32 %v6846_v22, %v7675_v49  ;;  %6389 = vmatmul.mubr.msk.bf16.vlgmr.msra.gmra.mrb[72].mxu0 %vm1099_vm4, %v2547_v57  ;;  %v2496_v21 = vpop.xlane.xlu1 %2495  ;;  %v1974_v49 = vcombine.high %v7587_v41, %v7587_v41  ;;  %v2755_v16 = vsel %vm1295_vm3, %v2559_v50, 0 }
 0x634   : > { %v6848_v33 = vpop.eup %6847  ;;  %6399 = vmatpush3.bf16.msra.mxu0 %v2661_v51  ;;  %6857 = vrcp.f32 %v2496_v21  ;;  %6400 = vmatprep.mubr.msk.bf16.mxu0 %vm7004_vm1, %v8639_v36 }
 0x635   : > { %v2511_v12 = vpop.xlane.xlu0 %2510  ;;  %v2550_v23 = vpack.c.bf16 %v2538_v44, %v2537_v55  ;;  %6410 = vmatprep.subr.bf16.mxu0 %v8639_v36  ;;  %v2535_v30 = vmul.f32 %v6848_v33, %v7680_v58  ;;  %v2562_v58 = vpack.c.bf16 %v1974_v49, %v1974_v49 }
 0x636   : > { %v6850_v27 = vpop.eup %6849  ;;  %6859 = vrcp.f32 %v2511_v12 }
 0x637   : > { %v2536_v28 = vmul.f32 %v6850_v27, %v7685_v54  ;;  %6407 = vmatmul.mubr.msk.bf16.vlgmr.msra.gmra.mrb[76].mxu1 %vm1099_vm4, %v2550_v23  ;;  %v2514_v39 = vpop.xlane.xlu1 %2513  ;;  %v2896_v6 = vsel %vm1295_vm3, %v2562_v58, 0 }
 0x638   : > { %v6852_v20 = vpop.eup %6851  ;;  %6417 = vmatpush3.bf16.msra.mxu1 %v2802_v56  ;;  %6861 = vrcp.f32 %v2514_v39  ;;  %6418 = vmatprep.mubr.msk.bf16.mxu1 %vm7004_vm1, %v8639_v36 }
 0x639   : > { %v2505_v42 = vpop.xlane.xlu0 %2504  ;;  %v2549_v11 = vpack.c.bf16 %v2536_v28, %v2535_v30  ;;  %6428 = vmatprep.subr.bf16.mxu1 %v8639_v36  ;;  %v2541_v54 = vmul.f32 %v6852_v20, %v7690_v38  ;;  %v6727_v38 = vld [vmem:[%s8634_s4 + $0x20] sm:$0xff]  }
 0x63a   : > { %v6854_v46 = vpop.eup %6853  ;;  %6863 = vrcp.f32 %v2505_v42 }
 0x63b   : > { %v2542_v5 = vmul.f32 %v6854_v46, %v7695_v7  ;;  %6401 = vmatmul.mubr.msk.bf16.vlgmr.msra.gmra.mrb[76].mxu0 %vm1099_vm4, %v2549_v11  ;;  %v2508_v34 = vpop.xlane.xlu1 %2507  ;;  %v2561_v7 = vpack.c.bf16 %v7587_v41, %v7587_v41 }
 0x63c   : > { %v6856_v60 = vpop.eup %6855  ;;  %6411 = vmatpush3.bf16.msra.mxu0 %v2755_v16  ;;  %6865 = vrcp.f32 %v2508_v34  ;;  %6412 = vmatprep.mubr.msk.bf16.mxu0 %vm7004_vm1, %v8639_v36 }
 0x63d   : > { %v2552_v45 = vpack.c.bf16 %v2542_v5, %v2541_v54  ;;  %6422 = vmatprep.subr.bf16.mxu0 %v8639_v36  ;;  %v2539_v14 = vmul.f32 %v6856_v60, %v7699_v13  ;;  %v2849_v63 = vsel %vm1295_vm3, %v2561_v7, 0  ;;  %v5883_v7 = vld [vmem:[%s8635_s5 + $0x2] ss:$0 sm:$0xff] }
 0x63e   : > { %v6858_v47 = vpop.eup %6857 }
 0x63f   : > { %v2540_v53 = vmul.f32 %v6858_v47, %v7703_v43  ;;  %6419 = vmatmul.mubr.msk.bf16.vlgmr.msra.gmra.mrb[80].mxu1 %vm1099_vm4, %v2552_v45 }
 0x640   : > { %v6860_v15 = vpop.eup %6859  ;;  %6429 = vmatpush3.bf16.msra.mxu1 %v2896_v6  ;;  %6430 = vmatprep.mubr.msk.bf16.mxu1 %vm7004_vm1, %v8639_v36 }
 0x641   : > { %v2551_v1 = vpack.c.bf16 %v2540_v53, %v2539_v14  ;;  %6454 = vmatprep.subr.bf16.mxu1 %v6727_v38  ;;  %v2545_v13 = vmul.f32 %v6860_v15, %v7707_v52 }
 0x642   : > { %v6862_v41 = vpop.eup %6861 }
 0x643   : > { %v2546_v43 = vmul.f32 %v6862_v41, %v7711_v3  ;;  %6413 = vmatmul.mubr.msk.bf16.vlgmr.msra.gmra.mrb[80].mxu0 %vm1099_vm4, %v2551_v1  ;;  %v7867_v1 = vld [vmem:[%s8633_s3 + $0x2] ss:$0 sm:$0xff] }
 0x644   : > { %v6864_v2 = vpop.eup %6863  ;;  %6423 = vmatpush3.bf16.msra.mxu0 %v2849_v63  ;;  %6424 = vmatprep.mubr.msk.bf16.mxu0 %vm7004_vm1, %v8639_v36 }
 0x645   : > { %v2554_v40 = vpack.c.bf16 %v2546_v43, %v2545_v13  ;;  %6434 = vmatprep.subr.bf16.mxu0 %v6728_v61  ;;  %v2543_v52 = vmul.f32 %v6864_v2, %v7715_v59  ;;  %v6731_v59 = vld [vmem:[%s8636_s6 + $0x20] sm:$0xff]  }
 0x646   : > { %v6866_v0 = vpop.eup %6865 }
 0x647   : > { %v2544_v3 = vmul.f32 %v6866_v0, %v7719_v37  ;;  %6431 = vmatmul.mubr.msk.bf16.vlgmr.msra.gmra.mrb[84].mxu1 %vm1099_vm4, %v2554_v40  ;;  %v6732_v37 = vld [vmem:[%s8636_s6 + $0x28] sm:$0xff]  }
 0x648   : > { %6455 = vmatpush3.bf16.msra.mxu1 %v6727_v38  ;;  %6458 = vmatprep.mubr.msk.bf16.mxu1 %vm410_vm0, %v7092_v9 }
 0x649   : > { %v2553_v48 = vpack.c.bf16 %v2544_v3, %v2543_v52  ;;  %6456 = vmatprep.subr.bf16.mxu1 %v6729_v29 }
 0x64b   : > { %6425 = vmatmul.mubr.msk.bf16.vlgmr.msra.gmra.mrb[84].mxu0 %vm1099_vm4, %v2553_v48 }
 0x64c   : > { %6435 = vmatpush3.bf16.msra.mxu0 %v6728_v61  ;;  %6457 = vmatpush3.bf16.msra.mxu1 %v6729_v29 }
 0x64d   : > { %6436 = vmatprep.subr.bf16.mxu0 %v6730_v24  ;;  %6438 = vmatprep.mubr.msk.bf16.mxu0 %vm410_vm0, %v7094_v10 }
 0x64e   : > { %6462 = vmatprep.subr.bf16.mxu1 %v6731_v59 }
 0x64f   : > { %6459 = vmatmul.mubr.msk.bf16.vlgmr.msra.gmra.mrb[88].mxu1 %vm410_vm0, %v7104_v17 }
 0x650   : > { %6437 = vmatpush3.bf16.msra.mxu0 %v6730_v24  ;;  %6466 = vmatprep.mubr.msk.bf16.mxu1 %vm410_vm0, %v7092_v9 }
 0x651   : > { %6482 = vmatprep.subr.bf16.mxu0 %v8639_v36  ;;  %6463 = vmatpush3.bf16.msra.mxu1 %v6731_v59 }
 0x652   : > { %6464 = vmatprep.subr.bf16.mxu1 %v6732_v37 }
 0x653   : > { %6439 = vmatmul.mubr.msk.bf16.vlgmr.msra.gmra.mrb[88].mxu0 %vm410_vm0, %v7106_v18 }
 0x654   : > { %6442 = vmatprep.mubr.msk.bf16.mxu0 %vm410_vm0, %v7108_v19 }
 0x655   : > { %6465 = vmatpush3.bf16.msra.mxu1 %v6732_v37 }
 0x656   : > { %6470 = vmatprep.subr.bf16.mxu1 %v8639_v36 }
 0x658   : > { %6467 = vmatmul.mubr.msk.bf16.vlgmr.msra.gmra.mrb[92].mxu1 %vm410_vm0, %v7104_v17 }
 0x659   : > { %6472 = vmatprep.mubr.msk.bf16.mxu1 %vm7004_vm1, %v8639_v36 }
 0x65b   : > { %6443 = vmatmul.mubr.msk.bf16.gmra.mrb[92].mxu0 %vm410_vm0, %v7125_v25 }
 0x65c   : > { %6446 = vmatprep.mubr.msk.bf16.mxu0 %vm410_vm0, %v7127_v26 }
 0x663   : > { %6447 = vmatmul.mubr.msk.bf16.gmra.mrb[96].mxu0 %vm410_vm0, %v7139_v31 }
 0x664   : > { %6450 = vmatprep.mubr.msk.bf16.mxu0 %vm410_vm0, %v7141_v32 }
 0x66b   : > { %6451 = vmatmul.mubr.msk.bf16.gmra.mrb[100].mxu0 %vm410_vm0, %v7149_v35 }
 0x66c   : > { %6484 = vmatprep.mubr.msk.bf16.mxu0 %vm7004_vm1, %v8639_v36 }
 0x702   : > { %v7829_v4 = vpop.f32.mrb[72].mxu1 }
 0x703   : > { %v6396_v8 = vpop.f32.mrb[73].mxu1 }
 0x704   : > { %v7831_v57 = vpop.f32.mrb[74].mxu1 }
 0x705   : > { %v6397_v22 = vpop.f32.mrb[75].mxu1 }
 0x706   : > { %v7833_v62 = vpop.f32.mrb[72].mxu0 }
 0x707   : > { %v6390_v55 = vpop.f32.mrb[73].mxu0 }
 0x708   : > { %v7835_v44 = vpop.f32.mrb[74].mxu0 }
 0x709   : > { %v6391_v51 = vpop.f32.mrb[75].mxu0 }
 0x70a   : > { %v7837_v21 = vpop.f32.mrb[76].mxu1 }
 0x70b   : > { %v6408_v33 = vpop.f32.mrb[77].mxu1 }
 0x70c   : > { %v7839_v12 = vpop.f32.mrb[78].mxu1 }
 0x70d   : > { %v6409_v23 = vpop.f32.mrb[79].mxu1 }
 0x70e   : > { %v7841_v27 = vpop.f32.mrb[76].mxu0 }
 0x70f   : > { %v6402_v50 = vpop.f32.mrb[77].mxu0 }
 0x710   : > { %v7843_v49 = vpop.f32.mrb[78].mxu0 }
 0x711   : > { %v6403_v30 = vpop.f32.mrb[79].mxu0 }
 0x712   : > { %v7845_v28 = vpop.f32.mrb[80].mxu1 }
 0x713   : > { %v6420_v56 = vpop.f32.mrb[81].mxu1 }
 0x714   : > { %v7847_v39 = vpop.f32.mrb[82].mxu1 }
 0x715   : > { %v6421_v20 = vpop.f32.mrb[83].mxu1 }
 0x716   : > { %v7849_v42 = vpop.f32.mrb[80].mxu0 }
 0x717   : > { %v6414_v11 = vpop.f32.mrb[81].mxu0 }
 0x718   : > { %v7851_v46 = vpop.f32.mrb[82].mxu0 }
 0x719   : > { %v6415_v58 = vpop.f32.mrb[83].mxu0 }
 0x71a   : > { %v7853_v54 = vpop.f32.mrb[84].mxu1 }
 0x71b   : > { %v6432_v5 = vpop.f32.mrb[85].mxu1 }
 0x71c   : > { %v7855_v16 = vpop.f32.mrb[86].mxu1 }
 0x71d   : > { %v6433_v34 = vpop.f32.mrb[87].mxu1 }
 0x71e   : > { %v7857_v60 = vpop.f32.mrb[84].mxu0 }
 0x71f   : > { %v6426_v45 = vpop.f32.mrb[85].mxu0 }
 0x720   : > { %v7859_v38 = vpop.f32.mrb[86].mxu0 }
 0x721   : > { %v6427_v47 = vpop.f32.mrb[87].mxu0 }
 0x722   : > { %v6460_v14 = vpop.f32.mrb[88].mxu1 }
 0x723   : > { %v3201_v53 = vpop.f32.mrb[89].mxu1  ;;  %v3210_v51 = vadd.f32 %v6460_v14, %v5883_v7 }
 0x724   : > { %v3202_v6 = vadd.f32 %v5883_v7, %v3201_v53  ;;  %v6461_v15 = vpop.f32.mrb[90].mxu1 }
 0x725   : > { %v3204_v61 = vpop.f32.mrb[91].mxu1  ;;  %v3326_v34 = vpack.c.bf16 %v3210_v51, %v3210_v51 }
 0x726   : > { %v3322_v41 = vpack.c.bf16 %v3202_v6, %v3202_v6  ;;  %v3205_v13 = vadd.f32 %v5883_v7, %v3204_v61  ;;  %v6440_v43 = vpop.f32.mrb[88].mxu0  ;;  %v3220_v52 = vcombine.high %v3202_v6, %v3202_v6  ;;  %v3213_v6 = vadd.f32 %v6461_v15, %v5883_v7 }
 0x727   : > { %v3088_v63 = vadd.f32 %v6440_v43, %v7867_v1  ;;  %v3079_v2 = vpop.f32.mrb[89].mxu0 }
 0x728   : > { %v3324_v40 = vpack.c.bf16 %v3205_v13, %v3205_v13  ;;  %v3080_v29 = vadd.f32 %v7867_v1, %v3079_v2  ;;  %v6441_v0 = vpop.f32.mrb[90].mxu0  ;;  %v3334_v24 = vsel %vm722_vm2, %v3322_v41, 0  ;;  %v3323_v55 = vpack.c.bf16 %v3220_v52, %v3220_v52 }
 0x729   : > { %v3091_v3 = vadd.f32 %v6441_v0, %v7867_v1  ;;  %v3082_v48 = vpop.f32.mrb[91].mxu0  ;;  %6471 = vmatpush3.bf16.xpose.msra.mxu1 %v3334_v24  ;;  %v3221_v20 = vcombine.high %v3205_v13, %v3205_v13  ;;  %v3522_v41 = vsel %vm722_vm2, %v3326_v34, 0  ;;  %v3328_v0 = vpack.c.bf16 %v3213_v6, %v3213_v6 }
 0x72a   : > { %v3083_v59 = vadd.f32 %v7867_v1, %v3082_v48  ;;  %v3428_v37 = vsel %vm722_vm2, %v3324_v40, 0  ;;  %6476 = vmatprep.subr.bf16.mxu1 %v8639_v36  ;;  %v3381_v5 = vsel %vm722_vm2, %v3323_v55, 0  ;;  %v3222_v40 = vcombine.high %v3210_v51, %v3210_v51 }
 0x72b   : > { %v3315_v8 = vpack.c.bf16 %v3091_v3, %v3088_v63  ;;  %6483 = vmatpush3.bf16.xpose.msra.mxu0 %v3428_v37  ;;  %v3325_v53 = vpack.c.bf16 %v3221_v20, %v3221_v20  ;;  %v6468_v34 = vpop.f32.mrb[92].mxu1 }
 0x72c   : > { %v3314_v22 = vpack.c.bf16 %v3083_v59, %v3080_v29  ;;  %6494 = vmatprep.subr.bf16.mxu0 %v8639_v36  ;;  %v3327_v24 = vpack.c.bf16 %v3222_v40, %v3222_v40  ;;  %v3616_v59 = vsel %vm722_vm2, %v3328_v0, 0 }
 0x72d   : > { %v3475_v29 = vsel %vm722_vm2, %v3325_v53, 0 }
 0x72e   : > { %v6444_v33 = vpop.f32.mrb[92].mxu0 }
 0x72f   : > { %v3104_v23 = vadd.f32 %v6444_v33, %v7867_v1  ;;  %v3095_v50 = vpop.f32.mrb[93].mxu0  ;;  %v3223_v33 = vcombine.high %v3213_v6, %v3213_v6 }
 0x730   : > { %v3096_v30 = vadd.f32 %v7867_v1, %v3095_v50  ;;  %v6445_v56 = vpop.f32.mrb[94].mxu0  ;;  %6473 = vmatmul.mubr.msk.bf16.vlgmr.msra.gmra.mrb[96].mxu1 %vm722_vm2, %v3314_v22 }
 0x731   : > { %v3107_v11 = vadd.f32 %v6445_v56, %v7867_v1  ;;  %v3098_v58 = vpop.f32.mrb[95].mxu0  ;;  %6477 = vmatpush3.bf16.xpose.msra.mxu1 %v3381_v5  ;;  %6478 = vmatprep.mubr.msk.bf16.mxu1 %vm7004_vm1, %v8639_v36 }
 0x732   : > { %v3099_v45 = vadd.f32 %v7867_v1, %v3098_v58  ;;  %6488 = vmatprep.subr.bf16.mxu1 %v8639_v36  ;;  %v3329_v58 = vpack.c.bf16 %v3223_v33, %v3223_v33 }
 0x733   : > { %v3317_v47 = vpack.c.bf16 %v3107_v11, %v3104_v23  ;;  %v3569_v23 = vsel %vm722_vm2, %v3327_v24, 0 }
 0x734   : > { %v3316_v14 = vpack.c.bf16 %v3099_v45, %v3096_v30  ;;  %v3663_v5 = vsel %vm722_vm2, %v3329_v58, 0 }
 0x736   : > { %v6448_v61 = vpop.f32.mrb[96].mxu0  ;;  %6485 = vmatmul.mubr.msk.bf16.vlgmr.msra.gmra.mrb[104].mxu0 %vm722_vm2, %v3316_v14 }
 0x737   : > { %v3120_v13 = vadd.f32 %v6448_v61, %v7867_v1  ;;  %6495 = vmatpush3.bf16.xpose.msra.mxu0 %v3522_v41  ;;  %v3111_v43 = vpop.f32.mrb[97].mxu0  ;;  %6496 = vmatprep.mubr.msk.bf16.mxu0 %vm7004_vm1, %v8639_v36 }
 0x738   : > { %v3112_v63 = vadd.f32 %v7867_v1, %v3111_v43  ;;  %v6449_v2 = vpop.f32.mrb[98].mxu0  ;;  %6506 = vmatprep.subr.bf16.mxu0 %v8639_v36  ;;  %6479 = vmatmul.mubr.msk.bf16.vlgmr.msra.gmra.mrb[100].mxu1 %vm722_vm2, %v3315_v8 }
 0x739   : > { %v3123_v7 = vadd.f32 %v6449_v2, %v7867_v1  ;;  %v3114_v15 = vpop.f32.mrb[99].mxu0  ;;  %6489 = vmatpush3.bf16.xpose.msra.mxu1 %v3475_v29  ;;  %6490 = vmatprep.mubr.msk.bf16.mxu1 %vm7004_vm1, %v8639_v36 }
 0x73a   : > { %v3115_v52 = vadd.f32 %v7867_v1, %v3114_v15  ;;  %6500 = vmatprep.subr.bf16.mxu1 %v8639_v36 }
 0x73b   : > { %v3319_v3 = vpack.c.bf16 %v3123_v7, %v3120_v13 }
 0x73c   : > { %v3318_v48 = vpack.c.bf16 %v3115_v52, %v3112_v63 }
 0x73e   : > { %6497 = vmatmul.mubr.msk.bf16.vlgmr.msra.gmra.mrb[108].mxu0 %vm722_vm2, %v3318_v48  ;;  %v6452_v37 = vpop.f32.mrb[100].mxu0 }
 0x73f   : > { %6507 = vmatpush3.bf16.xpose.msra.mxu0 %v3616_v59  ;;  %v3136_v8 = vadd.f32 %v6452_v37, %v7867_v1  ;;  %v3127_v22 = vpop.f32.mrb[101].mxu0  ;;  %6508 = vmatprep.mubr.msk.bf16.mxu0 %vm7004_vm1, %v8639_v36 }
 0x740   : > { %v3128_v55 = vadd.f32 %v7867_v1, %v3127_v22  ;;  %v6453_v51 = vpop.f32.mrb[102].mxu0  ;;  %6518 = vmatprep.subr.bf16.mxu0 %v8639_v36  ;;  %6491 = vmatmul.mubr.msk.bf16.vlgmr.msra.gmra.mrb[104].mxu1 %vm722_vm2, %v3317_v47  ;;  %v3287_v47 = vpop.f32.mrb[93].mxu1 }
 0x741   : > { %v3139_v50 = vadd.f32 %v6453_v51, %v7867_v1  ;;  %v3130_v30 = vpop.f32.mrb[103].mxu0  ;;  %6501 = vmatpush3.bf16.xpose.msra.mxu1 %v3569_v23  ;;  %6502 = vmatprep.mubr.msk.bf16.mxu1 %vm7004_vm1, %v8639_v36  ;;  %v6469_v53 = vpop.f32.mrb[94].mxu1 }
 0x742   : > { %v3131_v56 = vadd.f32 %v7867_v1, %v3130_v30  ;;  %6512 = vmatprep.subr.bf16.mxu1 %v8639_v36  ;;  %v5893_v1 = vld [vmem:[%s8637_s7 + $0x2] ss:$0 sm:$0xff]  ;;  %v3290_v61 = vpop.f32.mrb[95].mxu1 }
 0x743   : > { %v3321_v20 = vpack.c.bf16 %v3139_v50, %v3136_v8  ;;  %v7928_v45 = vadd.f32 %v6468_v34, %v5893_v1  ;;  %v3288_v14 = vadd.f32 %v5893_v1, %v3287_v47  ;;  %v7930_v6 = vadd.f32 %v6469_v53, %v5893_v1 }
 0x744   : > { %v3320_v11 = vpack.c.bf16 %v3131_v56, %v3128_v55  ;;  %v7932_v13 = vadd.f32 %v5893_v1, %v3290_v61 }
 0x745   : > { %v3890_v41 = vpack.c.bf16 %v3288_v14, %v3288_v14  ;;  %v3306_v43 = vcombine.high %v3288_v14, %v3288_v14 }
 0x746   : > { %6509 = vmatmul.mubr.msk.bf16.vlgmr.msra.gmra.mrb[112].mxu0 %vm722_vm2, %v3320_v11 }
 0x747   : > { %6520 = vmatprep.mubr.msk.bf16.mxu0 %vm7004_vm1, %v8639_v36  ;;  %v3902_v63 = vsel %vm1295_vm3, %v3890_v41, 0  ;;  %v3891_v2 = vpack.c.bf16 %v3306_v43, %v3306_v43 }
 0x748   : > { %6503 = vmatmul.mubr.msk.bf16.vlgmr.msra.gmra.mrb[108].mxu1 %vm722_vm2, %v3319_v3  ;;  %6519 = vmatpush3.bf16.msra.mxu0 %v3902_v63 }
 0x749   : > { %6513 = vmatpush3.bf16.xpose.msra.mxu1 %v3663_v5  ;;  %6514 = vmatprep.mubr.msk.bf16.mxu1 %vm7004_vm1, %v8639_v36  ;;  %v3949_v40 = vsel %vm1295_vm3, %v3891_v2, 0 }
 0x74a   : > { %6524 = vmatprep.subr.bf16.mxu1 %v8639_v36  ;;  %6530 = vmatprep.subr.bf16.mxu0 %v8639_v36 }
 0x750   : > { %6515 = vmatmul.mubr.msk.bf16.vlgmr.msra.gmra.mrb[112].mxu1 %vm722_vm2, %v3321_v20 }
 0x751   : > { %6526 = vmatprep.mubr.msk.bf16.mxu1 %vm7004_vm1, %v8639_v36  ;;  %6525 = vmatpush3.bf16.msra.mxu1 %v3949_v40 }
 0x752   : > { %6536 = vmatprep.subr.bf16.mxu1 %v8639_v36 }
 0x803   : > { %v7938_v7 = vpop.f32.mrb[96].mxu1 }
 0x804   : > { %v6474_v15 = vpop.f32.mrb[97].mxu1  ;;  %v3706_v33 = vsel %vm1099_vm4, %v7938_v7, -inf }
 0x805   : > { %v7940_v29 = vpop.f32.mrb[98].mxu1 }
 0x806   : > { %v6475_v0 = vpop.f32.mrb[99].mxu1  ;;  %v3709_v30 = vsel %vm1099_vm4, %v7940_v29, -inf }
 0x809   : > { %v7942_v52 = vpop.f32.mrb[104].mxu0 }
 0x80a   : > { %v6486_v3 = vpop.f32.mrb[105].mxu0  ;;  %v3718_v14 = vsel %vm1099_vm4, %v7942_v52, -inf }
 0x80b   : > { %v7944_v48 = vpop.f32.mrb[106].mxu0  ;;  %v3417_v24 = vpop.f32.mrb[100].mxu1 }
 0x80c   : > { %v6487_v59 = vpop.f32.mrb[107].mxu0  ;;  %v6480_v37 = vpop.f32.mrb[101].mxu1  ;;  %v3712_v8 = vsel %vm1099_vm4, %v3417_v24, -inf  ;;  %v3721_v41 = vsel %vm1099_vm4, %v7944_v48, -inf }
 0x80d   : > { %3713 = vmax.xlane.f32.xlu0 %v3712_v8  ;;  %v3420_v22 = vpop.f32.mrb[102].mxu1 }
 0x80e   : > { %v6481_v55 = vpop.f32.mrb[103].mxu1  ;;  %v3715_v51 = vsel %vm1099_vm4, %v3420_v22, -inf }
 0x80f   : > { %3716 = vmax.xlane.f32.xlu1 %v3715_v51 }
 0x811   : > { %v7950_v23 = vpop.f32.mrb[108].mxu0  ;;  %3707 = vmax.xlane.f32.xlu0 %v3706_v33 }
 0x812   : > { %v6498_v50 = vpop.f32.mrb[109].mxu0  ;;  %v3730_v37 = vsel %vm1099_vm4, %v7950_v23, -inf }
 0x813   : > { %v7954_v56 = vpop.f32.mrb[110].mxu0  ;;  %3710 = vmax.xlane.f32.xlu1 %v3709_v30  ;;  %v3511_v20 = vpop.f32.mrb[104].mxu1 }
 0x814   : > { %v6499_v11 = vpop.f32.mrb[111].mxu0  ;;  %v6492_v58 = vpop.f32.mrb[105].mxu1  ;;  %v3724_v5 = vsel %vm1099_vm4, %v3511_v20, -inf  ;;  %v3733_v8 = vsel %vm1099_vm4, %v7954_v56, -inf }
 0x815   : > { %3725 = vmax.xlane.f32.xlu0 %v3724_v5  ;;  %v3514_v1 = vpop.f32.mrb[106].mxu1 }
 0x816   : > { %v6493_v34 = vpop.f32.mrb[107].mxu1  ;;  %v3727_v47 = vsel %vm1099_vm4, %v3514_v1, -inf }
 0x817   : > { %3728 = vmax.xlane.f32.xlu1 %v3727_v47 }
 0x819   : > { %v7960_v53 = vpop.f32.mrb[112].mxu0  ;;  %3719 = vmax.xlane.f32.xlu0 %v3718_v14 }
 0x81a   : > { %v6510_v61 = vpop.f32.mrb[113].mxu0  ;;  %v3742_v58 = vsel %vm1099_vm4, %v7960_v53, -inf }
 0x81b   : > { %v7964_v43 = vpop.f32.mrb[114].mxu0  ;;  %3722 = vmax.xlane.f32.xlu1 %v3721_v41  ;;  %v7966_v63 = vpop.f32.mrb[108].mxu1 }
 0x81c   : > { %v6511_v2 = vpop.f32.mrb[115].mxu0  ;;  %v6504_v40 = vpop.f32.mrb[109].mxu1  ;;  %v3736_v15 = vsel %vm1099_vm4, %v7966_v63, -inf  ;;  %v3745_v5 = vsel %vm1099_vm4, %v7964_v43, -inf }
 0x81d   : > { %3737 = vmax.xlane.f32.xlu0 %v3736_v15  ;;  %v7970_v0 = vpop.f32.mrb[110].mxu1 }
 0x81e   : > { %v6505_v3 = vpop.f32.mrb[111].mxu1  ;;  %v3739_v59 = vsel %vm1099_vm4, %v7970_v0, -inf }
 0x81f   : > { %3740 = vmax.xlane.f32.xlu1 %v3739_v59 }
 0x821   : > { %3731 = vmax.xlane.f32.xlu0 %v3730_v37 }
 0x823   : > { %3734 = vmax.xlane.f32.xlu1 %v3733_v8  ;;  %v7978_v55 = vpop.f32.mrb[112].mxu1 }
 0x824   : > { %v6516_v51 = vpop.f32.mrb[113].mxu1  ;;  %v3748_v33 = vsel %vm1099_vm4, %v7978_v55, -inf }
 0x825   : > { %3749 = vmax.xlane.f32.xlu0 %v3748_v33  ;;  %v7982_v50 = vpop.f32.mrb[114].mxu1 }
 0x826   : > { %v6517_v30 = vpop.f32.mrb[115].mxu1  ;;  %v3751_v11 = vsel %vm1099_vm4, %v7982_v50, -inf }
 0x827   : > { %3752 = vmax.xlane.f32.xlu1 %v3751_v11 }
 0x829   : > { %3743 = vmax.xlane.f32.xlu0 %v3742_v58 }
 0x82b   : > { %3746 = vmax.xlane.f32.xlu1 %v3745_v5 }
 0x89a   : > { %v3714_v34 = vpop.xlane.xlu0 %3713 }
 0x89b   : > { %v3756_v47 = vsub.f32 %v3417_v24, %v3714_v34 }
 0x89c   : > { %v3717_v14 = vpop.xlane.xlu1 %3716 }
 0x89d   : > { %v3774_v61 = vmul.f32 1.442695, %v3756_v47  ;;  %v3757_v41 = vsub.f32 %v3420_v22, %v3717_v14 }
 0x89e   : > { %v3708_v2 = vpop.xlane.xlu0 %3707 }
 0x89f   : > { %6867 = vpow2.f32 %v3774_v61  ;;  %v3776_v40 = vmul.f32 1.442695, %v3757_v41  ;;  %v3754_v15 = vsub.f32 %v7938_v7, %v3708_v2 }
 0x8a0   : > { %v3711_v3 = vpop.xlane.xlu1 %3710 }
 0x8a1   : > { %6869 = vpow2.f32 %v3776_v40  ;;  %v3770_v59 = vmul.f32 1.442695, %v3754_v15  ;;  %v3755_v37 = vsub.f32 %v7940_v29, %v3711_v3 }
 0x8a2   : > { %v3726_v8 = vpop.xlane.xlu0 %3725 }
 0x8a3   : > { %6871 = vpow2.f32 %v3770_v59  ;;  %v3772_v51 = vmul.f32 1.442695, %v3755_v37  ;;  %v3760_v33 = vsub.f32 %v3511_v20, %v3726_v8 }
 0x8a4   : > { %v3729_v30 = vpop.xlane.xlu1 %3728 }
 0x8a5   : > { %6873 = vpow2.f32 %v3772_v51  ;;  %v3782_v24 = vmul.f32 1.442695, %v3760_v33  ;;  %v3761_v11 = vsub.f32 %v3514_v1, %v3729_v30 }
 0x8a6   : > { %v3720_v58 = vpop.xlane.xlu0 %3719 }
 0x8a7   : > { %6875 = vpow2.f32 %v3782_v24  ;;  %v3784_v22 = vmul.f32 1.442695, %v3761_v11  ;;  %v3758_v5 = vsub.f32 %v7942_v52, %v3720_v58 }
 0x8a8   : > { %v3723_v34 = vpop.xlane.xlu1 %3722 }
 0x8a9   : > { %v7993_v7 = vpop.eup %6867  ;;  %6877 = vpow2.f32 %v3784_v22  ;;  %v3778_v47 = vmul.f32 1.442695, %v3758_v5  ;;  %v3759_v29 = vsub.f32 %v7944_v48, %v3723_v34 }
 0x8aa   : > { %v3738_v14 = vpop.xlane.xlu0 %3737  ;;  %v3808_v20 = vsel %vm1099_vm4, %v7993_v7, 0.0 }
 0x8ab   : > { %v7998_v61 = vpop.eup %6869  ;;  %6879 = vpow2.f32 %v3778_v47  ;;  %v3780_v1 = vmul.f32 1.442695, %v3759_v29  ;;  %v3764_v41 = vsub.f32 %v7966_v63, %v3738_v14  ;;  %3809 = vadd.xlane.f32.xlu0 %v3808_v20 }
 0x8ac   : > { %v3741_v2 = vpop.xlane.xlu1 %3740  ;;  %v3811_v52 = vsel %vm1099_vm4, %v7998_v61, 0.0 }
 0x8ad   : > { %v8003_v40 = vpop.eup %6871  ;;  %6881 = vpow2.f32 %v3780_v1  ;;  %v3790_v15 = vmul.f32 1.442695, %v3764_v41  ;;  %v3765_v48 = vsub.f32 %v7970_v0, %v3741_v2  ;;  %3812 = vadd.xlane.f32.xlu1 %v3811_v52 }
 0x8ae   : > { %v3732_v3 = vpop.xlane.xlu0 %3731  ;;  %v3802_v59 = vsel %vm1099_vm4, %v8003_v40, 0.0 }
 0x8af   : > { %v8008_v37 = vpop.eup %6873  ;;  %6883 = vpow2.f32 %v3790_v15  ;;  %v3792_v63 = vmul.f32 1.442695, %v3765_v48  ;;  %v3762_v8 = vsub.f32 %v7950_v23, %v3732_v3  ;;  %3803 = vadd.xlane.f32.xlu0 %v3802_v59 }
 0x8b0   : > { %v3735_v51 = vpop.xlane.xlu1 %3734  ;;  %v3805_v33 = vsel %vm1099_vm4, %v8008_v37, 0.0 }
 0x8b1   : > { %v8013_v30 = vpop.eup %6875  ;;  %6885 = vpow2.f32 %v3792_v63  ;;  %v3786_v0 = vmul.f32 1.442695, %v3762_v8  ;;  %v3763_v24 = vsub.f32 %v7954_v56, %v3735_v51  ;;  %3806 = vadd.xlane.f32.xlu1 %v3805_v33 }
 0x8b2   : > { %v3750_v11 = vpop.xlane.xlu0 %3749  ;;  %v3820_v58 = vsel %vm1099_vm4, %v8013_v30, 0.0 }
 0x8b3   : > { %v8018_v22 = vpop.eup %6877  ;;  %6887 = vpow2.f32 %v3786_v0  ;;  %v3788_v23 = vmul.f32 1.442695, %v3763_v24  ;;  %v3768_v5 = vsub.f32 %v7978_v55, %v3750_v11  ;;  %3821 = vadd.xlane.f32.xlu0 %v3820_v58 }
 0x8b4   : > { %v3753_v34 = vpop.xlane.xlu1 %3752  ;;  %v3823_v47 = vsel %vm1099_vm4, %v8018_v22, 0.0 }
 0x8b5   : > { %v8023_v29 = vpop.eup %6879  ;;  %6889 = vpow2.f32 %v3788_v23  ;;  %v3798_v56 = vmul.f32 1.442695, %v3768_v5  ;;  %v3769_v14 = vsub.f32 %v7982_v50, %v3753_v34  ;;  %3824 = vadd.xlane.f32.xlu1 %v3823_v47 }
 0x8b6   : > { %v3744_v20 = vpop.xlane.xlu0 %3743  ;;  %v3814_v1 = vsel %vm1099_vm4, %v8023_v29, 0.0 }
 0x8b7   : > { %v8028_v41 = vpop.eup %6881  ;;  %6891 = vpow2.f32 %v3798_v56  ;;  %v3800_v55 = vmul.f32 1.442695, %v3769_v14  ;;  %v3766_v2 = vsub.f32 %v7960_v53, %v3744_v20  ;;  %3815 = vadd.xlane.f32.xlu0 %v3814_v1 }
 0x8b8   : > { %v3747_v52 = vpop.xlane.xlu1 %3746  ;;  %v3817_v15 = vsel %vm1099_vm4, %v8028_v41, 0.0 }
 0x8b9   : > { %v8033_v48 = vpop.eup %6883  ;;  %6893 = vpow2.f32 %v3800_v55  ;;  %v3794_v50 = vmul.f32 1.442695, %v3766_v2  ;;  %v3767_v3 = vsub.f32 %v7964_v43, %v3747_v52  ;;  %3818 = vadd.xlane.f32.xlu1 %v3817_v15  ;;  %v3307_v52 = vcombine.high %v7932_v13, %v7932_v13 }
 0x8ba   : > { %v3832_v59 = vsel %vm1099_vm4, %v8033_v48, 0.0 }
 0x8bb   : > { %v8038_v63 = vpop.eup %6885  ;;  %6895 = vpow2.f32 %v3794_v50  ;;  %v3796_v8 = vmul.f32 1.442695, %v3767_v3  ;;  %3833 = vadd.xlane.f32.xlu0 %v3832_v59 }
 0x8bc   : > { %v3835_v53 = vsel %vm1099_vm4, %v8038_v63, 0.0 }
 0x8bd   : > { %v8042_v51 = vpop.eup %6887  ;;  %6897 = vpow2.f32 %v3796_v8  ;;  %3836 = vadd.xlane.f32.xlu1 %v3835_v53  ;;  %v3893_v8 = vpack.c.bf16 %v3307_v52, %v3307_v52 }
 0x8be   : > { %v3826_v33 = vsel %vm1099_vm4, %v8042_v51, 0.0 }
 0x8bf   : > { %v8046_v43 = vpop.eup %6889  ;;  %3827 = vadd.xlane.f32.xlu0 %v3826_v33 }
 0x8c0   : > { %v3829_v0 = vsel %vm1099_vm4, %v8046_v43, 0.0 }
 0x8c1   : > { %v8050_v24 = vpop.eup %6891  ;;  %3830 = vadd.xlane.f32.xlu1 %v3829_v0 }
 0x8c2   : > { %v3844_v11 = vsel %vm1099_vm4, %v8050_v24, 0.0 }
 0x8c3   : > { %v8054_v58 = vpop.eup %6893  ;;  %3845 = vadd.xlane.f32.xlu0 %v3844_v11 }
 0x8c4   : > { %v3847_v23 = vsel %vm1099_vm4, %v8054_v58, 0.0 }
 0x8c5   : > { %v8058_v5 = vpop.eup %6895  ;;  %3848 = vadd.xlane.f32.xlu1 %v3847_v23 }
 0x8c6   : > { %v3838_v34 = vsel %vm1099_vm4, %v8058_v5, 0.0 }
 0x8c7   : > { %v8062_v47 = vpop.eup %6897  ;;  %3839 = vadd.xlane.f32.xlu0 %v3838_v34 }
 0x8c8   : > { %v3841_v56 = vsel %vm1099_vm4, %v8062_v47, 0.0 }
 0x8c9   : > { %3842 = vadd.xlane.f32.xlu1 %v3841_v56 }
 0x938   : > { %v3810_v14 = vpop.xlane.xlu0 %3809 }
 0x939   : > { %6899 = vrcp.f32 %v3810_v14  ;;  %v3308_v14 = vcombine.high %v7928_v45, %v7928_v45 }
 0x93a   : > { %v3813_v20 = vpop.xlane.xlu1 %3812 }
 0x93b   : > { %6901 = vrcp.f32 %v3813_v20  ;;  %v3892_v20 = vpack.c.bf16 %v7932_v13, %v7932_v13 }
 0x93c   : > { %v3804_v1 = vpop.xlane.xlu0 %3803 }
 0x93d   : > { %6903 = vrcp.f32 %v3804_v1 }
 0x93e   : > { %v3807_v55 = vpop.xlane.xlu1 %3806 }
 0x93f   : > { %6905 = vrcp.f32 %v3807_v55 }
 0x940   : > { %v3822_v2 = vpop.xlane.xlu0 %3821 }
 0x941   : > { %6907 = vrcp.f32 %v3822_v2 }
 0x942   : > { %v3825_v15 = vpop.xlane.xlu1 %3824 }
 0x943   : > { %v6900_v50 = vpop.eup %6899  ;;  %6909 = vrcp.f32 %v3825_v15 }
 0x944   : > { %v3816_v3 = vpop.xlane.xlu0 %3815  ;;  %v3868_v53 = vmul.f32 %v6900_v50, %v7993_v7  ;;  %v4043_v7 = vsel %vm1295_vm3, %v3893_v8, 0 }
 0x945   : > { %v6902_v59 = vpop.eup %6901  ;;  %6911 = vrcp.f32 %v3816_v3  ;;  %v3996_v3 = vsel %vm1295_vm3, %v3892_v20, 0 }
 0x946   : > { %v3869_v33 = vmul.f32 %v6902_v59, %v7998_v61  ;;  %v3819_v0 = vpop.xlane.xlu1 %3818 }
 0x947   : > { %v6904_v11 = vpop.eup %6903  ;;  %6913 = vrcp.f32 %v3819_v0 }
 0x948   : > { %v3834_v23 = vpop.xlane.xlu0 %3833  ;;  %v3883_v34 = vpack.c.bf16 %v3869_v33, %v3868_v53  ;;  %v3866_v1 = vmul.f32 %v6904_v11, %v8003_v40  ;;  %v3895_v40 = vpack.c.bf16 %v3308_v14, %v3308_v14 }
 0x949   : > { %v6906_v56 = vpop.eup %6905  ;;  %6915 = vrcp.f32 %v3834_v23 }
 0x94a   : > { %v3867_v55 = vmul.f32 %v6906_v56, %v8008_v37  ;;  %6527 = vmatmul.mubr.msk.bf16.vlgmr.msra.gmra.mrb[116].mxu1 %vm1099_vm4, %v3883_v34  ;;  %v3837_v61 = vpop.xlane.xlu1 %3836  ;;  %v4137_v34 = vsel %vm1295_vm3, %v3895_v40, 0 }
 0x94b   : > { %v6908_v2 = vpop.eup %6907  ;;  %6537 = vmatpush3.bf16.msra.mxu1 %v4043_v7  ;;  %6917 = vrcp.f32 %v3837_v61  ;;  %6538 = vmatprep.mubr.msk.bf16.mxu1 %vm7004_vm1, %v8639_v36 }
 0x94c   : > { %v3828_v52 = vpop.xlane.xlu0 %3827  ;;  %v3882_v15 = vpack.c.bf16 %v3867_v55, %v3866_v1  ;;  %6548 = vmatprep.subr.bf16.mxu1 %v8639_v36  ;;  %v3872_v37 = vmul.f32 %v6908_v2, %v8013_v30  ;;  %v3894_v30 = vpack.c.bf16 %v7928_v45, %v7928_v45 }
 0x94d   : > { %v6910_v13 = vpop.eup %6909  ;;  %6919 = vrcp.f32 %v3828_v52 }
 0x94e   : > { %v3873_v50 = vmul.f32 %v6910_v13, %v8018_v22  ;;  %6521 = vmatmul.mubr.msk.bf16.vlgmr.msra.gmra.mrb[116].mxu0 %vm1099_vm4, %v3882_v15  ;;  %v3831_v59 = vpop.xlane.xlu1 %3830  ;;  %v3309_v22 = vcombine.high %v7930_v6, %v7930_v6  ;;  %v4090_v7 = vsel %vm1295_vm3, %v3894_v30, 0 }
 0x94f   : > { %v6912_v8 = vpop.eup %6911  ;;  %6531 = vmatpush3.bf16.msra.mxu0 %v3996_v3  ;;  %6921 = vrcp.f32 %v3831_v59  ;;  %6532 = vmatprep.mubr.msk.bf16.mxu0 %vm7004_vm1, %v8639_v36  ;;  %v6734_v59 = vld [vmem:[%s8632_s2 + $0x30] sm:$0xff]  }
 0x950   : > { %v3846_v53 = vpop.xlane.xlu0 %3845  ;;  %v3885_v33 = vpack.c.bf16 %v3873_v50, %v3872_v37  ;;  %6542 = vmatprep.subr.bf16.mxu0 %v8639_v36  ;;  %v3870_v11 = vmul.f32 %v6912_v8, %v8023_v29  ;;  %v3897_v29 = vpack.c.bf16 %v3309_v22, %v3309_v22 }
 0x951   : > { %v6914_v0 = vpop.eup %6913  ;;  %6923 = vrcp.f32 %v3846_v53 }
 0x952   : > { %v3871_v23 = vmul.f32 %v6914_v0, %v8028_v41  ;;  %6539 = vmatmul.mubr.msk.bf16.vlgmr.msra.gmra.mrb[120].mxu1 %vm1099_vm4, %v3885_v33  ;;  %v3849_v56 = vpop.xlane.xlu1 %3848  ;;  %v4231_v37 = vsel %vm1295_vm3, %v3897_v29, 0  ;;  %v6735_v0 = vld [vmem:[%s8634_s4 + $0x38] sm:$0xff]  }
 0x953   : > { %v6916_v14 = vpop.eup %6915  ;;  %6549 = vmatpush3.bf16.msra.mxu1 %v4137_v34  ;;  %6925 = vrcp.f32 %v3849_v56  ;;  %6550 = vmatprep.mubr.msk.bf16.mxu1 %vm7004_vm1, %v8639_v36 }
 0x954   : > { %v3840_v45 = vpop.xlane.xlu0 %3839  ;;  %v3884_v20 = vpack.c.bf16 %v3871_v23, %v3870_v11  ;;  %6560 = vmatprep.subr.bf16.mxu1 %v8639_v36  ;;  %v3876_v41 = vmul.f32 %v6916_v14, %v8033_v48  ;;  %v6733_v48 = vld [vmem:[%s8634_s4 + $0x30] sm:$0xff]   ;;  %v6736_v11 = vld [vmem:[%s8632_s2 + $0x38] sm:$0xff]  }
 0x955   : > { %v6918_v1 = vpop.eup %6917  ;;  %6927 = vrcp.f32 %v3840_v45 }
 0x956   : > { %v3877_v55 = vmul.f32 %v6918_v1, %v8038_v63  ;;  %6533 = vmatmul.mubr.msk.bf16.vlgmr.msra.gmra.mrb[120].mxu0 %vm1099_vm4, %v3884_v20  ;;  %v3843_v61 = vpop.xlane.xlu1 %3842  ;;  %v3896_v63 = vpack.c.bf16 %v7930_v6, %v7930_v6 }
 0x957   : > { %v6920_v2 = vpop.eup %6919  ;;  %6543 = vmatpush3.bf16.msra.mxu0 %v4090_v7  ;;  %6929 = vrcp.f32 %v3843_v61  ;;  %6544 = vmatprep.mubr.msk.bf16.mxu0 %vm7004_vm1, %v8639_v36 }
 0x958   : > { %v3887_v52 = vpack.c.bf16 %v3877_v55, %v3876_v41  ;;  %6554 = vmatprep.subr.bf16.mxu0 %v8639_v36  ;;  %v3874_v13 = vmul.f32 %v6920_v2, %v8042_v51  ;;  %v4184_v8 = vsel %vm1295_vm3, %v3896_v63, 0 }
 0x959   : > { %v6922_v15 = vpop.eup %6921 }
 0x95a   : > { %v3875_v40 = vmul.f32 %v6922_v15, %v8046_v43  ;;  %6551 = vmatmul.mubr.msk.bf16.vlgmr.msra.gmra.mrb[124].mxu1 %vm1099_vm4, %v3887_v52 }
 0x95b   : > { %v6924_v50 = vpop.eup %6923  ;;  %6561 = vmatpush3.bf16.msra.mxu1 %v4231_v37  ;;  %6562 = vmatprep.mubr.msk.bf16.mxu1 %vm7004_vm1, %v8639_v36 }
 0x95c   : > { %v3886_v3 = vpack.c.bf16 %v3875_v40, %v3874_v13  ;;  %6586 = vmatprep.subr.bf16.mxu1 %v6733_v48  ;;  %v3880_v51 = vmul.f32 %v6924_v50, %v8050_v24 }
 0x95d   : > { %v6926_v6 = vpop.eup %6925 }
 0x95e   : > { %v3881_v43 = vmul.f32 %v6926_v6, %v8054_v58  ;;  %6545 = vmatmul.mubr.msk.bf16.vlgmr.msra.gmra.mrb[124].mxu0 %vm1099_vm4, %v3886_v3 }
 0x95f   : > { %v6928_v53 = vpop.eup %6927  ;;  %6555 = vmatpush3.bf16.msra.mxu0 %v4184_v8  ;;  %6556 = vmatprep.mubr.msk.bf16.mxu0 %vm7004_vm1, %v8639_v36 }
 0x960   : > { %v3889_v33 = vpack.c.bf16 %v3881_v43, %v3880_v51  ;;  %6566 = vmatprep.subr.bf16.mxu0 %v6734_v59  ;;  %v3878_v24 = vmul.f32 %v6928_v53, %v8058_v5  ;;  %v8210_v53 = vld [vmem:[%s8633_s3 + $0x3] ss:$0 sm:$0xff] }
 0x961   : > { %v6930_v30 = vpop.eup %6929 }
 0x962   : > { %v3879_v58 = vmul.f32 %v6930_v30, %v8062_v47  ;;  %6563 = vmatmul.mubr.msk.bf16.vlgmr.msra.gmra.mrb[128].mxu1 %vm1099_vm4, %v3889_v33 }
 0x963   : > { %6587 = vmatpush3.bf16.msra.mxu1 %v6733_v48  ;;  %6590 = vmatprep.mubr.msk.bf16.mxu1 %vm410_vm0, %v7092_v9 }
 0x964   : > { %v3888_v22 = vpack.c.bf16 %v3879_v58, %v3878_v24  ;;  %6588 = vmatprep.subr.bf16.mxu1 %v6735_v0 }
 0x966   : > { %6557 = vmatmul.mubr.msk.bf16.vlgmr.msra.gmra.mrb[128].mxu0 %vm1099_vm4, %v3888_v22 }
 0x967   : > { %6567 = vmatpush3.bf16.msra.mxu0 %v6734_v59  ;;  %6589 = vmatpush3.bf16.msra.mxu1 %v6735_v0  ;;  %v5935_v59 = vld [vmem:[%s8635_s5 + $0x3] ss:$0 sm:$0xff] }
 0x968   : > { %6568 = vmatprep.subr.bf16.mxu0 %v6736_v11  ;;  %6570 = vmatprep.mubr.msk.bf16.mxu0 %vm410_vm0, %v7094_v10  ;;  %v6738_v10 = vld [vmem:[%s8636_s6 + $0x38] sm:$0xff]  }
 0x96a   : > { %6591 = vmatmul.mubr.msk.bf16.vlgmr.msra.gmra.mrb[132].mxu1 %vm410_vm0, %v7104_v17 }
 0x96b   : > { %6569 = vmatpush3.bf16.msra.mxu0 %v6736_v11  ;;  %6598 = vmatprep.mubr.msk.bf16.mxu1 %vm410_vm0, %v7092_v9  ;;  %v6737_v9 = vld [vmem:[%s8636_s6 + $0x30] sm:$0xff]  }
 0x96c   : > { %6614 = vmatprep.subr.bf16.mxu0 %v8639_v36  ;;  %6594 = vmatprep.subr.bf16.mxu1 %v6737_v9 }
 0x96d   : > { %6595 = vmatpush3.bf16.msra.mxu1 %v6737_v9 }
 0x96e   : > { %6571 = vmatmul.mubr.msk.bf16.vlgmr.msra.gmra.mrb[132].mxu0 %vm410_vm0, %v7106_v18  ;;  %6596 = vmatprep.subr.bf16.mxu1 %v6738_v10 }
 0x96f   : > { %6574 = vmatprep.mubr.msk.bf16.mxu0 %vm410_vm0, %v7108_v19 }
 0x971   : > { %6597 = vmatpush3.bf16.msra.mxu1 %v6738_v10 }
 0x972   : > { %6602 = vmatprep.subr.bf16.mxu1 %v8639_v36 }
 0x974   : > { %6599 = vmatmul.mubr.msk.bf16.vlgmr.msra.gmra.mrb[136].mxu1 %vm410_vm0, %v7104_v17 }
 0x975   : > { %6604 = vmatprep.mubr.msk.bf16.mxu1 %vm7004_vm1, %v8639_v36 }
 0x976   : > { %6575 = vmatmul.mubr.msk.bf16.gmra.mrb[136].mxu0 %vm410_vm0, %v7125_v25 }
 0x977   : > { %6578 = vmatprep.mubr.msk.bf16.mxu0 %vm410_vm0, %v7127_v26 }
 0x97e   : > { %6579 = vmatmul.mubr.msk.bf16.gmra.mrb[140].mxu0 %vm410_vm0, %v7139_v31 }
 0x97f   : > { %6582 = vmatprep.mubr.msk.bf16.mxu0 %vm410_vm0, %v7141_v32 }
 0x986   : > { %6583 = vmatmul.mubr.msk.bf16.gmra.mrb[144].mxu0 %vm410_vm0, %v7149_v35 }
 0x987   : > { %6616 = vmatprep.mubr.msk.bf16.mxu0 %vm7004_vm1, %v8639_v36 }
 0xa1d   : > { %v8172_v18 = vpop.f32.mrb[116].mxu1 }
 0xa1e   : > { %v6528_v19 = vpop.f32.mrb[117].mxu1 }
 0xa1f   : > { %v8174_v25 = vpop.f32.mrb[118].mxu1 }
 0xa20   : > { %v6529_v26 = vpop.f32.mrb[119].mxu1 }
 0xa21   : > { %v8176_v31 = vpop.f32.mrb[116].mxu0 }
 0xa22   : > { %v6522_v32 = vpop.f32.mrb[117].mxu0 }
 0xa23   : > { %v8178_v35 = vpop.f32.mrb[118].mxu0 }
 0xa24   : > { %v6523_v5 = vpop.f32.mrb[119].mxu0 }
 0xa25   : > { %v8180_v47 = vpop.f32.mrb[120].mxu1 }
 0xa26   : > { %v6540_v23 = vpop.f32.mrb[121].mxu1 }
 0xa27   : > { %v8182_v34 = vpop.f32.mrb[122].mxu1 }
 0xa28   : > { %v6541_v17 = vpop.f32.mrb[123].mxu1 }
 0xa29   : > { %v8184_v56 = vpop.f32.mrb[120].mxu0 }
 0xa2a   : > { %v6534_v14 = vpop.f32.mrb[121].mxu0 }
 0xa2b   : > { %v8186_v45 = vpop.f32.mrb[122].mxu0 }
 0xa2c   : > { %v6535_v20 = vpop.f32.mrb[123].mxu0 }
 0xa2d   : > { %v8188_v1 = vpop.f32.mrb[124].mxu1 }
 0xa2e   : > { %v6552_v29 = vpop.f32.mrb[125].mxu1 }
 0xa2f   : > { %v8190_v41 = vpop.f32.mrb[126].mxu1 }
 0xa30   : > { %v6553_v55 = vpop.f32.mrb[127].mxu1 }
 0xa31   : > { %v8192_v7 = vpop.f32.mrb[124].mxu0 }
 0xa32   : > { %v6546_v61 = vpop.f32.mrb[125].mxu0 }
 0xa33   : > { %v8194_v2 = vpop.f32.mrb[126].mxu0 }
 0xa34   : > { %v6547_v52 = vpop.f32.mrb[127].mxu0 }
 0xa35   : > { %v8196_v48 = vpop.f32.mrb[128].mxu1 }
 0xa36   : > { %v6564_v15 = vpop.f32.mrb[129].mxu1 }
 0xa37   : > { %v8198_v63 = vpop.f32.mrb[130].mxu1 }
 0xa38   : > { %v6565_v13 = vpop.f32.mrb[131].mxu1 }
 0xa39   : > { %v8200_v40 = vpop.f32.mrb[128].mxu0 }
 0xa3a   : > { %v6558_v37 = vpop.f32.mrb[129].mxu0 }
 0xa3b   : > { %v8202_v50 = vpop.f32.mrb[130].mxu0 }
 0xa3c   : > { %v6559_v3 = vpop.f32.mrb[131].mxu0 }
 0xa3d   : > { %v6592_v6 = vpop.f32.mrb[132].mxu1 }
 0xa3e   : > { %v4536_v51 = vpop.f32.mrb[133].mxu1  ;;  %v4545_v55 = vadd.f32 %v6592_v6, %v5935_v59 }
 0xa3f   : > { %v4537_v43 = vadd.f32 %v5935_v59, %v4536_v51  ;;  %v6593_v8 = vpop.f32.mrb[134].mxu1 }
 0xa40   : > { %v4539_v33 = vpop.f32.mrb[135].mxu1 }
 0xa41   : > { %v4657_v0 = vpack.c.bf16 %v4537_v43, %v4537_v43  ;;  %v4540_v30 = vadd.f32 %v5935_v59, %v4539_v33  ;;  %v6572_v24 = vpop.f32.mrb[132].mxu0  ;;  %v4555_v19 = vcombine.high %v4537_v43, %v4537_v43 }
 0xa42   : > { %v4423_v58 = vadd.f32 %v6572_v24, %v8210_v53  ;;  %v4414_v22 = vpop.f32.mrb[133].mxu0 }
 0xa43   : > { %v4659_v11 = vpack.c.bf16 %v4540_v30, %v4540_v30  ;;  %v4415_v9 = vadd.f32 %v8210_v53, %v4414_v22  ;;  %v6573_v10 = vpop.f32.mrb[134].mxu0  ;;  %v4669_v26 = vsel %vm722_vm2, %v4657_v0, 0  ;;  %v4658_v29 = vpack.c.bf16 %v4555_v19, %v4555_v19 }
 0xa44   : > { %v4426_v32 = vadd.f32 %v6573_v10, %v8210_v53  ;;  %v4417_v5 = vpop.f32.mrb[135].mxu0  ;;  %6603 = vmatpush3.bf16.xpose.msra.mxu1 %v4669_v26  ;;  %v4556_v3 = vcombine.high %v4540_v30, %v4540_v30  ;;  %v4661_v0 = vpack.c.bf16 %v4545_v55, %v4545_v55  ;;  %v4548_v30 = vadd.f32 %v6593_v8, %v5935_v59 }
 0xa45   : > { %v4418_v23 = vadd.f32 %v8210_v53, %v4417_v5  ;;  %v4763_v17 = vsel %vm722_vm2, %v4659_v11, 0  ;;  %6608 = vmatprep.subr.bf16.mxu1 %v8639_v36  ;;  %v4716_v33 = vsel %vm722_vm2, %v4658_v29, 0  ;;  %v4557_v5 = vcombine.high %v4545_v55, %v4545_v55 }
 0xa46   : > { %v4650_v14 = vpack.c.bf16 %v4426_v32, %v4423_v58  ;;  %6615 = vmatpush3.bf16.xpose.msra.mxu0 %v4763_v17  ;;  %v4660_v22 = vpack.c.bf16 %v4556_v3, %v4556_v3  ;;  %v4663_v17 = vpack.c.bf16 %v4548_v30, %v4548_v30 }
 0xa47   : > { %v4649_v20 = vpack.c.bf16 %v4418_v23, %v4415_v9  ;;  %6626 = vmatprep.subr.bf16.mxu0 %v8639_v36  ;;  %v4857_v9 = vsel %vm722_vm2, %v4661_v0, 0 }
 0xa48   : > { %v4810_v23 = vsel %vm722_vm2, %v4660_v22, 0  ;;  %v4951_v55 = vsel %vm722_vm2, %v4663_v17, 0 }
 0xa49   : > { %v6576_v61 = vpop.f32.mrb[136].mxu0 }
 0xa4a   : > { %v4439_v52 = vadd.f32 %v6576_v61, %v8210_v53  ;;  %v4430_v15 = vpop.f32.mrb[137].mxu0 }
 0xa4b   : > { %v4431_v13 = vadd.f32 %v8210_v53, %v4430_v15  ;;  %v6577_v37 = vpop.f32.mrb[138].mxu0  ;;  %6605 = vmatmul.mubr.msk.bf16.vlgmr.msra.gmra.mrb[140].mxu1 %vm722_vm2, %v4649_v20 }
 0xa4c   : > { %v4442_v51 = vadd.f32 %v6577_v37, %v8210_v53  ;;  %v4433_v43 = vpop.f32.mrb[139].mxu0  ;;  %6609 = vmatpush3.bf16.xpose.msra.mxu1 %v4716_v33  ;;  %6610 = vmatprep.mubr.msk.bf16.mxu1 %vm7004_vm1, %v8639_v36 }
 0xa4d   : > { %v4434_v24 = vadd.f32 %v8210_v53, %v4433_v43  ;;  %6620 = vmatprep.subr.bf16.mxu1 %v8639_v36 }
 0xa4e   : > { %v4652_v6 = vpack.c.bf16 %v4442_v51, %v4439_v52  ;;  %v4662_v52 = vpack.c.bf16 %v4557_v5, %v4557_v5  ;;  %v4558_v51 = vcombine.high %v4548_v30, %v4548_v30  ;;  %v6600_v30 = vpop.f32.mrb[136].mxu1 }
 0xa4f   : > { %v4651_v58 = vpack.c.bf16 %v4434_v24, %v4431_v13 }
 0xa50   : > { %v4904_v43 = vsel %vm722_vm2, %v4662_v52, 0 }
 0xa51   : > { %v6580_v11 = vpop.f32.mrb[140].mxu0  ;;  %6617 = vmatmul.mubr.msk.bf16.vlgmr.msra.gmra.mrb[148].mxu0 %vm722_vm2, %v4651_v58 }
 0xa52   : > { %v4455_v10 = vadd.f32 %v6580_v11, %v8210_v53  ;;  %6627 = vmatpush3.bf16.xpose.msra.mxu0 %v4857_v9  ;;  %v4446_v19 = vpop.f32.mrb[141].mxu0  ;;  %6628 = vmatprep.mubr.msk.bf16.mxu0 %vm7004_vm1, %v8639_v36  ;;  %v4664_v11 = vpack.c.bf16 %v4558_v51, %v4558_v51 }
 0xa53   : > { %v4447_v26 = vadd.f32 %v8210_v53, %v4446_v19  ;;  %v6581_v32 = vpop.f32.mrb[142].mxu0  ;;  %6638 = vmatprep.subr.bf16.mxu0 %v8639_v36  ;;  %6611 = vmatmul.mubr.msk.bf16.vlgmr.msra.gmra.mrb[144].mxu1 %vm722_vm2, %v4650_v14 }
 0xa54   : > { %v4458_v59 = vadd.f32 %v6581_v32, %v8210_v53  ;;  %v4449_v8 = vpop.f32.mrb[143].mxu0  ;;  %6621 = vmatpush3.bf16.xpose.msra.mxu1 %v4810_v23  ;;  %6622 = vmatprep.mubr.msk.bf16.mxu1 %vm7004_vm1, %v8639_v36 }
 0xa55   : > { %v4450_v20 = vadd.f32 %v8210_v53, %v4449_v8  ;;  %6632 = vmatprep.subr.bf16.mxu1 %v8639_v36 }
 0xa56   : > { %v4654_v29 = vpack.c.bf16 %v4458_v59, %v4455_v10  ;;  %v4622_v10 = vpop.f32.mrb[137].mxu1 }
 0xa57   : > { %v4653_v61 = vpack.c.bf16 %v4450_v20, %v4447_v26  ;;  %v6601_v26 = vpop.f32.mrb[138].mxu1 }
 0xa58   : > { %v4625_v5 = vpop.f32.mrb[139].mxu1 }
 0xa59   : > { %6629 = vmatmul.mubr.msk.bf16.vlgmr.msra.gmra.mrb[152].mxu0 %vm722_vm2, %v4653_v61  ;;  %v6584_v14 = vpop.f32.mrb[144].mxu0 }
 0xa5a   : > { %6639 = vmatpush3.bf16.xpose.msra.mxu0 %v4951_v55  ;;  %v4471_v15 = vadd.f32 %v6584_v14, %v8210_v53  ;;  %v4462_v13 = vpop.f32.mrb[145].mxu0  ;;  %6640 = vmatprep.mubr.msk.bf16.mxu0 %vm7004_vm1, %v8639_v36 }
 0xa5b   : > { %v4463_v37 = vadd.f32 %v8210_v53, %v4462_v13  ;;  %v6585_v3 = vpop.f32.mrb[146].mxu0  ;;  %6650 = vmatprep.subr.bf16.mxu0 %v8639_v36  ;;  %6623 = vmatmul.mubr.msk.bf16.vlgmr.msra.gmra.mrb[148].mxu1 %vm722_vm2, %v4652_v6  ;;  %v4998_v6 = vsel %vm722_vm2, %v4664_v11, 0 }
 0xa5c   : > { %v4474_v33 = vadd.f32 %v6585_v3, %v8210_v53  ;;  %v4465_v0 = vpop.f32.mrb[147].mxu0  ;;  %6633 = vmatpush3.bf16.xpose.msra.mxu1 %v4904_v43  ;;  %6634 = vmatprep.mubr.msk.bf16.mxu1 %vm7004_vm1, %v8639_v36 }
 0xa5d   : > { %v4466_v24 = vadd.f32 %v8210_v53, %v4465_v0  ;;  %6644 = vmatprep.subr.bf16.mxu1 %v8639_v36  ;;  %v5945_v53 = vld [vmem:[%s8637_s7 + $0x3] ss:$0 sm:$0xff] }
 0xa5e   : > { %v4656_v58 = vpack.c.bf16 %v4474_v33, %v4471_v15  ;;  %v8271_v9 = vadd.f32 %v6600_v30, %v5945_v53  ;;  %v4623_v19 = vadd.f32 %v5945_v53, %v4622_v10  ;;  %v8273_v32 = vadd.f32 %v6601_v26, %v5945_v53 }
 0xa5f   : > { %v4655_v22 = vpack.c.bf16 %v4466_v24, %v4463_v37  ;;  %v8275_v59 = vadd.f32 %v5945_v53, %v4625_v5 }
 0xa60   : > { %8642 = vst [vmem:[#allocation2_spill] sm:$0xff] %v8273_v32  ;;  %v4641_v8 = vcombine.high %v4623_v19, %v4623_v19  ;;  %v5225_v23 = vpack.c.bf16 %v4623_v19, %v4623_v19 }
 0xa61   : > { %6641 = vmatmul.mubr.msk.bf16.vlgmr.msra.gmra.mrb[156].mxu0 %vm722_vm2, %v4655_v22 }
 0xa62   : > { %6652 = vmatprep.mubr.msk.bf16.mxu0 %vm7004_vm1, %v8639_v36  ;;  %v5226_v17 = vpack.c.bf16 %v4641_v8, %v4641_v8  ;;  %v5237_v20 = vsel %vm1295_vm3, %v5225_v23, 0 }
 0xa63   : > { %6635 = vmatmul.mubr.msk.bf16.vlgmr.msra.gmra.mrb[152].mxu1 %vm722_vm2, %v4654_v29  ;;  %6651 = vmatpush3.bf16.msra.mxu0 %v5237_v20 }
 0xa64   : > { %6645 = vmatpush3.bf16.xpose.msra.mxu1 %v4998_v6  ;;  %6646 = vmatprep.mubr.msk.bf16.mxu1 %vm7004_vm1, %v8639_v36  ;;  %v5284_v29 = vsel %vm1295_vm3, %v5226_v17, 0 }
 0xa65   : > { %6656 = vmatprep.subr.bf16.mxu1 %v8639_v36  ;;  %6662 = vmatprep.subr.bf16.mxu0 %v8639_v36 }
 0xa6b   : > { %6647 = vmatmul.mubr.msk.bf16.vlgmr.msra.gmra.mrb[156].mxu1 %vm722_vm2, %v4656_v58 }
 0xa6c   : > { %6658 = vmatprep.mubr.msk.bf16.mxu1 %vm7004_vm1, %v8639_v36  ;;  %6657 = vmatpush3.bf16.msra.mxu1 %v5284_v29 }
 0xa6d   : > { %6668 = vmatprep.subr.bf16.mxu1 %v8639_v36 }
 0xb1e   : > { %v8281_v61 = vpop.f32.mrb[140].mxu1 }
 0xb1f   : > { %v6606_v52 = vpop.f32.mrb[141].mxu1  ;;  %v5041_v55 = vsel %vm1099_vm4, %v8281_v61, -inf }
 0xb20   : > { %5042 = vmax.xlane.f32.xlu0 %v5041_v55  ;;  %v8285_v14 = vpop.f32.mrb[142].mxu1 }
 0xb21   : > { %v5044_v15 = vsel %vm1099_vm4, %v8285_v14, -inf  ;;  %v6607_v13 = vpop.f32.mrb[143].mxu1 }
 0xb22   : > { %5045 = vmax.xlane.f32.xlu1 %v5044_v15 }
 0xb24   : > { %v8289_v37 = vpop.f32.mrb[148].mxu0 }
 0xb25   : > { %v6618_v3 = vpop.f32.mrb[149].mxu0  ;;  %v5053_v6 = vsel %vm1099_vm4, %v8289_v37, -inf }
 0xb26   : > { %v8291_v51 = vpop.f32.mrb[150].mxu0  ;;  %v8293_v43 = vpop.f32.mrb[144].mxu1 }
 0xb27   : > { %v6619_v33 = vpop.f32.mrb[151].mxu0  ;;  %v6612_v0 = vpop.f32.mrb[145].mxu1  ;;  %v5047_v24 = vsel %vm1099_vm4, %v8293_v43, -inf  ;;  %v5056_v10 = vsel %vm1099_vm4, %v8291_v51, -inf }
 0xb28   : > { %5048 = vmax.xlane.f32.xlu0 %v5047_v24  ;;  %v8297_v58 = vpop.f32.mrb[146].mxu1 }
 0xb29   : > { %v5050_v22 = vsel %vm1099_vm4, %v8297_v58, -inf  ;;  %v6613_v11 = vpop.f32.mrb[147].mxu1 }
 0xb2a   : > { %5051 = vmax.xlane.f32.xlu1 %v5050_v22 }
 0xb2c   : > { %v8303_v53 = vpop.f32.mrb[152].mxu0  ;;  %5054 = vmax.xlane.f32.xlu0 %v5053_v6 }
 0xb2d   : > { %v6630_v30 = vpop.f32.mrb[153].mxu0  ;;  %v5065_v52 = vsel %vm1099_vm4, %v8303_v53, -inf }
 0xb2e   : > { %v8307_v19 = vpop.f32.mrb[154].mxu0  ;;  %5057 = vmax.xlane.f32.xlu1 %v5056_v10  ;;  %v8309_v26 = vpop.f32.mrb[148].mxu1 }
 0xb2f   : > { %v6631_v5 = vpop.f32.mrb[155].mxu0  ;;  %v6624_v8 = vpop.f32.mrb[149].mxu1  ;;  %v5059_v23 = vsel %vm1099_vm4, %v8309_v26, -inf  ;;  %v5068_v13 = vsel %vm1099_vm4, %v8307_v19, -inf }
 0xb30   : > { %5060 = vmax.xlane.f32.xlu0 %v5059_v23  ;;  %v8313_v17 = vpop.f32.mrb[150].mxu1 }
 0xb31   : > { %v5062_v20 = vsel %vm1099_vm4, %v8313_v17, -inf  ;;  %v6625_v29 = vpop.f32.mrb[151].mxu1 }
 0xb32   : > { %5063 = vmax.xlane.f32.xlu1 %v5062_v20 }
 0xb34   : > { %v8319_v55 = vpop.f32.mrb[156].mxu0  ;;  %5066 = vmax.xlane.f32.xlu0 %v5065_v52 }
 0xb35   : > { %v6642_v15 = vpop.f32.mrb[157].mxu0  ;;  %v5077_v10 = vsel %vm1099_vm4, %v8319_v55, -inf }
 0xb36   : > { %v8323_v3 = vpop.f32.mrb[158].mxu0  ;;  %5069 = vmax.xlane.f32.xlu1 %v5068_v13  ;;  %v8325_v33 = vpop.f32.mrb[152].mxu1 }
 0xb37   : > { %v6643_v0 = vpop.f32.mrb[159].mxu0  ;;  %v6636_v24 = vpop.f32.mrb[153].mxu1  ;;  %v5071_v22 = vsel %vm1099_vm4, %v8325_v33, -inf  ;;  %v5080_v5 = vsel %vm1099_vm4, %v8323_v3, -inf }
 0xb38   : > { %5072 = vmax.xlane.f32.xlu0 %v5071_v22  ;;  %v8329_v11 = vpop.f32.mrb[154].mxu1 }
 0xb39   : > { %v5074_v6 = vsel %vm1099_vm4, %v8329_v11, -inf  ;;  %v6637_v30 = vpop.f32.mrb[155].mxu1 }
 0xb3a   : > { %5075 = vmax.xlane.f32.xlu1 %v5074_v6 }
 0xb3c   : > { %5078 = vmax.xlane.f32.xlu0 %v5077_v10 }
 0xb3e   : > { %5081 = vmax.xlane.f32.xlu1 %v5080_v5  ;;  %v8337_v8 = vpop.f32.mrb[156].mxu1 }
 0xb3f   : > { %v6648_v23 = vpop.f32.mrb[157].mxu1  ;;  %v5083_v20 = vsel %vm1099_vm4, %v8337_v8, -inf }
 0xb40   : > { %5084 = vmax.xlane.f32.xlu0 %v5083_v20  ;;  %v8341_v29 = vpop.f32.mrb[158].mxu1 }
 0xb41   : > { %v5086_v52 = vsel %vm1099_vm4, %v8341_v29, -inf  ;;  %v6649_v15 = vpop.f32.mrb[159].mxu1 }
 0xb42   : > { %5087 = vmax.xlane.f32.xlu1 %v5086_v52 }
 0xbad   : > { %v5043_v13 = vpop.xlane.xlu0 %5042 }
 0xbae   : > { %v5089_v0 = vsub.f32 %v8281_v61, %v5043_v13 }
 0xbaf   : > { %v5046_v24 = vpop.xlane.xlu1 %5045 }
 0xbb0   : > { %v5105_v22 = vmul.f32 1.442695, %v5089_v0  ;;  %v5090_v6 = vsub.f32 %v8285_v14, %v5046_v24 }
 0xbb2   : > { %6931 = vpow2.f32 %v5105_v22  ;;  %v5107_v30 = vmul.f32 1.442695, %v5090_v6 }
 0xbb4   : > { %6933 = vpow2.f32 %v5107_v30 }
 0xbb5   : > { %v5049_v10 = vpop.xlane.xlu0 %5048 }
 0xbb6   : > { %v5091_v5 = vsub.f32 %v8293_v43, %v5049_v10 }
 0xbb7   : > { %v5052_v23 = vpop.xlane.xlu1 %5051 }
 0xbb8   : > { %v5109_v20 = vmul.f32 1.442695, %v5091_v5  ;;  %v5092_v36 = vsub.f32 %v8297_v58, %v5052_v23 }
 0xbb9   : > { %v5055_v32 = vpop.xlane.xlu0 %5054 }
 0xbba   : > { %6935 = vpow2.f32 %v5109_v20  ;;  %v5111_v52 = vmul.f32 1.442695, %v5092_v36  ;;  %v5093_v15 = vsub.f32 %v8289_v37, %v5055_v32 }
 0xbbb   : > { %v5058_v61 = vpop.xlane.xlu1 %5057 }
 0xbbc   : > { %v8350_v13 = vpop.eup %6931  ;;  %6937 = vpow2.f32 %v5111_v52  ;;  %v5113_v14 = vmul.f32 1.442695, %v5093_v15  ;;  %v5094_v0 = vsub.f32 %v8291_v51, %v5058_v61 }
 0xbbd   : > { %v5061_v24 = vpop.xlane.xlu0 %5060  ;;  %v5137_v43 = vsel %vm1099_vm4, %v8350_v13, 0.0 }
 0xbbe   : > { %v8355_v22 = vpop.eup %6933  ;;  %6939 = vpow2.f32 %v5113_v14  ;;  %v5115_v58 = vmul.f32 1.442695, %v5094_v0  ;;  %v5095_v6 = vsub.f32 %v8309_v26, %v5061_v24  ;;  %5138 = vadd.xlane.f32.xlu0 %v5137_v43 }
 0xbbf   : > { %v5064_v36 = vpop.xlane.xlu1 %5063  ;;  %v5140_v32 = vsel %vm1099_vm4, %v8355_v22, 0.0 }
 0xbc0   : > { %6941 = vpow2.f32 %v5115_v58  ;;  %v5117_v37 = vmul.f32 1.442695, %v5095_v6  ;;  %v5096_v30 = vsub.f32 %v8313_v17, %v5064_v36  ;;  %5141 = vadd.xlane.f32.xlu1 %v5140_v32 }
 0xbc1   : > { %v5067_v51 = vpop.xlane.xlu0 %5066 }
 0xbc2   : > { %6943 = vpow2.f32 %v5117_v37  ;;  %v5119_v10 = vmul.f32 1.442695, %v5096_v30  ;;  %v5097_v5 = vsub.f32 %v8303_v53, %v5067_v51 }
 0xbc3   : > { %v5070_v23 = vpop.xlane.xlu1 %5069 }
 0xbc4   : > { %v8362_v20 = vpop.eup %6935  ;;  %6945 = vpow2.f32 %v5119_v10  ;;  %v5121_v26 = vmul.f32 1.442695, %v5097_v5  ;;  %v5098_v52 = vsub.f32 %v8307_v19, %v5070_v23 }
 0xbc5   : > { %v5073_v15 = vpop.xlane.xlu0 %5072  ;;  %v5143_v61 = vsel %vm1099_vm4, %v8362_v20, 0.0 }
 0xbc6   : > { %v8367_v14 = vpop.eup %6937  ;;  %6947 = vpow2.f32 %v5121_v26  ;;  %v5123_v17 = vmul.f32 1.442695, %v5098_v52  ;;  %v5099_v0 = vsub.f32 %v8325_v33, %v5073_v15  ;;  %5144 = vadd.xlane.f32.xlu0 %v5143_v61 }
 0xbc7   : > { %v5076_v24 = vpop.xlane.xlu1 %5075  ;;  %v5146_v53 = vsel %vm1099_vm4, %v8367_v14, 0.0 }
 0xbc8   : > { %v8372_v43 = vpop.eup %6939  ;;  %6949 = vpow2.f32 %v5123_v17  ;;  %v5125_v58 = vmul.f32 1.442695, %v5099_v0  ;;  %v5100_v19 = vsub.f32 %v8329_v11, %v5076_v24  ;;  %5147 = vadd.xlane.f32.xlu1 %v5146_v53 }
 0xbc9   : > { %v5079_v6 = vpop.xlane.xlu0 %5078  ;;  %v5149_v36 = vsel %vm1099_vm4, %v8372_v43, 0.0 }
 0xbca   : > { %v8377_v32 = vpop.eup %6941  ;;  %6951 = vpow2.f32 %v5125_v58  ;;  %v5127_v33 = vmul.f32 1.442695, %v5100_v19  ;;  %v5101_v37 = vsub.f32 %v8319_v55, %v5079_v6  ;;  %5150 = vadd.xlane.f32.xlu0 %v5149_v36 }
 0xbcb   : > { %v5082_v30 = vpop.xlane.xlu1 %5081  ;;  %v5152_v51 = vsel %vm1099_vm4, %v8377_v32, 0.0 }
 0xbcc   : > { %v8382_v10 = vpop.eup %6943  ;;  %6953 = vpow2.f32 %v5127_v33  ;;  %v5129_v11 = vmul.f32 1.442695, %v5101_v37  ;;  %v5102_v5 = vsub.f32 %v8323_v3, %v5082_v30  ;;  %5153 = vadd.xlane.f32.xlu1 %v5152_v51 }
 0xbcd   : > { %v5085_v23 = vpop.xlane.xlu0 %5084  ;;  %v5155_v26 = vsel %vm1099_vm4, %v8382_v10, 0.0 }
 0xbce   : > { %v8387_v52 = vpop.eup %6945  ;;  %6955 = vpow2.f32 %v5129_v11  ;;  %v5131_v55 = vmul.f32 1.442695, %v5102_v5  ;;  %v5103_v15 = vsub.f32 %v8337_v8, %v5085_v23  ;;  %5156 = vadd.xlane.f32.xlu0 %v5155_v26 }
 0xbcf   : > { %v5088_v61 = vpop.xlane.xlu1 %5087  ;;  %v5158_v17 = vsel %vm1099_vm4, %v8387_v52, 0.0 }
 0xbd0   : > { %v8392_v0 = vpop.eup %6947  ;;  %6957 = vpow2.f32 %v5131_v55  ;;  %v5133_v3 = vmul.f32 1.442695, %v5103_v15  ;;  %v5104_v24 = vsub.f32 %v8341_v29, %v5088_v61  ;;  %5159 = vadd.xlane.f32.xlu1 %v5158_v17 }
 0xbd1   : > { %v5161_v53 = vsel %vm1099_vm4, %v8392_v0, 0.0 }
 0xbd2   : > { %v8397_v58 = vpop.eup %6949  ;;  %6959 = vpow2.f32 %v5133_v3  ;;  %v5135_v19 = vmul.f32 1.442695, %v5104_v24  ;;  %5162 = vadd.xlane.f32.xlu0 %v5161_v53 }
 0xbd3   : > { %v5164_v8 = vsel %vm1099_vm4, %v8397_v58, 0.0 }
 0xbd4   : > { %v8401_v6 = vpop.eup %6951  ;;  %6961 = vpow2.f32 %v5135_v19  ;;  %5165 = vadd.xlane.f32.xlu1 %v5164_v8  ;;  %v8644_v8 = vld [vmem:[#allocation2_spill] sm:$0xff] }
 0xbd5   : > { %v5167_v36 = vsel %vm1099_vm4, %v8401_v6, 0.0 }
 0xbd6   : > { %v8405_v29 = vpop.eup %6953  ;;  %5168 = vadd.xlane.f32.xlu0 %v5167_v36 }
 0xbd7   : > { %v5170_v33 = vsel %vm1099_vm4, %v8405_v29, 0.0 }
 0xbd8   : > { %v8409_v37 = vpop.eup %6955  ;;  %5171 = vadd.xlane.f32.xlu1 %v5170_v33 }
 0xbd9   : > { %v5173_v30 = vsel %vm1099_vm4, %v8409_v37, 0.0 }
 0xbda   : > { %v8413_v51 = vpop.eup %6957  ;;  %5174 = vadd.xlane.f32.xlu0 %v5173_v30 }
 0xbdb   : > { %v5176_v11 = vsel %vm1099_vm4, %v8413_v51, 0.0 }
 0xbdc   : > { %v8417_v5 = vpop.eup %6959  ;;  %5177 = vadd.xlane.f32.xlu1 %v5176_v11 }
 0xbdd   : > { %v5179_v23 = vsel %vm1099_vm4, %v8417_v5, 0.0 }
 0xbde   : > { %v8421_v26 = vpop.eup %6961  ;;  %5180 = vadd.xlane.f32.xlu0 %v5179_v23 }
 0xbdf   : > { %v5182_v55 = vsel %vm1099_vm4, %v8421_v26, 0.0 }
 0xbe0   : > { %5183 = vadd.xlane.f32.xlu1 %v5182_v55 }
 0xbf1   : > { %2957 = vrot.lane.b32.xlu1 %v7835_v44, %s7005_s10 }
 0xbf4   : > { %2955 = vrot.lane.b32.xlu0 %v7833_v62, %s7005_s10 }
 0xbf5   : > { %2959 = vrot.lane.b32.xlu1 %v7829_v4, %s7005_s10 }
 0xbf8   : > { %2963 = vrot.lane.b32.xlu0 %v7841_v27, %s7005_s10 }
 0xbf9   : > { %2961 = vrot.lane.b32.xlu1 %v7831_v57, %s7005_s10 }
 0xbfc   : > { %2967 = vrot.lane.b32.xlu0 %v7837_v21, %s7005_s10 }
 0xbfd   : > { %2965 = vrot.lane.b32.xlu1 %v7843_v49, %s7005_s10  ;;  %v5227_v49 = vpack.c.bf16 %v8275_v59, %v8275_v59 }
 0xc00   : > { %2971 = vrot.lane.b32.xlu0 %v7849_v42, %s7005_s10 }
 0xc01   : > { %2969 = vrot.lane.b32.xlu1 %v7839_v12, %s7005_s10 }
 0xc04   : > { %2975 = vrot.lane.b32.xlu0 %v7845_v28, %s7005_s10 }
 0xc05   : > { %2973 = vrot.lane.b32.xlu1 %v7851_v46, %s7005_s10 }
 0xc08   : > { %2979 = vrot.lane.b32.xlu0 %v7857_v60, %s7005_s10  ;;  %v5331_v60 = vsel %vm1295_vm3, %v5227_v49, 0 }
 0xc09   : > { %2977 = vrot.lane.b32.xlu1 %v7847_v39, %s7005_s10 }
 0xc0c   : > { %2983 = vrot.lane.b32.xlu0 %v7853_v54, %s7005_s10 }
 0xc0d   : > { %2981 = vrot.lane.b32.xlu1 %v7859_v38, %s7005_s10 }
 0xc10   : > { %4290 = vrot.lane.b32.xlu0 %v8176_v31, %s7006_s11 }
 0xc11   : > { %2985 = vrot.lane.b32.xlu1 %v7855_v16, %s7005_s10  ;;  %v4642_v16 = vcombine.high %v8275_v59, %v8275_v59 }
 0xc14   : > { %4294 = vrot.lane.b32.xlu0 %v8172_v18, %s7006_s11 }
 0xc15   : > { %4292 = vrot.lane.b32.xlu1 %v8178_v35, %s7006_s11 }
 0xc18   : > { %4298 = vrot.lane.b32.xlu0 %v8184_v56, %s7006_s11 }
 0xc19   : > { %4296 = vrot.lane.b32.xlu1 %v8174_v25, %s7006_s11  ;;  %v8643_v25 = vmov 0.0  }
 0xc1c   : > { %4302 = vrot.lane.b32.xlu0 %v8180_v47, %s7006_s11  ;;  %v5228_v47 = vpack.c.bf16 %v4642_v16, %v4642_v16 }
 0xc1d   : > { %4300 = vrot.lane.b32.xlu1 %v8186_v45, %s7006_s11 }
 0xc1e   : > { %v5378_v59 = vsel %vm1295_vm3, %v5228_v47, 0 }
 0xc20   : > { %4306 = vrot.lane.b32.xlu0 %v8192_v7, %s7006_s11 }
 0xc21   : > { %4304 = vrot.lane.b32.xlu1 %v8182_v34, %s7006_s11 }
 0xc24   : > { %4310 = vrot.lane.b32.xlu0 %v8188_v1, %s7006_s11 }
 0xc25   : > { %4308 = vrot.lane.b32.xlu1 %v8194_v2, %s7006_s11 }
 0xc28   : > { %4314 = vrot.lane.b32.xlu0 %v8200_v40, %s7006_s11 }
 0xc29   : > { %4312 = vrot.lane.b32.xlu1 %v8190_v41, %s7006_s11 }
 0xc2c   : > { %4318 = vrot.lane.b32.xlu0 %v8196_v48, %s7006_s11  ;;  %v4643_v48 = vcombine.high %v8271_v9, %v8271_v9 }
 0xc2d   : > { %4316 = vrot.lane.b32.xlu1 %v8202_v50, %s7006_s11 }
 0xc31   : > { %4320 = vrot.lane.b32.xlu1 %v8198_v63, %s7006_s11  ;;  %v5229_v63 = vpack.c.bf16 %v8271_v9, %v8271_v9 }
 0xc33   : > { %v5425_v61 = vsel %vm1295_vm3, %v5229_v63, 0 }
 0xc4b   : > { %v5139_v4 = vpop.xlane.xlu0 %5138 }
 0xc4c   : > { %6963 = vrcp.f32 %v5139_v4 }
 0xc4d   : > { %v5142_v57 = vpop.xlane.xlu1 %5141 }
 0xc4e   : > { %6965 = vrcp.f32 %v5142_v57 }
 0xc53   : > { %v5145_v62 = vpop.xlane.xlu0 %5144 }
 0xc54   : > { %6967 = vrcp.f32 %v5145_v62 }
 0xc55   : > { %v5148_v44 = vpop.xlane.xlu1 %5147 }
 0xc56   : > { %v6964_v21 = vpop.eup %6963  ;;  %6969 = vrcp.f32 %v5148_v44 }
 0xc57   : > { %v5151_v12 = vpop.xlane.xlu0 %5150  ;;  %v5201_v28 = vmul.f32 %v6964_v21, %v8350_v13 }
 0xc58   : > { %v6966_v27 = vpop.eup %6965  ;;  %6971 = vrcp.f32 %v5151_v12 }
 0xc59   : > { %v5202_v39 = vmul.f32 %v6966_v27, %v8355_v22  ;;  %v5154_v42 = vpop.xlane.xlu1 %5153 }
 0xc5a   : > { %6973 = vrcp.f32 %v5154_v42 }
 0xc5b   : > { %v5157_v46 = vpop.xlane.xlu0 %5156  ;;  %v5217_v54 = vpack.c.bf16 %v5202_v39, %v5201_v28 }
 0xc5c   : > { %6975 = vrcp.f32 %v5157_v46 }
 0xc5d   : > { %6653 = vmatmul.mubr.msk.bf16.vlgmr.msra.gmra.mrb[160].mxu0 %vm1099_vm4, %v5217_v54  ;;  %v5160_v38 = vpop.xlane.xlu1 %5159 }
 0xc5e   : > { %v6968_v18 = vpop.eup %6967  ;;  %6663 = vmatpush3.bf16.msra.mxu0 %v5331_v60  ;;  %6977 = vrcp.f32 %v5160_v38  ;;  %6664 = vmatprep.mubr.msk.bf16.mxu0 %vm7004_vm1, %v8643_v25 }
 0xc5f   : > { %v5163_v31 = vpop.xlane.xlu0 %5162  ;;  %6674 = vmatprep.subr.bf16.mxu0 %v8643_v25  ;;  %v5203_v34 = vmul.f32 %v6968_v18, %v8362_v20 }
 0xc60   : > { %v6970_v35 = vpop.eup %6969  ;;  %6979 = vrcp.f32 %v5163_v31 }
 0xc61   : > { %v5204_v56 = vmul.f32 %v6970_v35, %v8367_v14  ;;  %v5166_v45 = vpop.xlane.xlu1 %5165 }
 0xc62   : > { %v6972_v1 = vpop.eup %6971  ;;  %6981 = vrcp.f32 %v5166_v45 }
 0xc63   : > { %v5169_v41 = vpop.xlane.xlu0 %5168  ;;  %v5218_v7 = vpack.c.bf16 %v5204_v56, %v5203_v34  ;;  %v5205_v40 = vmul.f32 %v6972_v1, %v8372_v43  ;;  %v5230_v43 = vpack.c.bf16 %v4643_v48, %v4643_v48 }
 0xc64   : > { %v6974_v2 = vpop.eup %6973  ;;  %6983 = vrcp.f32 %v5169_v41 }
 0xc65   : > { %v5206_v50 = vmul.f32 %v6974_v2, %v8377_v32  ;;  %6659 = vmatmul.mubr.msk.bf16.vlgmr.msra.gmra.mrb[160].mxu1 %vm1099_vm4, %v5218_v7  ;;  %v5172_v13 = vpop.xlane.xlu1 %5171  ;;  %v5472_v30 = vsel %vm1295_vm3, %v5230_v43, 0 }
 0xc66   : > { %v6976_v22 = vpop.eup %6975  ;;  %6669 = vmatpush3.bf16.msra.mxu1 %v5378_v59  ;;  %6985 = vrcp.f32 %v5172_v13  ;;  %6670 = vmatprep.mubr.msk.bf16.mxu1 %vm7004_vm1, %v8643_v25 }
 0xc67   : > { %v5175_v20 = vpop.xlane.xlu0 %5174  ;;  %v5219_v14 = vpack.c.bf16 %v5206_v50, %v5205_v40  ;;  %6680 = vmatprep.subr.bf16.mxu1 %v8643_v25  ;;  %v5207_v32 = vmul.f32 %v6976_v22, %v8382_v10  ;;  %v4644_v10 = vcombine.high %v8644_v8, %v8644_v8 }
 0xc68   : > { %v6978_v9 = vpop.eup %6977  ;;  %6987 = vrcp.f32 %v5175_v20 }
 0xc69   : > { %v5208_v15 = vmul.f32 %v6978_v9, %v8387_v52  ;;  %6665 = vmatmul.mubr.msk.bf16.vlgmr.msra.gmra.mrb[164].mxu0 %vm1099_vm4, %v5219_v14  ;;  %v5178_v17 = vpop.xlane.xlu1 %5177  ;;  %v5231_v52 = vpack.c.bf16 %v8644_v8, %v8644_v8 }
 0xc6a   : > { %v6980_v3 = vpop.eup %6979  ;;  %6675 = vmatpush3.bf16.msra.mxu0 %v5425_v61  ;;  %6989 = vrcp.f32 %v5178_v17  ;;  %6676 = vmatprep.mubr.msk.bf16.mxu0 %vm7004_vm1, %v8643_v25 }
 0xc6b   : > { %v5181_v24 = vpop.xlane.xlu0 %5180  ;;  %v5220_v53 = vpack.c.bf16 %v5208_v15, %v5207_v32  ;;  %6686 = vmatprep.subr.bf16.mxu0 %v8643_v25  ;;  %v5209_v36 = vmul.f32 %v6980_v3, %v8392_v0  ;;  %v5519_v44 = vsel %vm1295_vm3, %v5231_v52, 0 }
 0xc6c   : > { %v6982_v19 = vpop.eup %6981  ;;  %6991 = vrcp.f32 %v5181_v24 }
 0xc6d   : > { %v5210_v33 = vmul.f32 %v6982_v19, %v8397_v58  ;;  %6671 = vmatmul.mubr.msk.bf16.vlgmr.msra.gmra.mrb[164].mxu1 %vm1099_vm4, %v5220_v53  ;;  %v5184_v11 = vpop.xlane.xlu1 %5183  ;;  %v5232_v58 = vpack.c.bf16 %v4644_v10, %v4644_v10 }
 0xc6e   : > { %v6984_v23 = vpop.eup %6983  ;;  %6681 = vmatpush3.bf16.msra.mxu1 %v5472_v30  ;;  %6993 = vrcp.f32 %v5184_v11  ;;  %6682 = vmatprep.mubr.msk.bf16.mxu1 %vm7004_vm1, %v8643_v25 }
 0xc6f   : > { %v2956_v55 = vpop.permute.xlu0 %2955  ;;  %v5221_v4 = vpack.c.bf16 %v5210_v33, %v5209_v36  ;;  %6692 = vmatprep.subr.bf16.mxu1 %v8643_v25  ;;  %v5211_v57 = vmul.f32 %v6984_v23, %v8401_v6  ;;  %v5566_v39 = vsel %vm1295_vm3, %v5232_v58, 0 }
 0xc70   : > { %v6986_v0 = vpop.eup %6985  ;;  %3004 = vst.msk [vmem:[%s7484_s30] sm:$0xff] %vm3003_vm5, %v2956_v55 }
 0xc71   : > { %v5212_v62 = vmul.f32 %v6986_v0, %v8405_v29  ;;  %6677 = vmatmul.mubr.msk.bf16.vlgmr.msra.gmra.mrb[168].mxu0 %vm1099_vm4, %v5221_v4  ;;  %v2958_v21 = vpop.permute.xlu1 %2957 }
 0xc72   : > { %v6988_v12 = vpop.eup %6987  ;;  %6687 = vmatpush3.bf16.msra.mxu0 %v5519_v44  ;;  %3005 = vst.msk [vmem:[%s7484_s30 + $0x8] sm:$0xff] %vm3003_vm5, %v2958_v21  ;;  %6688 = vmatprep.mubr.msk.bf16.mxu0 %vm7004_vm1, %v8643_v25 }
 0xc73   : > { %v2964_v27 = vpop.permute.xlu0 %2963  ;;  %v5222_v49 = vpack.c.bf16 %v5212_v62, %v5211_v57  ;;  %v5213_v6 = vmul.f32 %v6988_v12, %v8409_v37 }
 0xc74   : > { %v6990_v28 = vpop.eup %6989  ;;  %3008 = vst.msk [vmem:[%s7484_s30 + $0x20] sm:$0xff] %vm3003_vm5, %v2964_v27 }
 0xc75   : > { %v5214_v29 = vmul.f32 %v6990_v28, %v8413_v51  ;;  %6683 = vmatmul.mubr.msk.bf16.vlgmr.msra.gmra.mrb[168].mxu1 %vm1099_vm4, %v5222_v49  ;;  %v2960_v42 = vpop.permute.xlu1 %2959 }
 0xc76   : > { %v6992_v46 = vpop.eup %6991  ;;  %6693 = vmatpush3.bf16.msra.mxu1 %v5566_v39  ;;  %3006 = vst.msk [vmem:[%s7484_s30 + $0x10] sm:$0xff] %vm3003_vm5, %v2960_v42  ;;  %6694 = vmatprep.mubr.msk.bf16.mxu1 %vm7004_vm1, %v8643_v25 }
 0xc77   : > { %v2968_v54 = vpop.permute.xlu0 %2967  ;;  %v5223_v37 = vpack.c.bf16 %v5214_v29, %v5213_v6  ;;  %v5215_v51 = vmul.f32 %v6992_v46, %v8417_v5 }
 0xc78   : > { %v6994_v16 = vpop.eup %6993  ;;  %3010 = vst.msk [vmem:[%s7484_s30 + $0x30] sm:$0xff] %vm3003_vm5, %v2968_v54 }
 0xc79   : > { %v5216_v60 = vmul.f32 %v6994_v16, %v8421_v26  ;;  %6689 = vmatmul.mubr.msk.bf16.vlgmr.msra.gmra.mrb[172].mxu0 %vm1099_vm4, %v5223_v37  ;;  %v2962_v38 = vpop.permute.xlu1 %2961 }
 0xc7a   : > { %3007 = vst.msk [vmem:[%s7484_s30 + $0x18] sm:$0xff] %vm3003_vm5, %v2962_v38 }
 0xc7b   : > { %v2972_v18 = vpop.permute.xlu0 %2971  ;;  %v5224_v25 = vpack.c.bf16 %v5216_v60, %v5215_v51 }
 0xc7c   : > { %3012 = vst.msk [vmem:[%s7484_s30 + $0x40] sm:$0xff] %vm3003_vm5, %v2972_v18 }
 0xc7d   : > { %6695 = vmatmul.mubr.msk.bf16.vlgmr.msra.gmra.mrb[172].mxu1 %vm1099_vm4, %v5224_v25  ;;  %v2966_v31 = vpop.permute.xlu1 %2965 }
 0xc7e   : > { %3009 = vst.msk [vmem:[%s7484_s30 + $0x28] sm:$0xff] %vm3003_vm5, %v2966_v31 }
 0xc7f   : > { %v2976_v5 = vpop.permute.xlu0 %2975 }
 0xc80   : > { %3014 = vst.msk [vmem:[%s7484_s30 + $0x50] sm:$0xff] %vm3003_vm5, %v2976_v5 }
 0xc81   : > { %v2970_v26 = vpop.permute.xlu1 %2969 }
 0xc82   : > { %3011 = vst.msk [vmem:[%s7484_s30 + $0x38] sm:$0xff] %vm3003_vm5, %v2970_v26 }
 0xc83   : > { %v2980_v35 = vpop.permute.xlu0 %2979 }
 0xc84   : > { %3016 = vst.msk [vmem:[%s7484_s30 + $0x60] sm:$0xff] %vm3003_vm5, %v2980_v35 }
 0xc85   : > { %v2974_v47 = vpop.permute.xlu1 %2973 }
 0xc86   : > { %3013 = vst.msk [vmem:[%s7484_s30 + $0x48] sm:$0xff] %vm3003_vm5, %v2974_v47 }
 0xc87   : > { %v2984_v34 = vpop.permute.xlu0 %2983 }
 0xc88   : > { %3018 = vst.msk [vmem:[%s7484_s30 + $0x70] sm:$0xff] %vm3003_vm5, %v2984_v34 }
 0xc89   : > { %v2978_v56 = vpop.permute.xlu1 %2977 }
 0xc8a   : > { %3015 = vst.msk [vmem:[%s7484_s30 + $0x58] sm:$0xff] %vm3003_vm5, %v2978_v56 }
 0xc8b   : > { %v4291_v45 = vpop.permute.xlu0 %4290 }
 0xc8c   : > { %4339 = vst.msk [vmem:[%s7484_s30] sm:$0xff] %vm4338_vm6, %v4291_v45 }
 0xc8d   : > { %v2982_v1 = vpop.permute.xlu1 %2981 }
 0xc8e   : > { %3017 = vst.msk [vmem:[%s7484_s30 + $0x68] sm:$0xff] %vm3003_vm5, %v2982_v1 }
 0xc8f   : > { %v4295_v41 = vpop.permute.xlu0 %4294 }
 0xc90   : > { %4341 = vst.msk [vmem:[%s7484_s30 + $0x10] sm:$0xff] %vm4338_vm6, %v4295_v41 }
 0xc91   : > { %v2986_v7 = vpop.permute.xlu1 %2985 }
 0xc92   : > { %3019 = vst.msk [vmem:[%s7484_s30 + $0x78] sm:$0xff] %vm3003_vm5, %v2986_v7 }
 0xc93   : > { %v4299_v2 = vpop.permute.xlu0 %4298 }
 0xc94   : > { %4343 = vst.msk [vmem:[%s7484_s30 + $0x20] sm:$0xff] %vm4338_vm6, %v4299_v2 }
 0xc95   : > { %v4293_v48 = vpop.permute.xlu1 %4292 }
 0xc96   : > { %4340 = vst.msk [vmem:[%s7484_s30 + $0x8] sm:$0xff] %vm4338_vm6, %v4293_v48 }
 0xc97   : > { %v4303_v63 = vpop.permute.xlu0 %4302 }
 0xc98   : > { %4345 = vst.msk [vmem:[%s7484_s30 + $0x30] sm:$0xff] %vm4338_vm6, %v4303_v63 }
 0xc99   : > { %v4297_v40 = vpop.permute.xlu1 %4296 }
 0xc9a   : > { %4342 = vst.msk [vmem:[%s7484_s30 + $0x18] sm:$0xff] %vm4338_vm6, %v4297_v40 }
 0xc9b   : > { %v4307_v50 = vpop.permute.xlu0 %4306 }
 0xc9c   : > { %4347 = vst.msk [vmem:[%s7484_s30 + $0x40] sm:$0xff] %vm4338_vm6, %v4307_v50 }
 0xc9d   : > { %v4301_v59 = vpop.permute.xlu1 %4300 }
 0xc9e   : > { %4344 = vst.msk [vmem:[%s7484_s30 + $0x28] sm:$0xff] %vm4338_vm6, %v4301_v59 }
 0xc9f   : > { %v4311_v13 = vpop.permute.xlu0 %4310 }
 0xca0   : > { %4349 = vst.msk [vmem:[%s7484_s30 + $0x50] sm:$0xff] %vm4338_vm6, %v4311_v13 }
 0xca1   : > { %v4305_v22 = vpop.permute.xlu1 %4304 }
 0xca2   : > { %4346 = vst.msk [vmem:[%s7484_s30 + $0x38] sm:$0xff] %vm4338_vm6, %v4305_v22 }
 0xca3   : > { %v4315_v20 = vpop.permute.xlu0 %4314 }
 0xca4   : > { %4351 = vst.msk [vmem:[%s7484_s30 + $0x60] sm:$0xff] %vm4338_vm6, %v4315_v20 }
 0xca5   : > { %v4309_v14 = vpop.permute.xlu1 %4308 }
 0xca6   : > { %4348 = vst.msk [vmem:[%s7484_s30 + $0x48] sm:$0xff] %vm4338_vm6, %v4309_v14 }
 0xca7   : > { %v4319_v9 = vpop.permute.xlu0 %4318 }
 0xca8   : > { %4353 = vst.msk [vmem:[%s7484_s30 + $0x70] sm:$0xff] %vm4338_vm6, %v4319_v9 }
 0xca9   : > { %v4313_v43 = vpop.permute.xlu1 %4312 }
 0xcaa   : > { %4350 = vst.msk [vmem:[%s7484_s30 + $0x58] sm:$0xff] %vm4338_vm6, %v4313_v43 }
 0xcad   : > { %v4317_v32 = vpop.permute.xlu1 %4316 }
 0xcae   : > { %4352 = vst.msk [vmem:[%s7484_s30 + $0x68] sm:$0xff] %vm4338_vm6, %v4317_v32 }
 0xcb1   : > { %v4321_v15 = vpop.permute.xlu1 %4320 }
 0xcb2   : > { %4354 = vst.msk [vmem:[%s7484_s30 + $0x78] sm:$0xff] %vm4338_vm6, %v4321_v15 }
 0xd30   : > { %v5273_v61 = vpop.f32.mrb[160].mxu0 }
 0xd31   : > { %5625 = vrot.lane.b32.xlu0 %v5273_v61, %s7007_s12  ;;  %v6654_v17 = vpop.f32.mrb[161].mxu0 }
 0xd32   : > { %v5276_v3 = vpop.f32.mrb[162].mxu0 }
 0xd33   : > { %5627 = vrot.lane.b32.xlu1 %v5276_v3, %s7007_s12  ;;  %v6655_v24 = vpop.f32.mrb[163].mxu0 }
 0xd38   : > { %v5320_v53 = vpop.f32.mrb[160].mxu1 }
 0xd39   : > { %5629 = vrot.lane.b32.xlu0 %v5320_v53, %s7007_s12  ;;  %v6660_v19 = vpop.f32.mrb[161].mxu1 }
 0xd3a   : > { %v5323_v8 = vpop.f32.mrb[162].mxu1 }
 0xd3b   : > { %5631 = vrot.lane.b32.xlu1 %v5323_v8, %s7007_s12  ;;  %v6661_v10 = vpop.f32.mrb[163].mxu1 }
 0xd3c   : > { %v5367_v52 = vpop.f32.mrb[164].mxu0 }
 0xd3d   : > { %v6666_v36 = vpop.f32.mrb[165].mxu0  ;;  %5633 = vrot.lane.b32.xlu0 %v5367_v52, %s7007_s12 }
 0xd3e   : > { %v5370_v33 = vpop.f32.mrb[166].mxu0 }
 0xd3f   : > { %v6667_v30 = vpop.f32.mrb[167].mxu0  ;;  %5635 = vrot.lane.b32.xlu1 %v5370_v33, %s7007_s12 }
 0xd40   : > { %v5414_v11 = vpop.f32.mrb[164].mxu1 }
 0xd41   : > { %5637 = vrot.lane.b32.xlu0 %v5414_v11, %s7007_s12  ;;  %v6672_v23 = vpop.f32.mrb[165].mxu1 }
 0xd42   : > { %v5417_v55 = vpop.f32.mrb[166].mxu1 }
 0xd43   : > { %5639 = vrot.lane.b32.xlu1 %v5417_v55, %s7007_s12  ;;  %v6673_v4 = vpop.f32.mrb[167].mxu1 }
 0xd44   : > { %v5461_v0 = vpop.f32.mrb[168].mxu0 }
 0xd45   : > { %v6678_v58 = vpop.f32.mrb[169].mxu0  ;;  %5641 = vrot.lane.b32.xlu0 %v5461_v0, %s7007_s12 }
 0xd46   : > { %v5464_v57 = vpop.f32.mrb[170].mxu0 }
 0xd47   : > { %v6679_v62 = vpop.f32.mrb[171].mxu0  ;;  %5643 = vrot.lane.b32.xlu1 %v5464_v57, %s7007_s12 }
 0xd48   : > { %v5508_v44 = vpop.f32.mrb[168].mxu1 }
 0xd49   : > { %5645 = vrot.lane.b32.xlu0 %v5508_v44, %s7007_s12  ;;  %v6684_v21 = vpop.f32.mrb[169].mxu1 }
 0xd4a   : > { %v5511_v12 = vpop.f32.mrb[170].mxu1 }
 0xd4b   : > { %5647 = vrot.lane.b32.xlu1 %v5511_v12, %s7007_s12  ;;  %v6685_v27 = vpop.f32.mrb[171].mxu1 }
 0xd4c   : > { %v5555_v49 = vpop.f32.mrb[172].mxu0 }
 0xd4d   : > { %v6690_v28 = vpop.f32.mrb[173].mxu0  ;;  %5649 = vrot.lane.b32.xlu0 %v5555_v49, %s7007_s12 }
 0xd4e   : > { %v5558_v6 = vpop.f32.mrb[174].mxu0 }
 0xd4f   : > { %v6691_v29 = vpop.f32.mrb[175].mxu0  ;;  %5651 = vrot.lane.b32.xlu1 %v5558_v6, %s7007_s12 }
 0xd50   : > { %v5602_v39 = vpop.f32.mrb[172].mxu1 }
 0xd51   : > { %5653 = vrot.lane.b32.xlu0 %v5602_v39, %s7007_s12  ;;  %v6696_v42 = vpop.f32.mrb[173].mxu1 }
 0xd52   : > { %v5605_v46 = vpop.f32.mrb[174].mxu1 }
 0xd53   : > { %5655 = vrot.lane.b32.xlu1 %v5605_v46, %s7007_s12  ;;  %v6697_v54 = vpop.f32.mrb[175].mxu1 }
 0xda3   : > { %v5626_v37 = vpop.permute.xlu0 %5625 }
 0xda4   : > { %5674 = vst.msk [vmem:[%s7484_s30] sm:$0xff] %vm5673_vm7, %v5626_v37 }
 0xda5   : > { %v5628_v16 = vpop.permute.xlu1 %5627 }
 0xda6   : > { %5675 = vst.msk [vmem:[%s7484_s30 + $0x8] sm:$0xff] %vm5673_vm7, %v5628_v16 }
 0xdab   : > { %v5630_v51 = vpop.permute.xlu0 %5629 }
 0xdac   : > { %5676 = vst.msk [vmem:[%s7484_s30 + $0x10] sm:$0xff] %vm5673_vm7, %v5630_v51 }
 0xdad   : > { %v5632_v60 = vpop.permute.xlu1 %5631 }
 0xdae   : > { %5677 = vst.msk [vmem:[%s7484_s30 + $0x18] sm:$0xff] %vm5673_vm7, %v5632_v60 }
 0xdaf   : > { %v5634_v38 = vpop.permute.xlu0 %5633 }
 0xdb0   : > { %5678 = vst.msk [vmem:[%s7484_s30 + $0x20] sm:$0xff] %vm5673_vm7, %v5634_v38 }
 0xdb1   : > { %v5636_v18 = vpop.permute.xlu1 %5635 }
 0xdb2   : > { %5679 = vst.msk [vmem:[%s7484_s30 + $0x28] sm:$0xff] %vm5673_vm7, %v5636_v18 }
 0xdb3   : > { %v5638_v25 = vpop.permute.xlu0 %5637 }
 0xdb4   : > { %5680 = vst.msk [vmem:[%s7484_s30 + $0x30] sm:$0xff] %vm5673_vm7, %v5638_v25 }
 0xdb5   : > { %v5640_v31 = vpop.permute.xlu1 %5639 }
 0xdb6   : > { %5681 = vst.msk [vmem:[%s7484_s30 + $0x38] sm:$0xff] %vm5673_vm7, %v5640_v31 }
 0xdb7   : > { %v5642_v5 = vpop.permute.xlu0 %5641 }
 0xdb8   : > { %5682 = vst.msk [vmem:[%s7484_s30 + $0x40] sm:$0xff] %vm5673_vm7, %v5642_v5 }
 0xdb9   : > { %v5644_v26 = vpop.permute.xlu1 %5643 }
 0xdba   : > { %5683 = vst.msk [vmem:[%s7484_s30 + $0x48] sm:$0xff] %vm5673_vm7, %v5644_v26 }
 0xdbb   : > { %v5646_v35 = vpop.permute.xlu0 %5645 }
 0xdbc   : > { %5684 = vst.msk [vmem:[%s7484_s30 + $0x50] sm:$0xff] %vm5673_vm7, %v5646_v35 }
 0xdbd   : > { %v5648_v47 = vpop.permute.xlu1 %5647 }
 0xdbe   : > { %5685 = vst.msk [vmem:[%s7484_s30 + $0x58] sm:$0xff] %vm5673_vm7, %v5648_v47 }
 0xdbf   : > { %v5650_v34 = vpop.permute.xlu0 %5649 }
 0xdc0   : > { %5686 = vst.msk [vmem:[%s7484_s30 + $0x60] sm:$0xff] %vm5673_vm7, %v5650_v34 }
 0xdc1   : > { %v5652_v56 = vpop.permute.xlu1 %5651 }
 0xdc2   : > { %5687 = vst.msk [vmem:[%s7484_s30 + $0x68] sm:$0xff] %vm5673_vm7, %v5652_v56 }
 0xdc3   : > { %v5654_v45 = vpop.permute.xlu0 %5653 }
 0xdc4   : > { %5688 = vst.msk [vmem:[%s7484_s30 + $0x70] sm:$0xff] %vm5673_vm7, %v5654_v45 }
 0xdc5   : > { %v5656_v1 = vpop.permute.xlu1 %5655 }
 0xdc6   : > { %5689 = vst.msk [vmem:[%s7484_s30 + $0x78] sm:$0xff] %vm5673_vm7, %v5656_v1 }
 0xdc7 PF: > { %s18_s27 = sadd.s32 1, %s7001_s27  }
 0xdc8   : > { %p15_p4 = scmp.ge.s32.totalorder %s18_s27, 6  }
 0xdca   :  { %17 = sbr.rel (!%p15_p4) target bundleno = 1 (0x1), region = 103 }

</bundles_post_ra>
